<compile_context>
chip_gen: v6e
topology: v6e:2x2x1
jax: 0.10.0
libtpu: 0.0.40
codegen_flags: <defaults>
</compile_context>

<pallas_src>
import functools

import jax
import jax.numpy as jnp
from jax.experimental import pallas as pl
from jax.experimental.pallas import tpu as pltpu

LEAKY_SLOPE = 0.01   # PyTorch nn.LeakyReLU default
BN_EPS = 1e-5        # PyTorch nn.BatchNorm2d default
LATENT_EPS = 1e-8    # ShapePriorVAE.eps
LANE = 128           # TPU lane width; pad output channels to this


# ----------------------------- Pallas kernels ------------------------------

def _apply_act(x, act):
    if act == "identity":
        return x
    if act == "leakyrelu":
        return jnp.where(x >= 0, x, LEAKY_SLOPE * x)
    if act == "sigmoid":
        return jax.nn.sigmoid(x)
    raise ValueError(f"unknown act {act}")


def _mm_bias_act_kernel(p_ref, w_ref, b_ref, o_ref, *, act):
    # conv (as im2col matmul) + bias + activation, fully fused.
    acc = jnp.dot(p_ref[...], w_ref[...], preferred_element_type=jnp.float32)
    o_ref[...] = _apply_act(acc + b_ref[...], act)


def _mm_bn_act_kernel(p_ref, w_ref, g_ref, b_ref, o_ref, *, act, eps):
    # conv (as im2col matmul) + batch-norm (training-mode batch stats) + act.
    # The conv bias is omitted: adding a per-channel constant before batch-mean
    # subtraction is an exact no-op.
    acc = jnp.dot(p_ref[...], w_ref[...], preferred_element_type=jnp.float32)  # (M, CP)
    mean = jnp.mean(acc, axis=0, keepdims=True)
    var = jnp.mean(jnp.square(acc - mean), axis=0, keepdims=True)
    scale = g_ref[...] * jax.lax.rsqrt(var + eps)      # gamma/sqrt(var+eps) folded
    o_ref[...] = _apply_act((acc - mean) * scale + b_ref[...], act)


def _latent_fused_kernel(f_ref, w_ref, b_ref, eta_ref, z_ref, zm_ref, zls_ref,
                         *, eps, cp):
    # One matmul feeds both 1x1 convs (weights concatenated along lanes), then
    # sigmoid / logsigmoid / reparameterization in the epilogue.
    acc = jnp.dot(f_ref[...], w_ref[...], preferred_element_type=jnp.float32)
    acc = acc + b_ref[...]                              # (M, 2*cp)
    z_mean = jax.nn.sigmoid(acc[:, :cp])
    t = acc[:, cp:] + eps
    z_log_sigma = jnp.minimum(t, 0.0) - jnp.log1p(jnp.exp(-jnp.abs(t)))  # logsigmoid
    # snr == 0.0  =>  SNR = 1 ;  z = z_mean + exp(0.5 * z_log_sigma) * eta
    z_ref[...] = z_mean + jnp.exp(0.5 * z_log_sigma) * eta_ref[...]
    zm_ref[...] = z_mean
    zls_ref[...] = z_log_sigma


# ----------------------------- kernel wrappers ------------------------------

_CPARAMS = pltpu.CompilerParams(dimension_semantics=("arbitrary",))


def _pad_lanes(a, cp):
    pad = cp - a.shape[-1]
    if pad:
        a = jnp.pad(a, [(0, 0)] * (a.ndim - 1) + [(0, pad)])
    return a


def conv_mm_fused(patches, wmat, bias, gamma, beta, act, norm):
    """patches (M, K) @ wmat (K, Cout) with fused bias/BN + act; lane-dense out."""
    M, K = patches.shape
    Cout = wmat.shape[1]
    CP = max(LANE, ((Cout + LANE - 1) // LANE) * LANE)
    wp = _pad_lanes(wmat, CP)

    mk = pl.BlockSpec((M, K), lambda i: (0, 0))
    kn = pl.BlockSpec((K, CP), lambda i: (0, 0))
    vn = pl.BlockSpec((1, CP), lambda i: (0, 0))
    on = pl.BlockSpec((M, CP), lambda i: (0, 0))

    if norm:
        kern = functools.partial(_mm_bn_act_kernel, act=act, eps=BN_EPS)
        ins = (patches, wp,
               _pad_lanes(gamma.reshape(1, -1), CP),
               _pad_lanes(beta.reshape(1, -1), CP))
        in_specs = [mk, kn, vn, vn]
    else:
        kern = functools.partial(_mm_bias_act_kernel, act=act)
        ins = (patches, wp, _pad_lanes(bias.reshape(1, -1), CP))
        in_specs = [mk, kn, vn]

    out = pl.pallas_call(
        kern,
        grid=(1,),
        out_shape=jax.ShapeDtypeStruct((M, CP), jnp.float32),
        in_specs=in_specs,
        out_specs=on,
        compiler_params=_CPARAMS,
    )(*ins)
    return out[:, :Cout]


def latent_fused(flat, w_mu, b_mu, w_ls, b_ls, eta, dim_zc):
    M, K = flat.shape
    CP = LANE  # dim_zc << 128
    w = jnp.concatenate([_pad_lanes(w_mu, CP), _pad_lanes(w_ls, CP)], axis=1)  # (K, 2CP)
    b = jnp.concatenate([_pad_lanes(b_mu.reshape(1, -1), CP),
                         _pad_lanes(b_ls.reshape(1, -1), CP)], axis=1)         # (1, 2CP)

    mk = pl.BlockSpec((M, K), lambda i: (0, 0))
    kn = pl.BlockSpec((K, 2 * CP), lambda i: (0, 0))
    vn = pl.BlockSpec((1, 2 * CP), lambda i: (0, 0))
    mn = pl.BlockSpec((M, CP), lambda i: (0, 0))

    z, zm, zls = pl.pallas_call(
        functools.partial(_latent_fused_kernel, eps=LATENT_EPS, cp=CP),
        grid=(1,),
        out_shape=tuple(jax.ShapeDtypeStruct((M, CP), jnp.float32) for _ in range(3)),
        in_specs=[mk, kn, vn, mn],
        out_specs=(mn, mn, mn),
        compiler_params=_CPARAMS,
    )(flat, w, b, eta)
    return z[:, :dim_zc], zm[:, :dim_zc], zls[:, :dim_zc]


# ----------------------------- conv glue (JAX, NHWC) -------------------------

def _im2col_nhwc(x, k, stride, pad_lt, pad_rb):
    """x: NHWC -> patches (N*OH*OW, k*k*Cin), last-axis order (dy, dx, c)."""
    xp = jnp.pad(x, ((0, 0), (pad_lt, pad_rb), (pad_lt, pad_rb), (0, 0)))
    N, H, W, C = xp.shape
    OH = (H - k) // stride + 1
    OW = (W - k) // stride + 1
    slabs = []
    for dy in range(k):
        for dx in range(k):
            slabs.append(xp[:, dy: dy + stride * (OH - 1) + 1: stride,
                            dx: dx + stride * (OW - 1) + 1: stride, :])
    p = jnp.concatenate(slabs, axis=-1)            # (N, OH, OW, k*k*C)
    return p.reshape(N * OH * OW, k * k * C), (N, OH, OW)


def _dilate_nhwc(x, stride):
    if stride == 1:
        return x
    N, H, W, C = x.shape
    y = jnp.zeros((N, (H - 1) * stride + 1, (W - 1) * stride + 1, C), x.dtype)
    return y.at[:, ::stride, ::stride, :].set(x)


def _weight_to_mat(w_oikk):
    """(Cout, Cin, k, k) -> (k*k*Cin, Cout), matching im2col (dy, dx, c) order."""
    cout, cin, k, _ = w_oikk.shape
    return w_oikk.transpose(2, 3, 1, 0).reshape(k * k * cin, cout)


def conv_block(x, p, stride, padding, act, norm):
    k = p["w"].shape[-1]
    cout = p["w"].shape[0]
    patches, (N, OH, OW) = _im2col_nhwc(x, k, stride, padding, padding)
    y = conv_mm_fused(patches, _weight_to_mat(p["w"]), p["b"],
                      p.get("gamma"), p.get("beta"), act, norm)
    return y.reshape(N, OH, OW, cout)


def convt_block(x, p, stride, padding, output_padding, act, norm):
    # PyTorch ConvTranspose2d weight is (Cin, Cout, K, K); equivalent direct conv
    # over the stride-dilated input.
    k = p["w"].shape[-1]
    w_eff = jnp.flip(p["w"], (-2, -1)).transpose(1, 0, 2, 3)   # (Cout, Cin, k, k)
    cout = w_eff.shape[0]
    xd = _dilate_nhwc(x, stride)
    patches, (N, OH, OW) = _im2col_nhwc(xd, k, 1, k - 1 - padding,
                                        k - 1 - padding + output_padding)
    y = conv_mm_fused(patches, _weight_to_mat(w_eff), p["b"],
                      p.get("gamma"), p.get("beta"), act, norm)
    return y.reshape(N, OH, OW, cout)


# ----------------------------- model definition -----------------------------

class ParamGen:
    def __init__(self, key):
        self.key = key

    def next(self, shape, scale=0.1):
        self.key, sub = jax.random.split(self.key)
        return (scale * jax.random.normal(sub, shape)).astype(jnp.float32)


def make_conv_block_params(pg, cin, cout, k, norm):
    p = {"w": pg.next((cout, cin, k, k)), "b": pg.next((cout,))}
    if norm:
        p["gamma"] = jnp.ones((cout,), jnp.float32)
        p["beta"] = jnp.zeros((cout,), jnp.float32)
    return p


def make_convt_block_params(pg, cin, cout, k, norm):
    p = {"w": pg.next((cin, cout, k, k)), "b": pg.next((cout,))}
    if norm:
        p["gamma"] = jnp.ones((cout,), jnp.float32)
        p["beta"] = jnp.zeros((cout,), jnp.float32)
    return p


def init_params(key, cfg):
    pg = ParamGen(key)
    k = cfg["kernel_size"]
    ch = list(cfg["channels"])
    dim_zc = cfg["dim_z"] * cfg["dim_c"]

    def enc(cin):
        blocks, cprev = [], cin
        for c in ch:
            blocks.append(make_conv_block_params(pg, cprev, c, k, norm=True))
            cprev = c
        return blocks

    def dec(out_ch, add_final):
        rev = list(reversed(ch))
        ups = []
        for i in range(len(rev)):
            cin = rev[i]
            if i < len(rev) - 1:
                cout = rev[i + 1]
            else:
                cout = rev[i] if add_final else out_ch
            norm = add_final or (i < len(rev) - 1)
            ups.append(make_convt_block_params(pg, cin, cout, k, norm=norm))
        final = (make_conv_block_params(pg, rev[-1], out_ch, k, norm=False)
                 if add_final else None)
        return {"ups": ups, "final": final}

    return {
        "encode_down": enc(cfg["in_channels"]),
        "encode_up": dec(ch[0], add_final=False),
        "decode_down": enc(dim_zc),                       # add_appearance=False
        "decode_up": dec(cfg["out_ch"], add_final=True),
        "z_mu": {"w": pg.next((dim_zc, ch[0], 1, 1)), "b": pg.next((dim_zc,))},
        # TODO(synk): exact `weights_init` for z_log_sigma_conv unknown; using
        # a small deterministic normal weight and zero bias instead.
        "z_log_sigma": {"w": pg.next((dim_zc, ch[0], 1, 1)) * 0.1,
                        "b": jnp.zeros((dim_zc,), jnp.float32)},
    }


def encoder_fwd(x, blocks, strides, k):
    pad = (k - 1) // 2
    for p, s in zip(blocks, strides):
        x = conv_block(x, p, s, pad, act="leakyrelu", norm=True)
    return x


def decoder_fwd(x, dp, strides, k, act_final, add_final):
    pad = (k - 1) // 2
    ups = dp["ups"]
    n = len(ups)
    for i, (p, s) in enumerate(zip(ups, list(reversed(strides)))):
        last = i == n - 1
        if last and not add_final:
            x = convt_block(x, p, s, pad, s - 1, act=act_final, norm=False)
        else:
            x = convt_block(x, p, s, pad, s - 1, act="leakyrelu", norm=True)
    if add_final:
        x = conv_block(x, dp["final"], 1, pad, act=act_final, norm=False)
    return x


def shape_prior_vae_forward(params, x_nchw, eta_key, cfg):
    st, k = list(cfg["strides"]), cfg["kernel_size"]
    dim_zc = cfg["dim_z"] * cfg["dim_c"]

    # NCHW -> NHWC once; everything downstream is channels-last (lane-dense).
    x = x_nchw.transpose(0, 2, 3, 1)

    # z_enc = encode_up(encode_down(x))
    z_enc = encoder_fwd(x, params["encode_down"], st, k)
    z_enc = decoder_fwd(z_enc, params["encode_up"], st, k,
                        act_final="identity", add_final=False)

    # latent distribution: fused (z_mu | z_log_sigma) 1x1 convs + reparam.
    N, H, W, C = z_enc.shape
    flat = z_enc.reshape(N * H * W, C)                    # contiguous, no transpose
    w_mu = params["z_mu"]["w"].reshape(dim_zc, C).T
    w_ls = params["z_log_sigma"]["w"].reshape(dim_zc, C).T
    eta = jax.random.normal(eta_key, (N * H * W, LANE), jnp.float32)  # mean 0, std 1
    z_f, zm_f, zls_f = latent_fused(flat, w_mu, params["z_mu"]["b"],
                                    w_ls, params["z_log_sigma"]["b"], eta, dim_zc)

    def unflat(a):
        return a.reshape(N, H, W, dim_zc)

    z = unflat(z_f)
    z_dict_nhwc = {"z": z, "z_mean": unflat(zm_f), "z_log_sigma": unflat(zls_f)}

    # x_ = decode_up(decode_down(z))      (add_appearance=False)
    h = encoder_fwd(z, params["decode_down"], st, k)
    x_rec = decoder_fwd(h, params["decode_up"], st, k,
                        act_final="sigmoid", add_final=True)

    to_nchw = lambda a: a.transpose(0, 3, 1, 2)           # API boundary only
    return to_nchw(x_rec), {kk: to_nchw(v) for kk, v in z_dict_nhwc.items()}


# --------------------------------- main --------------------------------------

if __name__ == "__main__":
    cfg = dict(dimensions=2, in_channels=1, dim_z=4, dim_c=2,
               channels=(4, 8), out_ch=1, strides=(2, 2), kernel_size=5)

    key = jax.random.PRNGKey(0)
    pkey, xkey, ekey = jax.random.split(key, 3)
    params = init_params(pkey, cfg)
    x = jax.random.normal(xkey, (2, 1, 16, 16), jnp.float32)

    fwd = jax.jit(functools.partial(shape_prior_vae_forward, cfg=cfg))
    x_rec, z_dict = fwd(params, x, ekey)
    jax.block_until_ready((x_rec, z_dict))

    assert x_rec.shape == (2, 1, 16, 16), x_rec.shape
    assert z_dict["z"].shape == (2, cfg["dim_z"] * cfg["dim_c"], 16, 16)
    assert z_dict["z_mean"].shape == z_dict["z"].shape
    assert z_dict["z_log_sigma"].shape == z_dict["z"].shape
    assert bool(jnp.all(jnp.isfinite(x_rec)))
    print("KERNEL_OK")
</pallas_src>

<mosaic_0001>
module attributes {stable_mosaic.version = 11 : i64} {
  func.func @_mm_bn_act_kernel(%arg0: i32, %arg1: memref<128x25xf32, #tpu.memory_space<vmem>>, %arg2: memref<25x128xf32, #tpu.memory_space<vmem>>, %arg3: memref<1x128xf32, #tpu.memory_space<vmem>>, %arg4: memref<1x128xf32, #tpu.memory_space<vmem>>, %arg5: memref<128x128xf32, #tpu.memory_space<vmem>>) attributes {dimension_semantics = [#tpu.dimension_semantics<arbitrary>], iteration_bounds = array<i64: 1>, scalar_prefetch = 0 : i64, scratch_operands = 0 : i64, tpu.core_type = #tpu.core_type<tc>, window_params = [{pipeline_mode = #tpu.pipeline_mode<synchronous>, transform_indices = @transform_0, window_bounds = array<i64: 128, 25>}, {pipeline_mode = #tpu.pipeline_mode<synchronous>, transform_indices = @transform_1, window_bounds = array<i64: 25, 128>}, {pipeline_mode = #tpu.pipeline_mode<synchronous>, transform_indices = @transform_2, window_bounds = array<i64: 1, 128>}, {pipeline_mode = #tpu.pipeline_mode<synchronous>, transform_indices = @transform_3, window_bounds = array<i64: 1, 128>}, {pipeline_mode = #tpu.pipeline_mode<synchronous>, transform_indices = @transform_4, window_bounds = array<i64: 128, 128>}]} {
    %c0 = arith.constant 0 : index
    %c0_0 = arith.constant 0 : index
    %0 = vector.load %arg1[%c0, %c0_0] : memref<128x25xf32, #tpu.memory_space<vmem>>, vector<128x25xf32>
    %c0_1 = arith.constant 0 : index
    %c0_2 = arith.constant 0 : index
    %1 = vector.load %arg2[%c0_1, %c0_2] : memref<25x128xf32, #tpu.memory_space<vmem>>, vector<25x128xf32>
    %cst = arith.constant dense<0.000000e+00> : vector<128x128xf32>
    %2 = tpu.matmul %0, %1, %cst {dimension_numbers = #tpu.dot_dimension_numbers<[1], [0], [0], [1], [0, 0, 1, 1], [], []>} : vector<128x25xf32>, vector<25x128xf32>, vector<128x128xf32> -> vector<128x128xf32>
    %cst_3 = arith.constant dense<0.000000e+00> : vector<128xf32>
    %3 = vector.multi_reduction <add>, %2, %cst_3 [0] : vector<128x128xf32> to vector<128xf32>
    %4 = vector.shape_cast %3 : vector<128xf32> to vector<1x128xf32>
    %cst_4 = arith.constant 1.280000e+02 : f32
    %5 = vector.broadcast %cst_4 : f32 to vector<1x128xf32>
    %6 = arith.divf %4, %5 : vector<1x128xf32>
    %7 = vector.broadcast %6 : vector<1x128xf32> to vector<128x128xf32>
    %8 = arith.subf %2, %7 : vector<128x128xf32>
    %9 = arith.mulf %8, %8 : vector<128x128xf32>
    %cst_5 = arith.constant dense<0.000000e+00> : vector<128xf32>
    %10 = vector.multi_reduction <add>, %9, %cst_5 [0] : vector<128x128xf32> to vector<128xf32>
    %11 = vector.shape_cast %10 : vector<128xf32> to vector<1x128xf32>
    %cst_6 = arith.constant 1.280000e+02 : f32
    %12 = vector.broadcast %cst_6 : f32 to vector<1x128xf32>
    %13 = arith.divf %11, %12 : vector<1x128xf32>
    %c0_7 = arith.constant 0 : index
    %c0_8 = arith.constant 0 : index
    %14 = vector.load %arg3[%c0_7, %c0_8] : memref<1x128xf32, #tpu.memory_space<vmem>>, vector<1x128xf32>
    %cst_9 = arith.constant 9.99999974E-6 : f32
    %15 = vector.broadcast %cst_9 : f32 to vector<1x128xf32>
    %16 = arith.addf %13, %15 : vector<1x128xf32>
    %17 = math.rsqrt %16 : vector<1x128xf32>
    %18 = arith.mulf %14, %17 : vector<1x128xf32>
    %19 = vector.broadcast %6 : vector<1x128xf32> to vector<128x128xf32>
    %20 = arith.subf %2, %19 : vector<128x128xf32>
    %21 = vector.broadcast %18 : vector<1x128xf32> to vector<128x128xf32>
    %22 = arith.mulf %20, %21 : vector<128x128xf32>
    %c0_10 = arith.constant 0 : index
    %c0_11 = arith.constant 0 : index
    %23 = vector.load %arg4[%c0_10, %c0_11] : memref<1x128xf32, #tpu.memory_space<vmem>>, vector<1x128xf32>
    %24 = vector.broadcast %23 : vector<1x128xf32> to vector<128x128xf32>
    %25 = arith.addf %22, %24 : vector<128x128xf32>
    %cst_12 = arith.constant 0.000000e+00 : f32
    %26 = vector.broadcast %cst_12 : f32 to vector<128x128xf32>
    %27 = arith.cmpf oge, %25, %26 : vector<128x128xf32>
    %cst_13 = arith.constant 0.00999999977 : f32
    %28 = vector.broadcast %cst_13 : f32 to vector<128x128xf32>
    %29 = arith.mulf %28, %25 : vector<128x128xf32>
    %30 = arith.select %27, %25, %29 : vector<128x128xi1>, vector<128x128xf32>
    %c0_14 = arith.constant 0 : index
    %c0_15 = arith.constant 0 : index
    %31 = vector.load %arg5[%c0_14, %c0_15] : memref<128x128xf32, #tpu.memory_space<vmem>>, vector<128x128xf32>
    tpu.vector_store %arg5[%c0_14, %c0_15], %30 {strides = array<i32>} : memref<128x128xf32, #tpu.memory_space<vmem>>, vector<128x128xf32>,
    return
  }
  func.func @transform_0(%arg0: i32) -> (i32, i32) {
    %c0_i32 = arith.constant 0 : i32
    %c0_i32_0 = arith.constant 0 : i32
    %c0_i32_1 = arith.constant 0 : i32
    return %c0_i32, %c0_i32_0 : i32, i32
  }
  func.func @transform_1(%arg0: i32) -> (i32, i32) {
    %c0_i32 = arith.constant 0 : i32
    %c0_i32_0 = arith.constant 0 : i32
    %c0_i32_1 = arith.constant 0 : i32
    return %c0_i32, %c0_i32_0 : i32, i32
  }
  func.func @transform_2(%arg0: i32) -> (i32, i32) {
    %c0_i32 = arith.constant 0 : i32
    %c0_i32_0 = arith.constant 0 : i32
    %c0_i32_1 = arith.constant 0 : i32
    return %c0_i32, %c0_i32_0 : i32, i32
  }
  func.func @transform_3(%arg0: i32) -> (i32, i32) {
    %c0_i32 = arith.constant 0 : i32
    %c0_i32_0 = arith.constant 0 : i32
    %c0_i32_1 = arith.constant 0 : i32
    return %c0_i32, %c0_i32_0 : i32, i32
  }
  func.func @transform_4(%arg0: i32) -> (i32, i32) {
    %c0_i32 = arith.constant 0 : i32
    %c0_i32_0 = arith.constant 0 : i32
    %c0_i32_1 = arith.constant 0 : i32
    return %c0_i32, %c0_i32_0 : i32, i32
  }
}

module attributes {stable_mosaic.version = 11 : i64} {
  func.func @_mm_bn_act_kernel(%arg0: i32, %arg1: memref<32x100xf32, #tpu.memory_space<vmem>>, %arg2: memref<100x128xf32, #tpu.memory_space<vmem>>, %arg3: memref<1x128xf32, #tpu.memory_space<vmem>>, %arg4: memref<1x128xf32, #tpu.memory_space<vmem>>, %arg5: memref<32x128xf32, #tpu.memory_space<vmem>>) attributes {dimension_semantics = [#tpu.dimension_semantics<arbitrary>], iteration_bounds = array<i64: 1>, scalar_prefetch = 0 : i64, scratch_operands = 0 : i64, tpu.core_type = #tpu.core_type<tc>, window_params = [{pipeline_mode = #tpu.pipeline_mode<synchronous>, transform_indices = @transform_0, window_bounds = array<i64: 32, 100>}, {pipeline_mode = #tpu.pipeline_mode<synchronous>, transform_indices = @transform_1, window_bounds = array<i64: 100, 128>}, {pipeline_mode = #tpu.pipeline_mode<synchronous>, transform_indices = @transform_2, window_bounds = array<i64: 1, 128>}, {pipeline_mode = #tpu.pipeline_mode<synchronous>, transform_indices = @transform_3, window_bounds = array<i64: 1, 128>}, {pipeline_mode = #tpu.pipeline_mode<synchronous>, transform_indices = @transform_4, window_bounds = array<i64: 32, 128>}]} {
    %c0 = arith.constant 0 : index
    %c0_0 = arith.constant 0 : index
    %0 = vector.load %arg1[%c0, %c0_0] : memref<32x100xf32, #tpu.memory_space<vmem>>, vector<32x100xf32>
    %c0_1 = arith.constant 0 : index
    %c0_2 = arith.constant 0 : index
    %1 = vector.load %arg2[%c0_1, %c0_2] : memref<100x128xf32, #tpu.memory_space<vmem>>, vector<100x128xf32>
    %cst = arith.constant dense<0.000000e+00> : vector<32x128xf32>
    %2 = tpu.matmul %0, %1, %cst {dimension_numbers = #tpu.dot_dimension_numbers<[1], [0], [0], [1], [0, 0, 1, 1], [], []>} : vector<32x100xf32>, vector<100x128xf32>, vector<32x128xf32> -> vector<32x128xf32>
    %cst_3 = arith.constant dense<0.000000e+00> : vector<128xf32>
    %3 = vector.multi_reduction <add>, %2, %cst_3 [0] : vector<32x128xf32> to vector<128xf32>
    %4 = vector.shape_cast %3 : vector<128xf32> to vector<1x128xf32>
    %cst_4 = arith.constant 3.200000e+01 : f32
    %5 = vector.broadcast %cst_4 : f32 to vector<1x128xf32>
    %6 = arith.divf %4, %5 : vector<1x128xf32>
    %7 = vector.broadcast %6 : vector<1x128xf32> to vector<32x128xf32>
    %8 = arith.subf %2, %7 : vector<32x128xf32>
    %9 = arith.mulf %8, %8 : vector<32x128xf32>
    %cst_5 = arith.constant dense<0.000000e+00> : vector<128xf32>
    %10 = vector.multi_reduction <add>, %9, %cst_5 [0] : vector<32x128xf32> to vector<128xf32>
    %11 = vector.shape_cast %10 : vector<128xf32> to vector<1x128xf32>
    %cst_6 = arith.constant 3.200000e+01 : f32
    %12 = vector.broadcast %cst_6 : f32 to vector<1x128xf32>
    %13 = arith.divf %11, %12 : vector<1x128xf32>
    %c0_7 = arith.constant 0 : index
    %c0_8 = arith.constant 0 : index
    %14 = vector.load %arg3[%c0_7, %c0_8] : memref<1x128xf32, #tpu.memory_space<vmem>>, vector<1x128xf32>
    %cst_9 = arith.constant 9.99999974E-6 : f32
    %15 = vector.broadcast %cst_9 : f32 to vector<1x128xf32>
    %16 = arith.addf %13, %15 : vector<1x128xf32>
    %17 = math.rsqrt %16 : vector<1x128xf32>
    %18 = arith.mulf %14, %17 : vector<1x128xf32>
    %19 = vector.broadcast %6 : vector<1x128xf32> to vector<32x128xf32>
    %20 = arith.subf %2, %19 : vector<32x128xf32>
    %21 = vector.broadcast %18 : vector<1x128xf32> to vector<32x128xf32>
    %22 = arith.mulf %20, %21 : vector<32x128xf32>
    %c0_10 = arith.constant 0 : index
    %c0_11 = arith.constant 0 : index
    %23 = vector.load %arg4[%c0_10, %c0_11] : memref<1x128xf32, #tpu.memory_space<vmem>>, vector<1x128xf32>
    %24 = vector.broadcast %23 : vector<1x128xf32> to vector<32x128xf32>
    %25 = arith.addf %22, %24 : vector<32x128xf32>
    %cst_12 = arith.constant 0.000000e+00 : f32
    %26 = vector.broadcast %cst_12 : f32 to vector<32x128xf32>
    %27 = arith.cmpf oge, %25, %26 : vector<32x128xf32>
    %cst_13 = arith.constant 0.00999999977 : f32
    %28 = vector.broadcast %cst_13 : f32 to vector<32x128xf32>
    %29 = arith.mulf %28, %25 : vector<32x128xf32>
    %30 = arith.select %27, %25, %29 : vector<32x128xi1>, vector<32x128xf32>
    %c0_14 = arith.constant 0 : index
    %c0_15 = arith.constant 0 : index
    %31 = vector.load %arg5[%c0_14, %c0_15] : memref<32x128xf32, #tpu.memory_space<vmem>>, vector<32x128xf32>
    tpu.vector_store %arg5[%c0_14, %c0_15], %30 {strides = array<i32>} : memref<32x128xf32, #tpu.memory_space<vmem>>, vector<32x128xf32>,
    return
  }
  func.func @transform_0(%arg0: i32) -> (i32, i32) {
    %c0_i32 = arith.constant 0 : i32
    %c0_i32_0 = arith.constant 0 : i32
    %c0_i32_1 = arith.constant 0 : i32
    return %c0_i32, %c0_i32_0 : i32, i32
  }
  func.func @transform_1(%arg0: i32) -> (i32, i32) {
    %c0_i32 = arith.constant 0 : i32
    %c0_i32_0 = arith.constant 0 : i32
    %c0_i32_1 = arith.constant 0 : i32
    return %c0_i32, %c0_i32_0 : i32, i32
  }
  func.func @transform_2(%arg0: i32) -> (i32, i32) {
    %c0_i32 = arith.constant 0 : i32
    %c0_i32_0 = arith.constant 0 : i32
    %c0_i32_1 = arith.constant 0 : i32
    return %c0_i32, %c0_i32_0 : i32, i32
  }
  func.func @transform_3(%arg0: i32) -> (i32, i32) {
    %c0_i32 = arith.constant 0 : i32
    %c0_i32_0 = arith.constant 0 : i32
    %c0_i32_1 = arith.constant 0 : i32
    return %c0_i32, %c0_i32_0 : i32, i32
  }
  func.func @transform_4(%arg0: i32) -> (i32, i32) {
    %c0_i32 = arith.constant 0 : i32
    %c0_i32_0 = arith.constant 0 : i32
    %c0_i32_1 = arith.constant 0 : i32
    return %c0_i32, %c0_i32_0 : i32, i32
  }
}

module attributes {stable_mosaic.version = 11 : i64} {
  func.func @_mm_bn_act_kernel(%arg0: i32, %arg1: memref<128x200xf32, #tpu.memory_space<vmem>>, %arg2: memref<200x128xf32, #tpu.memory_space<vmem>>, %arg3: memref<1x128xf32, #tpu.memory_space<vmem>>, %arg4: memref<1x128xf32, #tpu.memory_space<vmem>>, %arg5: memref<128x128xf32, #tpu.memory_space<vmem>>) attributes {dimension_semantics = [#tpu.dimension_semantics<arbitrary>], iteration_bounds = array<i64: 1>, scalar_prefetch = 0 : i64, scratch_operands = 0 : i64, tpu.core_type = #tpu.core_type<tc>, window_params = [{pipeline_mode = #tpu.pipeline_mode<synchronous>, transform_indices = @transform_0, window_bounds = array<i64: 128, 200>}, {pipeline_mode = #tpu.pipeline_mode<synchronous>, transform_indices = @transform_1, window_bounds = array<i64: 200, 128>}, {pipeline_mode = #tpu.pipeline_mode<synchronous>, transform_indices = @transform_2, window_bounds = array<i64: 1, 128>}, {pipeline_mode = #tpu.pipeline_mode<synchronous>, transform_indices = @transform_3, window_bounds = array<i64: 1, 128>}, {pipeline_mode = #tpu.pipeline_mode<synchronous>, transform_indices = @transform_4, window_bounds = array<i64: 128, 128>}]} {
    %c0 = arith.constant 0 : index
    %c0_0 = arith.constant 0 : index
    %0 = vector.load %arg1[%c0, %c0_0] : memref<128x200xf32, #tpu.memory_space<vmem>>, vector<128x200xf32>
    %c0_1 = arith.constant 0 : index
    %c0_2 = arith.constant 0 : index
    %1 = vector.load %arg2[%c0_1, %c0_2] : memref<200x128xf32, #tpu.memory_space<vmem>>, vector<200x128xf32>
    %cst = arith.constant dense<0.000000e+00> : vector<128x128xf32>
    %2 = tpu.matmul %0, %1, %cst {dimension_numbers = #tpu.dot_dimension_numbers<[1], [0], [0], [1], [0, 0, 1, 1], [], []>} : vector<128x200xf32>, vector<200x128xf32>, vector<128x128xf32> -> vector<128x128xf32>
    %cst_3 = arith.constant dense<0.000000e+00> : vector<128xf32>
    %3 = vector.multi_reduction <add>, %2, %cst_3 [0] : vector<128x128xf32> to vector<128xf32>
    %4 = vector.shape_cast %3 : vector<128xf32> to vector<1x128xf32>
    %cst_4 = arith.constant 1.280000e+02 : f32
    %5 = vector.broadcast %cst_4 : f32 to vector<1x128xf32>
    %6 = arith.divf %4, %5 : vector<1x128xf32>
    %7 = vector.broadcast %6 : vector<1x128xf32> to vector<128x128xf32>
    %8 = arith.subf %2, %7 : vector<128x128xf32>
    %9 = arith.mulf %8, %8 : vector<128x128xf32>
    %cst_5 = arith.constant dense<0.000000e+00> : vector<128xf32>
    %10 = vector.multi_reduction <add>, %9, %cst_5 [0] : vector<128x128xf32> to vector<128xf32>
    %11 = vector.shape_cast %10 : vector<128xf32> to vector<1x128xf32>
    %cst_6 = arith.constant 1.280000e+02 : f32
    %12 = vector.broadcast %cst_6 : f32 to vector<1x128xf32>
    %13 = arith.divf %11, %12 : vector<1x128xf32>
    %c0_7 = arith.constant 0 : index
    %c0_8 = arith.constant 0 : index
    %14 = vector.load %arg3[%c0_7, %c0_8] : memref<1x128xf32, #tpu.memory_space<vmem>>, vector<1x128xf32>
    %cst_9 = arith.constant 9.99999974E-6 : f32
    %15 = vector.broadcast %cst_9 : f32 to vector<1x128xf32>
    %16 = arith.addf %13, %15 : vector<1x128xf32>
    %17 = math.rsqrt %16 : vector<1x128xf32>
    %18 = arith.mulf %14, %17 : vector<1x128xf32>
    %19 = vector.broadcast %6 : vector<1x128xf32> to vector<128x128xf32>
    %20 = arith.subf %2, %19 : vector<128x128xf32>
    %21 = vector.broadcast %18 : vector<1x128xf32> to vector<128x128xf32>
    %22 = arith.mulf %20, %21 : vector<128x128xf32>
    %c0_10 = arith.constant 0 : index
    %c0_11 = arith.constant 0 : index
    %23 = vector.load %arg4[%c0_10, %c0_11] : memref<1x128xf32, #tpu.memory_space<vmem>>, vector<1x128xf32>
    %24 = vector.broadcast %23 : vector<1x128xf32> to vector<128x128xf32>
    %25 = arith.addf %22, %24 : vector<128x128xf32>
    %cst_12 = arith.constant 0.000000e+00 : f32
    %26 = vector.broadcast %cst_12 : f32 to vector<128x128xf32>
    %27 = arith.cmpf oge, %25, %26 : vector<128x128xf32>
    %cst_13 = arith.constant 0.00999999977 : f32
    %28 = vector.broadcast %cst_13 : f32 to vector<128x128xf32>
    %29 = arith.mulf %28, %25 : vector<128x128xf32>
    %30 = arith.select %27, %25, %29 : vector<128x128xi1>, vector<128x128xf32>
    %c0_14 = arith.constant 0 : index
    %c0_15 = arith.constant 0 : index
    %31 = vector.load %arg5[%c0_14, %c0_15] : memref<128x128xf32, #tpu.memory_space<vmem>>, vector<128x128xf32>
    tpu.vector_store %arg5[%c0_14, %c0_15], %30 {strides = array<i32>} : memref<128x128xf32, #tpu.memory_space<vmem>>, vector<128x128xf32>,
    return
  }
  func.func @transform_0(%arg0: i32) -> (i32, i32) {
    %c0_i32 = arith.constant 0 : i32
    %c0_i32_0 = arith.constant 0 : i32
    %c0_i32_1 = arith.constant 0 : i32
    return %c0_i32, %c0_i32_0 : i32, i32
  }
  func.func @transform_1(%arg0: i32) -> (i32, i32) {
    %c0_i32 = arith.constant 0 : i32
    %c0_i32_0 = arith.constant 0 : i32
    %c0_i32_1 = arith.constant 0 : i32
    return %c0_i32, %c0_i32_0 : i32, i32
  }
  func.func @transform_2(%arg0: i32) -> (i32, i32) {
    %c0_i32 = arith.constant 0 : i32
    %c0_i32_0 = arith.constant 0 : i32
    %c0_i32_1 = arith.constant 0 : i32
    return %c0_i32, %c0_i32_0 : i32, i32
  }
  func.func @transform_3(%arg0: i32) -> (i32, i32) {
    %c0_i32 = arith.constant 0 : i32
    %c0_i32_0 = arith.constant 0 : i32
    %c0_i32_1 = arith.constant 0 : i32
    return %c0_i32, %c0_i32_0 : i32, i32
  }
  func.func @transform_4(%arg0: i32) -> (i32, i32) {
    %c0_i32 = arith.constant 0 : i32
    %c0_i32_0 = arith.constant 0 : i32
    %c0_i32_1 = arith.constant 0 : i32
    return %c0_i32, %c0_i32_0 : i32, i32
  }
}

module attributes {stable_mosaic.version = 11 : i64} {
  func.func @_mm_bias_act_kernel(%arg0: i32, %arg1: memref<512x100xf32, #tpu.memory_space<vmem>>, %arg2: memref<100x128xf32, #tpu.memory_space<vmem>>, %arg3: memref<1x128xf32, #tpu.memory_space<vmem>>, %arg4: memref<512x128xf32, #tpu.memory_space<vmem>>) attributes {dimension_semantics = [#tpu.dimension_semantics<arbitrary>], iteration_bounds = array<i64: 1>, scalar_prefetch = 0 : i64, scratch_operands = 0 : i64, tpu.core_type = #tpu.core_type<tc>, window_params = [{pipeline_mode = #tpu.pipeline_mode<synchronous>, transform_indices = @transform_0, window_bounds = array<i64: 512, 100>}, {pipeline_mode = #tpu.pipeline_mode<synchronous>, transform_indices = @transform_1, window_bounds = array<i64: 100, 128>}, {pipeline_mode = #tpu.pipeline_mode<synchronous>, transform_indices = @transform_2, window_bounds = array<i64: 1, 128>}, {pipeline_mode = #tpu.pipeline_mode<synchronous>, transform_indices = @transform_3, window_bounds = array<i64: 512, 128>}]} {
    %c0 = arith.constant 0 : index
    %c0_0 = arith.constant 0 : index
    %0 = vector.load %arg1[%c0, %c0_0] : memref<512x100xf32, #tpu.memory_space<vmem>>, vector<512x100xf32>
    %c0_1 = arith.constant 0 : index
    %c0_2 = arith.constant 0 : index
    %1 = vector.load %arg2[%c0_1, %c0_2] : memref<100x128xf32, #tpu.memory_space<vmem>>, vector<100x128xf32>
    %cst = arith.constant dense<0.000000e+00> : vector<512x128xf32>
    %2 = tpu.matmul %0, %1, %cst {dimension_numbers = #tpu.dot_dimension_numbers<[1], [0], [0], [1], [0, 0, 1, 1], [], []>} : vector<512x100xf32>, vector<100x128xf32>, vector<512x128xf32> -> vector<512x128xf32>
    %c0_3 = arith.constant 0 : index
    %c0_4 = arith.constant 0 : index
    %3 = vector.load %arg3[%c0_3, %c0_4] : memref<1x128xf32, #tpu.memory_space<vmem>>, vector<1x128xf32>
    %4 = vector.broadcast %3 : vector<1x128xf32> to vector<512x128xf32>
    %5 = arith.addf %2, %4 : vector<512x128xf32>
    %c0_5 = arith.constant 0 : index
    %c0_6 = arith.constant 0 : index
    %6 = vector.load %arg4[%c0_5, %c0_6] : memref<512x128xf32, #tpu.memory_space<vmem>>, vector<512x128xf32>
    tpu.vector_store %arg4[%c0_5, %c0_6], %5 {strides = array<i32>} : memref<512x128xf32, #tpu.memory_space<vmem>>, vector<512x128xf32>,
    return
  }
  func.func @transform_0(%arg0: i32) -> (i32, i32) {
    %c0_i32 = arith.constant 0 : i32
    %c0_i32_0 = arith.constant 0 : i32
    %c0_i32_1 = arith.constant 0 : i32
    return %c0_i32, %c0_i32_0 : i32, i32
  }
  func.func @transform_1(%arg0: i32) -> (i32, i32) {
    %c0_i32 = arith.constant 0 : i32
    %c0_i32_0 = arith.constant 0 : i32
    %c0_i32_1 = arith.constant 0 : i32
    return %c0_i32, %c0_i32_0 : i32, i32
  }
  func.func @transform_2(%arg0: i32) -> (i32, i32) {
    %c0_i32 = arith.constant 0 : i32
    %c0_i32_0 = arith.constant 0 : i32
    %c0_i32_1 = arith.constant 0 : i32
    return %c0_i32, %c0_i32_0 : i32, i32
  }
  func.func @transform_3(%arg0: i32) -> (i32, i32) {
    %c0_i32 = arith.constant 0 : i32
    %c0_i32_0 = arith.constant 0 : i32
    %c0_i32_1 = arith.constant 0 : i32
    return %c0_i32, %c0_i32_0 : i32, i32
  }
}

module attributes {stable_mosaic.version = 11 : i64} {
  func.func @_latent_fused_kernel(%arg0: i32, %arg1: memref<512x4xf32, #tpu.memory_space<vmem>>, %arg2: memref<4x256xf32, #tpu.memory_space<vmem>>, %arg3: memref<1x256xf32, #tpu.memory_space<vmem>>, %arg4: memref<512x128xf32, #tpu.memory_space<vmem>>, %arg5: memref<512x128xf32, #tpu.memory_space<vmem>>, %arg6: memref<512x128xf32, #tpu.memory_space<vmem>>, %arg7: memref<512x128xf32, #tpu.memory_space<vmem>>) attributes {dimension_semantics = [#tpu.dimension_semantics<arbitrary>], iteration_bounds = array<i64: 1>, scalar_prefetch = 0 : i64, scratch_operands = 0 : i64, tpu.core_type = #tpu.core_type<tc>, window_params = [{pipeline_mode = #tpu.pipeline_mode<synchronous>, transform_indices = @transform_0, window_bounds = array<i64: 512, 4>}, {pipeline_mode = #tpu.pipeline_mode<synchronous>, transform_indices = @transform_1, window_bounds = array<i64: 4, 256>}, {pipeline_mode = #tpu.pipeline_mode<synchronous>, transform_indices = @transform_2, window_bounds = array<i64: 1, 256>}, {pipeline_mode = #tpu.pipeline_mode<synchronous>, transform_indices = @transform_3, window_bounds = array<i64: 512, 128>}, {pipeline_mode = #tpu.pipeline_mode<synchronous>, transform_indices = @transform_4, window_bounds = array<i64: 512, 128>}, {pipeline_mode = #tpu.pipeline_mode<synchronous>, transform_indices = @transform_5, window_bounds = array<i64: 512, 128>}, {pipeline_mode = #tpu.pipeline_mode<synchronous>, transform_indices = @transform_6, window_bounds = array<i64: 512, 128>}]} {
    %c0 = arith.constant 0 : index
    %c0_0 = arith.constant 0 : index
    %0 = vector.load %arg1[%c0, %c0_0] : memref<512x4xf32, #tpu.memory_space<vmem>>, vector<512x4xf32>
    %c0_1 = arith.constant 0 : index
    %c0_2 = arith.constant 0 : index
    %1 = vector.load %arg2[%c0_1, %c0_2] : memref<4x256xf32, #tpu.memory_space<vmem>>, vector<4x256xf32>
    %cst = arith.constant dense<0.000000e+00> : vector<512x256xf32>
    %2 = tpu.matmul %0, %1, %cst {dimension_numbers = #tpu.dot_dimension_numbers<[1], [0], [0], [1], [0, 0, 1, 1], [], []>} : vector<512x4xf32>, vector<4x256xf32>, vector<512x256xf32> -> vector<512x256xf32>
    %c0_3 = arith.constant 0 : index
    %c0_4 = arith.constant 0 : index
    %3 = vector.load %arg3[%c0_3, %c0_4] : memref<1x256xf32, #tpu.memory_space<vmem>>, vector<1x256xf32>
    %4 = vector.broadcast %3 : vector<1x256xf32> to vector<512x256xf32>
    %5 = arith.addf %2, %4 : vector<512x256xf32>
    %6 = vector.extract_strided_slice %5 {offsets = [0, 0], sizes = [512, 128], strides = [1, 1]} : vector<512x256xf32> to vector<512x128xf32>
    %7 = arith.negf %6 : vector<512x128xf32>
    %8 = math.exp %7 : vector<512x128xf32>
    %cst_5 = arith.constant 1.000000e+00 : f32
    %9 = vector.broadcast %cst_5 : f32 to vector<512x128xf32>
    %10 = arith.addf %9, %8 : vector<512x128xf32>
    %11 = arith.divf %9, %10 : vector<512x128xf32>
    %12 = vector.extract_strided_slice %5 {offsets = [0, 128], sizes = [512, 128], strides = [1, 1]} : vector<512x256xf32> to vector<512x128xf32>
    %cst_6 = arith.constant 9.99999993E-9 : f32
    %13 = vector.broadcast %cst_6 : f32 to vector<512x128xf32>
    %14 = arith.addf %12, %13 : vector<512x128xf32>
    %cst_7 = arith.constant 0.000000e+00 : f32
    %15 = vector.broadcast %cst_7 : f32 to vector<512x128xf32>
    %16 = arith.minimumf %14, %15 : vector<512x128xf32>
    %17 = math.absf %14 : vector<512x128xf32>
    %cst_8 = arith.constant 0.000000e+00 : f32
    %18 = vector.broadcast %cst_8 : f32 to vector<512x128xf32>
    %19 = arith.subf %18, %17 : vector<512x128xf32>
    %20 = math.exp %19 : vector<512x128xf32>
    %21 = math.log1p %20 : vector<512x128xf32>
    %22 = arith.subf %16, %21 : vector<512x128xf32>
    %cst_9 = arith.constant 5.000000e-01 : f32
    %23 = vector.broadcast %cst_9 : f32 to vector<512x128xf32>
    %24 = arith.mulf %23, %22 : vector<512x128xf32>
    %25 = math.exp %24 : vector<512x128xf32>
    %c0_10 = arith.constant 0 : index
    %c0_11 = arith.constant 0 : index
    %26 = vector.load %arg4[%c0_10, %c0_11] : memref<512x128xf32, #tpu.memory_space<vmem>>, vector<512x128xf32>
    %27 = arith.mulf %25, %26 : vector<512x128xf32>
    %28 = arith.addf %11, %27 : vector<512x128xf32>
    %c0_12 = arith.constant 0 : index
    %c0_13 = arith.constant 0 : index
    %29 = vector.load %arg5[%c0_12, %c0_13] : memref<512x128xf32, #tpu.memory_space<vmem>>, vector<512x128xf32>
    tpu.vector_store %arg5[%c0_12, %c0_13], %28 {strides = array<i32>} : memref<512x128xf32, #tpu.memory_space<vmem>>, vector<512x128xf32>,
    %c0_14 = arith.constant 0 : index
    %c0_15 = arith.constant 0 : index
    %30 = vector.load %arg6[%c0_14, %c0_15] : memref<512x128xf32, #tpu.memory_space<vmem>>, vector<512x128xf32>
    tpu.vector_store %arg6[%c0_14, %c0_15], %11 {strides = array<i32>} : memref<512x128xf32, #tpu.memory_space<vmem>>, vector<512x128xf32>,
    %c0_16 = arith.constant 0 : index
    %c0_17 = arith.constant 0 : index
    %31 = vector.load %arg7[%c0_16, %c0_17] : memref<512x128xf32, #tpu.memory_space<vmem>>, vector<512x128xf32>
    tpu.vector_store %arg7[%c0_16, %c0_17], %22 {strides = array<i32>} : memref<512x128xf32, #tpu.memory_space<vmem>>, vector<512x128xf32>,
    return
  }
  func.func @transform_0(%arg0: i32) -> (i32, i32) {
    %c0_i32 = arith.constant 0 : i32
    %c0_i32_0 = arith.constant 0 : i32
    %c0_i32_1 = arith.constant 0 : i32
    return %c0_i32, %c0_i32_0 : i32, i32
  }
  func.func @transform_1(%arg0: i32) -> (i32, i32) {
    %c0_i32 = arith.constant 0 : i32
    %c0_i32_0 = arith.constant 0 : i32
    %c0_i32_1 = arith.constant 0 : i32
    return %c0_i32, %c0_i32_0 : i32, i32
  }
  func.func @transform_2(%arg0: i32) -> (i32, i32) {
    %c0_i32 = arith.constant 0 : i32
    %c0_i32_0 = arith.constant 0 : i32
    %c0_i32_1 = arith.constant 0 : i32
    return %c0_i32, %c0_i32_0 : i32, i32
  }
  func.func @transform_3(%arg0: i32) -> (i32, i32) {
    %c0_i32 = arith.constant 0 : i32
    %c0_i32_0 = arith.constant 0 : i32
    %c0_i32_1 = arith.constant 0 : i32
    return %c0_i32, %c0_i32_0 : i32, i32
  }
  func.func @transform_4(%arg0: i32) -> (i32, i32) {
    %c0_i32 = arith.constant 0 : i32
    %c0_i32_0 = arith.constant 0 : i32
    %c0_i32_1 = arith.constant 0 : i32
    return %c0_i32, %c0_i32_0 : i32, i32
  }
  func.func @transform_5(%arg0: i32) -> (i32, i32) {
    %c0_i32 = arith.constant 0 : i32
    %c0_i32_0 = arith.constant 0 : i32
    %c0_i32_1 = arith.constant 0 : i32
    return %c0_i32, %c0_i32_0 : i32, i32
  }
  func.func @transform_6(%arg0: i32) -> (i32, i32) {
    %c0_i32 = arith.constant 0 : i32
    %c0_i32_0 = arith.constant 0 : i32
    %c0_i32_1 = arith.constant 0 : i32
    return %c0_i32, %c0_i32_0 : i32, i32
  }
}

module attributes {stable_mosaic.version = 11 : i64} {
  func.func @_mm_bn_act_kernel(%arg0: i32, %arg1: memref<512x100xf32, #tpu.memory_space<vmem>>, %arg2: memref<100x128xf32, #tpu.memory_space<vmem>>, %arg3: memref<1x128xf32, #tpu.memory_space<vmem>>, %arg4: memref<1x128xf32, #tpu.memory_space<vmem>>, %arg5: memref<512x128xf32, #tpu.memory_space<vmem>>) attributes {dimension_semantics = [#tpu.dimension_semantics<arbitrary>], iteration_bounds = array<i64: 1>, scalar_prefetch = 0 : i64, scratch_operands = 0 : i64, tpu.core_type = #tpu.core_type<tc>, window_params = [{pipeline_mode = #tpu.pipeline_mode<synchronous>, transform_indices = @transform_0, window_bounds = array<i64: 512, 100>}, {pipeline_mode = #tpu.pipeline_mode<synchronous>, transform_indices = @transform_1, window_bounds = array<i64: 100, 128>}, {pipeline_mode = #tpu.pipeline_mode<synchronous>, transform_indices = @transform_2, window_bounds = array<i64: 1, 128>}, {pipeline_mode = #tpu.pipeline_mode<synchronous>, transform_indices = @transform_3, window_bounds = array<i64: 1, 128>}, {pipeline_mode = #tpu.pipeline_mode<synchronous>, transform_indices = @transform_4, window_bounds = array<i64: 512, 128>}]} {
    %c0 = arith.constant 0 : index
    %c0_0 = arith.constant 0 : index
    %0 = vector.load %arg1[%c0, %c0_0] : memref<512x100xf32, #tpu.memory_space<vmem>>, vector<512x100xf32>
    %c0_1 = arith.constant 0 : index
    %c0_2 = arith.constant 0 : index
    %1 = vector.load %arg2[%c0_1, %c0_2] : memref<100x128xf32, #tpu.memory_space<vmem>>, vector<100x128xf32>
    %cst = arith.constant dense<0.000000e+00> : vector<512x128xf32>
    %2 = tpu.matmul %0, %1, %cst {dimension_numbers = #tpu.dot_dimension_numbers<[1], [0], [0], [1], [0, 0, 1, 1], [], []>} : vector<512x100xf32>, vector<100x128xf32>, vector<512x128xf32> -> vector<512x128xf32>
    %cst_3 = arith.constant dense<0.000000e+00> : vector<128xf32>
    %3 = vector.multi_reduction <add>, %2, %cst_3 [0] : vector<512x128xf32> to vector<128xf32>
    %4 = vector.shape_cast %3 : vector<128xf32> to vector<1x128xf32>
    %cst_4 = arith.constant 5.120000e+02 : f32
    %5 = vector.broadcast %cst_4 : f32 to vector<1x128xf32>
    %6 = arith.divf %4, %5 : vector<1x128xf32>
    %7 = vector.broadcast %6 : vector<1x128xf32> to vector<512x128xf32>
    %8 = arith.subf %2, %7 : vector<512x128xf32>
    %9 = arith.mulf %8, %8 : vector<512x128xf32>
    %cst_5 = arith.constant dense<0.000000e+00> : vector<128xf32>
    %10 = vector.multi_reduction <add>, %9, %cst_5 [0] : vector<512x128xf32> to vector<128xf32>
    %11 = vector.shape_cast %10 : vector<128xf32> to vector<1x128xf32>
    %cst_6 = arith.constant 5.120000e+02 : f32
    %12 = vector.broadcast %cst_6 : f32 to vector<1x128xf32>
    %13 = arith.divf %11, %12 : vector<1x128xf32>
    %c0_7 = arith.constant 0 : index
    %c0_8 = arith.constant 0 : index
    %14 = vector.load %arg3[%c0_7, %c0_8] : memref<1x128xf32, #tpu.memory_space<vmem>>, vector<1x128xf32>
    %cst_9 = arith.constant 9.99999974E-6 : f32
    %15 = vector.broadcast %cst_9 : f32 to vector<1x128xf32>
    %16 = arith.addf %13, %15 : vector<1x128xf32>
    %17 = math.rsqrt %16 : vector<1x128xf32>
    %18 = arith.mulf %14, %17 : vector<1x128xf32>
    %19 = vector.broadcast %6 : vector<1x128xf32> to vector<512x128xf32>
    %20 = arith.subf %2, %19 : vector<512x128xf32>
    %21 = vector.broadcast %18 : vector<1x128xf32> to vector<512x128xf32>
    %22 = arith.mulf %20, %21 : vector<512x128xf32>
    %c0_10 = arith.constant 0 : index
    %c0_11 = arith.constant 0 : index
    %23 = vector.load %arg4[%c0_10, %c0_11] : memref<1x128xf32, #tpu.memory_space<vmem>>, vector<1x128xf32>
    %24 = vector.broadcast %23 : vector<1x128xf32> to vector<512x128xf32>
    %25 = arith.addf %22, %24 : vector<512x128xf32>
    %cst_12 = arith.constant 0.000000e+00 : f32
    %26 = vector.broadcast %cst_12 : f32 to vector<512x128xf32>
    %27 = arith.cmpf oge, %25, %26 : vector<512x128xf32>
    %cst_13 = arith.constant 0.00999999977 : f32
    %28 = vector.broadcast %cst_13 : f32 to vector<512x128xf32>
    %29 = arith.mulf %28, %25 : vector<512x128xf32>
    %30 = arith.select %27, %25, %29 : vector<512x128xi1>, vector<512x128xf32>
    %c0_14 = arith.constant 0 : index
    %c0_15 = arith.constant 0 : index
    %31 = vector.load %arg5[%c0_14, %c0_15] : memref<512x128xf32, #tpu.memory_space<vmem>>, vector<512x128xf32>
    tpu.vector_store %arg5[%c0_14, %c0_15], %30 {strides = array<i32>} : memref<512x128xf32, #tpu.memory_space<vmem>>, vector<512x128xf32>,
    return
  }
  func.func @transform_0(%arg0: i32) -> (i32, i32) {
    %c0_i32 = arith.constant 0 : i32
    %c0_i32_0 = arith.constant 0 : i32
    %c0_i32_1 = arith.constant 0 : i32
    return %c0_i32, %c0_i32_0 : i32, i32
  }
  func.func @transform_1(%arg0: i32) -> (i32, i32) {
    %c0_i32 = arith.constant 0 : i32
    %c0_i32_0 = arith.constant 0 : i32
    %c0_i32_1 = arith.constant 0 : i32
    return %c0_i32, %c0_i32_0 : i32, i32
  }
  func.func @transform_2(%arg0: i32) -> (i32, i32) {
    %c0_i32 = arith.constant 0 : i32
    %c0_i32_0 = arith.constant 0 : i32
    %c0_i32_1 = arith.constant 0 : i32
    return %c0_i32, %c0_i32_0 : i32, i32
  }
  func.func @transform_3(%arg0: i32) -> (i32, i32) {
    %c0_i32 = arith.constant 0 : i32
    %c0_i32_0 = arith.constant 0 : i32
    %c0_i32_1 = arith.constant 0 : i32
    return %c0_i32, %c0_i32_0 : i32, i32
  }
  func.func @transform_4(%arg0: i32) -> (i32, i32) {
    %c0_i32 = arith.constant 0 : i32
    %c0_i32_0 = arith.constant 0 : i32
    %c0_i32_1 = arith.constant 0 : i32
    return %c0_i32, %c0_i32_0 : i32, i32
  }
}

module attributes {stable_mosaic.version = 11 : i64} {
  func.func @_mm_bias_act_kernel(%arg0: i32, %arg1: memref<512x100xf32, #tpu.memory_space<vmem>>, %arg2: memref<100x128xf32, #tpu.memory_space<vmem>>, %arg3: memref<1x128xf32, #tpu.memory_space<vmem>>, %arg4: memref<512x128xf32, #tpu.memory_space<vmem>>) attributes {dimension_semantics = [#tpu.dimension_semantics<arbitrary>], iteration_bounds = array<i64: 1>, scalar_prefetch = 0 : i64, scratch_operands = 0 : i64, tpu.core_type = #tpu.core_type<tc>, window_params = [{pipeline_mode = #tpu.pipeline_mode<synchronous>, transform_indices = @transform_0, window_bounds = array<i64: 512, 100>}, {pipeline_mode = #tpu.pipeline_mode<synchronous>, transform_indices = @transform_1, window_bounds = array<i64: 100, 128>}, {pipeline_mode = #tpu.pipeline_mode<synchronous>, transform_indices = @transform_2, window_bounds = array<i64: 1, 128>}, {pipeline_mode = #tpu.pipeline_mode<synchronous>, transform_indices = @transform_3, window_bounds = array<i64: 512, 128>}]} {
    %c0 = arith.constant 0 : index
    %c0_0 = arith.constant 0 : index
    %0 = vector.load %arg1[%c0, %c0_0] : memref<512x100xf32, #tpu.memory_space<vmem>>, vector<512x100xf32>
    %c0_1 = arith.constant 0 : index
    %c0_2 = arith.constant 0 : index
    %1 = vector.load %arg2[%c0_1, %c0_2] : memref<100x128xf32, #tpu.memory_space<vmem>>, vector<100x128xf32>
    %cst = arith.constant dense<0.000000e+00> : vector<512x128xf32>
    %2 = tpu.matmul %0, %1, %cst {dimension_numbers = #tpu.dot_dimension_numbers<[1], [0], [0], [1], [0, 0, 1, 1], [], []>} : vector<512x100xf32>, vector<100x128xf32>, vector<512x128xf32> -> vector<512x128xf32>
    %c0_3 = arith.constant 0 : index
    %c0_4 = arith.constant 0 : index
    %3 = vector.load %arg3[%c0_3, %c0_4] : memref<1x128xf32, #tpu.memory_space<vmem>>, vector<1x128xf32>
    %4 = vector.broadcast %3 : vector<1x128xf32> to vector<512x128xf32>
    %5 = arith.addf %2, %4 : vector<512x128xf32>
    %6 = arith.negf %5 : vector<512x128xf32>
    %7 = math.exp %6 : vector<512x128xf32>
    %cst_5 = arith.constant 1.000000e+00 : f32
    %8 = vector.broadcast %cst_5 : f32 to vector<512x128xf32>
    %9 = arith.addf %8, %7 : vector<512x128xf32>
    %10 = arith.divf %8, %9 : vector<512x128xf32>
    %c0_6 = arith.constant 0 : index
    %c0_7 = arith.constant 0 : index
    %11 = vector.load %arg4[%c0_6, %c0_7] : memref<512x128xf32, #tpu.memory_space<vmem>>, vector<512x128xf32>
    tpu.vector_store %arg4[%c0_6, %c0_7], %10 {strides = array<i32>} : memref<512x128xf32, #tpu.memory_space<vmem>>, vector<512x128xf32>,
    return
  }
  func.func @transform_0(%arg0: i32) -> (i32, i32) {
    %c0_i32 = arith.constant 0 : i32
    %c0_i32_0 = arith.constant 0 : i32
    %c0_i32_1 = arith.constant 0 : i32
    return %c0_i32, %c0_i32_0 : i32, i32
  }
  func.func @transform_1(%arg0: i32) -> (i32, i32) {
    %c0_i32 = arith.constant 0 : i32
    %c0_i32_0 = arith.constant 0 : i32
    %c0_i32_1 = arith.constant 0 : i32
    return %c0_i32, %c0_i32_0 : i32, i32
  }
  func.func @transform_2(%arg0: i32) -> (i32, i32) {
    %c0_i32 = arith.constant 0 : i32
    %c0_i32_0 = arith.constant 0 : i32
    %c0_i32_1 = arith.constant 0 : i32
    return %c0_i32, %c0_i32_0 : i32, i32
  }
  func.func @transform_3(%arg0: i32) -> (i32, i32) {
    %c0_i32 = arith.constant 0 : i32
    %c0_i32_0 = arith.constant 0 : i32
    %c0_i32_1 = arith.constant 0 : i32
    return %c0_i32, %c0_i32_0 : i32, i32
  }
}

</mosaic_0001>

<bundles_post_ra>
// kernel: shape_prior_vae_forward.10
= control target key start
LH: loop header
LB: loop body
LE: loop exit
PB: predicated region body
PF: predicated region fallthrough
CT: control target
= control target key end

     0   :  { %vm86_vm0 = vcmask 1040384   ;;  %vm37_vm1 = vcmask 203776   ;;  %s705_s1 = inlined_call_operand.vmem [shape: f32[25,128], index: 1, kind: input, shape index: {}]   ;;  %s706_s0 = inlined_call_operand.vmem [shape: f32[128,25], index: 0, kind: input, shape index: {}]   ;;  %s707_s2 = inlined_call_operand.vmem [shape: f32[1,128], index: 2, kind: input, shape index: {}]   ;;  %s708_s3 = inlined_call_operand.vmem [shape: f32[1,128], index: 3, kind: input, shape index: {}]   ;;  %s709_s4 = inlined_call_operand.vmem [shape: f32[128,128], index: 4, kind: output, shape index: {}]  }
   0x1   :  { %v36_v0 = vld [vmem:[%s705_s1 + $0x18] sm:$0x1]  ;;  %v35_v1 = vld [vmem:[%s705_s1 + $0x10] sm:$0xff]  ;;  %v17_v2 = vld [vmem:[%s706_s0] sm:$0xff] }
   0x2   :  { %467 = vmatprep.subr.msk.mxu0 %vm86_vm0, %v36_v0  ;;  %499 = vmatprep.subr.msk.mxu1 %vm86_vm0, %v36_v0  ;;  %v34_v3 = vld [vmem:[%s705_s1 + $0x8] sm:$0xff]  ;;  %v33_v4 = vld [vmem:[%s705_s1] sm:$0xff]  ;;  %v19_v6 = vld [vmem:[%s706_s0 + $0x10] sm:$0xff] }
   0x3   :  { %468 = vmatpush3.msk.msra.mxu0 %vm86_vm0, %v36_v0  ;;  %475 = vmatprep.mubr.msk.f32.mxu0 %vm37_vm1, %v17_v2  ;;  %v18_v5 = vld [vmem:[%s706_s0 + $0x8] sm:$0xff]  ;;  %v25_v7 = vld [vmem:[%s706_s0 + $0x40] sm:$0xff]  ;;  %v27_v9 = vld [vmem:[%s706_s0 + $0x50] sm:$0xff] }
   0x4   :  { %469 = vmatprep.subr.mxu0 %v35_v1  ;;  %503 = vmatpush3.msk.msra.mxu1 %vm86_vm0, %v36_v0  ;;  %v26_v8 = vld [vmem:[%s706_s0 + $0x48] sm:$0xff]  ;;  %v20_v10 = vld [vmem:[%s706_s0 + $0x18] sm:$0xff]  ;;  %v21_v11 = vld [vmem:[%s706_s0 + $0x20] sm:$0xff] }
   0x5   :  { %470 = vmatpush3.msra.mxu0 %v35_v1  ;;  %500 = vmatprep.subr.mxu1 %v35_v1  ;;  %v28_v12 = vld [vmem:[%s706_s0 + $0x58] sm:$0xff]  ;;  %v29_v13 = vld [vmem:[%s706_s0 + $0x60] sm:$0xff]  ;;  %v22_v14 = vld [vmem:[%s706_s0 + $0x28] sm:$0xff] }
   0x6   :  { %471 = vmatprep.subr.mxu0 %v34_v3  ;;  %504 = vmatpush3.msra.mxu1 %v35_v1  ;;  %v23_v15 = vld [vmem:[%s706_s0 + $0x30] sm:$0xff]  ;;  %v30_v16 = vld [vmem:[%s706_s0 + $0x68] sm:$0xff]  ;;  %v24_v18 = vld [vmem:[%s706_s0 + $0x38] sm:$0xff] }
   0x7   :  { %472 = vmatpush3.msra.mxu0 %v34_v3  ;;  %501 = vmatprep.subr.mxu1 %v34_v3  ;;  %v31_v17 = vld [vmem:[%s706_s0 + $0x70] sm:$0xff]  ;;  %v32_v19 = vld [vmem:[%s706_s0 + $0x78] sm:$0xff] }
   0x8   :  { %473 = vmatprep.subr.mxu0 %v33_v4  ;;  %505 = vmatpush3.msra.mxu1 %v34_v3 }
   0x9   :  { %474 = vmatpush3.msra.mxu0 %v33_v4  ;;  %502 = vmatprep.subr.mxu1 %v33_v4 }
   0xa   :  { %476 = vmatmul.mubr.msk.f32.vlgmr.msra.gmra.mxu0 %vm37_vm1, %v18_v5  ;;  %506 = vmatpush3.msra.mxu1 %v33_v4 }
   0xb   :  { %478 = vmatprep.mubr.msk.f32.mxu0 %vm37_vm1, %v19_v6  ;;  %487 = vmatprep.mubr.msk.f32.mxu1 %vm37_vm1, %v25_v7 }
   0xc   :  { %488 = vmatmul.mubr.msk.f32.vlgmr.msra.gmra.mxu1 %vm37_vm1, %v26_v8 }
   0xd   :  { %490 = vmatprep.mubr.msk.f32.mxu1 %vm37_vm1, %v27_v9 }
   0xe   :  { %479 = vmatmul.mubr.msk.f32.gmra.mxu0 %vm37_vm1, %v20_v10 }
   0xf   :  { %481 = vmatprep.mubr.msk.f32.mxu0 %vm37_vm1, %v21_v11 }
  0x10   :  { %491 = vmatmul.mubr.msk.f32.gmra.mxu1 %vm37_vm1, %v28_v12 }
  0x11   :  { %493 = vmatprep.mubr.msk.f32.mxu1 %vm37_vm1, %v29_v13 }
  0x12   :  { %482 = vmatmul.mubr.msk.f32.gmra.mxu0 %vm37_vm1, %v22_v14 }
  0x13   :  { %484 = vmatprep.mubr.msk.f32.mxu0 %vm37_vm1, %v23_v15 }
  0x14   :  { %494 = vmatmul.mubr.msk.f32.gmra.mxu1 %vm37_vm1, %v30_v16 }
  0x15   :  { %496 = vmatprep.mubr.msk.f32.mxu1 %vm37_vm1, %v31_v17 }
  0x16   :  { %485 = vmatmul.mubr.msk.f32.gmra.mxu0 %vm37_vm1, %v24_v18 }
  0x18   :  { %497 = vmatmul.mubr.msk.f32.gmra.mxu1 %vm37_vm1, %v32_v19 }
  0xca   :  { %v477_v20 = vpop.f32.mrf.mxu0 }
  0xcc   :  { %v156_v21 = vpop.f32.mrf.mxu0  ;;  %v489_v22 = vpop.f32.mrf.mxu1 }
  0xcd   :  { %v235_v24 = vadd.f32 %v477_v20, %v156_v21 }
  0xce   :  { %v480_v23 = vpop.f32.mrf.mxu0  ;;  %v196_v26 = vpop.f32.mrf.mxu1 }
  0xd0   :  { %v166_v25 = vpop.f32.mrf.mxu0  ;;  %v492_v31 = vpop.f32.mrf.mxu1 }
  0xd1   :  { %v236_v27 = vadd.f32 %v235_v24, %v166_v25 }
  0xd2   :  { %v483_v28 = vpop.f32.mrf.mxu0  ;;  %v206_v36 = vpop.f32.mrf.mxu1 }
  0xd3   :  { %v237_v29 = vadd.f32 %v480_v23, %v236_v27 }
  0xd4   :  { %v176_v30 = vpop.f32.mrf.mxu0  ;;  %v495_v39 = vpop.f32.mrf.mxu1 }
  0xd5   :  { %v238_v32 = vadd.f32 %v237_v29, %v176_v30 }
  0xd6   :  { %v486_v33 = vpop.f32.mrf.mxu0  ;;  %v216_v42 = vpop.f32.mrf.mxu1 }
  0xd7   :  { %v239_v34 = vadd.f32 %v483_v28, %v238_v32 }
  0xd8   :  { %v186_v35 = vpop.f32.mrf.mxu0  ;;  %v498_v45 = vpop.f32.mrf.mxu1 }
  0xd9   :  { %v240_v37 = vadd.f32 %v239_v34, %v186_v35 }
  0xda   :  { %v226_v48 = vpop.f32.mrf.mxu1 }
  0xdb   :  { %v241_v38 = vadd.f32 %v486_v33, %v240_v37 }
  0xdd   :  { %v242_v40 = vadd.f32 %v241_v38, %v196_v26 }
  0xdf   :  { %v243_v41 = vadd.f32 %v489_v22, %v242_v40 }
  0xe1   :  { %v244_v43 = vadd.f32 %v243_v41, %v206_v36 }
  0xe3   :  { %v245_v44 = vadd.f32 %v492_v31, %v244_v43 }
  0xe5   :  { %v246_v46 = vadd.f32 %v245_v44, %v216_v42 }
  0xe7   :  { %v247_v47 = vadd.f32 %v495_v39, %v246_v46 }
  0xe9   :  { %v248_v49 = vadd.f32 %v247_v47, %v226_v48 }
  0xeb   :  { %v249_v50 = vadd.f32 %v498_v45, %v248_v49 }
  0xed   :  { %v250_v51 = vrot.slane %v249_v50, 4 }
  0xef   :  { %v251_v52 = vadd.f32 %v250_v51, %v249_v50 }
  0xf1   :  { %v252_v53 = vrot.slane %v251_v52, 2 }
  0xf3   :  { %v253_v54 = vadd.f32 %v252_v53, %v251_v52 }
  0xf5   :  { %v254_v55 = vrot.slane %v253_v54, 1 }
  0xf7   :  { %v255_v56 = vadd.f32 %v254_v55, %v253_v54 }
  0xf9   :  { %v257_v57 = vmul.f32 0.0078125, %v255_v56 }
  0xfb   :  { %v610_v58 = vsub.f32 %v156_v21, %v257_v57  ;;  %v612_v59 = vsub.f32 %v477_v20, %v257_v57  ;;  %v614_v60 = vsub.f32 %v166_v25, %v257_v57  ;;  %v620_v63 = vsub.f32 %v480_v23, %v257_v57 }
  0xfc   :  { %v622_v0 = vsub.f32 %v176_v30, %v257_v57  ;;  %v263_v3 = vsub.f32 %v483_v28, %v257_v57  ;;  %v264_v6 = vsub.f32 %v186_v35, %v257_v57  ;;  %v265_v9 = vsub.f32 %v486_v33, %v257_v57 }
  0xfd   :  { %v274_v61 = vmul.f32 %v610_v58, %v610_v58  ;;  %v275_v62 = vmul.f32 %v612_v59, %v612_v59  ;;  %v276_v1 = vmul.f32 %v614_v60, %v614_v60  ;;  %v277_v4 = vmul.f32 %v620_v63, %v620_v63 }
  0xfe   :  { %v278_v7 = vmul.f32 %v622_v0, %v622_v0  ;;  %v279_v10 = vmul.f32 %v263_v3, %v263_v3  ;;  %v266_v12 = vsub.f32 %v196_v26, %v257_v57  ;;  %v280_v13 = vmul.f32 %v264_v6, %v264_v6 }
  0xff   :  { %v290_v2 = vadd.f32 %v275_v62, %v274_v61  ;;  %v267_v15 = vsub.f32 %v489_v22, %v257_v57  ;;  %v281_v16 = vmul.f32 %v265_v9, %v265_v9  ;;  %v268_v18 = vsub.f32 %v206_v36, %v257_v57 }
 0x100   :  { %v282_v19 = vmul.f32 %v266_v12, %v266_v12  ;;  %v269_v21 = vsub.f32 %v492_v31, %v257_v57  ;;  %v270_v25 = vsub.f32 %v216_v42, %v257_v57  ;;  %v271_v29 = vsub.f32 %v495_v39, %v257_v57 }
 0x101   :  { %v291_v5 = vadd.f32 %v290_v2, %v276_v1  ;;  %v283_v23 = vmul.f32 %v267_v15, %v267_v15  ;;  %v284_v27 = vmul.f32 %v268_v18, %v268_v18  ;;  %v272_v33 = vsub.f32 %v226_v48, %v257_v57 }
 0x102   :  { %v285_v30 = vmul.f32 %v269_v21, %v269_v21  ;;  %v286_v34 = vmul.f32 %v270_v25, %v270_v25  ;;  %v273_v35 = vsub.f32 %v498_v45, %v257_v57  ;;  %v287_v37 = vmul.f32 %v271_v29, %v271_v29  ;;  %v312_v45 = vld [vmem:[%s707_s2] sm:$0x1] }
 0x103   :  { %v292_v8 = vadd.f32 %v291_v5, %v277_v4  ;;  %v288_v38 = vmul.f32 %v272_v33, %v272_v33  ;;  %v317_v48 = vlaneseq }
 0x104   :  { %v289_v36 = vmul.f32 %v273_v35, %v273_v35 }
 0x105   :  { %v293_v11 = vadd.f32 %v292_v8, %v278_v7  ;;  %v318_v51 = vshrl.u32 %v317_v48, 7  ;;  %v446_v7 = vld [vmem:[%s708_s3] ss:$0 sm:$0xff] }
 0x107   :  { %v294_v14 = vadd.f32 %v293_v11, %v279_v10  ;;  %v319_v52 = vsub.s32 0, %v318_v51 }
 0x109   :  { %v295_v17 = vadd.f32 %v294_v14, %v280_v13 }
 0x10b   :  { %v296_v20 = vadd.f32 %v295_v17, %v281_v16 }
 0x10d   :  { %v297_v24 = vadd.f32 %v296_v20, %v282_v19 }
 0x10f   :  { %v298_v28 = vadd.f32 %v297_v24, %v283_v23 }
 0x111   :  { %v299_v32 = vadd.f32 %v298_v28, %v284_v27 }
 0x113   :  { %v300_v26 = vadd.f32 %v299_v32, %v285_v30 }
 0x115   :  { %v301_v22 = vadd.f32 %v300_v26, %v286_v34 }
 0x117   :  { %v302_v40 = vadd.f32 %v301_v22, %v287_v37 }
 0x119   :  { %v303_v41 = vadd.f32 %v302_v40, %v288_v38 }
 0x11b   :  { %v304_v43 = vadd.f32 %v303_v41, %v289_v36 }
 0x11d   :  { %v305_v31 = vrot.slane %v304_v43, 4 }
 0x11f   :  { %v306_v44 = vadd.f32 %v305_v31, %v304_v43 }
 0x121   :  { %v307_v46 = vrot.slane %v306_v44, 2 }
 0x123   :  { %v308_v42 = vadd.f32 %v307_v46, %v306_v44 }
 0x125   :  { %v309_v47 = vrot.slane %v308_v42, 1 }
 0x127   :  { %v310_v49 = vadd.f32 %v309_v47, %v308_v42 }
 0x129   :  { %v311_v39 = vmul.f32 0.0078125, %v310_v49 }
 0x12b   :  { %v313_v50 = vadd.f32 1e-05, %v311_v39 }
 0x12d   :  { %507 = vrsqrt.f32 %v313_v50 }
 0x13a   :  { %v508_v53 = vpop.eup %507 }
 0x13b   :  { %v315_v54 = vmul.f32 %v508_v53, %v312_v45 }
 0x13d   :  { %v320_v55 = vrot.slane %v315_v54, %v319_v52 }
 0x13f   :  { %v322_v56 = vmul.f32 %v320_v55, %v610_v58  ;;  %v323_v57 = vmul.f32 %v320_v55, %v612_v59  ;;  %v324_v61 = vmul.f32 %v320_v55, %v614_v60  ;;  %v325_v62 = vmul.f32 %v320_v55, %v620_v63 }
 0x140   :  { %v326_v1 = vmul.f32 %v320_v55, %v622_v0  ;;  %v327_v2 = vmul.f32 %v320_v55, %v263_v3  ;;  %v328_v4 = vmul.f32 %v320_v55, %v264_v6  ;;  %v329_v5 = vmul.f32 %v320_v55, %v265_v9 }
 0x141   :  { %v330_v8 = vmul.f32 %v320_v55, %v266_v12  ;;  %v331_v10 = vmul.f32 %v320_v55, %v267_v15  ;;  %v332_v11 = vmul.f32 %v320_v55, %v268_v18  ;;  %v333_v13 = vmul.f32 %v320_v55, %v269_v21 }
 0x142   :  { %v334_v58 = vmul.f32 %v320_v55, %v270_v25  ;;  %v335_v14 = vmul.f32 %v320_v55, %v271_v29  ;;  %v336_v59 = vmul.f32 %v320_v55, %v272_v33  ;;  %v337_v16 = vmul.f32 %v320_v55, %v273_v35 }
 0x143   :  { %v345_v60 = vadd.f32 %v446_v7, %v322_v56  ;;  %v346_v17 = vadd.f32 %v446_v7, %v323_v57  ;;  %v347_v63 = vadd.f32 %v446_v7, %v324_v61  ;;  %v348_v19 = vadd.f32 %v446_v7, %v325_v62 }
 0x144   :  { %v349_v0 = vadd.f32 %v446_v7, %v326_v1  ;;  %v350_v3 = vadd.f32 %v446_v7, %v327_v2  ;;  %v351_v6 = vadd.f32 %v446_v7, %v328_v4  ;;  %v352_v9 = vadd.f32 %v446_v7, %v329_v5 }
 0x145   :  { %v353_v20 = vadd.f32 %v446_v7, %v330_v8  ;;  %v354_v23 = vadd.f32 %v446_v7, %v331_v10  ;;  %v355_v24 = vadd.f32 %v446_v7, %v332_v11  ;;  %v356_v27 = vadd.f32 %v446_v7, %v333_v13 }
 0x146   :  { %v357_v12 = vadd.f32 %v446_v7, %v334_v58  ;;  %v358_v15 = vadd.f32 %v446_v7, %v335_v14  ;;  %v359_v18 = vadd.f32 %v446_v7, %v336_v59  ;;  %v360_v21 = vadd.f32 %v446_v7, %v337_v16 }
 0x147   :  { %vm361_vm2 = vcmp.ge.f32.partialorder %v345_v60, 0.0  ;;  %vm362_vm3 = vcmp.ge.f32.partialorder %v346_v17, 0.0  ;;  %vm363_vm4 = vcmp.ge.f32.partialorder %v347_v63, 0.0  ;;  %vm364_vm5 = vcmp.ge.f32.partialorder %v348_v19, 0.0 }
 0x148   :  { %vm365_vm6 = vcmp.ge.f32.partialorder %v349_v0, 0.0  ;;  %vm366_vm7 = vcmp.ge.f32.partialorder %v350_v3, 0.0  ;;  %vm367_vm8 = vcmp.ge.f32.partialorder %v351_v6, 0.0  ;;  %vm368_vm9 = vcmp.ge.f32.partialorder %v352_v9, 0.0 }
 0x149   :  { %vm369_vm10 = vcmp.ge.f32.partialorder %v353_v20, 0.0  ;;  %vm370_vm11 = vcmp.ge.f32.partialorder %v354_v23, 0.0  ;;  %vm371_vm12 = vcmp.ge.f32.partialorder %v355_v24, 0.0  ;;  %vm372_vm13 = vcmp.ge.f32.partialorder %v356_v27, 0.0 }
 0x14a   :  { %vm373_vm14 = vcmp.ge.f32.partialorder %v357_v12, 0.0  ;;  %vm374_vm15 = vcmp.ge.f32.partialorder %v358_v15, 0.0  ;;  %vm375_vm0 = vcmp.ge.f32.partialorder %v359_v18, 0.0  ;;  %vm376_vm1 = vcmp.ge.f32.partialorder %v360_v21, 0.0 }
 0x14b   :  { %v377_v25 = vmul.f32 0.01, %v345_v60  ;;  %v378_v28 = vmul.f32 0.01, %v346_v17  ;;  %v379_v29 = vmul.f32 0.01, %v347_v63 }
 0x14c   :  { %v380_v30 = vmul.f32 0.01, %v348_v19  ;;  %v381_v32 = vmul.f32 0.01, %v349_v0  ;;  %v382_v33 = vmul.f32 0.01, %v350_v3 }
 0x14d   :  { %v383_v34 = vmul.f32 0.01, %v351_v6  ;;  %v384_v26 = vmul.f32 0.01, %v352_v9  ;;  %v385_v35 = vmul.f32 0.01, %v353_v20  ;;  %v393_v37 = vsel %vm361_vm2, %v345_v60, %v377_v25 }
 0x14e   :  { %v386_v22 = vmul.f32 0.01, %v354_v23  ;;  %v387_v38 = vmul.f32 0.01, %v355_v24  ;;  %v388_v40 = vmul.f32 0.01, %v356_v27  ;;  %v394_v36 = vsel %vm362_vm3, %v346_v17, %v378_v28  ;;  %409 = vst [vmem:[%s709_s4] sm:$0xff] %v393_v37 }
 0x14f   :  { %v389_v41 = vmul.f32 0.01, %v357_v12  ;;  %v390_v43 = vmul.f32 0.01, %v358_v15  ;;  %v391_v31 = vmul.f32 0.01, %v359_v18  ;;  %v395_v44 = vsel %vm363_vm4, %v347_v63, %v379_v29 }
 0x150   :  { %410 = vst [vmem:[%s709_s4 + $0x8] sm:$0xff] %v394_v36  ;;  %v392_v46 = vmul.f32 0.01, %v360_v21  ;;  %v396_v42 = vsel %vm364_vm5, %v348_v19, %v380_v30  ;;  %v397_v47 = vsel %vm365_vm6, %v349_v0, %v381_v32  ;;  %v398_v49 = vsel %vm366_vm7, %v350_v3, %v382_v33  ;;  %411 = vst [vmem:[%s709_s4 + $0x10] sm:$0xff] %v395_v44 }
 0x151   :  { %v399_v39 = vsel %vm367_vm8, %v351_v6, %v383_v34  ;;  %v400_v50 = vsel %vm368_vm9, %v352_v9, %v384_v26  ;;  %v401_v48 = vsel %vm369_vm10, %v353_v20, %v385_v35  ;;  %v402_v51 = vsel %vm370_vm11, %v354_v23, %v386_v22  ;;  %412 = vst [vmem:[%s709_s4 + $0x18] sm:$0xff] %v396_v42 }
 0x152   :  { %413 = vst [vmem:[%s709_s4 + $0x20] sm:$0xff] %v397_v47  ;;  %414 = vst [vmem:[%s709_s4 + $0x28] sm:$0xff] %v398_v49  ;;  %v403_v45 = vsel %vm371_vm12, %v355_v24, %v387_v38  ;;  %v404_v52 = vsel %vm372_vm13, %v356_v27, %v388_v40  ;;  %v405_v53 = vsel %vm373_vm14, %v357_v12, %v389_v41 }
 0x153   :  { %v406_v54 = vsel %vm374_vm15, %v358_v15, %v390_v43  ;;  %415 = vst [vmem:[%s709_s4 + $0x30] sm:$0xff] %v399_v39  ;;  %416 = vst [vmem:[%s709_s4 + $0x38] sm:$0xff] %v400_v50  ;;  %v407_v55 = vsel %vm375_vm0, %v359_v18, %v391_v31  ;;  %v408_v56 = vsel %vm376_vm1, %v360_v21, %v392_v46 }
 0x154   :  { %417 = vst [vmem:[%s709_s4 + $0x40] sm:$0xff] %v401_v48  ;;  %418 = vst [vmem:[%s709_s4 + $0x48] sm:$0xff] %v402_v51 }
 0x155   :  { %419 = vst [vmem:[%s709_s4 + $0x50] sm:$0xff] %v403_v45  ;;  %420 = vst [vmem:[%s709_s4 + $0x58] sm:$0xff] %v404_v52 }
 0x156   :  { %421 = vst [vmem:[%s709_s4 + $0x60] sm:$0xff] %v405_v53  ;;  %422 = vst [vmem:[%s709_s4 + $0x68] sm:$0xff] %v406_v54 }
 0x157   :  { %423 = vst [vmem:[%s709_s4 + $0x70] sm:$0xff] %v407_v55  ;;  %424 = vst [vmem:[%s709_s4 + $0x78] sm:$0xff] %v408_v56 }

// kernel: shape_prior_vae_forward.11
= control target key start
LH: loop header
LB: loop body
LE: loop exit
PB: predicated region body
PF: predicated region fallthrough
CT: control target
= control target key end

     0   :  { %vm47_vm0 = vcmask 1043456   ;;  %vm34_vm1 = vcmask 818176   ;;  %v170_v50 = vlaneseq  ;;  %s387_s1 = inlined_call_operand.vmem [shape: f32[100,128], index: 1, kind: input, shape index: {}]   ;;  %s388_s0 = inlined_call_operand.vmem [shape: f32[32,100], index: 0, kind: input, shape index: {}]   ;;  %s389_s2 = inlined_call_operand.vmem [shape: f32[1,128], index: 2, kind: input, shape index: {}]   ;;  %s390_s3 = inlined_call_operand.vmem [shape: f32[1,128], index: 3, kind: input, shape index: {}]   ;;  %s391_s4 = inlined_call_operand.vmem [shape: f32[32,128], index: 4, kind: output, shape index: {}]  }
   0x1   :  { %v33_v0 = vld [vmem:[%s387_s1 + $0x60] sm:$0xf]  ;;  %v32_v1 = vld [vmem:[%s387_s1 + $0x58] sm:$0xff]  ;;  %v31_v2 = vld [vmem:[%s387_s1 + $0x50] sm:$0xff] }
   0x2   :  { %233 = vmatprep.subr.msk.mxu0 %vm47_vm0, %v33_v0  ;;  %265 = vmatprep.subr.msk.mxu1 %vm47_vm0, %v33_v0  ;;  %v30_v3 = vld [vmem:[%s387_s1 + $0x48] sm:$0xff]  ;;  %v29_v4 = vld [vmem:[%s387_s1 + $0x40] sm:$0xff]  ;;  %v28_v5 = vld [vmem:[%s387_s1 + $0x38] sm:$0xff]  ;;  %v171_v51 = vshrl.u32 %v170_v50, 7 }
   0x3   :  { %234 = vmatpush3.msk.msra.mxu0 %vm47_vm0, %v33_v0  ;;  %278 = vmatpush3.msk.msra.mxu1 %vm47_vm0, %v33_v0  ;;  %v27_v6 = vld [vmem:[%s387_s1 + $0x30] sm:$0xff]  ;;  %v26_v7 = vld [vmem:[%s387_s1 + $0x28] sm:$0xff]  ;;  %v25_v8 = vld [vmem:[%s387_s1 + $0x20] sm:$0xff] }
   0x4   :  { %235 = vmatprep.subr.mxu0 %v32_v1  ;;  %266 = vmatprep.subr.mxu1 %v32_v1  ;;  %v24_v9 = vld [vmem:[%s387_s1 + $0x18] sm:$0xff]  ;;  %v23_v10 = vld [vmem:[%s387_s1 + $0x10] sm:$0xff]  ;;  %v22_v11 = vld [vmem:[%s387_s1 + $0x8] sm:$0xff]  ;;  %v172_v53 = vsub.s32 0, %v171_v51 }
   0x5   :  { %236 = vmatpush3.msra.mxu0 %v32_v1  ;;  %279 = vmatpush3.msra.mxu1 %v32_v1  ;;  %v21_v12 = vld [vmem:[%s387_s1] sm:$0xff]  ;;  %v19_v14 = vld [vmem:[%s388_s0 + $0x10] sm:$0xff]  ;;  %v18_v15 = vld [vmem:[%s388_s0 + $0x8] sm:$0xff] }
   0x6   :  { %237 = vmatprep.subr.mxu0 %v31_v2  ;;  %267 = vmatprep.subr.mxu1 %v31_v2  ;;  %v17_v13 = vld [vmem:[%s388_s0] sm:$0xff]  ;;  %v20_v16 = vld [vmem:[%s388_s0 + $0x18] sm:$0xff] }
   0x7   :  { %238 = vmatpush3.msra.mxu0 %v31_v2  ;;  %280 = vmatpush3.msra.mxu1 %v31_v2  ;;  %v165_v52 = vld [vmem:[%s389_s2] sm:$0x1] }
   0x8   :  { %239 = vmatprep.subr.mxu0 %v30_v3  ;;  %268 = vmatprep.subr.mxu1 %v30_v3  ;;  %v215_v57 = vld [vmem:[%s390_s3] ss:$0 sm:$0xff] }
   0x9   :  { %240 = vmatpush3.msra.mxu0 %v30_v3  ;;  %281 = vmatpush3.msra.mxu1 %v30_v3 }
   0xa   :  { %241 = vmatprep.subr.mxu0 %v29_v4  ;;  %269 = vmatprep.subr.mxu1 %v29_v4 }
   0xb   :  { %242 = vmatpush3.msra.mxu0 %v29_v4  ;;  %282 = vmatpush3.msra.mxu1 %v29_v4 }
   0xc   :  { %243 = vmatprep.subr.mxu0 %v28_v5  ;;  %270 = vmatprep.subr.mxu1 %v28_v5 }
   0xd   :  { %244 = vmatpush3.msra.mxu0 %v28_v5  ;;  %283 = vmatpush3.msra.mxu1 %v28_v5 }
   0xe   :  { %245 = vmatprep.subr.mxu0 %v27_v6  ;;  %271 = vmatprep.subr.mxu1 %v27_v6 }
   0xf   :  { %246 = vmatpush3.msra.mxu0 %v27_v6  ;;  %284 = vmatpush3.msra.mxu1 %v27_v6 }
  0x10   :  { %247 = vmatprep.subr.mxu0 %v26_v7  ;;  %272 = vmatprep.subr.mxu1 %v26_v7 }
  0x11   :  { %248 = vmatpush3.msra.mxu0 %v26_v7  ;;  %285 = vmatpush3.msra.mxu1 %v26_v7 }
  0x12   :  { %249 = vmatprep.subr.mxu0 %v25_v8  ;;  %273 = vmatprep.subr.mxu1 %v25_v8 }
  0x13   :  { %250 = vmatpush3.msra.mxu0 %v25_v8  ;;  %286 = vmatpush3.msra.mxu1 %v25_v8 }
  0x14   :  { %251 = vmatprep.subr.mxu0 %v24_v9  ;;  %274 = vmatprep.subr.mxu1 %v24_v9 }
  0x15   :  { %252 = vmatpush3.msra.mxu0 %v24_v9  ;;  %287 = vmatpush3.msra.mxu1 %v24_v9 }
  0x16   :  { %253 = vmatprep.subr.mxu0 %v23_v10  ;;  %275 = vmatprep.subr.mxu1 %v23_v10 }
  0x17   :  { %254 = vmatpush3.msra.mxu0 %v23_v10  ;;  %288 = vmatpush3.msra.mxu1 %v23_v10 }
  0x18   :  { %255 = vmatprep.subr.mxu0 %v22_v11  ;;  %276 = vmatprep.subr.mxu1 %v22_v11 }
  0x19   :  { %256 = vmatpush3.msra.mxu0 %v22_v11  ;;  %289 = vmatpush3.msra.mxu1 %v22_v11 }
  0x1a   :  { %257 = vmatprep.subr.mxu0 %v21_v12  ;;  %277 = vmatprep.subr.mxu1 %v21_v12 }
  0x1b   :  { %258 = vmatpush3.msra.mxu0 %v21_v12  ;;  %290 = vmatpush3.msra.mxu1 %v21_v12 }
  0x1c   :  { %259 = vmatprep.mubr.msk.f32.mxu0 %vm34_vm1, %v17_v13  ;;  %262 = vmatprep.mubr.msk.f32.mxu1 %vm34_vm1, %v19_v14 }
  0x1d   :  { %260 = vmatmul.mubr.msk.f32.vlgmr.msra.gmra.mxu0 %vm34_vm1, %v18_v15  ;;  %263 = vmatmul.mubr.msk.f32.vlgmr.msra.gmra.mxu1 %vm34_vm1, %v20_v16 }
  0xdd   :  { %v261_v17 = vpop.f32.mrf.mxu0  ;;  %v264_v18 = vpop.f32.mrf.mxu1 }
  0xdf   :  { %v117_v19 = vpop.f32.mrf.mxu0  ;;  %v127_v21 = vpop.f32.mrf.mxu1 }
  0xe0   :  { %v136_v20 = vadd.f32 %v261_v17, %v117_v19 }
  0xe2   :  { %v137_v22 = vadd.f32 %v136_v20, %v127_v21 }
  0xe4   :  { %v138_v23 = vadd.f32 %v264_v18, %v137_v22 }
  0xe6   :  { %v139_v24 = vrot.slane %v138_v23, 4 }
  0xe8   :  { %v140_v25 = vadd.f32 %v139_v24, %v138_v23 }
  0xea   :  { %v141_v26 = vrot.slane %v140_v25, 2 }
  0xec   :  { %v142_v27 = vadd.f32 %v141_v26, %v140_v25 }
  0xee   :  { %v143_v28 = vrot.slane %v142_v27, 1 }
  0xf0   :  { %v144_v29 = vadd.f32 %v143_v28, %v142_v27 }
  0xf2   :  { %v146_v30 = vmul.f32 0.03125, %v144_v29 }
  0xf4   :  { %v147_v31 = vsub.f32 %v117_v19, %v146_v30  ;;  %v148_v32 = vsub.f32 %v261_v17, %v146_v30  ;;  %v149_v33 = vsub.f32 %v127_v21, %v146_v30  ;;  %v150_v34 = vsub.f32 %v264_v18, %v146_v30 }
  0xf6   :  { %v151_v35 = vmul.f32 %v147_v31, %v147_v31  ;;  %v152_v36 = vmul.f32 %v148_v32, %v148_v32  ;;  %v153_v37 = vmul.f32 %v149_v33, %v149_v33  ;;  %v154_v39 = vmul.f32 %v150_v34, %v150_v34 }
  0xf8   :  { %v155_v38 = vadd.f32 %v152_v36, %v151_v35 }
  0xfa   :  { %v156_v40 = vadd.f32 %v155_v38, %v153_v37 }
  0xfc   :  { %v157_v41 = vadd.f32 %v156_v40, %v154_v39 }
  0xfe   :  { %v158_v42 = vrot.slane %v157_v41, 4 }
 0x100   :  { %v159_v43 = vadd.f32 %v158_v42, %v157_v41 }
 0x102   :  { %v160_v44 = vrot.slane %v159_v43, 2 }
 0x104   :  { %v161_v45 = vadd.f32 %v160_v44, %v159_v43 }
 0x106   :  { %v162_v46 = vrot.slane %v161_v45, 1 }
 0x108   :  { %v163_v47 = vadd.f32 %v162_v46, %v161_v45 }
 0x10a   :  { %v164_v48 = vmul.f32 0.03125, %v163_v47 }
 0x10c   :  { %v166_v49 = vadd.f32 1e-05, %v164_v48 }
 0x10e   :  { %291 = vrsqrt.f32 %v166_v49 }
 0x11b   :  { %v292_v54 = vpop.eup %291 }
 0x11c   :  { %v168_v55 = vmul.f32 %v292_v54, %v165_v52 }
 0x11e   :  { %v173_v56 = vrot.slane %v168_v55, %v172_v53 }
 0x120   :  { %v175_v58 = vmul.f32 %v173_v56, %v147_v31  ;;  %v176_v59 = vmul.f32 %v173_v56, %v148_v32  ;;  %v177_v60 = vmul.f32 %v173_v56, %v149_v33  ;;  %v178_v61 = vmul.f32 %v173_v56, %v150_v34 }
 0x122   :  { %v186_v62 = vadd.f32 %v215_v57, %v175_v58  ;;  %v187_v63 = vadd.f32 %v215_v57, %v176_v59  ;;  %v188_v0 = vadd.f32 %v215_v57, %v177_v60  ;;  %v189_v1 = vadd.f32 %v215_v57, %v178_v61 }
 0x124   :  { %vm190_vm2 = vcmp.ge.f32.partialorder %v186_v62, 0.0  ;;  %vm191_vm3 = vcmp.ge.f32.partialorder %v187_v63, 0.0  ;;  %vm192_vm4 = vcmp.ge.f32.partialorder %v188_v0, 0.0  ;;  %vm193_vm5 = vcmp.ge.f32.partialorder %v189_v1, 0.0 }
 0x125   :  { %v194_v2 = vmul.f32 0.01, %v186_v62  ;;  %v195_v3 = vmul.f32 0.01, %v187_v63  ;;  %v196_v4 = vmul.f32 0.01, %v188_v0 }
 0x126   :  { %v197_v5 = vmul.f32 0.01, %v189_v1 }
 0x127   :  { %v198_v6 = vsel %vm190_vm2, %v186_v62, %v194_v2  ;;  %v199_v7 = vsel %vm191_vm3, %v187_v63, %v195_v3  ;;  %v200_v8 = vsel %vm192_vm4, %v188_v0, %v196_v4 }
 0x128   :  { %v201_v9 = vsel %vm193_vm5, %v189_v1, %v197_v5  ;;  %202 = vst [vmem:[%s391_s4] sm:$0xff] %v198_v6  ;;  %203 = vst [vmem:[%s391_s4 + $0x8] sm:$0xff] %v199_v7 }
 0x129   :  { %204 = vst [vmem:[%s391_s4 + $0x10] sm:$0xff] %v200_v8  ;;  %205 = vst [vmem:[%s391_s4 + $0x18] sm:$0xff] %v201_v9 }

// kernel: shape_prior_vae_forward.12
= control target key start
LH: loop header
LB: loop body
LE: loop exit
PB: predicated region body
PF: predicated region fallthrough
CT: control target
= control target key end

     0   :  { %v532_v0 = vmov 0.0   ;;  %vm74_vm0 = vcmask 588800   ;;  %s910_s1 = inlined_call_operand.vmem [shape: f32[200,128], index: 1, kind: input, shape index: {}]   ;;  %s911_s0 = inlined_call_operand.vmem [shape: f32[128,200], index: 0, kind: input, shape index: {}]   ;;  %s912_s2 = inlined_call_operand.vmem [shape: f32[1,128], index: 2, kind: input, shape index: {}]   ;;  %s913_s3 = inlined_call_operand.vmem [shape: f32[1,128], index: 3, kind: input, shape index: {}]   ;;  %s914_s4 = inlined_call_operand.vmem [shape: f32[128,128], index: 4, kind: output, shape index: {}]  }
   0x1   :  { %123 = vmatprep.subr.mxu0 %v532_v0  ;;  %v64_v1 = vld [vmem:[%s910_s1 + $0x78] sm:$0xff]  ;;  %v63_v2 = vld [vmem:[%s910_s1 + $0x70] sm:$0xff]  ;;  %479 = vmatprep.subr.mxu1 %v532_v0  ;;  %v62_v3 = vld [vmem:[%s910_s1 + $0x68] sm:$0xff] }
   0x2   :  { %124 = vmatpush1.msra.mxu0 %v64_v1  ;;  %504 = vmatpush1.msra.mxu1 %v64_v1  ;;  %v61_v4 = vld [vmem:[%s910_s1 + $0x60] sm:$0xff]  ;;  %v60_v5 = vld [vmem:[%s910_s1 + $0x58] sm:$0xff]  ;;  %v59_v6 = vld [vmem:[%s910_s1 + $0x50] sm:$0xff] }
   0x3   :  { %125 = vmatprep.subr.mxu0 %v532_v0  ;;  %480 = vmatprep.subr.mxu1 %v532_v0  ;;  %v58_v7 = vld [vmem:[%s910_s1 + $0x48] sm:$0xff]  ;;  %v57_v8 = vld [vmem:[%s910_s1 + $0x40] sm:$0xff]  ;;  %v56_v9 = vld [vmem:[%s910_s1 + $0x38] sm:$0xff] }
   0x4   :  { %126 = vmatpush1.msra.mxu0 %v63_v2  ;;  %505 = vmatpush1.msra.mxu1 %v63_v2  ;;  %v55_v10 = vld [vmem:[%s910_s1 + $0x30] sm:$0xff]  ;;  %v54_v11 = vld [vmem:[%s910_s1 + $0x28] sm:$0xff]  ;;  %v53_v12 = vld [vmem:[%s910_s1 + $0x20] sm:$0xff] }
   0x5   :  { %127 = vmatprep.subr.mxu0 %v532_v0  ;;  %481 = vmatprep.subr.mxu1 %v532_v0  ;;  %v52_v13 = vld [vmem:[%s910_s1 + $0x18] sm:$0xff]  ;;  %v51_v14 = vld [vmem:[%s910_s1 + $0x10] sm:$0xff]  ;;  %v50_v15 = vld [vmem:[%s910_s1 + $0x8] sm:$0xff] }
   0x6   :  { %128 = vmatpush1.msra.mxu0 %v62_v3  ;;  %506 = vmatpush1.msra.mxu1 %v62_v3  ;;  %v49_v16 = vld [vmem:[%s910_s1] sm:$0xff]  ;;  %v72_v18 = vld [vmem:[%s910_s1 + $0xb8] sm:$0xff]  ;;  %v18_v19 = vld [vmem:[%s911_s0 + $0x8] sm:$0xff] }
   0x7   :  { %129 = vmatprep.subr.mxu0 %v532_v0  ;;  %482 = vmatprep.subr.mxu1 %v532_v0  ;;  %v73_v17 = vld [vmem:[%s910_s1 + $0xc0] sm:$0xff]  ;;  %v71_v20 = vld [vmem:[%s910_s1 + $0xb0] sm:$0xff]  ;;  %v70_v21 = vld [vmem:[%s910_s1 + $0xa8] sm:$0xff] }
   0x8   :  { %130 = vmatpush1.msra.mxu0 %v61_v4  ;;  %507 = vmatpush1.msra.mxu1 %v61_v4  ;;  %v69_v22 = vld [vmem:[%s910_s1 + $0xa0] sm:$0xff]  ;;  %v68_v23 = vld [vmem:[%s910_s1 + $0x98] sm:$0xff]  ;;  %v67_v24 = vld [vmem:[%s910_s1 + $0x90] sm:$0xff] }
   0x9   :  { %131 = vmatprep.subr.mxu0 %v532_v0  ;;  %483 = vmatprep.subr.mxu1 %v532_v0  ;;  %v66_v25 = vld [vmem:[%s910_s1 + $0x88] sm:$0xff]  ;;  %v65_v26 = vld [vmem:[%s910_s1 + $0x80] sm:$0xff]  ;;  %v20_v28 = vld [vmem:[%s911_s0 + $0x18] sm:$0xff] }
   0xa   :  { %132 = vmatpush1.msra.mxu0 %v60_v5  ;;  %508 = vmatpush1.msra.mxu1 %v60_v5  ;;  %v17_v27 = vld [vmem:[%s911_s0] sm:$0xff]  ;;  %v34_v29 = vld [vmem:[%s911_s0 + $0x88] sm:$0xff]  ;;  %v36_v31 = vld [vmem:[%s911_s0 + $0x98] sm:$0xff] }
   0xb   :  { %133 = vmatprep.subr.mxu0 %v532_v0  ;;  %484 = vmatprep.subr.mxu1 %v532_v0  ;;  %v33_v30 = vld [vmem:[%s911_s0 + $0x80] sm:$0xff]  ;;  %v19_v32 = vld [vmem:[%s911_s0 + $0x10] sm:$0xff]  ;;  %v22_v33 = vld [vmem:[%s911_s0 + $0x28] sm:$0xff] }
   0xc   :  { %134 = vmatpush1.msra.mxu0 %v59_v6  ;;  %509 = vmatpush1.msra.mxu1 %v59_v6  ;;  %v35_v34 = vld [vmem:[%s911_s0 + $0x90] sm:$0xff]  ;;  %v38_v35 = vld [vmem:[%s911_s0 + $0xa8] sm:$0xff]  ;;  %v21_v36 = vld [vmem:[%s911_s0 + $0x20] sm:$0xff] }
   0xd   :  { %135 = vmatprep.subr.mxu0 %v532_v0  ;;  %485 = vmatprep.subr.mxu1 %v532_v0  ;;  %v24_v37 = vld [vmem:[%s911_s0 + $0x38] sm:$0xff]  ;;  %v37_v38 = vld [vmem:[%s911_s0 + $0xa0] sm:$0xff]  ;;  %v23_v40 = vld [vmem:[%s911_s0 + $0x30] sm:$0xff] }
   0xe   :  { %136 = vmatpush1.msra.mxu0 %v58_v7  ;;  %510 = vmatpush1.msra.mxu1 %v58_v7  ;;  %v40_v39 = vld [vmem:[%s911_s0 + $0xb8] sm:$0xff]  ;;  %v26_v41 = vld [vmem:[%s911_s0 + $0x48] sm:$0xff]  ;;  %v39_v42 = vld [vmem:[%s911_s0 + $0xb0] sm:$0xff] }
   0xf   :  { %137 = vmatprep.subr.mxu0 %v532_v0  ;;  %486 = vmatprep.subr.mxu1 %v532_v0  ;;  %v42_v43 = vld [vmem:[%s911_s0 + $0xc8] sm:$0xff]  ;;  %v25_v44 = vld [vmem:[%s911_s0 + $0x40] sm:$0xff]  ;;  %v28_v45 = vld [vmem:[%s911_s0 + $0x58] sm:$0xff] }
  0x10   :  { %138 = vmatpush1.msra.mxu0 %v57_v8  ;;  %511 = vmatpush1.msra.mxu1 %v57_v8  ;;  %v41_v46 = vld [vmem:[%s911_s0 + $0xc0] sm:$0xff]  ;;  %v44_v47 = vld [vmem:[%s911_s0 + $0xd8] sm:$0xff]  ;;  %v27_v48 = vld [vmem:[%s911_s0 + $0x50] sm:$0xff] }
  0x11   :  { %139 = vmatprep.subr.mxu0 %v532_v0  ;;  %487 = vmatprep.subr.mxu1 %v532_v0  ;;  %v30_v49 = vld [vmem:[%s911_s0 + $0x68] sm:$0xff]  ;;  %v43_v50 = vld [vmem:[%s911_s0 + $0xd0] sm:$0xff]  ;;  %v29_v52 = vld [vmem:[%s911_s0 + $0x60] sm:$0xff] }
  0x12   :  { %140 = vmatpush1.msra.mxu0 %v56_v9  ;;  %512 = vmatpush1.msra.mxu1 %v56_v9  ;;  %v46_v51 = vld [vmem:[%s911_s0 + $0xe8] sm:$0xff]  ;;  %v32_v53 = vld [vmem:[%s911_s0 + $0x78] sm:$0xff]  ;;  %v45_v54 = vld [vmem:[%s911_s0 + $0xe0] sm:$0xff] }
  0x13   :  { %141 = vmatprep.subr.mxu0 %v532_v0  ;;  %488 = vmatprep.subr.mxu1 %v532_v0  ;;  %v48_v55 = vld [vmem:[%s911_s0 + $0xf8] sm:$0xff]  ;;  %v31_v56 = vld [vmem:[%s911_s0 + $0x70] sm:$0xff] }
  0x14   :  { %142 = vmatpush1.msra.mxu0 %v55_v10  ;;  %513 = vmatpush1.msra.mxu1 %v55_v10  ;;  %v47_v57 = vld [vmem:[%s911_s0 + $0xf0] sm:$0xff] }
  0x15   :  { %143 = vmatprep.subr.mxu0 %v532_v0  ;;  %489 = vmatprep.subr.mxu1 %v532_v0 }
  0x16   :  { %144 = vmatpush1.msra.mxu0 %v54_v11  ;;  %514 = vmatpush1.msra.mxu1 %v54_v11 }
  0x17   :  { %145 = vmatprep.subr.mxu0 %v532_v0  ;;  %490 = vmatprep.subr.mxu1 %v532_v0 }
  0x18   :  { %146 = vmatpush1.msra.mxu0 %v53_v12  ;;  %515 = vmatpush1.msra.mxu1 %v53_v12 }
  0x19   :  { %147 = vmatprep.subr.mxu0 %v532_v0  ;;  %491 = vmatprep.subr.mxu1 %v532_v0 }
  0x1a   :  { %148 = vmatpush1.msra.mxu0 %v52_v13  ;;  %516 = vmatpush1.msra.mxu1 %v52_v13 }
  0x1b   :  { %149 = vmatprep.subr.mxu0 %v532_v0  ;;  %492 = vmatprep.subr.mxu1 %v532_v0 }
  0x1c   :  { %150 = vmatpush1.msra.mxu0 %v51_v14  ;;  %517 = vmatpush1.msra.mxu1 %v51_v14 }
  0x1d   :  { %151 = vmatprep.subr.mxu0 %v532_v0  ;;  %493 = vmatprep.subr.mxu1 %v532_v0 }
  0x1e   :  { %152 = vmatpush1.msra.mxu0 %v50_v15  ;;  %518 = vmatpush1.msra.mxu1 %v50_v15 }
  0x1f   :  { %153 = vmatprep.subr.mxu0 %v532_v0  ;;  %494 = vmatprep.subr.mxu1 %v532_v0 }
  0x20   :  { %154 = vmatpush1.msra.mxu0 %v49_v16  ;;  %519 = vmatpush1.msra.mxu1 %v49_v16 }
  0x21   :  { %169 = vmatprep.subr.mxu0 %v532_v0  ;;  %495 = vmatprep.subr.mxu1 %v532_v0 }
  0x22   :  { %170 = vmatpush2.msra.mxu0 %v73_v17  ;;  %520 = vmatpush2.msra.mxu1 %v73_v17 }
  0x23   :  { %171 = vmatprep.subr.mxu0 %v532_v0  ;;  %496 = vmatprep.subr.mxu1 %v532_v0 }
  0x24   :  { %172 = vmatpush2.msra.mxu0 %v72_v18  ;;  %521 = vmatpush2.msra.mxu1 %v72_v18 }
  0x25   :  { %173 = vmatprep.subr.mxu0 %v532_v0  ;;  %462 = vmatprep.mubr.msk.f32.mxu0 %vm74_vm0, %v18_v19 }
  0x26   :  { %174 = vmatpush2.msra.mxu0 %v71_v20  ;;  %497 = vmatprep.subr.mxu1 %v532_v0 }
  0x27   :  { %175 = vmatprep.subr.mxu0 %v532_v0  ;;  %522 = vmatpush2.msra.mxu1 %v71_v20 }
  0x28   :  { %176 = vmatpush2.msra.mxu0 %v70_v21  ;;  %498 = vmatprep.subr.mxu1 %v532_v0 }
  0x29   :  { %177 = vmatprep.subr.mxu0 %v532_v0  ;;  %523 = vmatpush2.msra.mxu1 %v70_v21 }
  0x2a   :  { %178 = vmatpush2.msra.mxu0 %v69_v22  ;;  %499 = vmatprep.subr.mxu1 %v532_v0 }
  0x2b   :  { %179 = vmatprep.subr.mxu0 %v532_v0  ;;  %524 = vmatpush2.msra.mxu1 %v69_v22 }
  0x2c   :  { %180 = vmatpush2.msra.mxu0 %v68_v23  ;;  %500 = vmatprep.subr.mxu1 %v532_v0 }
  0x2d   :  { %181 = vmatprep.subr.mxu0 %v532_v0  ;;  %525 = vmatpush2.msra.mxu1 %v68_v23 }
  0x2e   :  { %182 = vmatpush2.msra.mxu0 %v67_v24  ;;  %501 = vmatprep.subr.mxu1 %v532_v0 }
  0x2f   :  { %183 = vmatprep.subr.mxu0 %v532_v0  ;;  %526 = vmatpush2.msra.mxu1 %v67_v24 }
  0x30   :  { %184 = vmatpush2.msra.mxu0 %v66_v25  ;;  %502 = vmatprep.subr.mxu1 %v532_v0 }
  0x31   :  { %185 = vmatprep.subr.mxu0 %v532_v0  ;;  %527 = vmatpush2.msra.mxu1 %v66_v25 }
  0x32   :  { %186 = vmatpush2.msra.mxu0 %v65_v26  ;;  %503 = vmatprep.subr.mxu1 %v532_v0 }
  0x33   :  { %188 = vmatmul.mubr.f32.vlgmr.msra.gmra.mxu0 %v17_v27  ;;  %528 = vmatpush2.msra.mxu1 %v65_v26 }
  0x34   :  { %463 = vmatprep.mubr.msk.f32.mxu0 %vm74_vm0, %v20_v28  ;;  %470 = vmatprep.mubr.msk.f32.mxu1 %vm74_vm0, %v34_v29 }
  0x35   :  { %228 = vmatmul.mubr.f32.vlgmr.msra.gmra.mxu1 %v33_v30 }
  0x36   :  { %471 = vmatprep.mubr.msk.f32.mxu1 %vm74_vm0, %v36_v31 }
  0x37   :  { %193 = vmatmul.mubr.f32.gmra.mxu0 %v19_v32 }
  0x38   :  { %464 = vmatprep.mubr.msk.f32.mxu0 %vm74_vm0, %v22_v33 }
  0x39   :  { %233 = vmatmul.mubr.f32.gmra.mxu1 %v35_v34 }
  0x3a   :  { %472 = vmatprep.mubr.msk.f32.mxu1 %vm74_vm0, %v38_v35 }
  0x3b   :  { %198 = vmatmul.mubr.f32.gmra.mxu0 %v21_v36 }
  0x3c   :  { %465 = vmatprep.mubr.msk.f32.mxu0 %vm74_vm0, %v24_v37 }
  0x3d   :  { %238 = vmatmul.mubr.f32.gmra.mxu1 %v37_v38 }
  0x3e   :  { %473 = vmatprep.mubr.msk.f32.mxu1 %vm74_vm0, %v40_v39 }
  0x3f   :  { %203 = vmatmul.mubr.f32.gmra.mxu0 %v23_v40 }
  0x40   :  { %466 = vmatprep.mubr.msk.f32.mxu0 %vm74_vm0, %v26_v41 }
  0x41   :  { %243 = vmatmul.mubr.f32.gmra.mxu1 %v39_v42 }
  0x42   :  { %474 = vmatprep.mubr.msk.f32.mxu1 %vm74_vm0, %v42_v43 }
  0x43   :  { %208 = vmatmul.mubr.f32.gmra.mxu0 %v25_v44 }
  0x44   :  { %467 = vmatprep.mubr.msk.f32.mxu0 %vm74_vm0, %v28_v45 }
  0x45   :  { %248 = vmatmul.mubr.f32.gmra.mxu1 %v41_v46 }
  0x46   :  { %475 = vmatprep.mubr.msk.f32.mxu1 %vm74_vm0, %v44_v47 }
  0x47   :  { %213 = vmatmul.mubr.f32.gmra.mxu0 %v27_v48 }
  0x48   :  { %468 = vmatprep.mubr.msk.f32.mxu0 %vm74_vm0, %v30_v49 }
  0x49   :  { %253 = vmatmul.mubr.f32.gmra.mxu1 %v43_v50 }
  0x4a   :  { %476 = vmatprep.mubr.msk.f32.mxu1 %vm74_vm0, %v46_v51 }
  0x4b   :  { %218 = vmatmul.mubr.f32.gmra.mxu0 %v29_v52 }
  0x4c   :  { %469 = vmatprep.mubr.msk.f32.mxu0 %vm74_vm0, %v32_v53 }
  0x4d   :  { %258 = vmatmul.mubr.f32.gmra.mxu1 %v45_v54 }
  0x4e   :  { %477 = vmatprep.mubr.msk.f32.mxu1 %vm74_vm0, %v48_v55 }
  0x4f   :  { %223 = vmatmul.mubr.f32.gmra.mxu0 %v31_v56 }
  0x51   :  { %263 = vmatmul.mubr.f32.gmra.mxu1 %v47_v57 }
  0xf3   :  { %v189_v58 = vpop.f32.mrf.mxu0 }
  0xf5   :  { %v191_v59 = vpop.f32.mrf.mxu0  ;;  %v795_v60 = vpop.f32.mrf.mxu1 }
  0xf7   :  { %v194_v61 = vpop.f32.mrf.mxu0  ;;  %v231_v62 = vpop.f32.mrf.mxu1 }
  0xf8   :  { %v268_v11 = vadd.f32 %v194_v61, %v189_v58 }
  0xf9   :  { %v196_v63 = vpop.f32.mrf.mxu0  ;;  %v797_v0 = vpop.f32.mrf.mxu1 }
  0xfb   :  { %v199_v1 = vpop.f32.mrf.mxu0  ;;  %v236_v2 = vpop.f32.mrf.mxu1 }
  0xfc   :  { %v269_v14 = vadd.f32 %v268_v11, %v199_v1 }
  0xfd   :  { %v201_v3 = vpop.f32.mrf.mxu0  ;;  %v799_v4 = vpop.f32.mrf.mxu1 }
  0xff   :  { %v204_v5 = vpop.f32.mrf.mxu0  ;;  %v241_v6 = vpop.f32.mrf.mxu1 }
 0x100   :  { %v270_v17 = vadd.f32 %v269_v14, %v204_v5 }
 0x101   :  { %v206_v7 = vpop.f32.mrf.mxu0  ;;  %v801_v8 = vpop.f32.mrf.mxu1 }
 0x103   :  { %v209_v9 = vpop.f32.mrf.mxu0  ;;  %v246_v10 = vpop.f32.mrf.mxu1 }
 0x104   :  { %v271_v20 = vadd.f32 %v270_v17, %v209_v9 }
 0x105   :  { %v211_v12 = vpop.f32.mrf.mxu0  ;;  %v803_v13 = vpop.f32.mrf.mxu1 }
 0x107   :  { %v214_v15 = vpop.f32.mrf.mxu0  ;;  %v251_v16 = vpop.f32.mrf.mxu1 }
 0x108   :  { %v272_v23 = vadd.f32 %v271_v20, %v214_v15 }
 0x109   :  { %v216_v18 = vpop.f32.mrf.mxu0  ;;  %v254_v19 = vpop.f32.mrf.mxu1 }
 0x10b   :  { %v219_v21 = vpop.f32.mrf.mxu0  ;;  %v256_v22 = vpop.f32.mrf.mxu1 }
 0x10c   :  { %v273_v26 = vadd.f32 %v272_v23, %v219_v21 }
 0x10d   :  { %v221_v24 = vpop.f32.mrf.mxu0  ;;  %v259_v25 = vpop.f32.mrf.mxu1 }
 0x10f   :  { %v224_v27 = vpop.f32.mrf.mxu0  ;;  %v261_v28 = vpop.f32.mrf.mxu1 }
 0x110   :  { %v274_v29 = vadd.f32 %v273_v26, %v224_v27 }
 0x111   :  { %v226_v30 = vpop.f32.mrf.mxu0  ;;  %v264_v31 = vpop.f32.mrf.mxu1 }
 0x112   :  { %v275_v32 = vadd.f32 %v274_v29, %v795_v60 }
 0x113   :  { %v266_v33 = vpop.f32.mrf.mxu1 }
 0x114   :  { %v276_v34 = vadd.f32 %v275_v32, %v797_v0 }
 0x116   :  { %v277_v35 = vadd.f32 %v276_v34, %v799_v4 }
 0x118   :  { %v278_v36 = vadd.f32 %v277_v35, %v801_v8 }
 0x11a   :  { %v279_v37 = vadd.f32 %v278_v36, %v803_v13 }
 0x11c   :  { %v280_v38 = vadd.f32 %v279_v37, %v254_v19 }
 0x11e   :  { %v281_v39 = vadd.f32 %v280_v38, %v259_v25 }
 0x120   :  { %v282_v40 = vadd.f32 %v281_v39, %v264_v31 }
 0x122   :  { %v283_v41 = vrot.slane %v282_v40, 4 }
 0x124   :  { %v284_v42 = vadd.f32 %v283_v41, %v282_v40 }
 0x126   :  { %v285_v43 = vrot.slane %v284_v42, 2 }
 0x128   :  { %v286_v44 = vadd.f32 %v285_v43, %v284_v42 }
 0x12a   :  { %v287_v45 = vrot.slane %v286_v44, 1 }
 0x12c   :  { %v288_v46 = vadd.f32 %v287_v45, %v286_v44 }
 0x12e   :  { %v290_v47 = vmul.f32 0.0078125, %v288_v46 }
 0x130   :  { %v810_v48 = vsub.f32 %v189_v58, %v290_v47  ;;  %v812_v49 = vsub.f32 %v194_v61, %v290_v47  ;;  %v814_v50 = vsub.f32 %v199_v1, %v290_v47  ;;  %v820_v53 = vsub.f32 %v204_v5, %v290_v47 }
 0x131   :  { %v822_v54 = vsub.f32 %v209_v9, %v290_v47  ;;  %v296_v57 = vsub.f32 %v214_v15, %v290_v47  ;;  %v297_v61 = vsub.f32 %v219_v21, %v290_v47  ;;  %v298_v1 = vsub.f32 %v224_v27, %v290_v47 }
 0x132   :  { %v307_v51 = vmul.f32 %v810_v48, %v810_v48  ;;  %v308_v52 = vmul.f32 %v812_v49, %v812_v49  ;;  %v309_v55 = vmul.f32 %v814_v50, %v814_v50  ;;  %v310_v58 = vmul.f32 %v820_v53, %v820_v53 }
 0x133   :  { %v311_v62 = vmul.f32 %v822_v54, %v822_v54  ;;  %v312_v2 = vmul.f32 %v296_v57, %v296_v57  ;;  %v299_v5 = vsub.f32 %v795_v60, %v290_v47  ;;  %v313_v6 = vmul.f32 %v297_v61, %v297_v61 }
 0x134   :  { %v323_v56 = vadd.f32 %v308_v52, %v307_v51  ;;  %v300_v9 = vsub.f32 %v797_v0, %v290_v47  ;;  %v314_v10 = vmul.f32 %v298_v1, %v298_v1  ;;  %v301_v12 = vsub.f32 %v799_v4, %v290_v47 }
 0x135   :  { %v315_v14 = vmul.f32 %v299_v5, %v299_v5  ;;  %v302_v16 = vsub.f32 %v801_v8, %v290_v47  ;;  %v303_v20 = vsub.f32 %v803_v13, %v290_v47  ;;  %v304_v23 = vsub.f32 %v254_v19, %v290_v47 }
 0x136   :  { %v324_v59 = vadd.f32 %v323_v56, %v309_v55  ;;  %v316_v17 = vmul.f32 %v300_v9, %v300_v9  ;;  %v317_v21 = vmul.f32 %v301_v12, %v301_v12  ;;  %v305_v26 = vsub.f32 %v259_v25, %v290_v47 }
 0x137   :  { %v318_v60 = vmul.f32 %v302_v16, %v302_v16  ;;  %v319_v27 = vmul.f32 %v303_v20, %v303_v20  ;;  %v306_v28 = vsub.f32 %v264_v31, %v290_v47  ;;  %v320_v29 = vmul.f32 %v304_v23, %v304_v23  ;;  %v345_v31 = vld [vmem:[%s912_s2] sm:$0x1] }
 0x138   :  { %v325_v63 = vadd.f32 %v324_v59, %v310_v58  ;;  %v321_v4 = vmul.f32 %v305_v26, %v305_v26  ;;  %v350_v25 = vlaneseq }
 0x139   :  { %v322_v33 = vmul.f32 %v306_v28, %v306_v28 }
 0x13a   :  { %v326_v3 = vadd.f32 %v325_v63, %v311_v62  ;;  %v351_v41 = vshrl.u32 %v350_v25, 7  ;;  %v478_v62 = vld [vmem:[%s913_s3] ss:$0 sm:$0xff] }
 0x13c   :  { %v327_v7 = vadd.f32 %v326_v3, %v312_v2  ;;  %v352_v42 = vsub.s32 0, %v351_v41 }
 0x13e   :  { %v328_v11 = vadd.f32 %v327_v7, %v313_v6 }
 0x140   :  { %v329_v15 = vadd.f32 %v328_v11, %v314_v10 }
 0x142   :  { %v330_v18 = vadd.f32 %v329_v15, %v315_v14 }
 0x144   :  { %v331_v22 = vadd.f32 %v330_v18, %v316_v17 }
 0x146   :  { %v332_v24 = vadd.f32 %v331_v22, %v317_v21 }
 0x148   :  { %v333_v0 = vadd.f32 %v332_v24, %v318_v60 }
 0x14a   :  { %v334_v30 = vadd.f32 %v333_v0, %v319_v27 }
 0x14c   :  { %v335_v32 = vadd.f32 %v334_v30, %v320_v29 }
 0x14e   :  { %v336_v34 = vadd.f32 %v335_v32, %v321_v4 }
 0x150   :  { %v337_v8 = vadd.f32 %v336_v34, %v322_v33 }
 0x152   :  { %v338_v35 = vrot.slane %v337_v8, 4 }
 0x154   :  { %v339_v36 = vadd.f32 %v338_v35, %v337_v8 }
 0x156   :  { %v340_v37 = vrot.slane %v339_v36, 2 }
 0x158   :  { %v341_v13 = vadd.f32 %v340_v37, %v339_v36 }
 0x15a   :  { %v342_v38 = vrot.slane %v341_v13, 1 }
 0x15c   :  { %v343_v39 = vadd.f32 %v342_v38, %v341_v13 }
 0x15e   :  { %v344_v19 = vmul.f32 0.0078125, %v343_v39 }
 0x160   :  { %v346_v40 = vadd.f32 1e-05, %v344_v19 }
 0x162   :  { %530 = vrsqrt.f32 %v346_v40 }
 0x16f   :  { %v531_v43 = vpop.eup %530 }
 0x170   :  { %v348_v44 = vmul.f32 %v531_v43, %v345_v31 }
 0x172   :  { %v353_v45 = vrot.slane %v348_v44, %v352_v42 }
 0x174   :  { %v355_v46 = vmul.f32 %v353_v45, %v810_v48  ;;  %v356_v47 = vmul.f32 %v353_v45, %v812_v49  ;;  %v357_v51 = vmul.f32 %v353_v45, %v814_v50  ;;  %v358_v52 = vmul.f32 %v353_v45, %v820_v53 }
 0x175   :  { %v359_v55 = vmul.f32 %v353_v45, %v822_v54  ;;  %v360_v56 = vmul.f32 %v353_v45, %v296_v57  ;;  %v361_v58 = vmul.f32 %v353_v45, %v297_v61  ;;  %v362_v59 = vmul.f32 %v353_v45, %v298_v1 }
 0x176   :  { %v363_v63 = vmul.f32 %v353_v45, %v299_v5  ;;  %v364_v2 = vmul.f32 %v353_v45, %v300_v9  ;;  %v365_v3 = vmul.f32 %v353_v45, %v301_v12  ;;  %v366_v6 = vmul.f32 %v353_v45, %v302_v16 }
 0x177   :  { %v367_v48 = vmul.f32 %v353_v45, %v303_v20  ;;  %v368_v7 = vmul.f32 %v353_v45, %v304_v23  ;;  %v369_v49 = vmul.f32 %v353_v45, %v305_v26  ;;  %v370_v10 = vmul.f32 %v353_v45, %v306_v28 }
 0x178   :  { %v378_v50 = vadd.f32 %v478_v62, %v355_v46  ;;  %v379_v11 = vadd.f32 %v478_v62, %v356_v47  ;;  %v380_v53 = vadd.f32 %v478_v62, %v357_v51  ;;  %v381_v14 = vadd.f32 %v478_v62, %v358_v52 }
 0x179   :  { %v382_v54 = vadd.f32 %v478_v62, %v359_v55  ;;  %v383_v57 = vadd.f32 %v478_v62, %v360_v56  ;;  %v384_v61 = vadd.f32 %v478_v62, %v361_v58  ;;  %v385_v1 = vadd.f32 %v478_v62, %v362_v59 }
 0x17a   :  { %v386_v15 = vadd.f32 %v478_v62, %v363_v63  ;;  %v387_v17 = vadd.f32 %v478_v62, %v364_v2  ;;  %v388_v18 = vadd.f32 %v478_v62, %v365_v3  ;;  %v389_v21 = vadd.f32 %v478_v62, %v366_v6 }
 0x17b   :  { %v390_v5 = vadd.f32 %v478_v62, %v367_v48  ;;  %v391_v9 = vadd.f32 %v478_v62, %v368_v7  ;;  %v392_v12 = vadd.f32 %v478_v62, %v369_v49  ;;  %v393_v16 = vadd.f32 %v478_v62, %v370_v10 }
 0x17c   :  { %vm394_vm1 = vcmp.ge.f32.partialorder %v378_v50, 0.0  ;;  %vm395_vm2 = vcmp.ge.f32.partialorder %v379_v11, 0.0  ;;  %vm396_vm3 = vcmp.ge.f32.partialorder %v380_v53, 0.0  ;;  %vm397_vm4 = vcmp.ge.f32.partialorder %v381_v14, 0.0 }
 0x17d   :  { %vm398_vm5 = vcmp.ge.f32.partialorder %v382_v54, 0.0  ;;  %vm399_vm6 = vcmp.ge.f32.partialorder %v383_v57, 0.0  ;;  %vm400_vm7 = vcmp.ge.f32.partialorder %v384_v61, 0.0  ;;  %vm401_vm8 = vcmp.ge.f32.partialorder %v385_v1, 0.0 }
 0x17e   :  { %vm402_vm9 = vcmp.ge.f32.partialorder %v386_v15, 0.0  ;;  %vm403_vm10 = vcmp.ge.f32.partialorder %v387_v17, 0.0  ;;  %vm404_vm11 = vcmp.ge.f32.partialorder %v388_v18, 0.0  ;;  %vm405_vm12 = vcmp.ge.f32.partialorder %v389_v21, 0.0 }
 0x17f   :  { %vm406_vm13 = vcmp.ge.f32.partialorder %v390_v5, 0.0  ;;  %vm407_vm14 = vcmp.ge.f32.partialorder %v391_v9, 0.0  ;;  %vm408_vm15 = vcmp.ge.f32.partialorder %v392_v12, 0.0  ;;  %vm409_vm0 = vcmp.ge.f32.partialorder %v393_v16, 0.0 }
 0x180   :  { %v410_v20 = vmul.f32 0.01, %v378_v50  ;;  %v411_v22 = vmul.f32 0.01, %v379_v11  ;;  %v412_v23 = vmul.f32 0.01, %v380_v53 }
 0x181   :  { %v413_v60 = vmul.f32 0.01, %v381_v14  ;;  %v414_v24 = vmul.f32 0.01, %v382_v54  ;;  %v415_v26 = vmul.f32 0.01, %v383_v57 }
 0x182   :  { %v416_v27 = vmul.f32 0.01, %v384_v61  ;;  %v417_v0 = vmul.f32 0.01, %v385_v1  ;;  %v418_v28 = vmul.f32 0.01, %v386_v15  ;;  %v426_v29 = vsel %vm394_vm1, %v378_v50, %v410_v20 }
 0x183   :  { %v419_v30 = vmul.f32 0.01, %v387_v17  ;;  %v420_v4 = vmul.f32 0.01, %v388_v18  ;;  %v421_v32 = vmul.f32 0.01, %v389_v21  ;;  %v427_v33 = vsel %vm395_vm2, %v379_v11, %v411_v22  ;;  %442 = vst [vmem:[%s914_s4] sm:$0xff] %v426_v29 }
 0x184   :  { %v422_v34 = vmul.f32 0.01, %v390_v5  ;;  %v423_v8 = vmul.f32 0.01, %v391_v9  ;;  %v424_v35 = vmul.f32 0.01, %v392_v12  ;;  %v428_v36 = vsel %vm396_vm3, %v380_v53, %v412_v23 }
 0x185   :  { %443 = vst [vmem:[%s914_s4 + $0x8] sm:$0xff] %v427_v33  ;;  %v425_v37 = vmul.f32 0.01, %v393_v16  ;;  %v429_v13 = vsel %vm397_vm4, %v381_v14, %v413_v60  ;;  %v430_v38 = vsel %vm398_vm5, %v382_v54, %v414_v24  ;;  %v431_v39 = vsel %vm399_vm6, %v383_v57, %v415_v26  ;;  %444 = vst [vmem:[%s914_s4 + $0x10] sm:$0xff] %v428_v36 }
 0x186   :  { %v432_v19 = vsel %vm400_vm7, %v384_v61, %v416_v27  ;;  %v433_v40 = vsel %vm401_vm8, %v385_v1, %v417_v0  ;;  %v434_v25 = vsel %vm402_vm9, %v386_v15, %v418_v28  ;;  %v435_v41 = vsel %vm403_vm10, %v387_v17, %v419_v30  ;;  %445 = vst [vmem:[%s914_s4 + $0x18] sm:$0xff] %v429_v13 }
 0x187   :  { %446 = vst [vmem:[%s914_s4 + $0x20] sm:$0xff] %v430_v38  ;;  %447 = vst [vmem:[%s914_s4 + $0x28] sm:$0xff] %v431_v39  ;;  %v436_v31 = vsel %vm404_vm11, %v388_v18, %v420_v4  ;;  %v437_v42 = vsel %vm405_vm12, %v389_v21, %v421_v32  ;;  %v438_v43 = vsel %vm406_vm13, %v390_v5, %v422_v34 }
 0x188   :  { %v439_v44 = vsel %vm407_vm14, %v391_v9, %v423_v8  ;;  %448 = vst [vmem:[%s914_s4 + $0x30] sm:$0xff] %v432_v19  ;;  %449 = vst [vmem:[%s914_s4 + $0x38] sm:$0xff] %v433_v40  ;;  %v440_v45 = vsel %vm408_vm15, %v392_v12, %v424_v35  ;;  %v441_v46 = vsel %vm409_vm0, %v393_v16, %v425_v37 }
 0x189   :  { %450 = vst [vmem:[%s914_s4 + $0x40] sm:$0xff] %v434_v25  ;;  %451 = vst [vmem:[%s914_s4 + $0x48] sm:$0xff] %v435_v41 }
 0x18a   :  { %452 = vst [vmem:[%s914_s4 + $0x50] sm:$0xff] %v436_v31  ;;  %453 = vst [vmem:[%s914_s4 + $0x58] sm:$0xff] %v437_v42 }
 0x18b   :  { %454 = vst [vmem:[%s914_s4 + $0x60] sm:$0xff] %v438_v43  ;;  %455 = vst [vmem:[%s914_s4 + $0x68] sm:$0xff] %v439_v44 }
 0x18c   :  { %456 = vst [vmem:[%s914_s4 + $0x70] sm:$0xff] %v440_v45  ;;  %457 = vst [vmem:[%s914_s4 + $0x78] sm:$0xff] %v441_v46 }

// kernel: shape_prior_vae_forward.13
= control target key start
LH: loop header
LB: loop body
LE: loop exit
PB: predicated region body
PF: predicated region fallthrough
CT: control target
= control target key end

     0   :  { %vm291_vm0 = vcmask 1043456   ;;  %vm98_vm1 = vcmask 818176   ;;  %s1615_s1 = inlined_call_operand.vmem [shape: f32[100,128], index: 1, kind: input, shape index: {}]   ;;  %s1616_s0 = inlined_call_operand.vmem [shape: f32[512,100], index: 0, kind: input, shape index: {}]   ;;  %s1617_s2 = inlined_call_operand.vmem [shape: f32[1,128], index: 2, kind: input, shape index: {}]   ;;  %s1618_s3 = inlined_call_operand.vmem [shape: f32[512,128], index: 3, kind: output, shape index: {}]  }
   0x1   :  { %v90_v0 = vld [vmem:[%s1615_s1 + $0x60] sm:$0xf]  ;;  %v89_v1 = vld [vmem:[%s1615_s1 + $0x58] sm:$0xff]  ;;  %v88_v2 = vld [vmem:[%s1615_s1 + $0x50] sm:$0xff] }
   0x2   :  { %891 = vmatprep.subr.msk.mxu0 %vm291_vm0, %v90_v0  ;;  %1013 = vmatprep.subr.msk.mxu1 %vm291_vm0, %v90_v0  ;;  %v87_v3 = vld [vmem:[%s1615_s1 + $0x48] sm:$0xff]  ;;  %v86_v4 = vld [vmem:[%s1615_s1 + $0x40] sm:$0xff]  ;;  %v85_v5 = vld [vmem:[%s1615_s1 + $0x38] sm:$0xff] }
   0x3   :  { %892 = vmatpush3.msk.msra.mxu0 %vm291_vm0, %v90_v0  ;;  %1026 = vmatpush3.msk.msra.mxu1 %vm291_vm0, %v90_v0  ;;  %v84_v6 = vld [vmem:[%s1615_s1 + $0x30] sm:$0xff]  ;;  %v83_v7 = vld [vmem:[%s1615_s1 + $0x28] sm:$0xff]  ;;  %v82_v8 = vld [vmem:[%s1615_s1 + $0x20] sm:$0xff] }
   0x4   :  { %893 = vmatprep.subr.mxu0 %v89_v1  ;;  %1014 = vmatprep.subr.mxu1 %v89_v1  ;;  %v81_v9 = vld [vmem:[%s1615_s1 + $0x18] sm:$0xff]  ;;  %v80_v10 = vld [vmem:[%s1615_s1 + $0x10] sm:$0xff]  ;;  %v79_v11 = vld [vmem:[%s1615_s1 + $0x8] sm:$0xff] }
   0x5   :  { %894 = vmatpush3.msra.mxu0 %v89_v1  ;;  %1027 = vmatpush3.msra.mxu1 %v89_v1  ;;  %v78_v12 = vld [vmem:[%s1615_s1] sm:$0xff]  ;;  %v15_v15 = vld [vmem:[%s1616_s0 + $0x8] sm:$0xff]  ;;  %v16_v17 = vld [vmem:[%s1616_s0 + $0x10] sm:$0xff] }
   0x6   :  { %895 = vmatprep.subr.mxu0 %v88_v2  ;;  %1015 = vmatprep.subr.mxu1 %v88_v2  ;;  %v14_v13 = vld [vmem:[%s1616_s0] sm:$0xff]  ;;  %v47_v16 = vld [vmem:[%s1616_s0 + $0x108] sm:$0xff]  ;;  %v48_v18 = vld [vmem:[%s1616_s0 + $0x110] sm:$0xff] }
   0x7   :  { %896 = vmatpush3.msra.mxu0 %v88_v2  ;;  %1028 = vmatpush3.msra.mxu1 %v88_v2  ;;  %v46_v14 = vld [vmem:[%s1616_s0 + $0x100] sm:$0xff]  ;;  %v17_v19 = vld [vmem:[%s1616_s0 + $0x18] sm:$0xff]  ;;  %v19_v23 = vld [vmem:[%s1616_s0 + $0x28] sm:$0xff] }
   0x8   :  { %897 = vmatprep.subr.mxu0 %v87_v3  ;;  %1016 = vmatprep.subr.mxu1 %v87_v3  ;;  %v49_v20 = vld [vmem:[%s1616_s0 + $0x118] sm:$0xff]  ;;  %v18_v21 = vld [vmem:[%s1616_s0 + $0x20] sm:$0xff]  ;;  %v51_v24 = vld [vmem:[%s1616_s0 + $0x128] sm:$0xff] }
   0x9   :  { %898 = vmatpush3.msra.mxu0 %v87_v3  ;;  %1029 = vmatpush3.msra.mxu1 %v87_v3  ;;  %v50_v22 = vld [vmem:[%s1616_s0 + $0x120] sm:$0xff]  ;;  %v20_v25 = vld [vmem:[%s1616_s0 + $0x30] sm:$0xff]  ;;  %v21_v27 = vld [vmem:[%s1616_s0 + $0x38] sm:$0xff] }
   0xa   :  { %899 = vmatprep.subr.mxu0 %v86_v4  ;;  %1017 = vmatprep.subr.mxu1 %v86_v4  ;;  %v52_v26 = vld [vmem:[%s1616_s0 + $0x130] sm:$0xff]  ;;  %v53_v28 = vld [vmem:[%s1616_s0 + $0x138] sm:$0xff]  ;;  %v22_v29 = vld [vmem:[%s1616_s0 + $0x40] sm:$0xff] }
   0xb   :  { %900 = vmatpush3.msra.mxu0 %v86_v4  ;;  %1030 = vmatpush3.msra.mxu1 %v86_v4  ;;  %v54_v30 = vld [vmem:[%s1616_s0 + $0x140] sm:$0xff]  ;;  %v23_v31 = vld [vmem:[%s1616_s0 + $0x48] sm:$0xff]  ;;  %v24_v33 = vld [vmem:[%s1616_s0 + $0x50] sm:$0xff] }
   0xc   :  { %901 = vmatprep.subr.mxu0 %v85_v5  ;;  %1018 = vmatprep.subr.mxu1 %v85_v5  ;;  %v55_v32 = vld [vmem:[%s1616_s0 + $0x148] sm:$0xff]  ;;  %v56_v34 = vld [vmem:[%s1616_s0 + $0x150] sm:$0xff]  ;;  %v25_v35 = vld [vmem:[%s1616_s0 + $0x58] sm:$0xff] }
   0xd   :  { %902 = vmatpush3.msra.mxu0 %v85_v5  ;;  %1031 = vmatpush3.msra.mxu1 %v85_v5  ;;  %v57_v36 = vld [vmem:[%s1616_s0 + $0x158] sm:$0xff]  ;;  %v26_v37 = vld [vmem:[%s1616_s0 + $0x60] sm:$0xff]  ;;  %v27_v39 = vld [vmem:[%s1616_s0 + $0x68] sm:$0xff] }
   0xe   :  { %903 = vmatprep.subr.mxu0 %v84_v6  ;;  %1019 = vmatprep.subr.mxu1 %v84_v6  ;;  %v58_v38 = vld [vmem:[%s1616_s0 + $0x160] sm:$0xff]  ;;  %v59_v40 = vld [vmem:[%s1616_s0 + $0x168] sm:$0xff]  ;;  %v28_v41 = vld [vmem:[%s1616_s0 + $0x70] sm:$0xff] }
   0xf   :  { %904 = vmatpush3.msra.mxu0 %v84_v6  ;;  %1032 = vmatpush3.msra.mxu1 %v84_v6  ;;  %v60_v42 = vld [vmem:[%s1616_s0 + $0x170] sm:$0xff]  ;;  %v29_v43 = vld [vmem:[%s1616_s0 + $0x78] sm:$0xff]  ;;  %v30_v45 = vld [vmem:[%s1616_s0 + $0x80] sm:$0xff] }
  0x10   :  { %905 = vmatprep.subr.mxu0 %v83_v7  ;;  %1020 = vmatprep.subr.mxu1 %v83_v7  ;;  %v61_v44 = vld [vmem:[%s1616_s0 + $0x178] sm:$0xff]  ;;  %v62_v46 = vld [vmem:[%s1616_s0 + $0x180] sm:$0xff]  ;;  %v31_v47 = vld [vmem:[%s1616_s0 + $0x88] sm:$0xff] }
  0x11   :  { %906 = vmatpush3.msra.mxu0 %v83_v7  ;;  %1033 = vmatpush3.msra.mxu1 %v83_v7  ;;  %v63_v48 = vld [vmem:[%s1616_s0 + $0x188] sm:$0xff]  ;;  %v32_v49 = vld [vmem:[%s1616_s0 + $0x90] sm:$0xff]  ;;  %v33_v51 = vld [vmem:[%s1616_s0 + $0x98] sm:$0xff] }
  0x12   :  { %907 = vmatprep.subr.mxu0 %v82_v8  ;;  %1021 = vmatprep.subr.mxu1 %v82_v8  ;;  %v64_v50 = vld [vmem:[%s1616_s0 + $0x190] sm:$0xff]  ;;  %v65_v52 = vld [vmem:[%s1616_s0 + $0x198] sm:$0xff]  ;;  %v34_v53 = vld [vmem:[%s1616_s0 + $0xa0] sm:$0xff] }
  0x13   :  { %908 = vmatpush3.msra.mxu0 %v82_v8  ;;  %1034 = vmatpush3.msra.mxu1 %v82_v8  ;;  %v66_v54 = vld [vmem:[%s1616_s0 + $0x1a0] sm:$0xff]  ;;  %v35_v55 = vld [vmem:[%s1616_s0 + $0xa8] sm:$0xff]  ;;  %v36_v57 = vld [vmem:[%s1616_s0 + $0xb0] sm:$0xff] }
  0x14   :  { %909 = vmatprep.subr.mxu0 %v81_v9  ;;  %1022 = vmatprep.subr.mxu1 %v81_v9  ;;  %v67_v56 = vld [vmem:[%s1616_s0 + $0x1a8] sm:$0xff]  ;;  %v68_v58 = vld [vmem:[%s1616_s0 + $0x1b0] sm:$0xff]  ;;  %v37_v59 = vld [vmem:[%s1616_s0 + $0xb8] sm:$0xff] }
  0x15   :  { %910 = vmatpush3.msra.mxu0 %v81_v9  ;;  %1035 = vmatpush3.msra.mxu1 %v81_v9  ;;  %v69_v60 = vld [vmem:[%s1616_s0 + $0x1b8] sm:$0xff]  ;;  %v38_v61 = vld [vmem:[%s1616_s0 + $0xc0] sm:$0xff]  ;;  %v39_v63 = vld [vmem:[%s1616_s0 + $0xc8] sm:$0xff] }
  0x16   :  { %911 = vmatprep.subr.mxu0 %v80_v10  ;;  %1023 = vmatprep.subr.mxu1 %v80_v10  ;;  %v70_v62 = vld [vmem:[%s1616_s0 + $0x1c0] sm:$0xff]  ;;  %v71_v0 = vld [vmem:[%s1616_s0 + $0x1c8] sm:$0xff]  ;;  %v40_v1 = vld [vmem:[%s1616_s0 + $0xd0] sm:$0xff] }
  0x17   :  { %912 = vmatpush3.msra.mxu0 %v80_v10  ;;  %1036 = vmatpush3.msra.mxu1 %v80_v10  ;;  %v72_v2 = vld [vmem:[%s1616_s0 + $0x1d0] sm:$0xff]  ;;  %v41_v3 = vld [vmem:[%s1616_s0 + $0xd8] sm:$0xff]  ;;  %v42_v5 = vld [vmem:[%s1616_s0 + $0xe0] sm:$0xff] }
  0x18   :  { %913 = vmatprep.subr.mxu0 %v79_v11  ;;  %1024 = vmatprep.subr.mxu1 %v79_v11  ;;  %v73_v4 = vld [vmem:[%s1616_s0 + $0x1d8] sm:$0xff]  ;;  %v74_v6 = vld [vmem:[%s1616_s0 + $0x1e0] sm:$0xff]  ;;  %v43_v7 = vld [vmem:[%s1616_s0 + $0xe8] sm:$0xff] }
  0x19   :  { %914 = vmatpush3.msra.mxu0 %v79_v11  ;;  %1037 = vmatpush3.msra.mxu1 %v79_v11  ;;  %v75_v8 = vld [vmem:[%s1616_s0 + $0x1e8] sm:$0xff]  ;;  %v44_v9 = vld [vmem:[%s1616_s0 + $0xf0] sm:$0xff]  ;;  %v45_v11 = vld [vmem:[%s1616_s0 + $0xf8] sm:$0xff] }
  0x1a   :  { %915 = vmatprep.subr.mxu0 %v78_v12  ;;  %1025 = vmatprep.subr.mxu1 %v78_v12  ;;  %v76_v10 = vld [vmem:[%s1616_s0 + $0x1f0] sm:$0xff] }
  0x1b   :  { %916 = vmatpush3.msra.mxu0 %v78_v12  ;;  %1038 = vmatpush3.msra.mxu1 %v78_v12  ;;  %v77_v12 = vld [vmem:[%s1616_s0 + $0x1f8] sm:$0xff] }
  0x1c   :  { %917 = vmatprep.mubr.msk.f32.mxu0 %vm98_vm1, %v14_v13  ;;  %965 = vmatprep.mubr.msk.f32.mxu1 %vm98_vm1, %v46_v14  ;;  %v1357_v13 = vld [vmem:[%s1617_s2] ss:$0 sm:$0xff] }
  0x1d   :  { %918 = vmatmul.mubr.msk.f32.vlgmr.msra.gmra.mxu0 %vm98_vm1, %v15_v15  ;;  %966 = vmatmul.mubr.msk.f32.vlgmr.msra.gmra.mxu1 %vm98_vm1, %v47_v16 }
  0x1e   :  { %920 = vmatprep.mubr.msk.f32.mxu0 %vm98_vm1, %v16_v17  ;;  %968 = vmatprep.mubr.msk.f32.mxu1 %vm98_vm1, %v48_v18 }
  0x21   :  { %921 = vmatmul.mubr.msk.f32.gmra.mxu0 %vm98_vm1, %v17_v19  ;;  %969 = vmatmul.mubr.msk.f32.gmra.mxu1 %vm98_vm1, %v49_v20 }
  0x22   :  { %923 = vmatprep.mubr.msk.f32.mxu0 %vm98_vm1, %v18_v21  ;;  %971 = vmatprep.mubr.msk.f32.mxu1 %vm98_vm1, %v50_v22 }
  0x25   :  { %924 = vmatmul.mubr.msk.f32.gmra.mxu0 %vm98_vm1, %v19_v23  ;;  %972 = vmatmul.mubr.msk.f32.gmra.mxu1 %vm98_vm1, %v51_v24 }
  0x26   :  { %926 = vmatprep.mubr.msk.f32.mxu0 %vm98_vm1, %v20_v25  ;;  %974 = vmatprep.mubr.msk.f32.mxu1 %vm98_vm1, %v52_v26 }
  0x29   :  { %927 = vmatmul.mubr.msk.f32.gmra.mxu0 %vm98_vm1, %v21_v27  ;;  %975 = vmatmul.mubr.msk.f32.gmra.mxu1 %vm98_vm1, %v53_v28 }
  0x2a   :  { %929 = vmatprep.mubr.msk.f32.mxu0 %vm98_vm1, %v22_v29  ;;  %977 = vmatprep.mubr.msk.f32.mxu1 %vm98_vm1, %v54_v30 }
  0x2d   :  { %930 = vmatmul.mubr.msk.f32.gmra.mxu0 %vm98_vm1, %v23_v31  ;;  %978 = vmatmul.mubr.msk.f32.gmra.mxu1 %vm98_vm1, %v55_v32 }
  0x2e   :  { %932 = vmatprep.mubr.msk.f32.mxu0 %vm98_vm1, %v24_v33  ;;  %980 = vmatprep.mubr.msk.f32.mxu1 %vm98_vm1, %v56_v34 }
  0x31   :  { %933 = vmatmul.mubr.msk.f32.gmra.mxu0 %vm98_vm1, %v25_v35  ;;  %981 = vmatmul.mubr.msk.f32.gmra.mxu1 %vm98_vm1, %v57_v36 }
  0x32   :  { %935 = vmatprep.mubr.msk.f32.mxu0 %vm98_vm1, %v26_v37  ;;  %983 = vmatprep.mubr.msk.f32.mxu1 %vm98_vm1, %v58_v38 }
  0x35   :  { %936 = vmatmul.mubr.msk.f32.gmra.mxu0 %vm98_vm1, %v27_v39  ;;  %984 = vmatmul.mubr.msk.f32.gmra.mxu1 %vm98_vm1, %v59_v40 }
  0x36   :  { %938 = vmatprep.mubr.msk.f32.mxu0 %vm98_vm1, %v28_v41  ;;  %986 = vmatprep.mubr.msk.f32.mxu1 %vm98_vm1, %v60_v42 }
  0x39   :  { %939 = vmatmul.mubr.msk.f32.gmra.mxu0 %vm98_vm1, %v29_v43  ;;  %987 = vmatmul.mubr.msk.f32.gmra.mxu1 %vm98_vm1, %v61_v44 }
  0x3a   :  { %941 = vmatprep.mubr.msk.f32.mxu0 %vm98_vm1, %v30_v45  ;;  %989 = vmatprep.mubr.msk.f32.mxu1 %vm98_vm1, %v62_v46 }
  0x3d   :  { %942 = vmatmul.mubr.msk.f32.gmra.mxu0 %vm98_vm1, %v31_v47  ;;  %990 = vmatmul.mubr.msk.f32.gmra.mxu1 %vm98_vm1, %v63_v48 }
  0x3e   :  { %944 = vmatprep.mubr.msk.f32.mxu0 %vm98_vm1, %v32_v49  ;;  %992 = vmatprep.mubr.msk.f32.mxu1 %vm98_vm1, %v64_v50 }
  0x41   :  { %945 = vmatmul.mubr.msk.f32.gmra.mxu0 %vm98_vm1, %v33_v51  ;;  %993 = vmatmul.mubr.msk.f32.gmra.mxu1 %vm98_vm1, %v65_v52 }
  0x42   :  { %947 = vmatprep.mubr.msk.f32.mxu0 %vm98_vm1, %v34_v53  ;;  %995 = vmatprep.mubr.msk.f32.mxu1 %vm98_vm1, %v66_v54 }
  0x45   :  { %948 = vmatmul.mubr.msk.f32.gmra.mxu0 %vm98_vm1, %v35_v55  ;;  %996 = vmatmul.mubr.msk.f32.gmra.mxu1 %vm98_vm1, %v67_v56 }
  0x46   :  { %950 = vmatprep.mubr.msk.f32.mxu0 %vm98_vm1, %v36_v57  ;;  %998 = vmatprep.mubr.msk.f32.mxu1 %vm98_vm1, %v68_v58 }
  0x49   :  { %951 = vmatmul.mubr.msk.f32.gmra.mxu0 %vm98_vm1, %v37_v59  ;;  %999 = vmatmul.mubr.msk.f32.gmra.mxu1 %vm98_vm1, %v69_v60 }
  0x4a   :  { %953 = vmatprep.mubr.msk.f32.mxu0 %vm98_vm1, %v38_v61  ;;  %1001 = vmatprep.mubr.msk.f32.mxu1 %vm98_vm1, %v70_v62 }
  0x4d   :  { %954 = vmatmul.mubr.msk.f32.gmra.mxu0 %vm98_vm1, %v39_v63  ;;  %1002 = vmatmul.mubr.msk.f32.gmra.mxu1 %vm98_vm1, %v71_v0 }
  0x4e   :  { %956 = vmatprep.mubr.msk.f32.mxu0 %vm98_vm1, %v40_v1  ;;  %1004 = vmatprep.mubr.msk.f32.mxu1 %vm98_vm1, %v72_v2 }
  0x51   :  { %957 = vmatmul.mubr.msk.f32.gmra.mxu0 %vm98_vm1, %v41_v3  ;;  %1005 = vmatmul.mubr.msk.f32.gmra.mxu1 %vm98_vm1, %v73_v4 }
  0x52   :  { %959 = vmatprep.mubr.msk.f32.mxu0 %vm98_vm1, %v42_v5  ;;  %1007 = vmatprep.mubr.msk.f32.mxu1 %vm98_vm1, %v74_v6 }
  0x55   :  { %960 = vmatmul.mubr.msk.f32.gmra.mxu0 %vm98_vm1, %v43_v7  ;;  %1008 = vmatmul.mubr.msk.f32.gmra.mxu1 %vm98_vm1, %v75_v8 }
  0x56   :  { %962 = vmatprep.mubr.msk.f32.mxu0 %vm98_vm1, %v44_v9  ;;  %1010 = vmatprep.mubr.msk.f32.mxu1 %vm98_vm1, %v76_v10 }
  0x59   :  { %963 = vmatmul.mubr.msk.f32.gmra.mxu0 %vm98_vm1, %v45_v11  ;;  %1011 = vmatmul.mubr.msk.f32.gmra.mxu1 %vm98_vm1, %v77_v12 }
  0xdd   :  { %v919_v14 = vpop.f32.mrf.mxu0  ;;  %v967_v15 = vpop.f32.mrf.mxu1 }
  0xde   :  { %v367_v16 = vadd.f32 %v919_v14, %v1357_v13  ;;  %v527_v17 = vadd.f32 %v967_v15, %v1357_v13 }
  0xdf   :  { %v361_v18 = vpop.f32.mrf.mxu0  ;;  %v521_v19 = vpop.f32.mrf.mxu1 }
  0xe0   :  { %681 = vst [vmem:[%s1618_s3 + $0x8] sm:$0xff] %v367_v16  ;;  %713 = vst [vmem:[%s1618_s3 + $0x108] sm:$0xff] %v527_v17  ;;  %v362_v20 = vadd.f32 %v1357_v13, %v361_v18  ;;  %v522_v21 = vadd.f32 %v1357_v13, %v521_v19 }
  0xe1   :  { %v922_v22 = vpop.f32.mrf.mxu0  ;;  %v970_v23 = vpop.f32.mrf.mxu1 }
  0xe2   :  { %680 = vst [vmem:[%s1618_s3] sm:$0xff] %v362_v20  ;;  %712 = vst [vmem:[%s1618_s3 + $0x100] sm:$0xff] %v522_v21  ;;  %v377_v24 = vadd.f32 %v922_v22, %v1357_v13  ;;  %v537_v25 = vadd.f32 %v970_v23, %v1357_v13 }
  0xe3   :  { %v371_v26 = vpop.f32.mrf.mxu0  ;;  %v531_v27 = vpop.f32.mrf.mxu1 }
  0xe4   :  { %683 = vst [vmem:[%s1618_s3 + $0x18] sm:$0xff] %v377_v24  ;;  %715 = vst [vmem:[%s1618_s3 + $0x118] sm:$0xff] %v537_v25  ;;  %v372_v28 = vadd.f32 %v1357_v13, %v371_v26  ;;  %v532_v29 = vadd.f32 %v1357_v13, %v531_v27 }
  0xe5   :  { %v925_v30 = vpop.f32.mrf.mxu0  ;;  %v973_v31 = vpop.f32.mrf.mxu1 }
  0xe6   :  { %682 = vst [vmem:[%s1618_s3 + $0x10] sm:$0xff] %v372_v28  ;;  %714 = vst [vmem:[%s1618_s3 + $0x110] sm:$0xff] %v532_v29  ;;  %v387_v32 = vadd.f32 %v925_v30, %v1357_v13  ;;  %v547_v33 = vadd.f32 %v973_v31, %v1357_v13 }
  0xe7   :  { %v381_v34 = vpop.f32.mrf.mxu0  ;;  %v541_v35 = vpop.f32.mrf.mxu1 }
  0xe8   :  { %685 = vst [vmem:[%s1618_s3 + $0x28] sm:$0xff] %v387_v32  ;;  %717 = vst [vmem:[%s1618_s3 + $0x128] sm:$0xff] %v547_v33  ;;  %v382_v36 = vadd.f32 %v1357_v13, %v381_v34  ;;  %v542_v37 = vadd.f32 %v1357_v13, %v541_v35 }
  0xe9   :  { %v928_v38 = vpop.f32.mrf.mxu0  ;;  %v976_v39 = vpop.f32.mrf.mxu1 }
  0xea   :  { %684 = vst [vmem:[%s1618_s3 + $0x20] sm:$0xff] %v382_v36  ;;  %716 = vst [vmem:[%s1618_s3 + $0x120] sm:$0xff] %v542_v37  ;;  %v397_v40 = vadd.f32 %v928_v38, %v1357_v13  ;;  %v557_v41 = vadd.f32 %v976_v39, %v1357_v13 }
  0xeb   :  { %v391_v42 = vpop.f32.mrf.mxu0  ;;  %v551_v43 = vpop.f32.mrf.mxu1 }
  0xec   :  { %687 = vst [vmem:[%s1618_s3 + $0x38] sm:$0xff] %v397_v40  ;;  %719 = vst [vmem:[%s1618_s3 + $0x138] sm:$0xff] %v557_v41  ;;  %v392_v44 = vadd.f32 %v1357_v13, %v391_v42  ;;  %v552_v45 = vadd.f32 %v1357_v13, %v551_v43 }
  0xed   :  { %v931_v46 = vpop.f32.mrf.mxu0  ;;  %v979_v47 = vpop.f32.mrf.mxu1 }
  0xee   :  { %686 = vst [vmem:[%s1618_s3 + $0x30] sm:$0xff] %v392_v44  ;;  %718 = vst [vmem:[%s1618_s3 + $0x130] sm:$0xff] %v552_v45  ;;  %v407_v48 = vadd.f32 %v931_v46, %v1357_v13  ;;  %v567_v49 = vadd.f32 %v979_v47, %v1357_v13 }
  0xef   :  { %v401_v50 = vpop.f32.mrf.mxu0  ;;  %v561_v51 = vpop.f32.mrf.mxu1 }
  0xf0   :  { %689 = vst [vmem:[%s1618_s3 + $0x48] sm:$0xff] %v407_v48  ;;  %721 = vst [vmem:[%s1618_s3 + $0x148] sm:$0xff] %v567_v49  ;;  %v402_v52 = vadd.f32 %v1357_v13, %v401_v50  ;;  %v562_v53 = vadd.f32 %v1357_v13, %v561_v51 }
  0xf1   :  { %v934_v54 = vpop.f32.mrf.mxu0  ;;  %v982_v55 = vpop.f32.mrf.mxu1 }
  0xf2   :  { %688 = vst [vmem:[%s1618_s3 + $0x40] sm:$0xff] %v402_v52  ;;  %720 = vst [vmem:[%s1618_s3 + $0x140] sm:$0xff] %v562_v53  ;;  %v417_v56 = vadd.f32 %v934_v54, %v1357_v13  ;;  %v577_v57 = vadd.f32 %v982_v55, %v1357_v13 }
  0xf3   :  { %v411_v58 = vpop.f32.mrf.mxu0  ;;  %v571_v59 = vpop.f32.mrf.mxu1 }
  0xf4   :  { %691 = vst [vmem:[%s1618_s3 + $0x58] sm:$0xff] %v417_v56  ;;  %723 = vst [vmem:[%s1618_s3 + $0x158] sm:$0xff] %v577_v57  ;;  %v412_v60 = vadd.f32 %v1357_v13, %v411_v58  ;;  %v572_v61 = vadd.f32 %v1357_v13, %v571_v59 }
  0xf5   :  { %v937_v62 = vpop.f32.mrf.mxu0  ;;  %v985_v63 = vpop.f32.mrf.mxu1 }
  0xf6   :  { %690 = vst [vmem:[%s1618_s3 + $0x50] sm:$0xff] %v412_v60  ;;  %722 = vst [vmem:[%s1618_s3 + $0x150] sm:$0xff] %v572_v61  ;;  %v427_v0 = vadd.f32 %v937_v62, %v1357_v13  ;;  %v587_v1 = vadd.f32 %v985_v63, %v1357_v13 }
  0xf7   :  { %v421_v2 = vpop.f32.mrf.mxu0  ;;  %v581_v3 = vpop.f32.mrf.mxu1 }
  0xf8   :  { %693 = vst [vmem:[%s1618_s3 + $0x68] sm:$0xff] %v427_v0  ;;  %725 = vst [vmem:[%s1618_s3 + $0x168] sm:$0xff] %v587_v1  ;;  %v422_v4 = vadd.f32 %v1357_v13, %v421_v2  ;;  %v582_v5 = vadd.f32 %v1357_v13, %v581_v3 }
  0xf9   :  { %v940_v6 = vpop.f32.mrf.mxu0  ;;  %v988_v7 = vpop.f32.mrf.mxu1 }
  0xfa   :  { %692 = vst [vmem:[%s1618_s3 + $0x60] sm:$0xff] %v422_v4  ;;  %724 = vst [vmem:[%s1618_s3 + $0x160] sm:$0xff] %v582_v5  ;;  %v437_v8 = vadd.f32 %v940_v6, %v1357_v13  ;;  %v597_v9 = vadd.f32 %v988_v7, %v1357_v13 }
  0xfb   :  { %v431_v10 = vpop.f32.mrf.mxu0  ;;  %v591_v11 = vpop.f32.mrf.mxu1 }
  0xfc   :  { %695 = vst [vmem:[%s1618_s3 + $0x78] sm:$0xff] %v437_v8  ;;  %727 = vst [vmem:[%s1618_s3 + $0x178] sm:$0xff] %v597_v9  ;;  %v432_v12 = vadd.f32 %v1357_v13, %v431_v10  ;;  %v592_v14 = vadd.f32 %v1357_v13, %v591_v11 }
  0xfd   :  { %v943_v15 = vpop.f32.mrf.mxu0  ;;  %v991_v16 = vpop.f32.mrf.mxu1 }
  0xfe   :  { %694 = vst [vmem:[%s1618_s3 + $0x70] sm:$0xff] %v432_v12  ;;  %726 = vst [vmem:[%s1618_s3 + $0x170] sm:$0xff] %v592_v14  ;;  %v447_v17 = vadd.f32 %v943_v15, %v1357_v13  ;;  %v607_v18 = vadd.f32 %v991_v16, %v1357_v13 }
  0xff   :  { %v441_v19 = vpop.f32.mrf.mxu0  ;;  %v601_v20 = vpop.f32.mrf.mxu1 }
 0x100   :  { %697 = vst [vmem:[%s1618_s3 + $0x88] sm:$0xff] %v447_v17  ;;  %729 = vst [vmem:[%s1618_s3 + $0x188] sm:$0xff] %v607_v18  ;;  %v442_v21 = vadd.f32 %v1357_v13, %v441_v19  ;;  %v602_v22 = vadd.f32 %v1357_v13, %v601_v20 }
 0x101   :  { %v946_v23 = vpop.f32.mrf.mxu0  ;;  %v994_v24 = vpop.f32.mrf.mxu1 }
 0x102   :  { %696 = vst [vmem:[%s1618_s3 + $0x80] sm:$0xff] %v442_v21  ;;  %728 = vst [vmem:[%s1618_s3 + $0x180] sm:$0xff] %v602_v22  ;;  %v457_v25 = vadd.f32 %v946_v23, %v1357_v13  ;;  %v617_v26 = vadd.f32 %v994_v24, %v1357_v13 }
 0x103   :  { %v451_v27 = vpop.f32.mrf.mxu0  ;;  %v611_v28 = vpop.f32.mrf.mxu1 }
 0x104   :  { %699 = vst [vmem:[%s1618_s3 + $0x98] sm:$0xff] %v457_v25  ;;  %731 = vst [vmem:[%s1618_s3 + $0x198] sm:$0xff] %v617_v26  ;;  %v452_v29 = vadd.f32 %v1357_v13, %v451_v27  ;;  %v612_v30 = vadd.f32 %v1357_v13, %v611_v28 }
 0x105   :  { %v949_v31 = vpop.f32.mrf.mxu0  ;;  %v997_v32 = vpop.f32.mrf.mxu1 }
 0x106   :  { %698 = vst [vmem:[%s1618_s3 + $0x90] sm:$0xff] %v452_v29  ;;  %730 = vst [vmem:[%s1618_s3 + $0x190] sm:$0xff] %v612_v30  ;;  %v467_v33 = vadd.f32 %v949_v31, %v1357_v13  ;;  %v627_v34 = vadd.f32 %v997_v32, %v1357_v13 }
 0x107   :  { %v461_v35 = vpop.f32.mrf.mxu0  ;;  %v621_v36 = vpop.f32.mrf.mxu1 }
 0x108   :  { %701 = vst [vmem:[%s1618_s3 + $0xa8] sm:$0xff] %v467_v33  ;;  %733 = vst [vmem:[%s1618_s3 + $0x1a8] sm:$0xff] %v627_v34  ;;  %v462_v37 = vadd.f32 %v1357_v13, %v461_v35  ;;  %v622_v38 = vadd.f32 %v1357_v13, %v621_v36 }
 0x109   :  { %v952_v39 = vpop.f32.mrf.mxu0  ;;  %v1000_v40 = vpop.f32.mrf.mxu1 }
 0x10a   :  { %700 = vst [vmem:[%s1618_s3 + $0xa0] sm:$0xff] %v462_v37  ;;  %732 = vst [vmem:[%s1618_s3 + $0x1a0] sm:$0xff] %v622_v38  ;;  %v477_v41 = vadd.f32 %v952_v39, %v1357_v13  ;;  %v637_v42 = vadd.f32 %v1000_v40, %v1357_v13 }
 0x10b   :  { %v471_v43 = vpop.f32.mrf.mxu0  ;;  %v631_v44 = vpop.f32.mrf.mxu1 }
 0x10c   :  { %703 = vst [vmem:[%s1618_s3 + $0xb8] sm:$0xff] %v477_v41  ;;  %735 = vst [vmem:[%s1618_s3 + $0x1b8] sm:$0xff] %v637_v42  ;;  %v472_v45 = vadd.f32 %v1357_v13, %v471_v43  ;;  %v632_v46 = vadd.f32 %v1357_v13, %v631_v44 }
 0x10d   :  { %v955_v47 = vpop.f32.mrf.mxu0  ;;  %v1003_v48 = vpop.f32.mrf.mxu1 }
 0x10e   :  { %702 = vst [vmem:[%s1618_s3 + $0xb0] sm:$0xff] %v472_v45  ;;  %734 = vst [vmem:[%s1618_s3 + $0x1b0] sm:$0xff] %v632_v46  ;;  %v487_v49 = vadd.f32 %v955_v47, %v1357_v13  ;;  %v647_v50 = vadd.f32 %v1003_v48, %v1357_v13 }
 0x10f   :  { %v481_v51 = vpop.f32.mrf.mxu0  ;;  %v641_v52 = vpop.f32.mrf.mxu1 }
 0x110   :  { %705 = vst [vmem:[%s1618_s3 + $0xc8] sm:$0xff] %v487_v49  ;;  %737 = vst [vmem:[%s1618_s3 + $0x1c8] sm:$0xff] %v647_v50  ;;  %v482_v53 = vadd.f32 %v1357_v13, %v481_v51  ;;  %v642_v54 = vadd.f32 %v1357_v13, %v641_v52 }
 0x111   :  { %v958_v55 = vpop.f32.mrf.mxu0  ;;  %v1006_v56 = vpop.f32.mrf.mxu1 }
 0x112   :  { %704 = vst [vmem:[%s1618_s3 + $0xc0] sm:$0xff] %v482_v53  ;;  %736 = vst [vmem:[%s1618_s3 + $0x1c0] sm:$0xff] %v642_v54  ;;  %v497_v57 = vadd.f32 %v958_v55, %v1357_v13  ;;  %v657_v58 = vadd.f32 %v1006_v56, %v1357_v13 }
 0x113   :  { %v491_v59 = vpop.f32.mrf.mxu0  ;;  %v651_v60 = vpop.f32.mrf.mxu1 }
 0x114   :  { %707 = vst [vmem:[%s1618_s3 + $0xd8] sm:$0xff] %v497_v57  ;;  %739 = vst [vmem:[%s1618_s3 + $0x1d8] sm:$0xff] %v657_v58  ;;  %v492_v61 = vadd.f32 %v1357_v13, %v491_v59  ;;  %v652_v62 = vadd.f32 %v1357_v13, %v651_v60 }
 0x115   :  { %v961_v63 = vpop.f32.mrf.mxu0  ;;  %v1009_v0 = vpop.f32.mrf.mxu1 }
 0x116   :  { %706 = vst [vmem:[%s1618_s3 + $0xd0] sm:$0xff] %v492_v61  ;;  %738 = vst [vmem:[%s1618_s3 + $0x1d0] sm:$0xff] %v652_v62  ;;  %v507_v1 = vadd.f32 %v961_v63, %v1357_v13  ;;  %v667_v2 = vadd.f32 %v1009_v0, %v1357_v13 }
 0x117   :  { %v501_v3 = vpop.f32.mrf.mxu0  ;;  %v661_v4 = vpop.f32.mrf.mxu1 }
 0x118   :  { %709 = vst [vmem:[%s1618_s3 + $0xe8] sm:$0xff] %v507_v1  ;;  %741 = vst [vmem:[%s1618_s3 + $0x1e8] sm:$0xff] %v667_v2  ;;  %v502_v5 = vadd.f32 %v1357_v13, %v501_v3  ;;  %v662_v6 = vadd.f32 %v1357_v13, %v661_v4 }
 0x119   :  { %v964_v7 = vpop.f32.mrf.mxu0  ;;  %v1012_v8 = vpop.f32.mrf.mxu1 }
 0x11a   :  { %708 = vst [vmem:[%s1618_s3 + $0xe0] sm:$0xff] %v502_v5  ;;  %740 = vst [vmem:[%s1618_s3 + $0x1e0] sm:$0xff] %v662_v6  ;;  %v517_v9 = vadd.f32 %v964_v7, %v1357_v13  ;;  %v677_v10 = vadd.f32 %v1012_v8, %v1357_v13 }
 0x11b   :  { %v511_v11 = vpop.f32.mrf.mxu0  ;;  %v671_v12 = vpop.f32.mrf.mxu1 }
 0x11c   :  { %711 = vst [vmem:[%s1618_s3 + $0xf8] sm:$0xff] %v517_v9  ;;  %743 = vst [vmem:[%s1618_s3 + $0x1f8] sm:$0xff] %v677_v10  ;;  %v512_v14 = vadd.f32 %v1357_v13, %v511_v11  ;;  %v672_v15 = vadd.f32 %v1357_v13, %v671_v12 }
 0x11e   :  { %710 = vst [vmem:[%s1618_s3 + $0xf0] sm:$0xff] %v512_v14  ;;  %742 = vst [vmem:[%s1618_s3 + $0x1f0] sm:$0xff] %v672_v15 }

// kernel: shape_prior_vae_forward.14
= control target key start
LH: loop header
LB: loop body
LE: loop exit
PB: predicated region body
PF: predicated region fallthrough
CT: control target
= control target key end

     0   :  { %vm292_vm0 = vcmask 1043456   ;;  %v3516_v1 = vmov 0.0   ;;  %vm99_vm1 = vcmask 31744   ;;  %s5984_s1 = inlined_call_operand.vmem [shape: f32[4,256], index: 1, kind: input, shape index: {}]   ;;  %s5985_s0 = inlined_call_operand.vmem [shape: f32[512,4], index: 0, kind: input, shape index: {}]   ;;  %s5986_s2 = inlined_call_operand.vmem [shape: f32[1,256], index: 2, kind: input, shape index: {}]   ;;  %s5987_s5 = inlined_call_operand.vmem [shape: f32[512,128], index: 5, kind: output, shape index: {1}]   ;;  %s5988_s6 = inlined_call_operand.vmem [shape: f32[512,128], index: 6, kind: output, shape index: {2}]   ;;  %s5989_s3 = inlined_call_operand.vmem [shape: f32[512,128], index: 3, kind: input, shape index: {}]   ;;  %s5990_s4 = inlined_call_operand.vmem [shape: f32[512,128], index: 4, kind: output, shape index: {0}]  }
   0x1   :  { %v84_v0 = vld [vmem:[%s5984_s1] sm:$0xff]  ;;  %361 = vmatprep.mubr.f32.mxu0 %v3516_v1  ;;  %553 = vmatprep.mubr.f32.mxu1 %v3516_v1  ;;  %v21_v5 = vld [vmem:[%s5985_s0 + $0x8] sm:$0xff]  ;;  %v22_v7 = vld [vmem:[%s5985_s0 + $0x10] sm:$0xff] }
   0x2   :  { %v98_v2 = vcombine.high %v84_v0, %v84_v0  ;;  %v20_v3 = vld [vmem:[%s5985_s0] sm:$0xff]  ;;  %v53_v6 = vld [vmem:[%s5985_s0 + $0x108] sm:$0xff]  ;;  %v54_v8 = vld [vmem:[%s5985_s0 + $0x110] sm:$0xff] }
   0x3   :  { %v52_v4 = vld [vmem:[%s5985_s0 + $0x100] sm:$0xff]  ;;  %v23_v9 = vld [vmem:[%s5985_s0 + $0x18] sm:$0xff]  ;;  %v25_v13 = vld [vmem:[%s5985_s0 + $0x28] sm:$0xff] }
   0x4   :  { %2742 = vmatprep.subr.msk.mxu0 %vm292_vm0, %v98_v2  ;;  %2872 = vmatprep.subr.msk.mxu1 %vm292_vm0, %v98_v2  ;;  %v55_v10 = vld [vmem:[%s5985_s0 + $0x118] sm:$0xff]  ;;  %v24_v11 = vld [vmem:[%s5985_s0 + $0x20] sm:$0xff]  ;;  %v57_v14 = vld [vmem:[%s5985_s0 + $0x128] sm:$0xff] }
   0x5   :  { %2743 = vmatpush1.msk.msra.mxu0 %vm292_vm0, %v84_v0  ;;  %2873 = vmatpush1.msk.msra.mxu1 %vm292_vm0, %v84_v0  ;;  %v56_v12 = vld [vmem:[%s5985_s0 + $0x120] sm:$0xff]  ;;  %v26_v15 = vld [vmem:[%s5985_s0 + $0x30] sm:$0xff]  ;;  %v27_v17 = vld [vmem:[%s5985_s0 + $0x38] sm:$0xff] }
   0x6   :  { %2744 = vmatmul.mubr.msk.f32.vlgmr.msra.gmra.mxu0 %vm99_vm1, %v20_v3  ;;  %2776 = vmatmul.mubr.msk.f32.vlgmr.msra.gmra.mxu1 %vm99_vm1, %v52_v4  ;;  %v58_v16 = vld [vmem:[%s5985_s0 + $0x130] sm:$0xff]  ;;  %v59_v18 = vld [vmem:[%s5985_s0 + $0x138] sm:$0xff]  ;;  %v28_v19 = vld [vmem:[%s5985_s0 + $0x40] sm:$0xff]  ;;  %v87_v4 = vlaneseq }
   0x7   :  { %367 = vmatprep.mubr.f32.mxu0 %v3516_v1  ;;  %559 = vmatprep.mubr.f32.mxu1 %v3516_v1  ;;  %v60_v20 = vld [vmem:[%s5985_s0 + $0x140] sm:$0xff]  ;;  %v29_v21 = vld [vmem:[%s5985_s0 + $0x48] sm:$0xff]  ;;  %v30_v23 = vld [vmem:[%s5985_s0 + $0x50] sm:$0xff] }
   0x8   :  { %v61_v22 = vld [vmem:[%s5985_s0 + $0x148] sm:$0xff]  ;;  %v62_v24 = vld [vmem:[%s5985_s0 + $0x150] sm:$0xff]  ;;  %v31_v25 = vld [vmem:[%s5985_s0 + $0x58] sm:$0xff] }
   0x9   :  { %v63_v26 = vld [vmem:[%s5985_s0 + $0x158] sm:$0xff]  ;;  %v32_v27 = vld [vmem:[%s5985_s0 + $0x60] sm:$0xff]  ;;  %v33_v29 = vld [vmem:[%s5985_s0 + $0x68] sm:$0xff] }
   0xa   :  { %2745 = vmatmul.mubr.msk.f32.gmra.mxu0 %vm99_vm1, %v21_v5  ;;  %2777 = vmatmul.mubr.msk.f32.gmra.mxu1 %vm99_vm1, %v53_v6  ;;  %v64_v28 = vld [vmem:[%s5985_s0 + $0x160] sm:$0xff]  ;;  %v65_v30 = vld [vmem:[%s5985_s0 + $0x168] sm:$0xff]  ;;  %v34_v31 = vld [vmem:[%s5985_s0 + $0x70] sm:$0xff]  ;;  %v88_v5 = vshrl.u32 %v87_v4, 7 }
   0xb   :  { %373 = vmatprep.mubr.f32.mxu0 %v3516_v1  ;;  %565 = vmatprep.mubr.f32.mxu1 %v3516_v1  ;;  %v66_v32 = vld [vmem:[%s5985_s0 + $0x170] sm:$0xff]  ;;  %v35_v33 = vld [vmem:[%s5985_s0 + $0x78] sm:$0xff]  ;;  %v36_v35 = vld [vmem:[%s5985_s0 + $0x80] sm:$0xff] }
   0xc   :  { %v67_v34 = vld [vmem:[%s5985_s0 + $0x178] sm:$0xff]  ;;  %v68_v36 = vld [vmem:[%s5985_s0 + $0x180] sm:$0xff]  ;;  %v37_v37 = vld [vmem:[%s5985_s0 + $0x88] sm:$0xff]  ;;  %v89_v6 = vsub.s32 0, %v88_v5 }
   0xd   :  { %v69_v38 = vld [vmem:[%s5985_s0 + $0x188] sm:$0xff]  ;;  %v38_v39 = vld [vmem:[%s5985_s0 + $0x90] sm:$0xff]  ;;  %v39_v41 = vld [vmem:[%s5985_s0 + $0x98] sm:$0xff] }
   0xe   :  { %2746 = vmatmul.mubr.msk.f32.gmra.mxu0 %vm99_vm1, %v22_v7  ;;  %2778 = vmatmul.mubr.msk.f32.gmra.mxu1 %vm99_vm1, %v54_v8  ;;  %v70_v40 = vld [vmem:[%s5985_s0 + $0x190] sm:$0xff]  ;;  %v71_v42 = vld [vmem:[%s5985_s0 + $0x198] sm:$0xff]  ;;  %v40_v43 = vld [vmem:[%s5985_s0 + $0xa0] sm:$0xff] }
   0xf   :  { %379 = vmatprep.mubr.f32.mxu0 %v3516_v1  ;;  %571 = vmatprep.mubr.f32.mxu1 %v3516_v1  ;;  %v72_v44 = vld [vmem:[%s5985_s0 + $0x1a0] sm:$0xff]  ;;  %v41_v45 = vld [vmem:[%s5985_s0 + $0xa8] sm:$0xff]  ;;  %v42_v47 = vld [vmem:[%s5985_s0 + $0xb0] sm:$0xff] }
  0x10   :  { %v73_v46 = vld [vmem:[%s5985_s0 + $0x1a8] sm:$0xff]  ;;  %v74_v48 = vld [vmem:[%s5985_s0 + $0x1b0] sm:$0xff]  ;;  %v43_v49 = vld [vmem:[%s5985_s0 + $0xb8] sm:$0xff] }
  0x11   :  { %v75_v50 = vld [vmem:[%s5985_s0 + $0x1b8] sm:$0xff]  ;;  %v44_v51 = vld [vmem:[%s5985_s0 + $0xc0] sm:$0xff]  ;;  %v45_v53 = vld [vmem:[%s5985_s0 + $0xc8] sm:$0xff] }
  0x12   :  { %2747 = vmatmul.mubr.msk.f32.gmra.mxu0 %vm99_vm1, %v23_v9  ;;  %2779 = vmatmul.mubr.msk.f32.gmra.mxu1 %vm99_vm1, %v55_v10  ;;  %v76_v52 = vld [vmem:[%s5985_s0 + $0x1c0] sm:$0xff]  ;;  %v77_v54 = vld [vmem:[%s5985_s0 + $0x1c8] sm:$0xff]  ;;  %v46_v55 = vld [vmem:[%s5985_s0 + $0xd0] sm:$0xff] }
  0x13   :  { %385 = vmatprep.mubr.f32.mxu0 %v3516_v1  ;;  %577 = vmatprep.mubr.f32.mxu1 %v3516_v1  ;;  %v78_v56 = vld [vmem:[%s5985_s0 + $0x1d0] sm:$0xff]  ;;  %v47_v57 = vld [vmem:[%s5985_s0 + $0xd8] sm:$0xff]  ;;  %v48_v59 = vld [vmem:[%s5985_s0 + $0xe0] sm:$0xff] }
  0x14   :  { %v79_v58 = vld [vmem:[%s5985_s0 + $0x1d8] sm:$0xff]  ;;  %v80_v60 = vld [vmem:[%s5985_s0 + $0x1e0] sm:$0xff]  ;;  %v49_v61 = vld [vmem:[%s5985_s0 + $0xe8] sm:$0xff] }
  0x15   :  { %v81_v62 = vld [vmem:[%s5985_s0 + $0x1e8] sm:$0xff]  ;;  %v50_v63 = vld [vmem:[%s5985_s0 + $0xf0] sm:$0xff]  ;;  %v51_v2 = vld [vmem:[%s5985_s0 + $0xf8] sm:$0xff] }
  0x16   :  { %2748 = vmatmul.mubr.msk.f32.gmra.mxu0 %vm99_vm1, %v24_v11  ;;  %2780 = vmatmul.mubr.msk.f32.gmra.mxu1 %vm99_vm1, %v56_v12  ;;  %v82_v0 = vld [vmem:[%s5985_s0 + $0x1f0] sm:$0xff]  ;;  %v83_v3 = vld [vmem:[%s5985_s0 + $0x1f8] sm:$0xff]  ;;  %v85_v7 = vld [vmem:[%s5986_s2] sm:$0x3] }
  0x17   :  { %391 = vmatprep.mubr.f32.mxu0 %v3516_v1  ;;  %583 = vmatprep.mubr.f32.mxu1 %v3516_v1  ;;  %v3878_v8 = vrot.slane %v85_v7, %v89_v6 }
  0x1a   :  { %2749 = vmatmul.mubr.msk.f32.gmra.mxu0 %vm99_vm1, %v25_v13  ;;  %2781 = vmatmul.mubr.msk.f32.gmra.mxu1 %vm99_vm1, %v57_v14 }
  0x1b   :  { %397 = vmatprep.mubr.f32.mxu0 %v3516_v1  ;;  %589 = vmatprep.mubr.f32.mxu1 %v3516_v1 }
  0x1e   :  { %2750 = vmatmul.mubr.msk.f32.gmra.mxu0 %vm99_vm1, %v26_v15  ;;  %2782 = vmatmul.mubr.msk.f32.gmra.mxu1 %vm99_vm1, %v58_v16 }
  0x1f   :  { %403 = vmatprep.mubr.f32.mxu0 %v3516_v1  ;;  %595 = vmatprep.mubr.f32.mxu1 %v3516_v1 }
  0x22   :  { %2751 = vmatmul.mubr.msk.f32.gmra.mxu0 %vm99_vm1, %v27_v17  ;;  %2783 = vmatmul.mubr.msk.f32.gmra.mxu1 %vm99_vm1, %v59_v18 }
  0x23   :  { %409 = vmatprep.mubr.f32.mxu0 %v3516_v1  ;;  %601 = vmatprep.mubr.f32.mxu1 %v3516_v1 }
  0x26   :  { %2752 = vmatmul.mubr.msk.f32.gmra.mxu0 %vm99_vm1, %v28_v19  ;;  %2784 = vmatmul.mubr.msk.f32.gmra.mxu1 %vm99_vm1, %v60_v20 }
  0x27   :  { %415 = vmatprep.mubr.f32.mxu0 %v3516_v1  ;;  %607 = vmatprep.mubr.f32.mxu1 %v3516_v1 }
  0x2a   :  { %2753 = vmatmul.mubr.msk.f32.gmra.mxu0 %vm99_vm1, %v29_v21  ;;  %2785 = vmatmul.mubr.msk.f32.gmra.mxu1 %vm99_vm1, %v61_v22 }
  0x2b   :  { %421 = vmatprep.mubr.f32.mxu0 %v3516_v1  ;;  %613 = vmatprep.mubr.f32.mxu1 %v3516_v1 }
  0x2e   :  { %2754 = vmatmul.mubr.msk.f32.gmra.mxu0 %vm99_vm1, %v30_v23  ;;  %2786 = vmatmul.mubr.msk.f32.gmra.mxu1 %vm99_vm1, %v62_v24 }
  0x2f   :  { %427 = vmatprep.mubr.f32.mxu0 %v3516_v1  ;;  %619 = vmatprep.mubr.f32.mxu1 %v3516_v1 }
  0x32   :  { %2755 = vmatmul.mubr.msk.f32.gmra.mxu0 %vm99_vm1, %v31_v25  ;;  %2787 = vmatmul.mubr.msk.f32.gmra.mxu1 %vm99_vm1, %v63_v26 }
  0x33   :  { %433 = vmatprep.mubr.f32.mxu0 %v3516_v1  ;;  %625 = vmatprep.mubr.f32.mxu1 %v3516_v1 }
  0x36   :  { %2756 = vmatmul.mubr.msk.f32.gmra.mxu0 %vm99_vm1, %v32_v27  ;;  %2788 = vmatmul.mubr.msk.f32.gmra.mxu1 %vm99_vm1, %v64_v28 }
  0x37   :  { %439 = vmatprep.mubr.f32.mxu0 %v3516_v1  ;;  %631 = vmatprep.mubr.f32.mxu1 %v3516_v1 }
  0x3a   :  { %2757 = vmatmul.mubr.msk.f32.gmra.mxu0 %vm99_vm1, %v33_v29  ;;  %2789 = vmatmul.mubr.msk.f32.gmra.mxu1 %vm99_vm1, %v65_v30 }
  0x3b   :  { %445 = vmatprep.mubr.f32.mxu0 %v3516_v1  ;;  %637 = vmatprep.mubr.f32.mxu1 %v3516_v1 }
  0x3e   :  { %2758 = vmatmul.mubr.msk.f32.gmra.mxu0 %vm99_vm1, %v34_v31  ;;  %2790 = vmatmul.mubr.msk.f32.gmra.mxu1 %vm99_vm1, %v66_v32 }
  0x3f   :  { %451 = vmatprep.mubr.f32.mxu0 %v3516_v1  ;;  %643 = vmatprep.mubr.f32.mxu1 %v3516_v1 }
  0x42   :  { %2759 = vmatmul.mubr.msk.f32.gmra.mxu0 %vm99_vm1, %v35_v33  ;;  %2791 = vmatmul.mubr.msk.f32.gmra.mxu1 %vm99_vm1, %v67_v34 }
  0x43   :  { %457 = vmatprep.mubr.f32.mxu0 %v3516_v1  ;;  %649 = vmatprep.mubr.f32.mxu1 %v3516_v1 }
  0x46   :  { %2760 = vmatmul.mubr.msk.f32.gmra.mxu0 %vm99_vm1, %v36_v35  ;;  %2792 = vmatmul.mubr.msk.f32.gmra.mxu1 %vm99_vm1, %v68_v36 }
  0x47   :  { %463 = vmatprep.mubr.f32.mxu0 %v3516_v1  ;;  %655 = vmatprep.mubr.f32.mxu1 %v3516_v1 }
  0x4a   :  { %2761 = vmatmul.mubr.msk.f32.gmra.mxu0 %vm99_vm1, %v37_v37  ;;  %2793 = vmatmul.mubr.msk.f32.gmra.mxu1 %vm99_vm1, %v69_v38 }
  0x4b   :  { %469 = vmatprep.mubr.f32.mxu0 %v3516_v1  ;;  %661 = vmatprep.mubr.f32.mxu1 %v3516_v1 }
  0x4e   :  { %2762 = vmatmul.mubr.msk.f32.gmra.mxu0 %vm99_vm1, %v38_v39  ;;  %2794 = vmatmul.mubr.msk.f32.gmra.mxu1 %vm99_vm1, %v70_v40 }
  0x4f   :  { %475 = vmatprep.mubr.f32.mxu0 %v3516_v1  ;;  %667 = vmatprep.mubr.f32.mxu1 %v3516_v1 }
  0x52   :  { %2763 = vmatmul.mubr.msk.f32.gmra.mxu0 %vm99_vm1, %v39_v41  ;;  %2795 = vmatmul.mubr.msk.f32.gmra.mxu1 %vm99_vm1, %v71_v42 }
  0x53   :  { %481 = vmatprep.mubr.f32.mxu0 %v3516_v1  ;;  %673 = vmatprep.mubr.f32.mxu1 %v3516_v1 }
  0x56   :  { %2764 = vmatmul.mubr.msk.f32.gmra.mxu0 %vm99_vm1, %v40_v43  ;;  %2796 = vmatmul.mubr.msk.f32.gmra.mxu1 %vm99_vm1, %v72_v44 }
  0x57   :  { %487 = vmatprep.mubr.f32.mxu0 %v3516_v1  ;;  %679 = vmatprep.mubr.f32.mxu1 %v3516_v1 }
  0x5a   :  { %2765 = vmatmul.mubr.msk.f32.gmra.mxu0 %vm99_vm1, %v41_v45  ;;  %2797 = vmatmul.mubr.msk.f32.gmra.mxu1 %vm99_vm1, %v73_v46 }
  0x5b   :  { %493 = vmatprep.mubr.f32.mxu0 %v3516_v1  ;;  %685 = vmatprep.mubr.f32.mxu1 %v3516_v1 }
  0x5e   :  { %2766 = vmatmul.mubr.msk.f32.gmra.mxu0 %vm99_vm1, %v42_v47  ;;  %2798 = vmatmul.mubr.msk.f32.gmra.mxu1 %vm99_vm1, %v74_v48 }
  0x5f   :  { %499 = vmatprep.mubr.f32.mxu0 %v3516_v1  ;;  %691 = vmatprep.mubr.f32.mxu1 %v3516_v1 }
  0x62   :  { %2767 = vmatmul.mubr.msk.f32.gmra.mxu0 %vm99_vm1, %v43_v49  ;;  %2799 = vmatmul.mubr.msk.f32.gmra.mxu1 %vm99_vm1, %v75_v50 }
  0x63   :  { %505 = vmatprep.mubr.f32.mxu0 %v3516_v1  ;;  %697 = vmatprep.mubr.f32.mxu1 %v3516_v1 }
  0x66   :  { %2768 = vmatmul.mubr.msk.f32.gmra.mxu0 %vm99_vm1, %v44_v51  ;;  %2800 = vmatmul.mubr.msk.f32.gmra.mxu1 %vm99_vm1, %v76_v52 }
  0x67   :  { %511 = vmatprep.mubr.f32.mxu0 %v3516_v1  ;;  %703 = vmatprep.mubr.f32.mxu1 %v3516_v1 }
  0x6a   :  { %2769 = vmatmul.mubr.msk.f32.gmra.mxu0 %vm99_vm1, %v45_v53  ;;  %2801 = vmatmul.mubr.msk.f32.gmra.mxu1 %vm99_vm1, %v77_v54 }
  0x6b   :  { %517 = vmatprep.mubr.f32.mxu0 %v3516_v1  ;;  %709 = vmatprep.mubr.f32.mxu1 %v3516_v1 }
  0x6e   :  { %2770 = vmatmul.mubr.msk.f32.gmra.mxu0 %vm99_vm1, %v46_v55  ;;  %2802 = vmatmul.mubr.msk.f32.gmra.mxu1 %vm99_vm1, %v78_v56 }
  0x6f   :  { %523 = vmatprep.mubr.f32.mxu0 %v3516_v1  ;;  %715 = vmatprep.mubr.f32.mxu1 %v3516_v1 }
  0x72   :  { %2771 = vmatmul.mubr.msk.f32.gmra.mxu0 %vm99_vm1, %v47_v57  ;;  %2803 = vmatmul.mubr.msk.f32.gmra.mxu1 %vm99_vm1, %v79_v58 }
  0x73   :  { %529 = vmatprep.mubr.f32.mxu0 %v3516_v1  ;;  %721 = vmatprep.mubr.f32.mxu1 %v3516_v1 }
  0x76   :  { %2772 = vmatmul.mubr.msk.f32.gmra.mxu0 %vm99_vm1, %v48_v59  ;;  %2804 = vmatmul.mubr.msk.f32.gmra.mxu1 %vm99_vm1, %v80_v60 }
  0x77   :  { %535 = vmatprep.mubr.f32.mxu0 %v3516_v1  ;;  %727 = vmatprep.mubr.f32.mxu1 %v3516_v1 }
  0x7a   :  { %2773 = vmatmul.mubr.msk.f32.gmra.mxu0 %vm99_vm1, %v49_v61  ;;  %2805 = vmatmul.mubr.msk.f32.gmra.mxu1 %vm99_vm1, %v81_v62 }
  0x7b   :  { %541 = vmatprep.mubr.f32.mxu0 %v3516_v1  ;;  %733 = vmatprep.mubr.f32.mxu1 %v3516_v1 }
  0x7e   :  { %2774 = vmatmul.mubr.msk.f32.gmra.mxu0 %vm99_vm1, %v50_v63  ;;  %2806 = vmatmul.mubr.msk.f32.gmra.mxu1 %vm99_vm1, %v82_v0 }
  0x7f   :  { %547 = vmatprep.mubr.f32.mxu0 %v3516_v1  ;;  %739 = vmatprep.mubr.f32.mxu1 %v3516_v1  ;;  %v93_v1 = vsub.s32 1, %v88_v5 }
  0x81   :  { %v3880_v9 = vrot.slane %v85_v7, %v93_v1 }
  0x82   :  { %2775 = vmatmul.mubr.msk.f32.gmra.mxu0 %vm99_vm1, %v51_v2  ;;  %2807 = vmatmul.mubr.msk.f32.gmra.mxu1 %vm99_vm1, %v83_v3 }
  0xc6   :  { %v363_v10 = vpop.f32.mrf.mxu0  ;;  %v555_v11 = vpop.f32.mrf.mxu1 }
  0xc7   :  { %v364_v12 = vadd.f32 %v363_v10, %v3878_v8  ;;  %v556_v13 = vadd.f32 %v555_v11, %v3878_v8 }
  0xc8   :  { %v365_v14 = vpop.f32.mrf.mxu0  ;;  %v557_v15 = vpop.f32.mrf.mxu1 }
  0xc9   :  { %v2808_v16 = vmul.f32 -1.442695, %v364_v12  ;;  %v2840_v17 = vmul.f32 -1.442695, %v556_v13  ;;  %v366_v18 = vadd.f32 %v365_v14, %v3880_v9  ;;  %v558_v19 = vadd.f32 %v557_v15, %v3880_v9 }
  0xca   :  { %v369_v20 = vpop.f32.mrf.mxu0  ;;  %v561_v21 = vpop.f32.mrf.mxu1 }
  0xcb   :  { %2876 = vpow2.f32 %v2808_v16  ;;  %v3886_v22 = vadd.f32 1e-08, %v366_v18  ;;  %v3888_v23 = vadd.f32 1e-08, %v558_v19  ;;  %v370_v24 = vadd.f32 %v369_v20, %v3878_v8 }
  0xcc   :  { %2878 = vpow2.f32 %v2840_v17  ;;  %v562_v25 = vadd.f32 %v561_v21, %v3878_v8  ;;  %v371_v26 = vpop.f32.mrf.mxu0  ;;  %v563_v27 = vpop.f32.mrf.mxu1 }
  0xcd   :  { %v1258_v28 = vand.u32 2147483647, %v3886_v22  ;;  %v1290_v29 = vand.u32 2147483647, %v3888_v23  ;;  %v2809_v30 = vmul.f32 -1.442695, %v370_v24  ;;  %v372_v32 = vadd.f32 %v371_v26, %v3880_v9 }
  0xce   :  { %v2841_v31 = vmul.f32 -1.442695, %v562_v25  ;;  %v564_v33 = vadd.f32 %v563_v27, %v3880_v9  ;;  %v375_v34 = vpop.f32.mrf.mxu0  ;;  %v567_v35 = vpop.f32.mrf.mxu1  ;;  %v1194_v24 = vmin.f32 %v3886_v22, 0.0 }
  0xcf   :  { %v1322_v36 = vsub.f32 0.0, %v1258_v28  ;;  %v1354_v37 = vsub.f32 0.0, %v1290_v29  ;;  %v376_v38 = vadd.f32 %v375_v34, %v3878_v8  ;;  %v568_v39 = vadd.f32 %v567_v35, %v3878_v8 }
  0xd0   :  { %2880 = vpow2.f32 %v2809_v30  ;;  %v3898_v40 = vadd.f32 1e-08, %v372_v32  ;;  %v3900_v41 = vadd.f32 1e-08, %v564_v33  ;;  %v377_v42 = vpop.f32.mrf.mxu0  ;;  %v569_v43 = vpop.f32.mrf.mxu1  ;;  %v1226_v29 = vmin.f32 %v3888_v23, 0.0 }
  0xd1   :  { %v1386_v44 = vmul.f32 1.442695, %v1322_v36  ;;  %v1450_v45 = vmul.f32 1.442695, %v1354_v37  ;;  %2882 = vpow2.f32 %v2841_v31  ;;  %v2810_v46 = vmul.f32 -1.442695, %v376_v38 }
  0xd2   :  { %v1259_v47 = vand.u32 2147483647, %v3898_v40  ;;  %v1291_v48 = vand.u32 2147483647, %v3900_v41  ;;  %v381_v49 = vpop.f32.mrf.mxu0  ;;  %v573_v50 = vpop.f32.mrf.mxu1  ;;  %v2842_v51 = vmul.f32 -1.442695, %v568_v39  ;;  %v378_v52 = vadd.f32 %v377_v42, %v3880_v9 }
  0xd3   :  { %2884 = vpow2.f32 %v1386_v44  ;;  %v570_v53 = vadd.f32 %v569_v43, %v3880_v9  ;;  %v382_v56 = vadd.f32 %v381_v49, %v3878_v8  ;;  %v574_v3 = vadd.f32 %v573_v50, %v3878_v8 }
  0xd4   :  { %2886 = vpow2.f32 %v1450_v45  ;;  %v1323_v54 = vsub.f32 0.0, %v1259_v47  ;;  %v1355_v55 = vsub.f32 0.0, %v1291_v48  ;;  %v3907_v57 = vadd.f32 1e-08, %v378_v52  ;;  %v383_v59 = vpop.f32.mrf.mxu0  ;;  %v575_v60 = vpop.f32.mrf.mxu1 }
  0xd5   :  { %2888 = vpow2.f32 %v2810_v46  ;;  %v3909_v58 = vadd.f32 1e-08, %v570_v53  ;;  %v2811_v63 = vmul.f32 -1.442695, %v382_v56  ;;  %v384_v5 = vadd.f32 %v383_v59, %v3880_v9 }
  0xd6   :  { %v1388_v61 = vmul.f32 1.442695, %v1323_v54  ;;  %v1452_v62 = vmul.f32 1.442695, %v1355_v55  ;;  %2890 = vpow2.f32 %v2842_v51  ;;  %v1260_v0 = vand.u32 2147483647, %v3907_v57  ;;  %v387_v14 = vpop.f32.mrf.mxu0  ;;  %v579_v27 = vpop.f32.mrf.mxu1 }
  0xd7   :  { %v1292_v2 = vand.u32 2147483647, %v3909_v58  ;;  %v576_v6 = vadd.f32 %v575_v60, %v3880_v9  ;;  %v3916_v13 = vadd.f32 1e-08, %v384_v5  ;;  %v2843_v17 = vmul.f32 -1.442695, %v574_v3 }
  0xd8   :  { %v2877_v4 = vpop.eup %2876  ;;  %2892 = vpow2.f32 %v1388_v61  ;;  %v1324_v10 = vsub.f32 0.0, %v1260_v0  ;;  %v389_v28 = vpop.f32.mrf.mxu0  ;;  %v1195_v31 = vmin.f32 %v3898_v40, 0.0  ;;  %v1227_v33 = vmin.f32 %v3900_v41, 0.0 }
  0xd9   :  { %v2879_v7 = vpop.eup %2878  ;;  %v938_v1 = vadd.f32 1.0, %v2877_v4  ;;  %2894 = vpow2.f32 %v1452_v62  ;;  %v1356_v11 = vsub.f32 0.0, %v1292_v2  ;;  %v1261_v18 = vand.u32 2147483647, %v3916_v13  ;;  %v581_v46 = vpop.f32.mrf.mxu1 }
  0xda   :  { %v970_v12 = vadd.f32 1.0, %v2879_v7  ;;  %2896 = vpow2.f32 %v2811_v63  ;;  %v1390_v15 = vmul.f32 1.442695, %v1324_v10  ;;  %v3919_v19 = vadd.f32 1e-08, %v576_v6 }
  0xdb   :  { %2898 = vrcp.f32 %v938_v1  ;;  %v1454_v16 = vmul.f32 1.442695, %v1356_v11  ;;  %v1325_v26 = vsub.f32 0.0, %v1261_v18  ;;  %v1196_v38 = vmin.f32 %v3907_v57, 0.0 }
  0xdc   :  { %2900 = vrcp.f32 %v970_v12  ;;  %v1293_v35 = vand.u32 2147483647, %v3919_v19  ;;  %v390_v39 = vadd.f32 %v389_v28, %v3880_v9  ;;  %v1228_v45 = vmin.f32 %v3909_v58, 0.0 }
  0xdd   :  { %v2881_v20 = vpop.eup %2880  ;;  %2902 = vpow2.f32 %v1390_v15  ;;  %v1392_v34 = vmul.f32 1.442695, %v1325_v26  ;;  %v1197_v49 = vmin.f32 %v3916_v13, 0.0  ;;  %v388_v50 = vadd.f32 %v387_v14, %v3878_v8 }
  0xde   :  { %v2883_v21 = vpop.eup %2882  ;;  %v939_v25 = vadd.f32 1.0, %v2881_v20  ;;  %2904 = vpow2.f32 %v1454_v16  ;;  %v1357_v52 = vsub.f32 0.0, %v1293_v35  ;;  %v580_v53 = vadd.f32 %v579_v27, %v3878_v8 }
  0xdf   :  { %v971_v30 = vadd.f32 1.0, %v2883_v21  ;;  %2906 = vpow2.f32 %v2843_v17  ;;  %v3936_v56 = vadd.f32 1e-08, %v390_v39  ;;  %v582_v59 = vadd.f32 %v581_v46, %v3880_v9 }
  0xe0   :  { %v2885_v32 = vpop.eup %2884  ;;  %2908 = vrcp.f32 %v939_v25  ;;  %v1229_v1 = vmin.f32 %v3919_v19, 0.0  ;;  %v1456_v10 = vmul.f32 1.442695, %v1357_v52  ;;  %v2812_v14 = vmul.f32 -1.442695, %v388_v50  ;;  %v2348_v19 = vld [vmem:[%s5989_s3 + $0x10] sm:$0xff] }
  0xe1   :  { %v3926_v36 = vpop.eup %2886  ;;  %v1514_v37 = vadd.f32 1.0, %v2885_v32  ;;  %2910 = vrcp.f32 %v971_v30  ;;  %v1517_v43 = vmul.f32 -0.5, %v2885_v32  ;;  %v1520_v62 = vand.u32 2147483647, %v2885_v32 }
  0xe2   :  { %v2889_v42 = vpop.eup %2888  ;;  %v1802_v44 = vadd.f32 1.0, %v3926_v36  ;;  %2912 = vpow2.f32 %v1392_v34  ;;  %v1805_v55 = vmul.f32 -0.5, %v3926_v36  ;;  %v1808_v3 = vand.u32 2147483647, %v3926_v36 }
  0xe3   :  { %v2891_v47 = vpop.eup %2890  ;;  %2914 = vlog2.f32 %v1514_v37  ;;  %v940_v48 = vadd.f32 1.0, %v2889_v42  ;;  %v1518_v61 = vadd.f32 1.0, %v1517_v43  ;;  %v2844_v15 = vmul.f32 -1.442695, %v580_v53  ;;  %v393_v42 = vpop.f32.mrf.mxu0 }
  0xe4   :  { %2916 = vlog2.f32 %v1802_v44  ;;  %v972_v51 = vadd.f32 1.0, %v2891_v47  ;;  %v1806_v12 = vadd.f32 1.0, %v1805_v55  ;;  %vm3955_vm2 = vcmp.lt.f32.partialorder %v1520_v62, 0.0004427343 }
  0xe5   :  { %v2893_v54 = vpop.eup %2892  ;;  %2918 = vrcp.f32 %v940_v48  ;;  %v1519_v17 = vmul.f32 %v2885_v32, %v1518_v61  ;;  %v1262_v21 = vand.u32 2147483647, %v3936_v56  ;;  %vm3962_vm3 = vcmp.lt.f32.partialorder %v1808_v3, 0.0004427343  ;;  %v395_v26 = vpop.f32.mrf.mxu0 }
  0xe6   :  { %v2895_v60 = vpop.eup %2894  ;;  %v1523_v63 = vadd.f32 1.0, %v2893_v54  ;;  %v1526_v0 = vmul.f32 -0.5, %v2893_v54  ;;  %2920 = vrcp.f32 %v972_v51  ;;  %v1529_v27 = vand.u32 2147483647, %v2893_v54 }
  0xe7   :  { %v2897_v2 = vpop.eup %2896  ;;  %v1811_v4 = vadd.f32 1.0, %v2895_v60  ;;  %v1814_v5 = vmul.f32 -0.5, %v2895_v60  ;;  %v3967_v34 = vadd.f32 1e-08, %v582_v59  ;;  %v1817_v35 = vand.u32 2147483647, %v2895_v60  ;;  %v399_v62 = vpop.f32.mrf.mxu0 }
  0xe8   :  { %v3940_v6 = vpop.eup %2898  ;;  %2922 = vlog2.f32 %v1523_v63  ;;  %v941_v7 = vadd.f32 1.0, %v2897_v2  ;;  %v1527_v20 = vadd.f32 1.0, %v1526_v0  ;;  %v1807_v44 = vmul.f32 %v3926_v36, %v1806_v12 }
  0xe9   :  { %v3943_v11 = vpop.eup %2900  ;;  %2602 = vst [vmem:[%s5987_s5] sm:$0xff] %v3940_v6  ;;  %2924 = vlog2.f32 %v1811_v4  ;;  %v1815_v28 = vadd.f32 1.0, %v1814_v5  ;;  %v1198_v47 = vmin.f32 %v3936_v56, 0.0  ;;  %v1326_v52 = vsub.f32 0.0, %v1262_v21 }
  0xea   :  { %v3949_v16 = vpop.eup %2902  ;;  %2634 = vst [vmem:[%s5987_s5 + $0x100] sm:$0xff] %v3943_v11  ;;  %2926 = vrcp.f32 %v941_v7  ;;  %v3981_v50 = vmul.f32 %v2893_v54, %v1527_v20  ;;  %vm3990_vm4 = vcmp.lt.f32.partialorder %v1529_v27, 0.0004427343  ;;  %v1294_v54 = vand.u32 2147483647, %v3967_v34  ;;  %v585_v27 = vpop.f32.mrf.mxu1 }
  0xeb   :  { %v3960_v25 = vpop.eup %2904  ;;  %v1532_v30 = vadd.f32 1.0, %v3949_v16  ;;  %v1535_v37 = vmul.f32 -0.5, %v3949_v16  ;;  %2928 = vpow2.f32 %v1456_v10  ;;  %v3994_v55 = vmul.f32 %v2895_v60, %v1815_v28 }
  0xec   :  { %v2907_v32 = vpop.eup %2906  ;;  %v1820_v39 = vadd.f32 1.0, %v3960_v25  ;;  %v1823_v51 = vmul.f32 -0.5, %v3960_v25  ;;  %v394_v59 = vadd.f32 %v393_v42, %v3878_v8  ;;  %vm3998_vm5 = vcmp.lt.f32.partialorder %v1817_v35, 0.0004427343 }
  0xed   :  { %v3971_v43 = vpop.eup %2908  ;;  %2930 = vlog2.f32 %v1532_v30  ;;  %v973_v46 = vadd.f32 1.0, %v2907_v32  ;;  %v1536_v63 = vadd.f32 1.0, %v1535_v37  ;;  %v1538_v0 = vand.u32 2147483647, %v3949_v16 }
  0xee   :  { %v3975_v48 = vpop.eup %2910  ;;  %2603 = vst [vmem:[%s5987_s5 + $0x8] sm:$0xff] %v3971_v43  ;;  %2932 = vlog2.f32 %v1820_v39  ;;  %v1826_v2 = vand.u32 2147483647, %v3960_v25  ;;  %v1394_v5 = vmul.f32 1.442695, %v1326_v52  ;;  %v1358_v7 = vsub.f32 0.0, %v1294_v54 }
  0xef   :  { %v3984_v53 = vpop.eup %2912  ;;  %2635 = vst [vmem:[%s5987_s5 + $0x108] sm:$0xff] %v3975_v48  ;;  %2934 = vrcp.f32 %v973_v46  ;;  %v1824_v20 = vadd.f32 1.0, %v1823_v51  ;;  %v2813_v30 = vmul.f32 -1.442695, %v394_v59  ;;  %v1537_v39 = vmul.f32 %v3949_v16, %v1536_v63 }
  0xf0   :  { %v2915_v61 = vpop.eup %2914  ;;  %v1541_v3 = vadd.f32 1.0, %v3984_v53  ;;  %2936 = vpow2.f32 %v2812_v14  ;;  %v1544_v21 = vmul.f32 -0.5, %v3984_v53  ;;  %v1458_v14 = vmul.f32 1.442695, %v1358_v7 }
  0xf1   :  { %v2917_v4 = vpop.eup %2916  ;;  %v1516_v60 = vmul.f32 0.6931472, %v2915_v61  ;;  %vm4021_vm6 = vcmp.lt.f32.partialorder %v1538_v0, 0.0004427343  ;;  %vm4031_vm7 = vcmp.lt.f32.partialorder %v1826_v2, 0.0004427343  ;;  %v586_v16 = vadd.f32 %v585_v27, %v3878_v8 }
  0xf2   :  { %v4005_v10 = vpop.eup %2918  ;;  %v1804_v12 = vmul.f32 0.6931472, %v2917_v4  ;;  %2938 = vlog2.f32 %v1541_v3  ;;  %v1545_v54 = vadd.f32 1.0, %v1544_v21  ;;  %v1825_v0 = vmul.f32 %v3960_v25, %v1824_v20 }
  0xf3   :  { %v1522_v28 = vsel %vm3955_vm2, %v1519_v17, %v1516_v60  ;;  %2604 = vst [vmem:[%s5987_s5 + $0x10] sm:$0xff] %v4005_v10  ;;  %2940 = vpow2.f32 %v2844_v15  ;;  %v4014_v32 = vpop.eup %2920  ;;  %v2845_v59 = vmul.f32 -1.442695, %v586_v16  ;;  %v396_v2 = vadd.f32 %v395_v26, %v3880_v9 }
  0xf4   :  { %v2090_v35 = vsub.f32 %v1194_v24, %v1522_v28  ;;  %v1810_v37 = vsel %vm3962_vm3, %v1807_v44, %v1804_v12  ;;  %2942 = vpow2.f32 %v1394_v5  ;;  %2636 = vst [vmem:[%s5987_s5 + $0x110] sm:$0xff] %v4014_v32  ;;  %v1230_v24 = vmin.f32 %v3967_v34, 0.0  ;;  %v587_v12 = vpop.f32.mrf.mxu1  ;;  %v2346_v5 = vld [vmem:[%s5989_s3] sm:$0xff] }
  0xf5   :  { %v2923_v18 = vpop.eup %2922  ;;  %v2122_v15 = vsub.f32 %v1226_v29, %v1810_v37  ;;  %2944 = vpow2.f32 %v1458_v14  ;;  %v1547_v29 = vand.u32 2147483647, %v3984_v53  ;;  %v4078_v27 = vadd.f32 1e-08, %v396_v2 }
  0xf6   :  { %v2925_v42 = vpop.eup %2924  ;;  %v2154_v44 = vmul.f32 0.5, %v2090_v35  ;;  %2666 = vst [vmem:[%s5988_s6] sm:$0xff] %v2090_v35  ;;  %v1525_v23 = vmul.f32 0.6931472, %v2923_v18  ;;  %2946 = vpow2.f32 %v2813_v30  ;;  %v588_v30 = vadd.f32 %v587_v12, %v3880_v9 }
  0xf7   :  { %v4041_v46 = vpop.eup %2926  ;;  %v2186_v51 = vmul.f32 0.5, %v2122_v15  ;;  %2698 = vst [vmem:[%s5988_s6 + $0x100] sm:$0xff] %v2122_v15  ;;  %v1813_v52 = vmul.f32 0.6931472, %v2925_v42  ;;  %2948 = vpow2.f32 %v2845_v59  ;;  %vm4064_vm8 = vcmp.lt.f32.partialorder %v1547_v29, 0.0004427343 }
  0xf8   :  { %v2218_v61 = vmul.f32 1.442695, %v2154_v44  ;;  %v1531_v63 = vsel %vm3990_vm4, %v3981_v50, %v1525_v23  ;;  %2605 = vst [vmem:[%s5987_s5 + $0x18] sm:$0xff] %v4041_v46  ;;  %v4055_v3 = vpop.eup %2928  ;;  %v400_v17 = vadd.f32 %v399_v62, %v3878_v8  ;;  %v401_v62 = vpop.f32.mrf.mxu0 }
  0xf9   :  { %v2282_v4 = vmul.f32 1.442695, %v2186_v51  ;;  %v2091_v60 = vsub.f32 %v1195_v31, %v1531_v63  ;;  %v1819_v36 = vsel %vm3998_vm5, %v3994_v55, %v1813_v52  ;;  %v1829_v7 = vadd.f32 1.0, %v4055_v3 }
  0xfa   :  { %v2931_v50 = vpop.eup %2930  ;;  %2950 = vpow2.f32 %v2218_v61  ;;  %v2123_v25 = vsub.f32 %v1227_v33, %v1819_v36  ;;  %v1546_v55 = vmul.f32 %v3984_v53, %v1545_v54  ;;  %v1832_v53 = vmul.f32 -0.5, %v4055_v3 }
  0xfb   :  { %v2933_v20 = vpop.eup %2932  ;;  %2952 = vpow2.f32 %v2282_v4  ;;  %v2155_v40 = vmul.f32 0.5, %v2091_v60  ;;  %2667 = vst [vmem:[%s5988_s6 + $0x8] sm:$0xff] %v2091_v60  ;;  %v1534_v31 = vmul.f32 0.6931472, %v2931_v50  ;;  %v1835_v26 = vand.u32 2147483647, %v4055_v3  ;;  %v591_v60 = vpop.f32.mrf.mxu1 }
  0xfc   :  { %v4073_v41 = vpop.eup %2934  ;;  %v2187_v33 = vmul.f32 0.5, %v2123_v25  ;;  %2699 = vst [vmem:[%s5988_s6 + $0x108] sm:$0xff] %v2123_v25  ;;  %v1822_v21 = vmul.f32 0.6931472, %v2933_v20  ;;  %2954 = vlog2.f32 %v1829_v7  ;;  %v1833_v58 = vadd.f32 1.0, %v1832_v53  ;;  %v2378_v20 = vld [vmem:[%s5989_s3 + $0x100] sm:$0xff] }
  0xfd   :  { %v2220_v28 = vmul.f32 1.442695, %v2155_v40  ;;  %v1540_v14 = vsel %vm4021_vm6, %v1537_v39, %v1534_v31  ;;  %2637 = vst [vmem:[%s5987_s5 + $0x118] sm:$0xff] %v4073_v41  ;;  %v2937_v35 = vpop.eup %2936  ;;  %v4113_v4 = vadd.f32 1e-08, %v588_v30 }
  0xfe   :  { %v2284_v37 = vmul.f32 1.442695, %v2187_v33  ;;  %v2092_v18 = vsub.f32 %v1196_v38, %v1540_v14  ;;  %v1828_v15 = vsel %vm4031_vm7, %v1825_v0, %v1822_v21  ;;  %v942_v42 = vadd.f32 1.0, %v2937_v35  ;;  %v593_v14 = vpop.f32.mrf.mxu1 }
  0xff   :  { %v2939_v39 = vpop.eup %2938  ;;  %2956 = vpow2.f32 %v2220_v28  ;;  %v2124_v16 = vsub.f32 %v1228_v45, %v1828_v15  ;;  %v1263_v38 = vand.u32 2147483647, %v4078_v27  ;;  %v1834_v13 = vmul.f32 %v4055_v3, %v1833_v58 }
 0x100   :  { %v2941_v44 = vpop.eup %2940  ;;  %2958 = vpow2.f32 %v2284_v37  ;;  %v2156_v23 = vmul.f32 0.5, %v2092_v18  ;;  %2668 = vst [vmem:[%s5988_s6 + $0x10] sm:$0xff] %v2092_v18  ;;  %v1543_v57 = vmul.f32 0.6931472, %v2939_v39  ;;  %vm4123_vm9 = vcmp.lt.f32.partialorder %v1835_v26, 0.0004427343 }
 0x101   :  { %v4100_v22 = vpop.eup %2942  ;;  %v2188_v29 = vmul.f32 0.5, %v2124_v16  ;;  %2700 = vst [vmem:[%s5988_s6 + $0x110] sm:$0xff] %v2124_v16  ;;  %2960 = vrcp.f32 %v942_v42  ;;  %v974_v45 = vadd.f32 1.0, %v2941_v44  ;;  %v1327_v25 = vsub.f32 0.0, %v1263_v38  ;;  %v2347_v42 = vld [vmem:[%s5989_s3 + $0x8] sm:$0xff] }
 0x102   :  { %v4105_v51 = vpop.eup %2944  ;;  %v2222_v52 = vmul.f32 1.442695, %v2156_v23  ;;  %v1549_v54 = vsel %vm4064_vm8, %v1546_v55, %v1543_v57  ;;  %v1550_v59 = vadd.f32 1.0, %v4100_v22  ;;  %v1553_v61 = vmul.f32 -0.5, %v4100_v22  ;;  %v405_v57 = vpop.f32.mrf.mxu0 }
 0x103   :  { %v2947_v63 = vpop.eup %2946  ;;  %v2286_v0 = vmul.f32 1.442695, %v2188_v29  ;;  %v2093_v2 = vsub.f32 %v1197_v49, %v1549_v54  ;;  %2962 = vrcp.f32 %v974_v45  ;;  %v1838_v50 = vadd.f32 1.0, %v4105_v51 }
 0x104   :  { %2964 = vpow2.f32 %v2222_v52  ;;  %v1554_v36 = vadd.f32 1.0, %v1553_v61  ;;  %v2949_v12 = vpop.eup %2948  ;;  %v1556_v40 = vand.u32 2147483647, %v4100_v22  ;;  %v1841_v31 = vmul.f32 -0.5, %v4105_v51 }
 0x105   :  { %2966 = vpow2.f32 %v2286_v0  ;;  %v2157_v7 = vmul.f32 0.5, %v2093_v2  ;;  %2669 = vst [vmem:[%s5988_s6 + $0x18] sm:$0xff] %v2093_v2  ;;  %v943_v55 = vadd.f32 1.0, %v2947_v63  ;;  %v1844_v3 = vand.u32 2147483647, %v4105_v51 }
 0x106   :  { %2968 = vlog2.f32 %v1550_v59  ;;  %v975_v28 = vadd.f32 1.0, %v2949_v12  ;;  %v4134_v35 = vmul.f32 %v4100_v22, %v1554_v36  ;;  %v1396_v37 = vmul.f32 1.442695, %v1327_v25  ;;  %v2379_v22 = vld [vmem:[%s5989_s3 + $0x108] sm:$0xff] }
 0x107   :  { %v2951_v33 = vpop.eup %2950  ;;  %v2224_v21 = vmul.f32 1.442695, %v2157_v7  ;;  %2970 = vlog2.f32 %v1838_v50  ;;  %v1295_v39 = vand.u32 2147483647, %v4113_v4  ;;  %v2814_v16 = vmul.f32 -1.442695, %v400_v17 }
 0x108   :  { %v2953_v53 = vpop.eup %2952  ;;  %v2410_v30 = vmul.f32 %v2951_v33, %v2346_v5  ;;  %2972 = vrcp.f32 %v943_v55  ;;  %v592_v23 = vadd.f32 %v591_v60, %v3878_v8  ;;  %v402_v17 = vadd.f32 %v401_v62, %v3880_v9  ;;  %v407_v5 = vpop.f32.mrf.mxu0 }
 0x109   :  { %v2955_v18 = vpop.eup %2954  ;;  %v2442_v15 = vmul.f32 %v2953_v53, %v2378_v20  ;;  %2974 = vpow2.f32 %v2224_v21  ;;  %v1359_v29 = vsub.f32 0.0, %v1295_v39  ;;  %vm4158_vm10 = vcmp.lt.f32.partialorder %v1556_v40, 0.0004427343  ;;  %v2349_v39 = vld [vmem:[%s5989_s3 + $0x18] sm:$0xff] }
 0x10a   :  { %v2474_v26 = vadd.f32 %v3940_v6, %v2410_v30  ;;  %v1831_v44 = vmul.f32 0.6931472, %v2955_v18  ;;  %2976 = vrcp.f32 %v975_v28  ;;  %v597_v6 = vpop.f32.mrf.mxu1  ;;  %v2846_v52 = vmul.f32 -1.442695, %v592_v23 }
 0x10b   :  { %v2506_v38 = vadd.f32 %v3943_v11, %v2442_v15  ;;  %2978 = vpow2.f32 %v1396_v37  ;;  %v594_v11 = vadd.f32 %v593_v14, %v3880_v9  ;;  %v1460_v0 = vmul.f32 1.442695, %v1359_v29 }
 0x10c   :  { %v2957_v58 = vpop.eup %2956  ;;  %2538 = vst [vmem:[%s5990_s4] sm:$0xff] %v2474_v26  ;;  %v1837_v45 = vsel %vm4123_vm9, %v1834_v13, %v1831_v44  ;;  %2980 = vpow2.f32 %v2814_v16  ;;  %v4162_v2 = vadd.f32 1e-08, %v402_v17  ;;  %v406_v25 = vadd.f32 %v405_v57, %v3878_v8 }
 0x10d   :  { %v2959_v54 = vpop.eup %2958  ;;  %2570 = vst [vmem:[%s5990_s4 + $0x100] sm:$0xff] %v2506_v38  ;;  %v2411_v59 = vmul.f32 %v2957_v58, %v2347_v42  ;;  %v2125_v61 = vsub.f32 %v1229_v1, %v1837_v45  ;;  %2982 = vpow2.f32 %v2846_v52  ;;  %v4166_v50 = vadd.f32 1e-08, %v594_v11  ;;  %v2380_v1 = vld [vmem:[%s5989_s3 + $0x110] sm:$0xff] }
 0x10e   :  { %v4164_v60 = vpop.eup %2960  ;;  %v2443_v36 = vmul.f32 %v2959_v54, %v2379_v22  ;;  %v1842_v49 = vadd.f32 1.0, %v1841_v31  ;;  %2984 = vpow2.f32 %v1460_v0  ;;  %vm4186_vm11 = vcmp.lt.f32.partialorder %v1844_v3, 0.0004427343 }
 0x10f   :  { %v2475_v7 = vadd.f32 %v3971_v43, %v2411_v59  ;;  %v2189_v13 = vmul.f32 0.5, %v2125_v61  ;;  %2701 = vst [vmem:[%s5988_s6 + $0x118] sm:$0xff] %v2125_v61  ;;  %2606 = vst [vmem:[%s5987_s5 + $0x20] sm:$0xff] %v4164_v60  ;;  %v599_v43 = vpop.f32.mrf.mxu1  ;;  %v1264_v55 = vand.u32 2147483647, %v4162_v2  ;;  %v598_v21 = vadd.f32 %v597_v6, %v3878_v8 }
 0x110   :  { %v4183_v12 = vpop.eup %2962  ;;  %v2507_v20 = vadd.f32 %v3975_v48, %v2443_v36  ;;  %v1296_v62 = vand.u32 2147483647, %v4166_v50  ;;  %v2815_v48 = vmul.f32 -1.442695, %v406_v25  ;;  %v408_v3 = vadd.f32 %v407_v5, %v3880_v9  ;;  %v411_v36 = vpop.f32.mrf.mxu0 }
 0x111   :  { %v2965_v33 = vpop.eup %2964  ;;  %2539 = vst [vmem:[%s5990_s4 + $0x8] sm:$0xff] %v2475_v7  ;;  %v2288_v31 = vmul.f32 1.442695, %v2189_v13  ;;  %2638 = vst [vmem:[%s5987_s5 + $0x120] sm:$0xff] %v4183_v12  ;;  %v1328_v53 = vsub.f32 0.0, %v1264_v55  ;;  %v600_v37 = vadd.f32 %v599_v43, %v3880_v9  ;;  %v1843_v6 = vmul.f32 %v4105_v51, %v1842_v49  ;;  %v603_v25 = vpop.f32.mrf.mxu1 }
 0x112   :  { %v2967_v28 = vpop.eup %2966  ;;  %2571 = vst [vmem:[%s5990_s4 + $0x108] sm:$0xff] %v2507_v20  ;;  %v2412_v14 = vmul.f32 %v2965_v33, %v2348_v19  ;;  %v1360_v30 = vsub.f32 0.0, %v1296_v62  ;;  %v2847_v16 = vmul.f32 -1.442695, %v598_v21  ;;  %v4208_v26 = vadd.f32 1e-08, %v408_v3  ;;  %v413_v55 = vpop.f32.mrf.mxu0 }
 0x113   :  { %v2969_v18 = vpop.eup %2968  ;;  %v2444_v15 = vmul.f32 %v2967_v28, %v2380_v1  ;;  %2986 = vpow2.f32 %v2288_v31  ;;  %v1398_v57 = vmul.f32 1.442695, %v1328_v53  ;;  %v4226_v45 = vadd.f32 1e-08, %v600_v37  ;;  %v2381_v62 = vld [vmem:[%s5989_s3 + $0x118] sm:$0xff]  ;;  %v605_v21 = vpop.f32.mrf.mxu1 }
 0x114   :  { %v2971_v42 = vpop.eup %2970  ;;  %v2476_v44 = vadd.f32 %v4005_v10, %v2412_v14  ;;  %v1552_v23 = vmul.f32 0.6931472, %v2969_v18  ;;  %v1462_v38 = vmul.f32 1.442695, %v1360_v30  ;;  %2988 = vpow2.f32 %v2815_v48 }
 0x115   :  { %v4211_v22 = vpop.eup %2972  ;;  %v2508_v29 = vadd.f32 %v4014_v32, %v2444_v15  ;;  %v1840_v17 = vmul.f32 0.6931472, %v2971_v42  ;;  %2990 = vpow2.f32 %v1398_v57  ;;  %v1265_v32 = vand.u32 2147483647, %v4208_v26 }
 0x116   :  { %v2975_v58 = vpop.eup %2974  ;;  %2540 = vst [vmem:[%s5990_s4 + $0x10] sm:$0xff] %v2476_v44  ;;  %v1558_v10 = vsel %vm4158_vm10, %v4134_v35, %v1552_v23  ;;  %2607 = vst [vmem:[%s5987_s5 + $0x28] sm:$0xff] %v4211_v22  ;;  %2992 = vpow2.f32 %v1462_v38  ;;  %v1297_v7 = vand.u32 2147483647, %v4226_v45  ;;  %v1199_v13 = vmin.f32 %v4078_v27, 0.0  ;;  %v417_v38 = vpop.f32.mrf.mxu0 }
 0x117   :  { %v4228_v51 = vpop.eup %2976  ;;  %2572 = vst [vmem:[%s5990_s4 + $0x110] sm:$0xff] %v2508_v29  ;;  %v2413_v52 = vmul.f32 %v2975_v58, %v2349_v39  ;;  %v2094_v35 = vsub.f32 %v1198_v47, %v1558_v10  ;;  %v1846_v11 = vsel %vm4186_vm11, %v1843_v6, %v1840_v17  ;;  %2994 = vpow2.f32 %v2847_v16  ;;  %v609_v29 = vpop.f32.mrf.mxu1 }
 0x118   :  { %v4237_v54 = vpop.eup %2978  ;;  %v2126_v59 = vsub.f32 %v1230_v24, %v1846_v11  ;;  %2639 = vst [vmem:[%s5987_s5 + $0x128] sm:$0xff] %v4228_v51  ;;  %v1329_v0 = vsub.f32 0.0, %v1265_v32  ;;  %v1231_v43 = vmin.f32 %v4113_v4, 0.0  ;;  %v1361_v31 = vsub.f32 0.0, %v1297_v7 }
 0x119   :  { %v2981_v61 = vpop.eup %2980  ;;  %v2477_v63 = vadd.f32 %v4041_v46, %v2413_v52  ;;  %v2158_v56 = vmul.f32 0.5, %v2094_v35  ;;  %2670 = vst [vmem:[%s5988_s6 + $0x20] sm:$0xff] %v2094_v35  ;;  %v1559_v47 = vadd.f32 1.0, %v4237_v54  ;;  %v1562_v33 = vmul.f32 -0.5, %v4237_v54 }
 0x11a   :  { %v2190_v34 = vmul.f32 0.5, %v2126_v59  ;;  %2702 = vst [vmem:[%s5988_s6 + $0x120] sm:$0xff] %v2126_v59  ;;  %v944_v24 = vadd.f32 1.0, %v2981_v61  ;;  %v2983_v5 = vpop.eup %2982  ;;  %v1400_v40 = vmul.f32 1.442695, %v1329_v0  ;;  %v412_v48 = vadd.f32 %v411_v36, %v3878_v8  ;;  %v2350_v36 = vld [vmem:[%s5989_s3 + $0x20] sm:$0xff] }
 0x11b   :  { %2541 = vst [vmem:[%s5990_s4 + $0x18] sm:$0xff] %v2477_v63  ;;  %v2226_v46 = vmul.f32 1.442695, %v2158_v56  ;;  %2996 = vlog2.f32 %v1559_v47  ;;  %v4257_v19 = vpop.eup %2984  ;;  %v976_v49 = vadd.f32 1.0, %v2983_v5  ;;  %v1200_v28 = vmin.f32 %v4162_v2, 0.0 }
 0x11c   :  { %v2290_v1 = vmul.f32 1.442695, %v2190_v34  ;;  %2998 = vrcp.f32 %v944_v24  ;;  %v1847_v20 = vadd.f32 1.0, %v4257_v19  ;;  %v1850_v3 = vmul.f32 -0.5, %v4257_v19 }
 0x11d   :  { %3000 = vpow2.f32 %v2226_v46  ;;  %v604_v14 = vadd.f32 %v603_v25, %v3878_v8  ;;  %v1464_v30 = vmul.f32 1.442695, %v1361_v31  ;;  %v2816_v37 = vmul.f32 -1.442695, %v412_v48  ;;  %v2382_v46 = vld [vmem:[%s5989_s3 + $0x120] sm:$0xff] }
 0x11e   :  { %3002 = vpow2.f32 %v2290_v1  ;;  %v414_v18 = vadd.f32 %v413_v55, %v3880_v9  ;;  %v1232_v39 = vmin.f32 %v4166_v50, 0.0  ;;  %v1563_v44 = vadd.f32 1.0, %v1562_v33 }
 0x11f   :  { %3004 = vlog2.f32 %v1847_v20  ;;  %v2848_v16 = vmul.f32 -1.442695, %v604_v14  ;;  %v1565_v23 = vand.u32 2147483647, %v4237_v54  ;;  %v1201_v57 = vmin.f32 %v4208_v26, 0.0  ;;  %v419_v14 = vpop.f32.mrf.mxu0 }
 0x120   :  { %v2987_v53 = vpop.eup %2986  ;;  %3006 = vrcp.f32 %v976_v49  ;;  %v1851_v58 = vadd.f32 1.0, %v1850_v3  ;;  %v4280_v35 = vadd.f32 1e-08, %v414_v18  ;;  %v606_v11 = vadd.f32 %v605_v21, %v3880_v9 }
 0x121   :  { %v2445_v15 = vmul.f32 %v2987_v53, %v2381_v62  ;;  %3008 = vpow2.f32 %v1400_v40  ;;  %v2989_v42 = vpop.eup %2988  ;;  %v610_v63 = vadd.f32 %v609_v29, %v3878_v8  ;;  %v1233_v0 = vmin.f32 %v4226_v45, 0.0 }
 0x122   :  { %3010 = vpow2.f32 %v1464_v30  ;;  %v4274_v17 = vpop.eup %2990  ;;  %v945_v10 = vadd.f32 1.0, %v2989_v42  ;;  %v1564_v34 = vmul.f32 %v4237_v54, %v1563_v44  ;;  %vm4295_vm12 = vcmp.lt.f32.partialorder %v1565_v23, 0.0004427343 }
 0x123   :  { %v2509_v6 = vadd.f32 %v4073_v41, %v2445_v15  ;;  %3012 = vpow2.f32 %v2816_v37  ;;  %v4277_v32 = vpop.eup %2992  ;;  %v1568_v52 = vadd.f32 1.0, %v4274_v17  ;;  %v418_v41 = vadd.f32 %v417_v38, %v3878_v8 }
 0x124   :  { %3014 = vpow2.f32 %v2848_v16  ;;  %v2995_v59 = vpop.eup %2994  ;;  %v1856_v61 = vadd.f32 1.0, %v4277_v32  ;;  %v1571_v56 = vmul.f32 -0.5, %v4274_v17  ;;  %v1853_v25 = vand.u32 2147483647, %v4257_v19 }
 0x125   :  { %2573 = vst [vmem:[%s5990_s4 + $0x118] sm:$0xff] %v2509_v6  ;;  %3016 = vrcp.f32 %v945_v10  ;;  %v977_v47 = vadd.f32 1.0, %v2995_v59  ;;  %v1859_v7 = vmul.f32 -0.5, %v4277_v32  ;;  %v1266_v1 = vand.u32 2147483647, %v4280_v35  ;;  %v611_v59 = vpop.f32.mrf.mxu1 }
 0x126   :  { %3018 = vlog2.f32 %v1568_v52  ;;  %v4305_v49 = vadd.f32 1e-08, %v606_v11  ;;  %v1852_v40 = vmul.f32 %v4257_v19, %v1851_v58  ;;  %v2817_v55 = vmul.f32 -1.442695, %v418_v41 }
 0x127   :  { %3020 = vlog2.f32 %v1856_v61  ;;  %v2849_v62 = vmul.f32 -1.442695, %v610_v63  ;;  %v1572_v31 = vadd.f32 1.0, %v1571_v56  ;;  %v1574_v48 = vand.u32 2147483647, %v4274_v17 }
 0x128   :  { %v2997_v5 = vpop.eup %2996  ;;  %3022 = vrcp.f32 %v977_v47  ;;  %v1862_v21 = vand.u32 2147483647, %v4277_v32  ;;  %v1330_v3 = vsub.f32 0.0, %v1266_v1  ;;  %v1298_v37 = vand.u32 2147483647, %v4305_v49 }
 0x129   :  { %v4307_v54 = vpop.eup %2998  ;;  %v1561_v20 = vmul.f32 0.6931472, %v2997_v5  ;;  %3024 = vpow2.f32 %v2817_v55  ;;  %v1860_v42 = vadd.f32 1.0, %v1859_v7  ;;  %v420_v6 = vadd.f32 %v419_v14, %v3880_v9 }
 0x12a   :  { %v3001_v33 = vpop.eup %3000  ;;  %2608 = vst [vmem:[%s5987_s5 + $0x30] sm:$0xff] %v4307_v54  ;;  %v1402_v44 = vmul.f32 1.442695, %v1330_v3  ;;  %3026 = vpow2.f32 %v2849_v62  ;;  %vm1854_vm13 = vcmp.lt.f32.partialorder %v1853_v25, 0.0004427343  ;;  %v1362_v11 = vsub.f32 0.0, %v1298_v37 }
 0x12b   :  { %v3003_v53 = vpop.eup %3002  ;;  %v2414_v30 = vmul.f32 %v3001_v33, %v2350_v36  ;;  %v1567_v19 = vsel %vm4295_vm12, %v1564_v34, %v1561_v20  ;;  %vm4340_vm14 = vcmp.lt.f32.partialorder %v1574_v48, 0.0004427343  ;;  %vm4350_vm15 = vcmp.lt.f32.partialorder %v1862_v21, 0.0004427343  ;;  %v423_v20 = vpop.f32.mrf.mxu0 }
 0x12c   :  { %v3005_v18 = vpop.eup %3004  ;;  %v2446_v15 = vmul.f32 %v3003_v53, %v2382_v46  ;;  %v2095_v16 = vsub.f32 %v1199_v13, %v1567_v19  ;;  %3028 = vpow2.f32 %v1402_v44  ;;  %v1573_v34 = vmul.f32 %v4274_v17, %v1572_v31  ;;  %v615_v19 = vpop.f32.mrf.mxu1 }
 0x12d   :  { %v4321_v23 = vpop.eup %3006  ;;  %v2478_v38 = vadd.f32 %v4164_v60, %v2414_v30  ;;  %v1849_v29 = vmul.f32 0.6931472, %v3005_v18  ;;  %v1861_v24 = vmul.f32 %v4277_v32, %v1860_v42  ;;  %v4357_v25 = vadd.f32 1e-08, %v420_v6 }
 0x12e   :  { %v4325_v58 = vpop.eup %3008  ;;  %v2510_v10 = vadd.f32 %v4183_v12, %v2446_v15  ;;  %v2159_v52 = vmul.f32 0.5, %v2095_v16  ;;  %2671 = vst [vmem:[%s5988_s6 + $0x28] sm:$0xff] %v2095_v16  ;;  %2640 = vst [vmem:[%s5987_s5 + $0x130] sm:$0xff] %v4321_v23  ;;  %v1466_v1 = vmul.f32 1.442695, %v1362_v11  ;;  %v424_v30 = vadd.f32 %v423_v20, %v3878_v8  ;;  %v425_v16 = vpop.f32.mrf.mxu0 }
 0x12f   :  { %v4335_v27 = vpop.eup %3010  ;;  %2542 = vst [vmem:[%s5990_s4 + $0x20] sm:$0xff] %v2478_v38  ;;  %v1855_v60 = vsel %vm1854_vm13, %v1852_v40, %v1849_v29  ;;  %v1577_v13 = vadd.f32 1.0, %v4325_v58  ;;  %v1580_v17 = vmul.f32 -0.5, %v4325_v58  ;;  %v1583_v33 = vand.u32 2147483647, %v4325_v58 }
 0x130   :  { %v3013_v61 = vpop.eup %3012  ;;  %2574 = vst [vmem:[%s5990_s4 + $0x120] sm:$0xff] %v2510_v10  ;;  %v2228_v41 = vmul.f32 1.442695, %v2159_v52  ;;  %v2127_v63 = vsub.f32 %v1231_v43, %v1855_v60  ;;  %v1865_v47 = vadd.f32 1.0, %v4335_v27  ;;  %v612_v43 = vadd.f32 %v611_v59, %v3880_v9 }
 0x131   :  { %v3015_v36 = vpop.eup %3014  ;;  %3030 = vlog2.f32 %v1577_v13  ;;  %v946_v4 = vadd.f32 1.0, %v3013_v61  ;;  %v1868_v21 = vmul.f32 -0.5, %v4335_v27  ;;  %v1267_v3 = vand.u32 2147483647, %v4357_v25  ;;  %v617_v13 = vpop.f32.mrf.mxu1 }
 0x132   :  { %v4359_v5 = vpop.eup %3016  ;;  %3032 = vpow2.f32 %v2228_v41  ;;  %v2191_v46 = vmul.f32 0.5, %v2127_v63  ;;  %2703 = vst [vmem:[%s5988_s6 + $0x128] sm:$0xff] %v2127_v63  ;;  %v978_v32 = vadd.f32 1.0, %v3015_v36  ;;  %v4381_v53 = vadd.f32 1e-08, %v612_v43  ;;  %v429_v43 = vpop.f32.mrf.mxu0 }
 0x133   :  { %v3019_v7 = vpop.eup %3018  ;;  %2609 = vst [vmem:[%s5987_s5 + $0x38] sm:$0xff] %v4359_v5  ;;  %3034 = vlog2.f32 %v1865_v47  ;;  %v1581_v15 = vadd.f32 1.0, %v1580_v17  ;;  %v1871_v38 = vand.u32 2147483647, %v4335_v27  ;;  %v2818_v6 = vmul.f32 -1.442695, %v424_v30 }
 0x134   :  { %v3021_v40 = vpop.eup %3020  ;;  %v2292_v55 = vmul.f32 1.442695, %v2191_v46  ;;  %v1570_v62 = vmul.f32 0.6931472, %v3019_v7  ;;  %3036 = vrcp.f32 %v946_v4  ;;  %v1299_v29 = vand.u32 2147483647, %v4381_v53 }
 0x135   :  { %v4371_v31 = vpop.eup %3022  ;;  %v1858_v48 = vmul.f32 0.6931472, %v3021_v40  ;;  %3038 = vrcp.f32 %v978_v32  ;;  %v1869_v2 = vadd.f32 1.0, %v1868_v21  ;;  %v1331_v52 = vsub.f32 0.0, %v1267_v3 }
 0x136   :  { %3040 = vpow2.f32 %v2292_v55  ;;  %v1576_v14 = vsel %vm4340_vm14, %v1573_v34, %v1570_v62  ;;  %2641 = vst [vmem:[%s5987_s5 + $0x138] sm:$0xff] %v4371_v31  ;;  %v3025_v42 = vpop.eup %3024  ;;  %v1363_v50 = vsub.f32 0.0, %v1299_v29  ;;  %vm4401_vm0 = vcmp.lt.f32.partialorder %v1583_v33, 0.0004427343  ;;  %v2351_v34 = vld [vmem:[%s5989_s3 + $0x28] sm:$0xff] }
 0x137   :  { %v2096_v37 = vsub.f32 %v1200_v28, %v1576_v14  ;;  %v1864_v18 = vsel %vm4350_vm15, %v1861_v24, %v1858_v48  ;;  %3042 = vpow2.f32 %v1466_v1  ;;  %v947_v28 = vadd.f32 1.0, %v3025_v42  ;;  %v3027_v60 = vpop.eup %3026 }
 0x138   :  { %v2128_v44 = vsub.f32 %v1232_v39, %v1864_v18  ;;  %3044 = vpow2.f32 %v2818_v6  ;;  %v426_v39 = vadd.f32 %v425_v16, %v3880_v9  ;;  %v616_v41 = vadd.f32 %v615_v19, %v3878_v8 }
 0x139   :  { %v2160_v10 = vmul.f32 0.5, %v2096_v37  ;;  %2672 = vst [vmem:[%s5988_s6 + $0x30] sm:$0xff] %v2096_v37  ;;  %v4399_v11 = vpop.eup %3028  ;;  %3046 = vrcp.f32 %v947_v28  ;;  %v1582_v56 = vmul.f32 %v4325_v58, %v1581_v15  ;;  %v979_v36 = vadd.f32 1.0, %v3027_v60 }
 0x13a   :  { %v2192_v12 = vmul.f32 0.5, %v2128_v44  ;;  %2704 = vst [vmem:[%s5988_s6 + $0x130] sm:$0xff] %v2128_v44  ;;  %v1586_v47 = vadd.f32 1.0, %v4399_v11  ;;  %v1404_v24 = vmul.f32 1.442695, %v1331_v52  ;;  %v618_v4 = vadd.f32 %v617_v13, %v3880_v9  ;;  %v431_v13 = vpop.f32.mrf.mxu0 }
 0x13b   :  { %v2230_v59 = vmul.f32 1.442695, %v2160_v10  ;;  %v4411_v46 = vadd.f32 1e-08, %v426_v39  ;;  %v1870_v17 = vmul.f32 %v4335_v27, %v1869_v2  ;;  %vm4415_vm1 = vcmp.lt.f32.partialorder %v1871_v38, 0.0004427343 }
 0x13c   :  { %v2294_v63 = vmul.f32 1.442695, %v2192_v12  ;;  %v1468_v32 = vmul.f32 1.442695, %v1363_v50  ;;  %v2850_v40 = vmul.f32 -1.442695, %v616_v41  ;;  %v430_v21 = vadd.f32 %v429_v43, %v3878_v8 }
 0x13d   :  { %3048 = vpow2.f32 %v2230_v59  ;;  %v1268_v55 = vand.u32 2147483647, %v4411_v46  ;;  %v4420_v48 = vadd.f32 1e-08, %v618_v4  ;;  %v2383_v27 = vld [vmem:[%s5989_s3 + $0x128] sm:$0xff]  ;;  %v1589_v16 = vmul.f32 -0.5, %v4399_v11 }
 0x13e   :  { %v3031_v7 = vpop.eup %3030  ;;  %3050 = vpow2.f32 %v2294_v63  ;;  %v1202_v2 = vmin.f32 %v4280_v35, 0.0  ;;  %v2819_v52 = vmul.f32 -1.442695, %v430_v21  ;;  %v432_v43 = vadd.f32 %v431_v13, %v3880_v9 }
 0x13f   :  { %v3033_v1 = vpop.eup %3032  ;;  %v1579_v20 = vmul.f32 0.6931472, %v3031_v7  ;;  %3052 = vlog2.f32 %v1586_v47  ;;  %v1332_v19 = vsub.f32 0.0, %v1268_v55  ;;  %v1590_v61 = vadd.f32 1.0, %v1589_v16 }
 0x140   :  { %v3035_v62 = vpop.eup %3034  ;;  %v2415_v33 = vmul.f32 %v3033_v1, %v2351_v34  ;;  %3054 = vrcp.f32 %v979_v36  ;;  %v2384_v34 = vld [vmem:[%s5989_s3 + $0x130] sm:$0xff]  ;;  %v1203_v58 = vmin.f32 %v4357_v25, 0.0 }
 0x141   :  { %v4423_v3 = vpop.eup %3036  ;;  %v1585_v14 = vsel %vm4401_vm0, %v1582_v56, %v1579_v20  ;;  %v1867_v30 = vmul.f32 0.6931472, %v3035_v62  ;;  %3056 = vpow2.f32 %v1404_v24  ;;  %v1406_v26 = vmul.f32 1.442695, %v1332_v19 }
 0x142   :  { %v4430_v37 = vpop.eup %3038  ;;  %v2479_v18 = vadd.f32 %v4211_v22, %v2415_v33  ;;  %v2097_v15 = vsub.f32 %v1201_v57, %v1585_v14  ;;  %2610 = vst [vmem:[%s5987_s5 + $0x40] sm:$0xff] %v4423_v3  ;;  %3058 = vpow2.f32 %v1468_v32  ;;  %v1300_v22 = vand.u32 2147483647, %v4420_v48  ;;  %v621_v57 = vpop.f32.mrf.mxu1 }
 0x143   :  { %v3041_v42 = vpop.eup %3040  ;;  %v1873_v44 = vsel %vm4415_vm1, %v1870_v17, %v1867_v30  ;;  %2642 = vst [vmem:[%s5987_s5 + $0x140] sm:$0xff] %v4430_v37  ;;  %3060 = vpow2.f32 %v2850_v40  ;;  %v1234_v24 = vmin.f32 %v4305_v49, 0.0  ;;  %v1592_v17 = vand.u32 2147483647, %v4399_v11  ;;  %v435_v14 = vpop.f32.mrf.mxu0 }
 0x144   :  { %v4447_v38 = vpop.eup %3042  ;;  %2543 = vst [vmem:[%s5990_s4 + $0x28] sm:$0xff] %v2479_v18  ;;  %v2447_v29 = vmul.f32 %v3041_v42, %v2383_v27  ;;  %v2161_v6 = vmul.f32 0.5, %v2097_v15  ;;  %2673 = vst [vmem:[%s5988_s6 + $0x38] sm:$0xff] %v2097_v15  ;;  %v2129_v10 = vsub.f32 %v1233_v0, %v1873_v44  ;;  %3062 = vpow2.f32 %v1406_v26  ;;  %v623_v41 = vpop.f32.mrf.mxu1 }
 0x145   :  { %v1874_v28 = vadd.f32 1.0, %v4447_v38  ;;  %v1364_v39 = vsub.f32 0.0, %v1300_v22  ;;  %v3045_v59 = vpop.eup %3044  ;;  %v1877_v45 = vmul.f32 -0.5, %v4447_v38  ;;  %v622_v0 = vadd.f32 %v621_v57, %v3878_v8  ;;  %v437_v13 = vpop.f32.mrf.mxu0 }
 0x146   :  { %v2511_v60 = vadd.f32 %v4228_v51, %v2447_v29  ;;  %v2232_v12 = vmul.f32 1.442695, %v2161_v6  ;;  %v2193_v50 = vmul.f32 0.5, %v2129_v10  ;;  %2705 = vst [vmem:[%s5988_s6 + $0x138] sm:$0xff] %v2129_v10  ;;  %v4465_v63 = vpop.eup %3046  ;;  %v2352_v51 = vld [vmem:[%s5989_s3 + $0x30] sm:$0xff]  ;;  %v948_v47 = vadd.f32 1.0, %v3045_v59  ;;  %v627_v29 = vpop.f32.mrf.mxu1 }
 0x147   :  { %3064 = vlog2.f32 %v1874_v28  ;;  %v1470_v36 = vmul.f32 1.442695, %v1364_v39  ;;  %2611 = vst [vmem:[%s5987_s5 + $0x48] sm:$0xff] %v4465_v63  ;;  %v2851_v4 = vmul.f32 -1.442695, %v622_v0  ;;  %v624_v32 = vadd.f32 %v623_v41, %v3880_v9 }
 0x148   :  { %2575 = vst [vmem:[%s5990_s4 + $0x128] sm:$0xff] %v2511_v60  ;;  %3066 = vpow2.f32 %v2232_v12  ;;  %v2296_v56 = vmul.f32 1.442695, %v2193_v50  ;;  %v1591_v40 = vmul.f32 %v4399_v11, %v1590_v61  ;;  %v1880_v55 = vand.u32 2147483647, %v4447_v38 }
 0x149   :  { %3068 = vpow2.f32 %v2819_v52  ;;  %v1878_v21 = vadd.f32 1.0, %v1877_v45  ;;  %v4487_v27 = vadd.f32 1e-08, %v432_v43  ;;  %v4492_v15 = vadd.f32 1e-08, %v624_v32  ;;  %v2385_v43 = vld [vmem:[%s5989_s3 + $0x138] sm:$0xff] }
 0x14a   :  { %v3049_v7 = vpop.eup %3048  ;;  %3070 = vpow2.f32 %v2296_v56  ;;  %vm1593_vm2 = vcmp.lt.f32.partialorder %v1592_v17, 0.0004427343  ;;  %v1235_v42 = vmin.f32 %v4381_v53, 0.0  ;;  %v1204_v44 = vmin.f32 %v4411_v46, 0.0 }
 0x14b   :  { %v3051_v1 = vpop.eup %3050  ;;  %v2416_v20 = vmul.f32 %v3049_v7, %v2352_v51  ;;  %3072 = vrcp.f32 %v948_v47  ;;  %vm4508_vm3 = vcmp.lt.f32.partialorder %v1880_v55, 0.0004427343  ;;  %v436_v57 = vadd.f32 %v435_v14, %v3878_v8 }
 0x14c   :  { %v3053_v62 = vpop.eup %3052  ;;  %v2448_v33 = vmul.f32 %v3051_v1, %v2384_v34  ;;  %3074 = vpow2.f32 %v1470_v36  ;;  %v1879_v28 = vmul.f32 %v4447_v38, %v1878_v21  ;;  %v1269_v60 = vand.u32 2147483647, %v4487_v27 }
 0x14d   :  { %v4489_v30 = vpop.eup %3054  ;;  %v2480_v19 = vadd.f32 %v4307_v54, %v2416_v20  ;;  %v1588_v18 = vmul.f32 0.6931472, %v3053_v62  ;;  %3076 = vpow2.f32 %v2851_v4  ;;  %v1301_v39 = vand.u32 2147483647, %v4492_v15  ;;  %v629_v62 = vpop.f32.mrf.mxu1 }
 0x14e   :  { %v4494_v16 = vpop.eup %3056  ;;  %v2512_v11 = vadd.f32 %v4321_v23, %v2448_v33  ;;  %2643 = vst [vmem:[%s5987_s5 + $0x148] sm:$0xff] %v4489_v30  ;;  %v628_v38 = vadd.f32 %v627_v29, %v3878_v8  ;;  %v4536_v41 = vmul.f32 -1.442695, %v436_v57  ;;  %v1333_v36 = vsub.f32 0.0, %v1269_v60 }
 0x14f   :  { %v4503_v26 = vpop.eup %3058  ;;  %2544 = vst [vmem:[%s5990_s4 + $0x30] sm:$0xff] %v2480_v19  ;;  %v1594_v54 = vsel %vm1593_vm2, %v1591_v40, %v1588_v18  ;;  %v1595_v23 = vadd.f32 1.0, %v4494_v16  ;;  %v1598_v12 = vmul.f32 -0.5, %v4494_v16  ;;  %v1601_v45 = vand.u32 2147483647, %v4494_v16 }
 0x150   :  { %v3061_v6 = vpop.eup %3060  ;;  %2576 = vst [vmem:[%s5990_s4 + $0x130] sm:$0xff] %v2512_v11  ;;  %v2098_v10 = vsub.f32 %v1202_v2, %v1594_v54  ;;  %v1883_v52 = vadd.f32 1.0, %v4503_v26  ;;  %v1886_v35 = vmul.f32 -0.5, %v4503_v26  ;;  %v2353_v2 = vld [vmem:[%s5989_s3 + $0x38] sm:$0xff]  ;;  %v1889_v47 = vand.u32 2147483647, %v4503_v26 }
 0x151   :  { %3078 = vlog2.f32 %v1595_v23  ;;  %v980_v50 = vadd.f32 1.0, %v3061_v6  ;;  %v4524_v59 = vpop.eup %3062  ;;  %v438_v34 = vadd.f32 %v437_v13, %v3880_v9  ;;  %v1599_v17 = vadd.f32 1.0, %v1598_v12 }
 0x152   :  { %v2162_v61 = vmul.f32 0.5, %v2098_v10  ;;  %2674 = vst [vmem:[%s5988_s6 + $0x40] sm:$0xff] %v2098_v10  ;;  %3080 = vlog2.f32 %v1883_v52  ;;  %v1604_v0 = vadd.f32 1.0, %v4524_v59  ;;  %v1365_v32 = vsub.f32 0.0, %v1301_v39 }
 0x153   :  { %3082 = vrcp.f32 %v980_v50  ;;  %v1887_v40 = vadd.f32 1.0, %v1886_v35  ;;  %v1408_v55 = vmul.f32 1.442695, %v1333_v36  ;;  %v1607_v14 = vmul.f32 -0.5, %v4524_v59  ;;  %v441_v50 = vpop.f32.mrf.mxu0  ;;  %v633_v35 = vpop.f32.mrf.mxu1 }
 0x154   :  { %v3065_v51 = vpop.eup %3064  ;;  %v2234_v56 = vmul.f32 1.442695, %v2162_v61  ;;  %3084 = vlog2.f32 %v1604_v0  ;;  %v1472_v18 = vmul.f32 1.442695, %v1365_v32  ;;  %vm4551_vm4 = vcmp.lt.f32.partialorder %v1601_v45, 0.0004427343 }
 0x155   :  { %v3067_v4 = vpop.eup %3066  ;;  %v1876_v7 = vmul.f32 0.6931472, %v3065_v51  ;;  %vm4557_vm5 = vcmp.lt.f32.partialorder %v1889_v47, 0.0004427343  ;;  %v4566_v49 = vadd.f32 1e-08, %v438_v34  ;;  %v1600_v60 = vmul.f32 %v4494_v16, %v1599_v17  ;;  %v443_v34 = vpop.f32.mrf.mxu0 }
 0x156   :  { %v3069_v1 = vpop.eup %3068  ;;  %v2417_v20 = vmul.f32 %v3067_v4, %v2353_v2  ;;  %3086 = vpow2.f32 %v2234_v56  ;;  %v1888_v39 = vmul.f32 %v4503_v26, %v1887_v40  ;;  %v1608_v13 = vadd.f32 1.0, %v1607_v14  ;;  %v2354_v40 = vld [vmem:[%s5989_s3 + $0x40] sm:$0xff] }
 0x157   :  { %v3071_v33 = vpop.eup %3070  ;;  %v1882_v21 = vsel %vm4508_vm3, %v1879_v28, %v1876_v7  ;;  %v949_v19 = vadd.f32 1.0, %v3069_v1  ;;  %3088 = vpow2.f32 %v1408_v55  ;;  %v2852_v2 = vmul.f32 -1.442695, %v628_v38 }
 0x158   :  { %v4546_v11 = vpop.eup %3072  ;;  %v2481_v54 = vadd.f32 %v4359_v5, %v2417_v20  ;;  %v2449_v23 = vmul.f32 %v3071_v33, %v2385_v43  ;;  %v2130_v57 = vsub.f32 %v1234_v24, %v1882_v21  ;;  %v1610_v5 = vand.u32 2147483647, %v4524_v59 }
 0x159   :  { %v4555_v6 = vpop.eup %3074  ;;  %2612 = vst [vmem:[%s5987_s5 + $0x50] sm:$0xff] %v4546_v11  ;;  %3090 = vrcp.f32 %v949_v19  ;;  %v630_v24 = vadd.f32 %v629_v62, %v3880_v9  ;;  %v1270_v45 = vand.u32 2147483647, %v4566_v49  ;;  %v442_v26 = vadd.f32 %v441_v50, %v3878_v8 }
 0x15a   :  { %v3077_v10 = vpop.eup %3076  ;;  %2545 = vst [vmem:[%s5990_s4 + $0x38] sm:$0xff] %v2481_v54  ;;  %v2513_v28 = vadd.f32 %v4371_v31, %v2449_v23  ;;  %v2194_v52 = vmul.f32 0.5, %v2130_v57  ;;  %2706 = vst [vmem:[%s5988_s6 + $0x140] sm:$0xff] %v2130_v57  ;;  %v1892_v12 = vadd.f32 1.0, %v4555_v6  ;;  %3092 = vpow2.f32 %v1472_v18  ;;  %v635_v18 = vpop.f32.mrf.mxu1 }
 0x15b   :  { %v981_v61 = vadd.f32 1.0, %v3077_v10  ;;  %vm4583_vm6 = vcmp.lt.f32.partialorder %v1610_v5, 0.0004427343  ;;  %v4587_v0 = vadd.f32 1e-08, %v630_v24  ;;  %v1895_v56 = vmul.f32 -0.5, %v4555_v6 }
 0x15c   :  { %2577 = vst [vmem:[%s5990_s4 + $0x138] sm:$0xff] %v2513_v28  ;;  %v2298_v31 = vmul.f32 1.442695, %v2194_v52  ;;  %3094 = vlog2.f32 %v1892_v12  ;;  %v1334_v47 = vsub.f32 0.0, %v1270_v45  ;;  %v634_v36 = vadd.f32 %v633_v35, %v3878_v8  ;;  %v2386_v35 = vld [vmem:[%s5989_s3 + $0x140] sm:$0xff] }
 0x15d   :  { %3096 = vrcp.f32 %v981_v61  ;;  %v1609_v43 = vmul.f32 %v4524_v59, %v1608_v13  ;;  %v1302_v7 = vand.u32 2147483647, %v4587_v0  ;;  %v2821_v20 = vmul.f32 -1.442695, %v442_v26 }
 0x15e   :  { %v3079_v51 = vpop.eup %3078  ;;  %3098 = vpow2.f32 %v2298_v31  ;;  %v1410_v1 = vmul.f32 1.442695, %v1334_v47  ;;  %v444_v62 = vadd.f32 %v443_v34, %v3880_v9  ;;  %v1896_v19 = vadd.f32 1.0, %v1895_v56 }
 0x15f   :  { %v3081_v38 = vpop.eup %3080  ;;  %v1597_v4 = vmul.f32 0.6931472, %v3079_v51  ;;  %3100 = vpow2.f32 %v4536_v41  ;;  %v1366_v59 = vsub.f32 0.0, %v1302_v7  ;;  %v2853_v41 = vmul.f32 -1.442695, %v634_v36 }
 0x160   :  { %v4595_v17 = vpop.eup %3082  ;;  %v1885_v32 = vmul.f32 0.6931472, %v3081_v38  ;;  %3102 = vpow2.f32 %v2852_v2  ;;  %v4616_v25 = vadd.f32 1e-08, %v444_v62  ;;  %v1236_v46 = vmin.f32 %v4420_v48, 0.0 }
 0x161   :  { %v1603_v55 = vsel %vm4551_vm4, %v1600_v60, %v1597_v4  ;;  %2644 = vst [vmem:[%s5987_s5 + $0x150] sm:$0xff] %v4595_v17  ;;  %v3085_v33 = vpop.eup %3084  ;;  %3104 = vpow2.f32 %v1410_v1  ;;  %v1474_v29 = vmul.f32 1.442695, %v1366_v59  ;;  %v1897_v31 = vmul.f32 %v4555_v6, %v1896_v19 }
 0x162   :  { %v2099_v21 = vsub.f32 %v1203_v58, %v1603_v55  ;;  %v1891_v14 = vsel %vm4557_vm5, %v1888_v39, %v1885_v32  ;;  %v1606_v57 = vmul.f32 0.6931472, %v3085_v33  ;;  %3106 = vpow2.f32 %v2821_v20  ;;  %v639_v55 = vpop.f32.mrf.mxu1 }
 0x163   :  { %v3087_v54 = vpop.eup %3086  ;;  %v2131_v23 = vsub.f32 %v1235_v42, %v1891_v14  ;;  %3108 = vpow2.f32 %v2853_v41  ;;  %v636_v42 = vadd.f32 %v635_v18, %v3880_v9  ;;  %v1898_v39 = vand.u32 2147483647, %v4555_v6 }
 0x164   :  { %v2418_v5 = vmul.f32 %v3087_v54, %v2354_v40  ;;  %v2163_v24 = vmul.f32 0.5, %v2099_v21  ;;  %2675 = vst [vmem:[%s5988_s6 + $0x48] sm:$0xff] %v2099_v21  ;;  %v4618_v58 = vpop.eup %3088  ;;  %v1612_v53 = vsel %vm4583_vm6, %v1609_v43, %v1606_v57  ;;  %3110 = vpow2.f32 %v1474_v29  ;;  %v447_v43 = vpop.f32.mrf.mxu0 }
 0x165   :  { %v2195_v22 = vmul.f32 0.5, %v2131_v23  ;;  %2707 = vst [vmem:[%s5988_s6 + $0x148] sm:$0xff] %v2131_v23  ;;  %v2100_v60 = vsub.f32 %v1204_v44, %v1612_v53  ;;  %v1613_v12 = vadd.f32 1.0, %v4618_v58  ;;  %v1271_v44 = vand.u32 2147483647, %v4616_v25 }
 0x166   :  { %v4626_v10 = vpop.eup %3090  ;;  %v2482_v28 = vadd.f32 %v4423_v3, %v2418_v5  ;;  %v2236_v52 = vmul.f32 1.442695, %v2163_v24  ;;  %v4652_v45 = vadd.f32 1e-08, %v636_v42  ;;  %v1616_v48 = vmul.f32 -0.5, %v4618_v58  ;;  %v449_v29 = vpop.f32.mrf.mxu0 }
 0x167   :  { %v2300_v50 = vmul.f32 1.442695, %v2195_v22  ;;  %2613 = vst [vmem:[%s5987_s5 + $0x58] sm:$0xff] %v4626_v10  ;;  %v4637_v13 = vpop.eup %3092  ;;  %v2164_v3 = vmul.f32 0.5, %v2100_v60  ;;  %2676 = vst [vmem:[%s5988_s6 + $0x50] sm:$0xff] %v2100_v60  ;;  %v1335_v47 = vsub.f32 0.0, %v1271_v44  ;;  %v448_v23 = vadd.f32 %v447_v43, %v3878_v8 }
 0x168   :  { %2546 = vst [vmem:[%s5990_s4 + $0x40] sm:$0xff] %v2482_v28  ;;  %3112 = vpow2.f32 %v2236_v52  ;;  %v1901_v2 = vadd.f32 1.0, %v4637_v13  ;;  %vm1899_vm7 = vcmp.lt.f32.partialorder %v1898_v39, 0.0004427343  ;;  %v1904_v6 = vmul.f32 -0.5, %v4637_v13 }
 0x169   :  { %v3095_v61 = vpop.eup %3094  ;;  %3114 = vpow2.f32 %v2300_v50  ;;  %v2238_v26 = vmul.f32 1.442695, %v2164_v3  ;;  %v1205_v4 = vmin.f32 %v4487_v27, 0.0  ;;  %v1619_v1 = vand.u32 2147483647, %v4618_v58  ;;  %v2387_v50 = vld [vmem:[%s5989_s3 + $0x148] sm:$0xff] }
 0x16a   :  { %v4654_v16 = vpop.eup %3096  ;;  %v1894_v51 = vmul.f32 0.6931472, %v3095_v61  ;;  %3116 = vlog2.f32 %v1613_v12  ;;  %v1412_v40 = vmul.f32 1.442695, %v1335_v47  ;;  %v1617_v41 = vadd.f32 1.0, %v1616_v48  ;;  %v2355_v12 = vld [vmem:[%s5989_s3 + $0x48] sm:$0xff] }
 0x16b   :  { %v3099_v56 = vpop.eup %3098  ;;  %2645 = vst [vmem:[%s5987_s5 + $0x158] sm:$0xff] %v4654_v16  ;;  %3118 = vlog2.f32 %v1901_v2  ;;  %v1303_v33 = vand.u32 2147483647, %v4652_v45  ;;  %v1905_v19 = vadd.f32 1.0, %v1904_v6  ;;  %v1907_v18 = vand.u32 2147483647, %v4637_v13 }
 0x16c   :  { %v3101_v36 = vpop.eup %3100  ;;  %v2450_v34 = vmul.f32 %v3099_v56, %v2386_v35  ;;  %3120 = vpow2.f32 %v2238_v26  ;;  %v1900_v38 = vsel %vm1899_vm7, %v1897_v31, %v1894_v51  ;;  %v640_v57 = vadd.f32 %v639_v55, %v3878_v8  ;;  %v453_v31 = vpop.f32.mrf.mxu0 }
 0x16d   :  { %v3103_v7 = vpop.eup %3102  ;;  %v2132_v32 = vsub.f32 %v1236_v46, %v1900_v38  ;;  %v950_v20 = vadd.f32 1.0, %v3101_v36  ;;  %v1367_v53 = vsub.f32 0.0, %v1303_v33  ;;  %v1237_v28 = vmin.f32 %v4492_v15, 0.0  ;;  %v641_v46 = vpop.f32.mrf.mxu1  ;;  %v2356_v38 = vld [vmem:[%s5989_s3 + $0x50] sm:$0xff] }
 0x16e   :  { %v2514_v59 = vadd.f32 %v4430_v37, %v2450_v34  ;;  %v982_v62 = vadd.f32 1.0, %v3103_v7  ;;  %v4666_v21 = vpop.eup %3104  ;;  %v1206_v52 = vmin.f32 %v4566_v49, 0.0  ;;  %v1618_v39 = vmul.f32 %v4618_v58, %v1617_v41 }
 0x16f   :  { %v2196_v14 = vmul.f32 0.5, %v2132_v32  ;;  %2708 = vst [vmem:[%s5988_s6 + $0x150] sm:$0xff] %v2132_v32  ;;  %3122 = vrcp.f32 %v950_v20  ;;  %v3107_v54 = vpop.eup %3106  ;;  %v1622_v37 = vadd.f32 1.0, %v4666_v21  ;;  %vm4689_vm8 = vcmp.lt.f32.partialorder %v1619_v1, 0.0004427343 }
 0x170   :  { %2578 = vst [vmem:[%s5990_s4 + $0x140] sm:$0xff] %v2514_v59  ;;  %3124 = vrcp.f32 %v982_v62  ;;  %v3109_v5 = vpop.eup %3108  ;;  %v951_v22 = vadd.f32 1.0, %v3107_v54  ;;  %vm4694_vm9 = vcmp.lt.f32.partialorder %v1907_v18, 0.0004427343  ;;  %v1476_v61 = vmul.f32 1.442695, %v1367_v53 }
 0x171   :  { %v2302_v24 = vmul.f32 1.442695, %v2196_v14  ;;  %3126 = vpow2.f32 %v1412_v40  ;;  %v4678_v42 = vpop.eup %3110  ;;  %v983_v60 = vadd.f32 1.0, %v3109_v5  ;;  %v2822_v35 = vmul.f32 -1.442695, %v448_v23  ;;  %v455_v23 = vpop.f32.mrf.mxu0 }
 0x172   :  { %3128 = vlog2.f32 %v1622_v37  ;;  %v1910_v15 = vadd.f32 1.0, %v4678_v42  ;;  %v1906_v26 = vmul.f32 %v4637_v13, %v1905_v19  ;;  %v1625_v58 = vmul.f32 -0.5, %v4666_v21  ;;  %v645_v19 = vpop.f32.mrf.mxu1 }
 0x173   :  { %3130 = vpow2.f32 %v2302_v24  ;;  %v2854_v51 = vmul.f32 -1.442695, %v640_v57  ;;  %v450_v6 = vadd.f32 %v449_v29, %v3880_v9  ;;  %v642_v47 = vadd.f32 %v641_v46, %v3880_v9 }
 0x174   :  { %3132 = vrcp.f32 %v951_v22  ;;  %v1913_v43 = vmul.f32 -0.5, %v4678_v42  ;;  %v454_v13 = vadd.f32 %v453_v31, %v3878_v8  ;;  %v1626_v54 = vadd.f32 1.0, %v1625_v58 }
 0x175   :  { %v3113_v2 = vpop.eup %3112  ;;  %3134 = vlog2.f32 %v1910_v15  ;;  %v4708_v20 = vadd.f32 1e-08, %v450_v6  ;;  %v4711_v41 = vadd.f32 1e-08, %v642_v47  ;;  %v456_v3 = vadd.f32 %v455_v23, %v3880_v9 }
 0x176   :  { %v3115_v48 = vpop.eup %3114  ;;  %v2419_v56 = vmul.f32 %v3113_v2, %v2355_v12  ;;  %3136 = vrcp.f32 %v983_v60  ;;  %v2823_v22 = vmul.f32 -1.442695, %v454_v13  ;;  %v1914_v27 = vadd.f32 1.0, %v1913_v43 }
 0x177   :  { %v3117_v36 = vpop.eup %3116  ;;  %v2451_v34 = vmul.f32 %v3115_v48, %v2387_v50  ;;  %3138 = vpow2.f32 %v1476_v61  ;;  %v1272_v14 = vand.u32 2147483647, %v4708_v20  ;;  %v1304_v37 = vand.u32 2147483647, %v4711_v41 }
 0x178   :  { %v3119_v7 = vpop.eup %3118  ;;  %v2483_v32 = vadd.f32 %v4465_v63, %v2419_v56  ;;  %v1615_v1 = vmul.f32 0.6931472, %v3117_v36  ;;  %3140 = vpow2.f32 %v2822_v35  ;;  %v1628_v63 = vand.u32 2147483647, %v4666_v21 }
 0x179   :  { %v3121_v40 = vpop.eup %3120  ;;  %v2515_v55 = vadd.f32 %v4489_v30, %v2451_v34  ;;  %v1903_v59 = vmul.f32 0.6931472, %v3119_v7  ;;  %3142 = vpow2.f32 %v2854_v51  ;;  %v1336_v24 = vsub.f32 0.0, %v1272_v14  ;;  %v647_v34 = vpop.f32.mrf.mxu1 }
 0x17a   :  { %2547 = vst [vmem:[%s5990_s4 + $0x48] sm:$0xff] %v2483_v32  ;;  %v2420_v62 = vmul.f32 %v3121_v40, %v2356_v38  ;;  %v1621_v33 = vsel %vm4689_vm8, %v1618_v39, %v1615_v1  ;;  %v646_v12 = vadd.f32 %v645_v19, %v3878_v8  ;;  %3144 = vpow2.f32 %v2823_v22  ;;  %v459_v40 = vpop.f32.mrf.mxu0 }
 0x17b   :  { %2579 = vst [vmem:[%s5990_s4 + $0x148] sm:$0xff] %v2515_v55  ;;  %v2101_v30 = vsub.f32 %v1205_v4, %v1621_v33  ;;  %v1909_v18 = vsel %vm4694_vm9, %v1906_v26, %v1903_v59  ;;  %v1368_v4 = vsub.f32 0.0, %v1304_v37  ;;  %v1414_v39 = vmul.f32 1.442695, %v1336_v24  ;;  %v651_v23 = vpop.f32.mrf.mxu1 }
 0x17c   :  { %v4728_v57 = vpop.eup %3122  ;;  %v2484_v29 = vadd.f32 %v4546_v11, %v2420_v62  ;;  %v2133_v5 = vsub.f32 %v1237_v28, %v1909_v18  ;;  %v2388_v28 = vld [vmem:[%s5989_s3 + $0x150] sm:$0xff]  ;;  %v1627_v44 = vmul.f32 %v4666_v21, %v1626_v54  ;;  %v1916_v61 = vand.u32 2147483647, %v4678_v42 }
 0x17d   :  { %v4731_v53 = vpop.eup %3124  ;;  %v2165_v60 = vmul.f32 0.5, %v2101_v30  ;;  %2677 = vst [vmem:[%s5988_s6 + $0x58] sm:$0xff] %v2101_v30  ;;  %2614 = vst [vmem:[%s5987_s5 + $0x60] sm:$0xff] %v4728_v57  ;;  %3146 = vpow2.f32 %v1414_v39  ;;  %v1478_v58 = vmul.f32 1.442695, %v1368_v4  ;;  %v1915_v56 = vmul.f32 %v4678_v42, %v1914_v27 }
 0x17e   :  { %v4741_v11 = vpop.eup %3126  ;;  %2548 = vst [vmem:[%s5990_s4 + $0x50] sm:$0xff] %v2484_v29  ;;  %v2197_v50 = vmul.f32 0.5, %v2133_v5  ;;  %2709 = vst [vmem:[%s5988_s6 + $0x158] sm:$0xff] %v2133_v5  ;;  %vm1629_vm10 = vcmp.lt.f32.partialorder %v1628_v63, 0.0004427343  ;;  %v1238_v32 = vmin.f32 %v4587_v0, 0.0  ;;  %v648_v55 = vadd.f32 %v647_v34, %v3880_v9  ;;  %v461_v29 = vpop.f32.mrf.mxu0 }
 0x17f   :  { %2646 = vst [vmem:[%s5987_s5 + $0x160] sm:$0xff] %v4731_v53  ;;  %v3129_v15 = vpop.eup %3128  ;;  %v2240_v46 = vmul.f32 1.442695, %v2165_v60  ;;  %v1631_v35 = vadd.f32 1.0, %v4741_v11  ;;  %v2855_v21 = vmul.f32 -1.442695, %v646_v12  ;;  %v460_v22 = vadd.f32 %v459_v40, %v3878_v8 }
 0x180   :  { %v3131_v31 = vpop.eup %3130  ;;  %v2304_v2 = vmul.f32 1.442695, %v2197_v50  ;;  %v1624_v26 = vmul.f32 0.6931472, %v3129_v15  ;;  %v4767_v36 = vadd.f32 1e-08, %v456_v3  ;;  %v652_v39 = vadd.f32 %v651_v23, %v3878_v8 }
 0x181   :  { %v4760_v51 = vpop.eup %3132  ;;  %v2452_v48 = vmul.f32 %v3131_v31, %v2388_v28  ;;  %3148 = vpow2.f32 %v2240_v46  ;;  %vm1917_vm11 = vcmp.lt.f32.partialorder %v1916_v61, 0.0004427343  ;;  %v1634_v33 = vmul.f32 -0.5, %v4741_v11  ;;  %v2357_v15 = vld [vmem:[%s5989_s3 + $0x58] sm:$0xff]  ;;  %v2358_v23 = vld [vmem:[%s5989_s3 + $0x60] sm:$0xff] }
 0x182   :  { %v3135_v6 = vpop.eup %3134  ;;  %3150 = vpow2.f32 %v2304_v2  ;;  %v1630_v47 = vsel %vm1629_vm10, %v1627_v44, %v1624_v26  ;;  %2615 = vst [vmem:[%s5987_s5 + $0x68] sm:$0xff] %v4760_v51  ;;  %v1273_v1 = vand.u32 2147483647, %v4767_v36  ;;  %v1207_v19 = vmin.f32 %v4616_v25, 0.0  ;;  %v2389_v31 = vld [vmem:[%s5989_s3 + $0x158] sm:$0xff] }
 0x183   :  { %v4769_v38 = vpop.eup %3136  ;;  %v2516_v43 = vadd.f32 %v4595_v17, %v2452_v48  ;;  %v2102_v13 = vsub.f32 %v1206_v52, %v1630_v47  ;;  %v1912_v42 = vmul.f32 0.6931472, %v3135_v6  ;;  %3152 = vlog2.f32 %v1631_v35 }
 0x184   :  { %v4774_v7 = vpop.eup %3138  ;;  %2647 = vst [vmem:[%s5987_s5 + $0x168] sm:$0xff] %v4769_v38  ;;  %3154 = vpow2.f32 %v1478_v58  ;;  %v1239_v54 = vmin.f32 %v4652_v45, 0.0  ;;  %v1337_v37 = vsub.f32 0.0, %v1273_v1  ;;  %v1637_v5 = vand.u32 2147483647, %v4741_v11 }
 0x185   :  { %v3141_v17 = vpop.eup %3140  ;;  %2580 = vst [vmem:[%s5990_s4 + $0x150] sm:$0xff] %v2516_v43  ;;  %v2166_v49 = vmul.f32 0.5, %v2102_v13  ;;  %2678 = vst [vmem:[%s5988_s6 + $0x60] sm:$0xff] %v2102_v13  ;;  %v1918_v0 = vsel %vm1917_vm11, %v1915_v56, %v1912_v42  ;;  %v1919_v52 = vadd.f32 1.0, %v4774_v7  ;;  %3156 = vpow2.f32 %v2855_v21  ;;  %v653_v21 = vpop.f32.mrf.mxu1 }
 0x186   :  { %v3143_v59 = vpop.eup %3142  ;;  %v2134_v62 = vsub.f32 %v1238_v32, %v1918_v0  ;;  %v952_v63 = vadd.f32 1.0, %v3141_v17  ;;  %v4797_v24 = vadd.f32 1e-08, %v648_v55  ;;  %v1635_v27 = vadd.f32 1.0, %v1634_v33 }
 0x187   :  { %v2242_v14 = vmul.f32 1.442695, %v2166_v49  ;;  %3158 = vlog2.f32 %v1919_v52  ;;  %v984_v30 = vadd.f32 1.0, %v3143_v59  ;;  %v1416_v4 = vmul.f32 1.442695, %v1337_v37  ;;  %v3145_v12 = vpop.eup %3144 }
 0x188   :  { %v2198_v18 = vmul.f32 0.5, %v2134_v62  ;;  %2710 = vst [vmem:[%s5988_s6 + $0x160] sm:$0xff] %v2134_v62  ;;  %3160 = vrcp.f32 %v952_v63  ;;  %v1305_v28 = vand.u32 2147483647, %v4797_v24  ;;  %v2824_v50 = vmul.f32 -1.442695, %v460_v22 }
 0x189   :  { %3162 = vpow2.f32 %v2242_v14  ;;  %v462_v3 = vadd.f32 %v461_v29, %v3880_v9  ;;  %v1922_v46 = vmul.f32 -0.5, %v4774_v7  ;;  %v1208_v44 = vmin.f32 %v4708_v20, 0.0  ;;  %v657_v14 = vpop.f32.mrf.mxu1 }
 0x18a   :  { %v2306_v60 = vmul.f32 1.442695, %v2198_v18  ;;  %3164 = vrcp.f32 %v984_v30  ;;  %v953_v61 = vadd.f32 1.0, %v3145_v12  ;;  %v4808_v35 = vpop.eup %3146  ;;  %v1240_v2 = vmin.f32 %v4711_v41, 0.0 }
 0x18b   :  { %v1369_v26 = vsub.f32 0.0, %v1305_v28  ;;  %v4814_v58 = vadd.f32 1e-08, %v462_v3  ;;  %v1636_v56 = vmul.f32 %v4741_v11, %v1635_v27  ;;  %vm4817_vm12 = vcmp.lt.f32.partialorder %v1637_v5, 0.0004427343  ;;  %v465_v11 = vpop.f32.mrf.mxu0 }
 0x18c   :  { %3166 = vpow2.f32 %v2306_v60  ;;  %v1640_v47 = vadd.f32 1.0, %v4808_v35  ;;  %v2856_v42 = vmul.f32 -1.442695, %v652_v39  ;;  %v1923_v40 = vadd.f32 1.0, %v1922_v46  ;;  %v2390_v46 = vld [vmem:[%s5989_s3 + $0x160] sm:$0xff] }
 0x18d   :  { %3168 = vpow2.f32 %v1416_v4  ;;  %v1480_v13 = vmul.f32 1.442695, %v1369_v26  ;;  %v1925_v17 = vand.u32 2147483647, %v4774_v7  ;;  %v1274_v55 = vand.u32 2147483647, %v4814_v58  ;;  %v467_v3 = vpop.f32.mrf.mxu0 }
 0x18e   :  { %v3149_v48 = vpop.eup %3148  ;;  %3170 = vrcp.f32 %v953_v61  ;;  %v1643_v62 = vmul.f32 -0.5, %v4808_v35  ;;  %v654_v63 = vadd.f32 %v653_v21, %v3880_v9  ;;  %v466_v37 = vadd.f32 %v465_v11, %v3878_v8 }
 0x18f   :  { %v3151_v34 = vpop.eup %3150  ;;  %v2421_v43 = vmul.f32 %v3149_v48, %v2357_v15  ;;  %3172 = vpow2.f32 %v2824_v50  ;;  %v1338_v18 = vsub.f32 0.0, %v1274_v55  ;;  %vm4845_vm13 = vcmp.lt.f32.partialorder %v1925_v17, 0.0004427343 }
 0x190   :  { %v3153_v32 = vpop.eup %3152  ;;  %v2453_v1 = vmul.f32 %v3151_v34, %v2389_v31  ;;  %3174 = vlog2.f32 %v1640_v47  ;;  %v1924_v4 = vmul.f32 %v4774_v7, %v1923_v40  ;;  %v658_v28 = vadd.f32 %v657_v14, %v3878_v8  ;;  %v659_v14 = vpop.f32.mrf.mxu1 }
 0x191   :  { %v4823_v49 = vpop.eup %3154  ;;  %v2485_v0 = vadd.f32 %v4626_v10, %v2421_v43  ;;  %v1633_v52 = vmul.f32 0.6931472, %v3153_v32  ;;  %3176 = vpow2.f32 %v1480_v13  ;;  %v1418_v12 = vmul.f32 1.442695, %v1338_v18 }
 0x192   :  { %v2517_v59 = vadd.f32 %v4654_v16, %v2453_v1  ;;  %v1928_v33 = vadd.f32 1.0, %v4823_v49  ;;  %v3157_v30 = vpop.eup %3156  ;;  %3178 = vpow2.f32 %v2856_v42  ;;  %v1644_v25 = vadd.f32 1.0, %v1643_v62 }
 0x193   :  { %2549 = vst [vmem:[%s5990_s4 + $0x58] sm:$0xff] %v2485_v0  ;;  %v1639_v10 = vsel %vm4817_vm12, %v1636_v56, %v1633_v52  ;;  %v985_v22 = vadd.f32 1.0, %v3157_v30  ;;  %v2825_v31 = vmul.f32 -1.442695, %v466_v37  ;;  %v1931_v56 = vmul.f32 -0.5, %v4823_v49 }
 0x194   :  { %v3159_v16 = vpop.eup %3158  ;;  %2581 = vst [vmem:[%s5990_s4 + $0x158] sm:$0xff] %v2517_v59  ;;  %v2103_v29 = vsub.f32 %v1207_v19, %v1639_v10  ;;  %3180 = vlog2.f32 %v1928_v33  ;;  %v4860_v19 = vadd.f32 1e-08, %v654_v63  ;;  %v2857_v34 = vmul.f32 -1.442695, %v658_v28 }
 0x195   :  { %v4849_v60 = vpop.eup %3160  ;;  %v1921_v27 = vmul.f32 0.6931472, %v3159_v16  ;;  %3182 = vrcp.f32 %v985_v22  ;;  %v468_v43 = vadd.f32 %v467_v3, %v3880_v9  ;;  %v1209_v52 = vmin.f32 %v4767_v36, 0.0 }
 0x196   :  { %v3163_v50 = vpop.eup %3162  ;;  %v2167_v39 = vmul.f32 0.5, %v2103_v29  ;;  %2679 = vst [vmem:[%s5988_s6 + $0x68] sm:$0xff] %v2103_v29  ;;  %2616 = vst [vmem:[%s5987_s5 + $0x70] sm:$0xff] %v4849_v60  ;;  %3184 = vpow2.f32 %v1418_v12  ;;  %v1306_v6 = vand.u32 2147483647, %v4860_v19  ;;  %v1645_v62 = vmul.f32 %v4808_v35, %v1644_v25 }
 0x197   :  { %v4862_v7 = vpop.eup %3164  ;;  %v2422_v15 = vmul.f32 %v3163_v50, %v2358_v23  ;;  %v1927_v61 = vsel %vm4845_vm13, %v1924_v4, %v1921_v27  ;;  %3186 = vpow2.f32 %v2825_v31  ;;  %v4898_v55 = vadd.f32 1e-08, %v468_v43  ;;  %v471_v27 = vpop.f32.mrf.mxu0 }
 0x198   :  { %v2244_v26 = vmul.f32 1.442695, %v2167_v39  ;;  %v2135_v48 = vsub.f32 %v1239_v54, %v1927_v61  ;;  %2648 = vst [vmem:[%s5987_s5 + $0x170] sm:$0xff] %v4862_v7  ;;  %v1370_v42 = vsub.f32 0.0, %v1306_v6  ;;  %v1932_v33 = vadd.f32 1.0, %v1931_v56  ;;  %v2359_v6 = vld [vmem:[%s5989_s3 + $0x68] sm:$0xff] }
 0x199   :  { %v3167_v47 = vpop.eup %3166  ;;  %v2486_v21 = vadd.f32 %v4728_v57, %v2422_v15  ;;  %v1646_v57 = vand.u32 2147483647, %v4808_v35  ;;  %v1275_v18 = vand.u32 2147483647, %v4898_v55  ;;  %v1934_v37 = vand.u32 2147483647, %v4823_v49  ;;  %v473_v56 = vpop.f32.mrf.mxu0 }
 0x19a   :  { %v4879_v13 = vpop.eup %3168  ;;  %v2454_v45 = vmul.f32 %v3167_v47, %v2390_v46  ;;  %3188 = vpow2.f32 %v2244_v26  ;;  %v2199_v54 = vmul.f32 0.5, %v2135_v48  ;;  %2711 = vst [vmem:[%s5988_s6 + $0x168] sm:$0xff] %v2135_v48  ;;  %v1482_v10 = vmul.f32 1.442695, %v1370_v42 }
 0x19b   :  { %v4884_v32 = vpop.eup %3170  ;;  %2550 = vst [vmem:[%s5990_s4 + $0x60] sm:$0xff] %v2486_v21  ;;  %v1649_v1 = vadd.f32 1.0, %v4879_v13  ;;  %v1652_v40 = vmul.f32 -0.5, %v4879_v13  ;;  %3190 = vpow2.f32 %v2857_v34  ;;  %vm1647_vm14 = vcmp.lt.f32.partialorder %v1646_v57, 0.0004427343 }
 0x19c   :  { %v3173_v17 = vpop.eup %3172  ;;  %v2518_v11 = vadd.f32 %v4731_v53, %v2454_v45  ;;  %v2308_v0 = vmul.f32 1.442695, %v2199_v54  ;;  %2617 = vst [vmem:[%s5987_s5 + $0x78] sm:$0xff] %v4884_v32  ;;  %v1339_v5 = vsub.f32 0.0, %v1275_v18  ;;  %v660_v22 = vadd.f32 %v659_v14, %v3880_v9 }
 0x19d   :  { %v3175_v59 = vpop.eup %3174  ;;  %3192 = vlog2.f32 %v1649_v1  ;;  %v954_v63 = vadd.f32 1.0, %v3173_v17  ;;  %v1653_v16 = vadd.f32 1.0, %v1652_v40  ;;  %v1933_v28 = vmul.f32 %v4823_v49, %v1932_v33  ;;  %v663_v49 = vpop.f32.mrf.mxu1 }
 0x19e   :  { %v4901_v30 = vpop.eup %3176  ;;  %2582 = vst [vmem:[%s5990_s4 + $0x160] sm:$0xff] %v2518_v11  ;;  %3194 = vpow2.f32 %v2308_v0  ;;  %v1642_v53 = vmul.f32 0.6931472, %v3175_v59  ;;  %v1241_v50 = vmin.f32 %v4797_v24, 0.0  ;;  %v1420_v3 = vmul.f32 1.442695, %v1339_v5 }
 0x19f   :  { %v1937_v35 = vadd.f32 1.0, %v4901_v30  ;;  %v3179_v23 = vpop.eup %3178  ;;  %3196 = vrcp.f32 %v954_v63  ;;  %vm1935_vm15 = vcmp.lt.f32.partialorder %v1934_v37, 0.0004427343  ;;  %v1210_v20 = vmin.f32 %v4814_v58, 0.0  ;;  %v665_v59 = vpop.f32.mrf.mxu1 }
 0x1a0   :  { %v1648_v29 = vsel %vm1647_vm14, %v1645_v62, %v1642_v53  ;;  %v986_v25 = vadd.f32 1.0, %v3179_v23  ;;  %v1654_v26 = vmul.f32 %v4879_v13, %v1653_v16  ;;  %v1655_v48 = vand.u32 2147483647, %v4879_v13  ;;  %v2391_v62 = vld [vmem:[%s5989_s3 + $0x168] sm:$0xff] }
 0x1a1   :  { %v3181_v4 = vpop.eup %3180  ;;  %v2104_v12 = vsub.f32 %v1208_v44, %v1648_v29  ;;  %3198 = vlog2.f32 %v1937_v35  ;;  %v4920_v44 = vadd.f32 1e-08, %v660_v22  ;;  %v1940_v34 = vmul.f32 -0.5, %v4901_v30 }
 0x1a2   :  { %v1930_v39 = vmul.f32 0.6931472, %v3181_v4  ;;  %3200 = vpow2.f32 %v1482_v10  ;;  %v4914_v15 = vpop.eup %3182  ;;  %v472_v13 = vadd.f32 %v471_v27, %v3878_v8  ;;  %v664_v42 = vadd.f32 %v663_v49, %v3878_v8 }
 0x1a3   :  { %v2168_v46 = vmul.f32 0.5, %v2104_v12  ;;  %2680 = vst [vmem:[%s5988_s6 + $0x70] sm:$0xff] %v2104_v12  ;;  %v4922_v61 = vpop.eup %3184  ;;  %2649 = vst [vmem:[%s5987_s5 + $0x178] sm:$0xff] %v4914_v15  ;;  %3202 = vrcp.f32 %v986_v25  ;;  %v1307_v54 = vand.u32 2147483647, %v4920_v44  ;;  %v1941_v63 = vadd.f32 1.0, %v1940_v34 }
 0x1a4   :  { %v1936_v31 = vsel %vm1935_vm15, %v1933_v28, %v1930_v39  ;;  %v1658_v43 = vadd.f32 1.0, %v4922_v61  ;;  %v3187_v45 = vpop.eup %3186  ;;  %3204 = vpow2.f32 %v1420_v3  ;;  %v1943_v11 = vand.u32 2147483647, %v4901_v30  ;;  %v477_v39 = vpop.f32.mrf.mxu0 }
 0x1a5   :  { %v2246_v47 = vmul.f32 1.442695, %v2168_v46  ;;  %v2136_v21 = vsub.f32 %v1240_v2, %v1936_v31  ;;  %v955_v41 = vadd.f32 1.0, %v3187_v45  ;;  %v474_v2 = vadd.f32 %v473_v56, %v3880_v9  ;;  %v669_v31 = vpop.f32.mrf.mxu1 }
 0x1a6   :  { %v1371_v0 = vsub.f32 0.0, %v1307_v54  ;;  %v2826_v37 = vmul.f32 -1.442695, %v472_v13  ;;  %v2858_v16 = vmul.f32 -1.442695, %v664_v42  ;;  %v666_v5 = vadd.f32 %v665_v59, %v3880_v9  ;;  %v2360_v54 = vld [vmem:[%s5989_s3 + $0x70] sm:$0xff] }
 0x1a7   :  { %v3189_v57 = vpop.eup %3188  ;;  %3206 = vpow2.f32 %v2246_v47  ;;  %v2200_v1 = vmul.f32 0.5, %v2136_v21  ;;  %2712 = vst [vmem:[%s5988_s6 + $0x170] sm:$0xff] %v2136_v21  ;;  %v4949_v29 = vadd.f32 1e-08, %v474_v2  ;;  %vm1656_vm0 = vcmp.lt.f32.partialorder %v1655_v48, 0.0004427343 }
 0x1a8   :  { %v3191_v40 = vpop.eup %3190  ;;  %v2423_v17 = vmul.f32 %v3189_v57, %v2359_v6  ;;  %3208 = vlog2.f32 %v1658_v43  ;;  %v1484_v18 = vmul.f32 1.442695, %v1371_v0  ;;  %v1661_v27 = vmul.f32 -0.5, %v4922_v61 }
 0x1a9   :  { %v2310_v33 = vmul.f32 1.442695, %v2200_v1  ;;  %3210 = vrcp.f32 %v955_v41  ;;  %v987_v14 = vadd.f32 1.0, %v3191_v40  ;;  %vm4958_vm1 = vcmp.lt.f32.partialorder %v1943_v11, 0.0004427343 }
 0x1aa   :  { %v3193_v53 = vpop.eup %3192  ;;  %v2487_v10 = vadd.f32 %v4760_v51, %v2423_v17  ;;  %v1276_v28 = vand.u32 2147483647, %v4949_v29  ;;  %v4970_v49 = vadd.f32 1e-08, %v666_v5  ;;  %v1942_v56 = vmul.f32 %v4901_v30, %v1941_v63  ;;  %v479_v17 = vpop.f32.mrf.mxu0 }
 0x1ab   :  { %v3195_v35 = vpop.eup %3194  ;;  %3212 = vpow2.f32 %v2310_v33  ;;  %v1651_v23 = vmul.f32 0.6931472, %v3193_v53  ;;  %v478_v47 = vadd.f32 %v477_v39, %v3878_v8  ;;  %v670_v45 = vadd.f32 %v669_v31, %v3878_v8  ;;  %v671_v53 = vpop.f32.mrf.mxu1 }
 0x1ac   :  { %2551 = vst [vmem:[%s5990_s4 + $0x68] sm:$0xff] %v2487_v10  ;;  %v2455_v22 = vmul.f32 %v3195_v35, %v2391_v62  ;;  %3214 = vrcp.f32 %v987_v14  ;;  %v4956_v51 = vpop.eup %3196  ;;  %v1340_v6 = vsub.f32 0.0, %v1276_v28  ;;  %v1308_v43 = vand.u32 2147483647, %v4970_v49 }
 0x1ad   :  { %v1657_v4 = vsel %vm1656_vm0, %v1654_v26, %v1651_v23  ;;  %3216 = vpow2.f32 %v1484_v18  ;;  %2618 = vst [vmem:[%s5987_s5 + $0x80] sm:$0xff] %v4956_v51  ;;  %v1242_v57 = vmin.f32 %v4860_v19, 0.0  ;;  %v1664_v41 = vand.u32 2147483647, %v4922_v61  ;;  %v2392_v18 = vld [vmem:[%s5989_s3 + $0x170] sm:$0xff] }
 0x1ae   :  { %v3199_v25 = vpop.eup %3198  ;;  %v2519_v3 = vadd.f32 %v4769_v38, %v2455_v22  ;;  %v2105_v46 = vsub.f32 %v1209_v52, %v1657_v4  ;;  %3218 = vpow2.f32 %v2826_v37  ;;  %v1662_v38 = vadd.f32 1.0, %v1661_v27 }
 0x1af   :  { %v4972_v26 = vpop.eup %3200  ;;  %v1939_v48 = vmul.f32 0.6931472, %v3199_v25  ;;  %3220 = vpow2.f32 %v2858_v16  ;;  %v1422_v34 = vmul.f32 1.442695, %v1340_v6  ;;  %v1211_v2 = vmin.f32 %v4898_v55, 0.0 }
 0x1b0   :  { %2583 = vst [vmem:[%s5990_s4 + $0x168] sm:$0xff] %v2519_v3  ;;  %v2169_v36 = vmul.f32 0.5, %v2105_v46  ;;  %2681 = vst [vmem:[%s5988_s6 + $0x78] sm:$0xff] %v2105_v46  ;;  %v1946_v52 = vadd.f32 1.0, %v4972_v26  ;;  %v4983_v21 = vpop.eup %3202  ;;  %v1372_v40 = vsub.f32 0.0, %v1308_v43  ;;  %v480_v35 = vadd.f32 %v479_v17, %v3880_v9 }
 0x1b1   :  { %v1945_v30 = vsel %vm4958_vm1, %v1942_v56, %v1939_v48  ;;  %2650 = vst [vmem:[%s5987_s5 + $0x180] sm:$0xff] %v4983_v21  ;;  %v4999_v1 = vpop.eup %3204  ;;  %v2827_v63 = vmul.f32 -1.442695, %v478_v47  ;;  %v2859_v14 = vmul.f32 -1.442695, %v670_v45  ;;  %v1949_v23 = vmul.f32 -0.5, %v4972_v26 }
 0x1b2   :  { %v2248_v13 = vmul.f32 1.442695, %v2169_v36  ;;  %v2137_v42 = vsub.f32 %v1241_v50, %v1945_v30  ;;  %3222 = vlog2.f32 %v1946_v52  ;;  %v1663_v50 = vmul.f32 %v4922_v61, %v1662_v38 }
 0x1b3   :  { %3224 = vpow2.f32 %v1422_v34  ;;  %v1667_v0 = vadd.f32 1.0, %v4999_v1  ;;  %v1486_v33 = vmul.f32 1.442695, %v1372_v40  ;;  %vm1665_vm2 = vcmp.lt.f32.partialorder %v1664_v41, 0.0004427343  ;;  %v483_v34 = vpop.f32.mrf.mxu0  ;;  %v2361_v40 = vld [vmem:[%s5989_s3 + $0x78] sm:$0xff] }
 0x1b4   :  { %v3207_v11 = vpop.eup %3206  ;;  %3226 = vpow2.f32 %v2248_v13  ;;  %v2201_v24 = vmul.f32 0.5, %v2137_v42  ;;  %2713 = vst [vmem:[%s5988_s6 + $0x178] sm:$0xff] %v2137_v42  ;;  %v5020_v27 = vadd.f32 1e-08, %v480_v35  ;;  %v672_v4 = vadd.f32 %v671_v53, %v3880_v9 }
 0x1b5   :  { %v3209_v59 = vpop.eup %3208  ;;  %v2424_v62 = vmul.f32 %v3207_v11, %v2360_v54  ;;  %3228 = vlog2.f32 %v1667_v0  ;;  %v1243_v39 = vmin.f32 %v4920_v44, 0.0  ;;  %v1952_v3 = vand.u32 2147483647, %v4972_v26 }
 0x1b6   :  { %v5008_v10 = vpop.eup %3210  ;;  %v2312_v37 = vmul.f32 1.442695, %v2201_v24  ;;  %v1660_v16 = vmul.f32 0.6931472, %v3209_v59  ;;  %3230 = vpow2.f32 %v1486_v33  ;;  %v1277_v46 = vand.u32 2147483647, %v5020_v27 }
 0x1b7   :  { %v2488_v61 = vadd.f32 %v4849_v60, %v2424_v62  ;;  %2619 = vst [vmem:[%s5987_s5 + $0x88] sm:$0xff] %v5008_v10  ;;  %v5039_v31 = vadd.f32 1e-08, %v672_v4  ;;  %v1670_v56 = vmul.f32 -0.5, %v4999_v1  ;;  %v1950_v38 = vadd.f32 1.0, %v1949_v23  ;;  %v485_v23 = vpop.f32.mrf.mxu0 }
 0x1b8   :  { %v3213_v5 = vpop.eup %3212  ;;  %3232 = vpow2.f32 %v2312_v37  ;;  %v1666_v22 = vsel %vm1665_vm2, %v1663_v50, %v1660_v16  ;;  %v1212_v47 = vmin.f32 %v4949_v29, 0.0  ;;  %v1341_v30 = vsub.f32 0.0, %v1277_v46 }
 0x1b9   :  { %v5023_v12 = vpop.eup %3214  ;;  %2552 = vst [vmem:[%s5990_s4 + $0x70] sm:$0xff] %v2488_v61  ;;  %v2456_v60 = vmul.f32 %v3213_v5, %v2392_v18  ;;  %v2106_v28 = vsub.f32 %v1210_v20, %v1666_v22  ;;  %3234 = vpow2.f32 %v2827_v63  ;;  %v1244_v45 = vmin.f32 %v4970_v49, 0.0  ;;  %v675_v18 = vpop.f32.mrf.mxu1 }
 0x1ba   :  { %v5031_v25 = vpop.eup %3216  ;;  %2651 = vst [vmem:[%s5987_s5 + $0x188] sm:$0xff] %v5023_v12  ;;  %3236 = vpow2.f32 %v2859_v14  ;;  %vm5052_vm3 = vcmp.lt.f32.partialorder %v1952_v3, 0.0004427343  ;;  %v1424_v13 = vmul.f32 1.442695, %v1341_v30  ;;  %v1671_v17 = vadd.f32 1.0, %v1670_v56 }
 0x1bb   :  { %v3219_v48 = vpop.eup %3218  ;;  %v2520_v58 = vadd.f32 %v4862_v7, %v2456_v60  ;;  %v2170_v20 = vmul.f32 0.5, %v2106_v28  ;;  %2682 = vst [vmem:[%s5988_s6 + $0x80] sm:$0xff] %v2106_v28  ;;  %v1955_v6 = vadd.f32 1.0, %v5031_v25  ;;  %v1309_v42 = vand.u32 2147483647, %v5039_v31 }
 0x1bc   :  { %v3221_v36 = vpop.eup %3220  ;;  %v956_v52 = vadd.f32 1.0, %v3219_v48  ;;  %v1958_v11 = vmul.f32 -0.5, %v5031_v25  ;;  %v484_v24 = vadd.f32 %v483_v34, %v3878_v8  ;;  %v1951_v59 = vmul.f32 %v4972_v26, %v1950_v38  ;;  %v2393_v26 = vld [vmem:[%s5989_s3 + $0x178] sm:$0xff]  ;;  %v677_v34 = vpop.f32.mrf.mxu1 }
 0x1bd   :  { %2584 = vst [vmem:[%s5990_s4 + $0x170] sm:$0xff] %v2520_v58  ;;  %v2250_v7 = vmul.f32 1.442695, %v2170_v20  ;;  %3238 = vlog2.f32 %v1955_v6  ;;  %v988_v43 = vadd.f32 1.0, %v3221_v36  ;;  %v1373_v62 = vsub.f32 0.0, %v1309_v42 }
 0x1be   :  { %3240 = vrcp.f32 %v956_v52  ;;  %v1673_v63 = vand.u32 2147483647, %v4999_v1  ;;  %v1961_v14 = vand.u32 2147483647, %v5031_v25  ;;  %v2828_v61 = vmul.f32 -1.442695, %v484_v24 }
 0x1bf   :  { %v3223_v41 = vpop.eup %3222  ;;  %3242 = vpow2.f32 %v2250_v7  ;;  %v1488_v35 = vmul.f32 1.442695, %v1373_v62  ;;  %v1672_v4 = vmul.f32 %v4999_v1, %v1671_v17  ;;  %v1959_v60 = vadd.f32 1.0, %v1958_v11  ;;  %v489_v7 = vpop.f32.mrf.mxu0 }
 0x1c0   :  { %v5062_v50 = vpop.eup %3224  ;;  %v1948_v0 = vmul.f32 0.6931472, %v3223_v41  ;;  %3244 = vrcp.f32 %v988_v43  ;;  %v676_v48 = vadd.f32 %v675_v18, %v3878_v8  ;;  %vm1674_vm4 = vcmp.lt.f32.partialorder %v1673_v63, 0.0004427343  ;;  %v681_v18 = vpop.f32.mrf.mxu1 }
 0x1c1   :  { %v3227_v33 = vpop.eup %3226  ;;  %v1676_v53 = vadd.f32 1.0, %v5062_v50  ;;  %3246 = vpow2.f32 %v1424_v13  ;;  %vm5088_vm5 = vcmp.lt.f32.partialorder %v1961_v14, 0.0004427343  ;;  %v1960_v30 = vmul.f32 %v5031_v25, %v1959_v60 }
 0x1c2   :  { %v2425_v37 = vmul.f32 %v3227_v33, %v2361_v40  ;;  %v1954_v16 = vsel %vm5052_vm3, %v1951_v59, %v1948_v0  ;;  %v3229_v5 = vpop.eup %3228  ;;  %v2860_v42 = vmul.f32 -1.442695, %v676_v48  ;;  %v1679_v40 = vmul.f32 -0.5, %v5062_v50 }
 0x1c3   :  { %v2138_v22 = vsub.f32 %v1242_v57, %v1954_v16  ;;  %3248 = vlog2.f32 %v1676_v53  ;;  %v5076_v28 = vpop.eup %3230  ;;  %v1669_v46 = vmul.f32 0.6931472, %v3229_v5  ;;  %v486_v57 = vadd.f32 %v485_v23, %v3880_v9 }
 0x1c4   :  { %v2489_v3 = vadd.f32 %v4884_v32, %v2425_v37  ;;  %3250 = vpow2.f32 %v1488_v35  ;;  %v1964_v19 = vadd.f32 1.0, %v5076_v28  ;;  %v1682_v25 = vand.u32 2147483647, %v5062_v50 }
 0x1c5   :  { %v3233_v58 = vpop.eup %3232  ;;  %v2202_v20 = vmul.f32 0.5, %v2138_v22  ;;  %2714 = vst [vmem:[%s5988_s6 + $0x180] sm:$0xff] %v2138_v22  ;;  %v1675_v56 = vsel %vm1674_vm4, %v1672_v4, %v1669_v46  ;;  %3252 = vpow2.f32 %v2828_v61  ;;  %v5100_v55 = vadd.f32 1e-08, %v486_v57 }
 0x1c6   :  { %v3235_v1 = vpop.eup %3234  ;;  %2553 = vst [vmem:[%s5990_s4 + $0x78] sm:$0xff] %v2489_v3  ;;  %v2457_v32 = vmul.f32 %v3233_v58, %v2393_v26  ;;  %v2107_v52 = vsub.f32 %v1211_v2, %v1675_v56  ;;  %3254 = vlog2.f32 %v1964_v19  ;;  %v678_v17 = vadd.f32 %v677_v34, %v3880_v9 }
 0x1c7   :  { %v3237_v36 = vpop.eup %3236  ;;  %v2314_v38 = vmul.f32 1.442695, %v2202_v20  ;;  %v957_v54 = vadd.f32 1.0, %v3235_v1  ;;  %v490_v11 = vadd.f32 %v489_v7, %v3878_v8  ;;  %v1967_v62 = vmul.f32 -0.5, %v5076_v28  ;;  %v683_v7 = vpop.f32.mrf.mxu1 }
 0x1c8   :  { %v2521_v43 = vadd.f32 %v4914_v15, %v2457_v32  ;;  %v989_v13 = vadd.f32 1.0, %v3237_v36  ;;  %v2171_v41 = vmul.f32 0.5, %v2107_v52  ;;  %2683 = vst [vmem:[%s5988_s6 + $0x88] sm:$0xff] %v2107_v52  ;;  %v2362_v15 = vld [vmem:[%s5989_s3 + $0x80] sm:$0xff]  ;;  %v1278_v63 = vand.u32 2147483647, %v5100_v55  ;;  %v491_v32 = vpop.f32.mrf.mxu0 }
 0x1c9   :  { %3256 = vpow2.f32 %v2314_v38  ;;  %v5119_v14 = vadd.f32 1e-08, %v678_v17  ;;  %v2829_v53 = vmul.f32 -1.442695, %v490_v11  ;;  %v1680_v61 = vadd.f32 1.0, %v1679_v40 }
 0x1ca   :  { %v3239_v2 = vpop.eup %3238  ;;  %2585 = vst [vmem:[%s5990_s4 + $0x178] sm:$0xff] %v2521_v43  ;;  %3258 = vrcp.f32 %v957_v54  ;;  %v2252_v0 = vmul.f32 1.442695, %v2171_v41  ;;  %v1970_v26 = vand.u32 2147483647, %v5076_v28  ;;  %v1342_v22 = vsub.f32 0.0, %v1278_v63 }
 0x1cb   :  { %v5111_v24 = vpop.eup %3240  ;;  %v1957_v59 = vmul.f32 0.6931472, %v3239_v2  ;;  %3260 = vrcp.f32 %v989_v13  ;;  %v1310_v4 = vand.u32 2147483647, %v5119_v14  ;;  %v1968_v3 = vadd.f32 1.0, %v1967_v62  ;;  %v2394_v54 = vld [vmem:[%s5989_s3 + $0x180] sm:$0xff] }
 0x1cc   :  { %v3243_v33 = vpop.eup %3242  ;;  %2620 = vst [vmem:[%s5987_s5 + $0x90] sm:$0xff] %v5111_v24  ;;  %3262 = vpow2.f32 %v2860_v42  ;;  %v682_v48 = vadd.f32 %v681_v18, %v3878_v8  ;;  %v1681_v57 = vmul.f32 %v5062_v50, %v1680_v61  ;;  %vm5147_vm6 = vcmp.lt.f32.partialorder %v1682_v25, 0.0004427343  ;;  %v2363_v63 = vld [vmem:[%s5989_s3 + $0x88] sm:$0xff] }
 0x1cd   :  { %v5121_v37 = vpop.eup %3244  ;;  %v2426_v16 = vmul.f32 %v3243_v33, %v2362_v15  ;;  %3264 = vpow2.f32 %v2252_v0  ;;  %v1963_v35 = vsel %vm5088_vm5, %v1960_v30, %v1957_v59  ;;  %v1374_v20 = vsub.f32 0.0, %v1310_v4  ;;  %v495_v15 = vpop.f32.mrf.mxu0 }
 0x1ce   :  { %v5125_v23 = vpop.eup %3246  ;;  %v2139_v5 = vsub.f32 %v1243_v39, %v1963_v35  ;;  %2652 = vst [vmem:[%s5987_s5 + $0x190] sm:$0xff] %v5121_v37  ;;  %v1426_v39 = vmul.f32 1.442695, %v1342_v22  ;;  %3266 = vpow2.f32 %v2829_v53  ;;  %vm5151_vm7 = vcmp.lt.f32.partialorder %v1970_v26, 0.0004427343  ;;  %v687_v26 = vpop.f32.mrf.mxu1 }
 0x1cf   :  { %v2490_v60 = vadd.f32 %v4956_v51, %v2426_v16  ;;  %v1685_v46 = vadd.f32 1.0, %v5125_v23  ;;  %v1213_v36 = vmin.f32 %v5020_v27, 0.0  ;;  %v1969_v50 = vmul.f32 %v5076_v28, %v1968_v3  ;;  %v497_v22 = vpop.f32.mrf.mxu0 }
 0x1d0   :  { %v3249_v58 = vpop.eup %3248  ;;  %v2203_v44 = vmul.f32 0.5, %v2139_v5  ;;  %2715 = vst [vmem:[%s5988_s6 + $0x188] sm:$0xff] %v2139_v5  ;;  %v1490_v34 = vmul.f32 1.442695, %v1374_v20  ;;  %v1688_v42 = vmul.f32 -0.5, %v5125_v23  ;;  %v492_v28 = vadd.f32 %v491_v32, %v3880_v9 }
 0x1d1   :  { %v5141_v19 = vpop.eup %3250  ;;  %2554 = vst [vmem:[%s5990_s4 + $0x80] sm:$0xff] %v2490_v60  ;;  %v1678_v51 = vmul.f32 0.6931472, %v3249_v58  ;;  %3268 = vlog2.f32 %v1685_v46  ;;  %v2861_v41 = vmul.f32 -1.442695, %v682_v48  ;;  %v684_v29 = vadd.f32 %v683_v7, %v3880_v9 }
 0x1d2   :  { %v2316_v56 = vmul.f32 1.442695, %v2203_v44  ;;  %v1973_v38 = vadd.f32 1.0, %v5141_v19  ;;  %v3253_v52 = vpop.eup %3252  ;;  %3270 = vpow2.f32 %v1426_v39  ;;  %v1691_v11 = vand.u32 2147483647, %v5125_v23 }
 0x1d3   :  { %v1684_v30 = vsel %vm5147_vm6, %v1681_v57, %v1678_v51  ;;  %v3255_v43 = vpop.eup %3254  ;;  %v958_v2 = vadd.f32 1.0, %v3253_v52  ;;  %v5176_v62 = vadd.f32 1e-08, %v492_v28  ;;  %v5189_v16 = vadd.f32 1e-08, %v684_v29 }
 0x1d4   :  { %3272 = vpow2.f32 %v2316_v56  ;;  %v2108_v13 = vsub.f32 %v1212_v47, %v1684_v30  ;;  %v1966_v40 = vmul.f32 0.6931472, %v3255_v43  ;;  %v1689_v5 = vadd.f32 1.0, %v1688_v42 }
 0x1d5   :  { %3274 = vlog2.f32 %v1973_v38  ;;  %v1279_v49 = vand.u32 2147483647, %v5176_v62  ;;  %v1311_v58 = vand.u32 2147483647, %v5189_v16  ;;  %v688_v20 = vadd.f32 %v687_v26, %v3878_v8 }
 0x1d6   :  { %v3257_v25 = vpop.eup %3256  ;;  %v2172_v17 = vmul.f32 0.5, %v2108_v13  ;;  %2684 = vst [vmem:[%s5988_s6 + $0x90] sm:$0xff] %v2108_v13  ;;  %3276 = vpow2.f32 %v1490_v34  ;;  %v1972_v59 = vsel %vm5151_vm7, %v1969_v50, %v1966_v40  ;;  %v498_v51 = vadd.f32 %v497_v22, %v3880_v9  ;;  %v2395_v50 = vld [vmem:[%s5989_s3 + $0x188] sm:$0xff]  ;;  %v689_v13 = vpop.f32.mrf.mxu1 }
 0x1d7   :  { %v5172_v47 = vpop.eup %3258  ;;  %v2458_v0 = vmul.f32 %v3257_v25, %v2394_v54  ;;  %3278 = vrcp.f32 %v958_v2  ;;  %v2140_v18 = vsub.f32 %v1244_v45, %v1972_v59  ;;  %v496_v45 = vadd.f32 %v495_v15, %v3878_v8 }
 0x1d8   :  { %v5178_v33 = vpop.eup %3260  ;;  %v2254_v53 = vmul.f32 1.442695, %v2172_v17  ;;  %2621 = vst [vmem:[%s5987_s5 + $0x98] sm:$0xff] %v5172_v47  ;;  %3280 = vpow2.f32 %v2861_v41  ;;  %v1343_v48 = vsub.f32 0.0, %v1279_v49  ;;  %v1375_v56 = vsub.f32 0.0, %v1311_v58  ;;  %v2396_v58 = vld [vmem:[%s5989_s3 + $0x190] sm:$0xff] }
 0x1d9   :  { %v3263_v35 = vpop.eup %3262  ;;  %v2522_v61 = vadd.f32 %v4983_v21, %v2458_v0  ;;  %2653 = vst [vmem:[%s5987_s5 + $0x198] sm:$0xff] %v5178_v33  ;;  %v2204_v60 = vmul.f32 0.5, %v2140_v18  ;;  %2716 = vst [vmem:[%s5988_s6 + $0x190] sm:$0xff] %v2140_v18  ;;  %v1976_v21 = vmul.f32 -0.5, %v5141_v19  ;;  %v2830_v44 = vmul.f32 -1.442695, %v496_v45 }
 0x1da   :  { %v3265_v4 = vpop.eup %3264  ;;  %3282 = vpow2.f32 %v2254_v53  ;;  %v990_v3 = vadd.f32 1.0, %v3263_v35  ;;  %v1428_v32 = vmul.f32 1.442695, %v1343_v48  ;;  %v1690_v38 = vmul.f32 %v5125_v23, %v1689_v5 }
 0x1db   :  { %2586 = vst [vmem:[%s5990_s4 + $0x180] sm:$0xff] %v2522_v61  ;;  %v2427_v46 = vmul.f32 %v3265_v4, %v2363_v63  ;;  %v2318_v39 = vmul.f32 1.442695, %v2204_v60  ;;  %v3267_v57 = vpop.eup %3266  ;;  %v5210_v30 = vadd.f32 1e-08, %v498_v51  ;;  %v1245_v17 = vmin.f32 %v5039_v31, 0.0  ;;  %v693_v31 = vpop.f32.mrf.mxu1 }
 0x1dc   :  { %3284 = vrcp.f32 %v990_v3  ;;  %v959_v52 = vadd.f32 1.0, %v3267_v57  ;;  %v1492_v7 = vmul.f32 1.442695, %v1375_v56  ;;  %vm1692_vm8 = vcmp.lt.f32.partialorder %v1691_v11, 0.0004427343  ;;  %v501_v11 = vpop.f32.mrf.mxu0 }
 0x1dd   :  { %v2491_v1 = vadd.f32 %v5008_v10, %v2427_v46  ;;  %3286 = vpow2.f32 %v2830_v44  ;;  %v1977_v10 = vadd.f32 1.0, %v1976_v21  ;;  %v1979_v23 = vand.u32 2147483647, %v5141_v19 }
 0x1de   :  { %v3269_v6 = vpop.eup %3268  ;;  %3288 = vpow2.f32 %v2318_v39  ;;  %v1280_v54 = vand.u32 2147483647, %v5210_v30  ;;  %v2862_v2 = vmul.f32 -1.442695, %v688_v20  ;;  %v502_v5 = vadd.f32 %v501_v11, %v3878_v8  ;;  %v503_v46 = vpop.f32.mrf.mxu0 }
 0x1df   :  { %2555 = vst [vmem:[%s5990_s4 + $0x88] sm:$0xff] %v2491_v1  ;;  %v1687_v34 = vmul.f32 0.6931472, %v3269_v6  ;;  %3290 = vpow2.f32 %v1428_v32  ;;  %v5218_v43 = vpop.eup %3270  ;;  %v1978_v59 = vmul.f32 %v5141_v19, %v1977_v10  ;;  %vm1980_vm9 = vcmp.lt.f32.partialorder %v1979_v23, 0.0004427343  ;;  %v2364_v19 = vld [vmem:[%s5989_s3 + $0x90] sm:$0xff] }
 0x1e0   :  { %3292 = vrcp.f32 %v959_v52  ;;  %v1694_v40 = vadd.f32 1.0, %v5218_v43  ;;  %v1344_v63 = vsub.f32 0.0, %v1280_v54  ;;  %v1214_v26 = vmin.f32 %v5100_v55, 0.0  ;;  %v695_v52 = vpop.f32.mrf.mxu1 }
 0x1e1   :  { %v3273_v42 = vpop.eup %3272  ;;  %v1693_v41 = vsel %vm1692_vm8, %v1690_v38, %v1687_v34  ;;  %3294 = vpow2.f32 %v1492_v7  ;;  %v1246_v4 = vmin.f32 %v5119_v14, 0.0  ;;  %v694_v3 = vadd.f32 %v693_v31, %v3878_v8 }
 0x1e2   :  { %v3275_v28 = vpop.eup %3274  ;;  %v2459_v15 = vmul.f32 %v3273_v42, %v2395_v50  ;;  %v2109_v25 = vsub.f32 %v1213_v36, %v1693_v41  ;;  %3296 = vlog2.f32 %v1694_v40  ;;  %v1430_v21 = vmul.f32 1.442695, %v1344_v63  ;;  %v507_v63 = vpop.f32.mrf.mxu0 }
 0x1e3   :  { %v5226_v29 = vpop.eup %3276  ;;  %v1975_v0 = vmul.f32 0.6931472, %v3275_v28  ;;  %3298 = vpow2.f32 %v2862_v2  ;;  %v1697_v39 = vmul.f32 -0.5, %v5218_v43  ;;  %v2831_v57 = vmul.f32 -1.442695, %v502_v5 }
 0x1e4   :  { %v5229_v53 = vpop.eup %3278  ;;  %v2523_v18 = vadd.f32 %v5023_v12, %v2459_v15  ;;  %v2173_v35 = vmul.f32 0.5, %v2109_v25  ;;  %2685 = vst [vmem:[%s5988_s6 + $0x98] sm:$0xff] %v2109_v25  ;;  %v1982_v27 = vadd.f32 1.0, %v5226_v29  ;;  %v690_v12 = vadd.f32 %v689_v13, %v3880_v9 }
 0x1e5   :  { %v3281_v36 = vpop.eup %3280  ;;  %v1981_v61 = vsel %vm1980_vm9, %v1978_v59, %v1975_v0  ;;  %2622 = vst [vmem:[%s5987_s5 + $0xa0] sm:$0xff] %v5229_v53  ;;  %v2863_v1 = vmul.f32 -1.442695, %v694_v3  ;;  %v504_v38 = vadd.f32 %v503_v46, %v3880_v9  ;;  %v1700_v34 = vand.u32 2147483647, %v5218_v43 }
 0x1e6   :  { %2587 = vst [vmem:[%s5990_s4 + $0x188] sm:$0xff] %v2523_v18  ;;  %v2256_v49 = vmul.f32 1.442695, %v2173_v35  ;;  %v2141_v45 = vsub.f32 %v1245_v17, %v1981_v61  ;;  %3300 = vlog2.f32 %v1982_v27  ;;  %v991_v60 = vadd.f32 1.0, %v3281_v36 }
 0x1e7   :  { %v3283_v22 = vpop.eup %3282  ;;  %v5260_v51 = vadd.f32 1e-08, %v690_v12  ;;  %v1985_v54 = vmul.f32 -0.5, %v5226_v29  ;;  %v5276_v13 = vadd.f32 1e-08, %v504_v38  ;;  %v1698_v41 = vadd.f32 1.0, %v1697_v39  ;;  %v699_v39 = vpop.f32.mrf.mxu1 }
 0x1e8   :  { %v2428_v48 = vmul.f32 %v3283_v22, %v2364_v19  ;;  %3302 = vpow2.f32 %v2256_v49  ;;  %v2205_v44 = vmul.f32 0.5, %v2141_v45  ;;  %2717 = vst [vmem:[%s5988_s6 + $0x198] sm:$0xff] %v2141_v45  ;;  %v696_v2 = vadd.f32 %v695_v52, %v3880_v9 }
 0x1e9   :  { %v5258_v20 = vpop.eup %3284  ;;  %3304 = vrcp.f32 %v991_v60  ;;  %v1312_v7 = vand.u32 2147483647, %v5260_v51  ;;  %v1988_v15 = vand.u32 2147483647, %v5226_v29  ;;  %v1215_v11 = vmin.f32 %v5176_v62, 0.0  ;;  %v2365_v60 = vld [vmem:[%s5989_s3 + $0x98] sm:$0xff]  ;;  %v701_v14 = vpop.f32.mrf.mxu1 }
 0x1ea   :  { %v3287_v32 = vpop.eup %3286  ;;  %v2492_v56 = vadd.f32 %v5111_v24, %v2428_v48  ;;  %v2320_v6 = vmul.f32 1.442695, %v2205_v44  ;;  %2654 = vst [vmem:[%s5987_s5 + $0x1a0] sm:$0xff] %v5258_v20  ;;  %3306 = vpow2.f32 %v1430_v21  ;;  %v1247_v0 = vmin.f32 %v5189_v16, 0.0  ;;  %v2366_v16 = vld [vmem:[%s5989_s3 + $0xa0] sm:$0xff] }
 0x1eb   :  { %v3289_v50 = vpop.eup %3288  ;;  %v960_v10 = vadd.f32 1.0, %v3287_v32  ;;  %3308 = vpow2.f32 %v2831_v57  ;;  %v1376_v25 = vsub.f32 0.0, %v1312_v7  ;;  %v1281_v59 = vand.u32 2147483647, %v5276_v13  ;;  %v509_v7 = vpop.f32.mrf.mxu0 }
 0x1ec   :  { %v5270_v23 = vpop.eup %3290  ;;  %2556 = vst [vmem:[%s5990_s4 + $0x90] sm:$0xff] %v2492_v56  ;;  %v2460_v24 = vmul.f32 %v3289_v50, %v2396_v58  ;;  %3310 = vpow2.f32 %v2320_v6  ;;  %v1986_v18 = vadd.f32 1.0, %v1985_v54  ;;  %v1699_v19 = vmul.f32 %v5218_v43, %v1698_v41 }
 0x1ed   :  { %v5278_v42 = vpop.eup %3292  ;;  %v1703_v40 = vadd.f32 1.0, %v5270_v23  ;;  %3312 = vrcp.f32 %v960_v10  ;;  %v1706_v35 = vmul.f32 -0.5, %v5270_v23  ;;  %v1494_v31 = vmul.f32 1.442695, %v1376_v25  ;;  %v513_v49 = vpop.f32.mrf.mxu0 }
 0x1ee   :  { %v2524_v28 = vadd.f32 %v5121_v37, %v2460_v24  ;;  %2623 = vst [vmem:[%s5987_s5 + $0xa8] sm:$0xff] %v5278_v42  ;;  %3314 = vpow2.f32 %v2863_v1  ;;  %v5288_v17 = vpop.eup %3294  ;;  %v1345_v61 = vsub.f32 0.0, %v1281_v59  ;;  %v5299_v12 = vadd.f32 1e-08, %v696_v2 }
 0x1ef   :  { %3316 = vlog2.f32 %v1703_v40  ;;  %v3297_v37 = vpop.eup %3296  ;;  %v1991_v27 = vadd.f32 1.0, %v5288_v17  ;;  %vm1701_vm10 = vcmp.lt.f32.partialorder %v1700_v34, 0.0004427343  ;;  %vm5301_vm11 = vcmp.lt.f32.partialorder %v1988_v15, 0.0004427343 }
 0x1f0   :  { %2588 = vst [vmem:[%s5990_s4 + $0x190] sm:$0xff] %v2524_v28  ;;  %v1696_v36 = vmul.f32 0.6931472, %v3297_v37  ;;  %v3299_v5 = vpop.eup %3298  ;;  %v508_v45 = vadd.f32 %v507_v63, %v3878_v8  ;;  %v1432_v43 = vmul.f32 1.442695, %v1345_v61  ;;  %v1987_v58 = vmul.f32 %v5226_v29, %v1986_v18 }
 0x1f1   :  { %3318 = vlog2.f32 %v1991_v27  ;;  %v992_v3 = vadd.f32 1.0, %v3299_v5  ;;  %v1707_v44 = vadd.f32 1.0, %v1706_v35  ;;  %v1994_v1 = vmul.f32 -0.5, %v5288_v17 }
 0x1f2   :  { %v1702_v21 = vsel %vm1701_vm10, %v1699_v19, %v1696_v36  ;;  %3320 = vpow2.f32 %v1494_v31  ;;  %v1313_v32 = vand.u32 2147483647, %v5299_v12  ;;  %v2832_v56 = vmul.f32 -1.442695, %v508_v45 }
 0x1f3   :  { %v3301_v22 = vpop.eup %3300  ;;  %v2110_v46 = vsub.f32 %v1214_v26, %v1702_v21  ;;  %3322 = vrcp.f32 %v992_v3  ;;  %v2397_v26 = vld [vmem:[%s5989_s3 + $0x198] sm:$0xff]  ;;  %v1709_v34 = vand.u32 2147483647, %v5270_v23  ;;  %v700_v2 = vadd.f32 %v699_v39, %v3878_v8 }
 0x1f4   :  { %v1984_v48 = vmul.f32 0.6931472, %v3301_v22  ;;  %3324 = vpow2.f32 %v1432_v43  ;;  %v1377_v10 = vsub.f32 0.0, %v1313_v32  ;;  %v1708_v15 = vmul.f32 %v5270_v23, %v1707_v44 }
 0x1f5   :  { %v3303_v57 = vpop.eup %3302  ;;  %v2174_v52 = vmul.f32 0.5, %v2110_v46  ;;  %2686 = vst [vmem:[%s5988_s6 + $0xa0] sm:$0xff] %v2110_v46  ;;  %3326 = vpow2.f32 %v2832_v56  ;;  %v1997_v25 = vand.u32 2147483647, %v5288_v17  ;;  %v1995_v37 = vadd.f32 1.0, %v1994_v1  ;;  %v515_v1 = vpop.f32.mrf.mxu0 }
 0x1f6   :  { %v5314_v6 = vpop.eup %3304  ;;  %v2429_v38 = vmul.f32 %v3303_v57, %v2365_v60  ;;  %v1990_v55 = vsel %vm5301_vm11, %v1987_v58, %v1984_v48  ;;  %v510_v18 = vadd.f32 %v509_v7, %v3880_v9  ;;  %v1496_v23 = vmul.f32 1.442695, %v1377_v10 }
 0x1f7   :  { %v5321_v29 = vpop.eup %3306  ;;  %v2142_v50 = vsub.f32 %v1246_v4, %v1990_v55  ;;  %2655 = vst [vmem:[%s5987_s5 + $0x1a8] sm:$0xff] %v5314_v6  ;;  %v2258_v41 = vmul.f32 1.442695, %v2174_v52  ;;  %v702_v31 = vadd.f32 %v701_v14, %v3880_v9  ;;  %v2864_v5 = vmul.f32 -1.442695, %v700_v2 }
 0x1f8   :  { %v3309_v24 = vpop.eup %3308  ;;  %v2493_v54 = vadd.f32 %v5172_v47, %v2429_v38  ;;  %v1712_v40 = vadd.f32 1.0, %v5321_v29  ;;  %v1715_v22 = vmul.f32 -0.5, %v5321_v29  ;;  %v5354_v60 = vadd.f32 1e-08, %v510_v18 }
 0x1f9   :  { %v3311_v4 = vpop.eup %3310  ;;  %v2206_v28 = vmul.f32 0.5, %v2142_v50  ;;  %2718 = vst [vmem:[%s5988_s6 + $0x1a0] sm:$0xff] %v2142_v50  ;;  %v961_v59 = vadd.f32 1.0, %v3309_v24  ;;  %3328 = vpow2.f32 %v2258_v41  ;;  %vm1710_vm12 = vcmp.lt.f32.partialorder %v1709_v34, 0.0004427343 }
 0x1fa   :  { %v5341_v63 = vpop.eup %3312  ;;  %2557 = vst [vmem:[%s5990_s4 + $0x98] sm:$0xff] %v2493_v54  ;;  %v2461_v47 = vmul.f32 %v3311_v4, %v2397_v26  ;;  %3330 = vlog2.f32 %v1712_v40  ;;  %v1216_v21 = vmin.f32 %v5210_v30, 0.0  ;;  %v5360_v3 = vadd.f32 1e-08, %v702_v31 }
 0x1fb   :  { %v3315_v35 = vpop.eup %3314  ;;  %v2322_v27 = vmul.f32 1.442695, %v2206_v28  ;;  %2624 = vst [vmem:[%s5987_s5 + $0xb0] sm:$0xff] %v5341_v63  ;;  %3332 = vrcp.f32 %v961_v59  ;;  %v1248_v46 = vmin.f32 %v5260_v51, 0.0  ;;  %v1282_v48 = vand.u32 2147483647, %v5354_v60 }
 0x1fc   :  { %v3317_v36 = vpop.eup %3316  ;;  %v2525_v19 = vadd.f32 %v5178_v33, %v2461_v47  ;;  %v993_v61 = vadd.f32 1.0, %v3315_v35  ;;  %v1996_v57 = vmul.f32 %v5288_v17, %v1995_v37  ;;  %vm1998_vm13 = vcmp.lt.f32.partialorder %v1997_v25, 0.0004427343  ;;  %v705_v17 = vpop.f32.mrf.mxu1 }
 0x1fd   :  { %3334 = vpow2.f32 %v2322_v27  ;;  %v1705_v45 = vmul.f32 0.6931472, %v3317_v36  ;;  %v1716_v32 = vadd.f32 1.0, %v1715_v22  ;;  %v1718_v56 = vand.u32 2147483647, %v5321_v29 }
 0x1fe   :  { %2589 = vst [vmem:[%s5990_s4 + $0x198] sm:$0xff] %v2525_v19  ;;  %3336 = vrcp.f32 %v993_v61  ;;  %v3319_v33 = vpop.eup %3318  ;;  %v1314_v26 = vand.u32 2147483647, %v5360_v3  ;;  %v514_v10 = vadd.f32 %v513_v49, %v3878_v8  ;;  %v516_v7 = vadd.f32 %v515_v1, %v3880_v9  ;;  %v707_v27 = vpop.f32.mrf.mxu1  ;;  %v2398_v19 = vld [vmem:[%s5989_s3 + $0x1a0] sm:$0xff] }
 0x1ff   :  { %v1711_v43 = vsel %vm1710_vm12, %v1708_v15, %v1705_v45  ;;  %3338 = vpow2.f32 %v1496_v23  ;;  %v5364_v58 = vpop.eup %3320  ;;  %v1993_v39 = vmul.f32 0.6931472, %v3319_v33  ;;  %v1217_v40 = vmin.f32 %v5276_v13, 0.0  ;;  %v519_v23 = vpop.f32.mrf.mxu0 }
 0x200   :  { %v2111_v44 = vsub.f32 %v1215_v11, %v1711_v43  ;;  %3340 = vpow2.f32 %v2864_v5  ;;  %v2000_v38 = vadd.f32 1.0, %v5364_v58  ;;  %v5371_v52 = vpop.eup %3322  ;;  %v1346_v11 = vsub.f32 0.0, %v1282_v48 }
 0x201   :  { %v1999_v62 = vsel %vm1998_vm13, %v1996_v57, %v1993_v39  ;;  %v5377_v50 = vpop.eup %3324  ;;  %2656 = vst [vmem:[%s5987_s5 + $0x1b0] sm:$0xff] %v5371_v52  ;;  %v2003_v41 = vmul.f32 -0.5, %v5364_v58  ;;  %vm5396_vm14 = vcmp.lt.f32.partialorder %v1718_v56, 0.0004427343  ;;  %v706_v28 = vadd.f32 %v705_v17, %v3878_v8 }
 0x202   :  { %v2175_v55 = vmul.f32 0.5, %v2111_v44  ;;  %2687 = vst [vmem:[%s5988_s6 + $0xa8] sm:$0xff] %v2111_v44  ;;  %v2143_v34 = vsub.f32 %v1247_v0, %v1999_v62  ;;  %3342 = vlog2.f32 %v2000_v38  ;;  %v3327_v24 = vpop.eup %3326  ;;  %v1721_v2 = vadd.f32 1.0, %v5377_v50 }
 0x203   :  { %v962_v4 = vadd.f32 1.0, %v3327_v24  ;;  %v1717_v15 = vmul.f32 %v5321_v29, %v1716_v32  ;;  %v1434_v25 = vmul.f32 1.442695, %v1346_v11  ;;  %v1378_v59 = vsub.f32 0.0, %v1314_v26  ;;  %v521_v24 = vpop.f32.mrf.mxu0 }
 0x204   :  { %v2260_v54 = vmul.f32 1.442695, %v2175_v55  ;;  %v2207_v0 = vmul.f32 0.5, %v2143_v34  ;;  %2719 = vst [vmem:[%s5988_s6 + $0x1a8] sm:$0xff] %v2143_v34  ;;  %v2833_v18 = vmul.f32 -1.442695, %v514_v10  ;;  %v708_v48 = vadd.f32 %v707_v27, %v3880_v9 }
 0x205   :  { %v5402_v35 = vadd.f32 1e-08, %v516_v7  ;;  %v2004_v61 = vadd.f32 1.0, %v2003_v41  ;;  %v1498_v5 = vmul.f32 1.442695, %v1378_v59  ;;  %v520_v44 = vadd.f32 %v519_v23, %v3878_v8 }
 0x206   :  { %3344 = vpow2.f32 %v2260_v54  ;;  %v3329_v47 = vpop.eup %3328  ;;  %v2324_v37 = vmul.f32 1.442695, %v2207_v0  ;;  %v2865_v45 = vmul.f32 -1.442695, %v706_v28  ;;  %v1249_v38 = vmin.f32 %v5299_v12, 0.0 }
 0x207   :  { %3346 = vlog2.f32 %v1721_v2  ;;  %v3331_v31 = vpop.eup %3330  ;;  %v2430_v36 = vmul.f32 %v3329_v47, %v2366_v16  ;;  %v1283_v22 = vand.u32 2147483647, %v5402_v35  ;;  %v5433_v55 = vadd.f32 1e-08, %v708_v48 }
 0x208   :  { %3348 = vrcp.f32 %v962_v4  ;;  %v5407_v29 = vpop.eup %3332  ;;  %v1714_v49 = vmul.f32 0.6931472, %v3331_v31  ;;  %v2006_v26 = vand.u32 2147483647, %v5364_v58  ;;  %v1724_v17 = vmul.f32 -0.5, %v5377_v50  ;;  %v2367_v4 = vld [vmem:[%s5989_s3 + $0xa8] sm:$0xff] }
 0x209   :  { %3350 = vpow2.f32 %v2324_v37  ;;  %v2494_v43 = vadd.f32 %v5229_v53, %v2430_v36  ;;  %2625 = vst [vmem:[%s5987_s5 + $0xb8] sm:$0xff] %v5407_v29  ;;  %v1347_v32 = vsub.f32 0.0, %v1283_v22  ;;  %v1727_v54 = vand.u32 2147483647, %v5377_v50 }
 0x20a   :  { %v3335_v33 = vpop.eup %3334  ;;  %3352 = vpow2.f32 %v1434_v25  ;;  %v1720_v1 = vsel %vm5396_vm14, %v1717_v15, %v1714_v49  ;;  %v2834_v41 = vmul.f32 -1.442695, %v520_v44  ;;  %v1315_v0 = vand.u32 2147483647, %v5433_v55 }
 0x20b   :  { %v5417_v39 = vpop.eup %3336  ;;  %v2462_v57 = vmul.f32 %v3335_v33, %v2398_v19  ;;  %3354 = vpow2.f32 %v1498_v5  ;;  %2558 = vst [vmem:[%s5990_s4 + $0xa0] sm:$0xff] %v2494_v43  ;;  %v2112_v53 = vsub.f32 %v1216_v21, %v1720_v1  ;;  %v711_v21 = vpop.f32.mrf.mxu1  ;;  %v1436_v7 = vmul.f32 1.442695, %v1347_v32  ;;  %v2399_v19 = vld [vmem:[%s5989_s3 + $0x1a8] sm:$0xff] }
 0x20c   :  { %v5421_v56 = vpop.eup %3338  ;;  %2657 = vst [vmem:[%s5987_s5 + $0x1b8] sm:$0xff] %v5417_v39  ;;  %3356 = vpow2.f32 %v2833_v18  ;;  %v712_v14 = vadd.f32 %v711_v21, %v3878_v8  ;;  %v1725_v15 = vadd.f32 1.0, %v1724_v17  ;;  %vm2007_vm15 = vcmp.lt.f32.partialorder %v2006_v26, 0.0004427343 }
 0x20d   :  { %v3341_v62 = vpop.eup %3340  ;;  %v2526_v11 = vadd.f32 %v5258_v20, %v2462_v57  ;;  %v2009_v30 = vadd.f32 1.0, %v5421_v56  ;;  %v2176_v34 = vmul.f32 0.5, %v2112_v53  ;;  %2688 = vst [vmem:[%s5988_s6 + $0xb0] sm:$0xff] %v2112_v53  ;;  %3358 = vpow2.f32 %v2865_v45  ;;  %v713_v47 = vpop.f32.mrf.mxu1 }
 0x20e   :  { %v994_v10 = vadd.f32 1.0, %v3341_v62  ;;  %v2005_v20 = vmul.f32 %v5364_v58, %v2004_v61  ;;  %v522_v58 = vadd.f32 %v521_v24, %v3880_v9  ;;  %v1379_v25 = vsub.f32 0.0, %v1315_v0  ;;  %v525_v24 = vpop.f32.mrf.mxu0 }
 0x20f   :  { %2590 = vst [vmem:[%s5990_s4 + $0x1a0] sm:$0xff] %v2526_v11  ;;  %3360 = vlog2.f32 %v2009_v30  ;;  %v3343_v2 = vpop.eup %3342  ;;  %v2262_v16 = vmul.f32 1.442695, %v2176_v34  ;;  %v2866_v59 = vmul.f32 -1.442695, %v712_v14  ;;  %v2012_v27 = vmul.f32 -0.5, %v5421_v56 }
 0x210   :  { %3362 = vrcp.f32 %v994_v10  ;;  %v2002_v28 = vmul.f32 0.6931472, %v3343_v2  ;;  %v5454_v23 = vadd.f32 1e-08, %v522_v58  ;;  %v1500_v5 = vmul.f32 1.442695, %v1379_v25 }
 0x211   :  { %3364 = vpow2.f32 %v1436_v7  ;;  %v1726_v22 = vmul.f32 %v5377_v50, %v1725_v15  ;;  %vm5464_vm0 = vcmp.lt.f32.partialorder %v1727_v54, 0.0004427343  ;;  %v714_v43 = vadd.f32 %v713_v47, %v3880_v9 }
 0x212   :  { %3366 = vpow2.f32 %v2262_v16  ;;  %v2008_v18 = vsel %vm2007_vm15, %v2005_v20, %v2002_v28  ;;  %v1284_v51 = vand.u32 2147483647, %v5454_v23  ;;  %v2015_v32 = vand.u32 2147483647, %v5421_v56  ;;  %v717_v16 = vpop.f32.mrf.mxu1 }
 0x213   :  { %v3345_v37 = vpop.eup %3344  ;;  %3368 = vpow2.f32 %v2834_v41  ;;  %v2144_v61 = vsub.f32 %v1248_v46, %v2008_v18  ;;  %v1218_v26 = vmin.f32 %v5354_v60, 0.0  ;;  %v1250_v34 = vmin.f32 %v5360_v3, 0.0 }
 0x214   :  { %v3347_v31 = vpop.eup %3346  ;;  %v2431_v36 = vmul.f32 %v3345_v37, %v2367_v4  ;;  %3370 = vpow2.f32 %v2866_v59  ;;  %v5495_v7 = vadd.f32 1e-08, %v714_v43  ;;  %vm5505_vm1 = vcmp.lt.f32.partialorder %v2015_v32, 0.0004427343 }
 0x215   :  { %v5461_v49 = vpop.eup %3348  ;;  %v1723_v45 = vmul.f32 0.6931472, %v3347_v31  ;;  %v2208_v57 = vmul.f32 0.5, %v2144_v61  ;;  %2720 = vst [vmem:[%s5988_s6 + $0x1b0] sm:$0xff] %v2144_v61  ;;  %3372 = vpow2.f32 %v1500_v5  ;;  %v526_v28 = vadd.f32 %v525_v24, %v3878_v8  ;;  %v527_v31 = vpop.f32.mrf.mxu0 }
 0x216   :  { %v3351_v48 = vpop.eup %3350  ;;  %v2495_v44 = vadd.f32 %v5278_v42, %v2431_v36  ;;  %2626 = vst [vmem:[%s5987_s5 + $0xc0] sm:$0xff] %v5461_v49  ;;  %v2013_v42 = vadd.f32 1.0, %v2012_v27  ;;  %v1316_v27 = vand.u32 2147483647, %v5495_v7  ;;  %v1219_v3 = vmin.f32 %v5402_v35, 0.0 }
 0x217   :  { %v5478_v46 = vpop.eup %3352  ;;  %v2463_v50 = vmul.f32 %v3351_v48, %v2399_v19  ;;  %v1729_v1 = vsel %vm5464_vm0, %v1726_v22, %v1723_v45  ;;  %v2326_v62 = vmul.f32 1.442695, %v2208_v57  ;;  %v719_v45 = vpop.f32.mrf.mxu1  ;;  %v718_v48 = vadd.f32 %v717_v16, %v3878_v8 }
 0x218   :  { %v5483_v53 = vpop.eup %3354  ;;  %2559 = vst [vmem:[%s5990_s4 + $0xa8] sm:$0xff] %v2495_v44  ;;  %v2113_v11 = vsub.f32 %v1217_v40, %v1729_v1  ;;  %v1730_v17 = vadd.f32 1.0, %v5478_v46  ;;  %v1733_v13 = vmul.f32 -0.5, %v5478_v46  ;;  %v1348_v40 = vsub.f32 0.0, %v1284_v51 }
 0x219   :  { %v3357_v30 = vpop.eup %3356  ;;  %v2527_v21 = vadd.f32 %v5314_v6, %v2463_v50  ;;  %v2018_v10 = vadd.f32 1.0, %v5483_v53  ;;  %3374 = vpow2.f32 %v2326_v62  ;;  %v2014_v6 = vmul.f32 %v5421_v56, %v2013_v42  ;;  %v2368_v56 = vld [vmem:[%s5989_s3 + $0xb0] sm:$0xff] }
 0x21a   :  { %v2177_v20 = vmul.f32 0.5, %v2113_v11  ;;  %2689 = vst [vmem:[%s5988_s6 + $0xb8] sm:$0xff] %v2113_v11  ;;  %v3359_v54 = vpop.eup %3358  ;;  %3376 = vlog2.f32 %v1730_v17  ;;  %v963_v2 = vadd.f32 1.0, %v3357_v30  ;;  %v1736_v4 = vand.u32 2147483647, %v5478_v46  ;;  %v531_v11 = vpop.f32.mrf.mxu0 }
 0x21b   :  { %2591 = vst [vmem:[%s5990_s4 + $0x1a8] sm:$0xff] %v2527_v21  ;;  %3378 = vlog2.f32 %v2018_v10  ;;  %v2021_v25 = vmul.f32 -0.5, %v5483_v53  ;;  %v995_v59 = vadd.f32 1.0, %v3359_v54  ;;  %v1734_v37 = vadd.f32 1.0, %v1733_v13 }
 0x21c   :  { %v3361_v0 = vpop.eup %3360  ;;  %v2264_v14 = vmul.f32 1.442695, %v2177_v20  ;;  %3380 = vrcp.f32 %v963_v2  ;;  %v1438_v18 = vmul.f32 1.442695, %v1348_v40  ;;  %v2024_v61 = vand.u32 2147483647, %v5483_v53 }
 0x21d   :  { %v5511_v15 = vpop.eup %3362  ;;  %v2011_v58 = vmul.f32 0.6931472, %v3361_v0  ;;  %v1380_v51 = vsub.f32 0.0, %v1316_v27  ;;  %v2835_v50 = vmul.f32 -1.442695, %v526_v28  ;;  %v2022_v32 = vadd.f32 1.0, %v2021_v25 }
 0x21e   :  { %v5517_v47 = vpop.eup %3364  ;;  %3382 = vpow2.f32 %v2264_v14  ;;  %2658 = vst [vmem:[%s5987_s5 + $0x1c0] sm:$0xff] %v5511_v15  ;;  %vm5538_vm2 = vcmp.lt.f32.partialorder %v1736_v4, 0.0004427343  ;;  %vm5542_vm3 = vcmp.lt.f32.partialorder %v2024_v61, 0.0004427343  ;;  %v2400_v20 = vld [vmem:[%s5989_s3 + $0x1b0] sm:$0xff]  ;;  %v528_v13 = vadd.f32 %v527_v31, %v3880_v9 }
 0x21f   :  { %v3367_v36 = vpop.eup %3366  ;;  %v2017_v19 = vsel %vm5505_vm1, %v2014_v6, %v2011_v58  ;;  %3384 = vrcp.f32 %v995_v59  ;;  %v1739_v5 = vadd.f32 1.0, %v5517_v47  ;;  %v1742_v10 = vmul.f32 -0.5, %v5517_v47 }
 0x220   :  { %v3369_v22 = vpop.eup %3368  ;;  %v2432_v33 = vmul.f32 %v3367_v36, %v2368_v56  ;;  %v2145_v43 = vsub.f32 %v1249_v38, %v2017_v19  ;;  %3386 = vpow2.f32 %v1438_v18  ;;  %v1735_v38 = vmul.f32 %v5478_v46, %v1734_v37 }
 0x221   :  { %v3371_v44 = vpop.eup %3370  ;;  %3388 = vlog2.f32 %v1739_v5  ;;  %v964_v57 = vadd.f32 1.0, %v3369_v22  ;;  %v1502_v46 = vmul.f32 1.442695, %v1380_v51  ;;  %v720_v40 = vadd.f32 %v719_v45, %v3880_v9  ;;  %v533_v5 = vpop.f32.mrf.mxu0 }
 0x222   :  { %v2496_v1 = vadd.f32 %v5341_v63, %v2432_v33  ;;  %v2209_v42 = vmul.f32 0.5, %v2145_v43  ;;  %2721 = vst [vmem:[%s5988_s6 + $0x1b8] sm:$0xff] %v2145_v43  ;;  %v996_v62 = vadd.f32 1.0, %v3371_v44  ;;  %v5535_v12 = vpop.eup %3372  ;;  %v723_v63 = vpop.f32.mrf.mxu1  ;;  %v532_v54 = vadd.f32 %v531_v11, %v3878_v8 }
 0x223   :  { %3390 = vrcp.f32 %v964_v57  ;;  %v2027_v24 = vadd.f32 1.0, %v5535_v12  ;;  %v2023_v6 = vmul.f32 %v5483_v53, %v2022_v32  ;;  %v2867_v41 = vmul.f32 -1.442695, %v718_v48  ;;  %v2369_v53 = vld [vmem:[%s5989_s3 + $0xb8] sm:$0xff] }
 0x224   :  { %2560 = vst [vmem:[%s5990_s4 + $0xb0] sm:$0xff] %v2496_v1  ;;  %v2328_v21 = vmul.f32 1.442695, %v2209_v42  ;;  %3392 = vrcp.f32 %v996_v62  ;;  %v724_v2 = vadd.f32 %v723_v63, %v3878_v8  ;;  %v5559_v0 = vadd.f32 1e-08, %v528_v13  ;;  %v725_v63 = vpop.f32.mrf.mxu1 }
 0x225   :  { %v5561_v14 = vadd.f32 1e-08, %v720_v40  ;;  %v2836_v4 = vmul.f32 -1.442695, %v532_v54  ;;  %v1745_v58 = vand.u32 2147483647, %v5517_v47  ;;  %v534_v32 = vadd.f32 %v533_v5, %v3880_v9 }
 0x226   :  { %3394 = vpow2.f32 %v2328_v21  ;;  %v3375_v16 = vpop.eup %3374  ;;  %v2868_v25 = vmul.f32 -1.442695, %v724_v2  ;;  %v1743_v18 = vadd.f32 1.0, %v1742_v10  ;;  %v1285_v27 = vand.u32 2147483647, %v5559_v0  ;;  %v2401_v21 = vld [vmem:[%s5989_s3 + $0x1b8] sm:$0xff] }
 0x227   :  { %3396 = vlog2.f32 %v2027_v24  ;;  %v3377_v28 = vpop.eup %3376  ;;  %v2464_v56 = vmul.f32 %v3375_v16, %v2400_v20  ;;  %v2030_v61 = vmul.f32 -0.5, %v5535_v12  ;;  %v1317_v43 = vand.u32 2147483647, %v5561_v14 }
 0x228   :  { %3398 = vpow2.f32 %v1502_v46  ;;  %v3379_v59 = vpop.eup %3378  ;;  %v1732_v37 = vmul.f32 0.6931472, %v3377_v28  ;;  %v1349_v33 = vsub.f32 0.0, %v1285_v27  ;;  %v1744_v17 = vmul.f32 %v5517_v47, %v1743_v18 }
 0x229   :  { %3400 = vpow2.f32 %v2835_v50  ;;  %v5568_v31 = vpop.eup %3380  ;;  %v2528_v36 = vadd.f32 %v5371_v52, %v2464_v56  ;;  %v2020_v19 = vmul.f32 0.6931472, %v3379_v59  ;;  %v1381_v42 = vsub.f32 0.0, %v1317_v43 }
 0x22a   :  { %3402 = vpow2.f32 %v2867_v41  ;;  %v1738_v22 = vsel %vm5538_vm2, %v1735_v38, %v1732_v37  ;;  %2627 = vst [vmem:[%s5987_s5 + $0xc8] sm:$0xff] %v5568_v31  ;;  %v1440_v1 = vmul.f32 1.442695, %v1349_v33  ;;  %vm1746_vm4 = vcmp.lt.f32.partialorder %v1745_v58, 0.0004427343 }
 0x22b   :  { %v3383_v45 = vpop.eup %3382  ;;  %3404 = vpow2.f32 %v2836_v4  ;;  %2592 = vst [vmem:[%s5990_s4 + $0x1b0] sm:$0xff] %v2528_v36  ;;  %v2114_v44 = vsub.f32 %v1218_v26, %v1738_v22  ;;  %v2026_v57 = vsel %vm5542_vm3, %v2023_v6, %v2020_v19  ;;  %v1504_v35 = vmul.f32 1.442695, %v1381_v42 }
 0x22c   :  { %v5579_v48 = vpop.eup %3384  ;;  %v2433_v52 = vmul.f32 %v3383_v45, %v2369_v53  ;;  %3406 = vpow2.f32 %v2868_v25  ;;  %v2146_v50 = vsub.f32 %v1250_v34, %v2026_v57  ;;  %v2031_v46 = vadd.f32 1.0, %v2030_v61  ;;  %v729_v61 = vpop.f32.mrf.mxu1 }
 0x22d   :  { %v5588_v51 = vpop.eup %3386  ;;  %2659 = vst [vmem:[%s5987_s5 + $0x1c8] sm:$0xff] %v5579_v48  ;;  %v2178_v62 = vmul.f32 0.5, %v2114_v44  ;;  %2690 = vst [vmem:[%s5988_s6 + $0xc0] sm:$0xff] %v2114_v44  ;;  %3408 = vpow2.f32 %v1440_v1  ;;  %v5619_v47 = vadd.f32 1e-08, %v534_v32  ;;  %v1251_v6 = vmin.f32 %v5433_v55, 0.0  ;;  %v537_v55 = vpop.f32.mrf.mxu0 }
 0x22e   :  { %v3389_v60 = vpop.eup %3388  ;;  %v2497_v26 = vadd.f32 %v5407_v29, %v2433_v52  ;;  %v1748_v34 = vadd.f32 1.0, %v5588_v51  ;;  %v2210_v11 = vmul.f32 0.5, %v2146_v50  ;;  %2722 = vst [vmem:[%s5988_s6 + $0x1c0] sm:$0xff] %v2146_v50  ;;  %v2033_v40 = vand.u32 2147483647, %v5535_v12 }
 0x22f   :  { %v1741_v38 = vmul.f32 0.6931472, %v3389_v60  ;;  %v2266_v29 = vmul.f32 1.442695, %v2178_v62  ;;  %v1751_v41 = vmul.f32 -0.5, %v5588_v51  ;;  %v726_v2 = vadd.f32 %v725_v63, %v3880_v9  ;;  %v539_v57 = vpop.f32.mrf.mxu0 }
 0x230   :  { %v5607_v30 = vpop.eup %3390  ;;  %2561 = vst [vmem:[%s5990_s4 + $0xb8] sm:$0xff] %v2497_v26  ;;  %3410 = vlog2.f32 %v1748_v34  ;;  %v2330_v10 = vmul.f32 1.442695, %v2210_v11  ;;  %v1286_v56 = vand.u32 2147483647, %v5619_v47  ;;  %v2032_v59 = vmul.f32 %v5535_v12, %v2031_v46 }
 0x231   :  { %v1747_v24 = vsel %vm1746_vm4, %v1744_v17, %v1741_v38  ;;  %2628 = vst [vmem:[%s5987_s5 + $0xd0] sm:$0xff] %v5607_v30  ;;  %v5621_v20 = vpop.eup %3392  ;;  %3412 = vpow2.f32 %v2266_v29  ;;  %v1220_v53 = vmin.f32 %v5454_v23, 0.0  ;;  %v1754_v37 = vand.u32 2147483647, %v5588_v51 }
 0x232   :  { %v2115_v13 = vsub.f32 %v1219_v3, %v1747_v24  ;;  %3414 = vpow2.f32 %v2330_v10  ;;  %2660 = vst [vmem:[%s5987_s5 + $0x1d0] sm:$0xff] %v5621_v20  ;;  %vm2034_vm5 = vcmp.lt.f32.partialorder %v2033_v40, 0.0004427343  ;;  %v1752_v22 = vadd.f32 1.0, %v1751_v41  ;;  %v731_v3 = vpop.f32.mrf.mxu1  ;;  %v2370_v10 = vld [vmem:[%s5989_s3 + $0xc0] sm:$0xff] }
 0x233   :  { %v3395_v54 = vpop.eup %3394  ;;  %3416 = vpow2.f32 %v1504_v35  ;;  %v5642_v43 = vadd.f32 1e-08, %v726_v2  ;;  %vm5647_vm6 = vcmp.lt.f32.partialorder %v1754_v37, 0.0004427343  ;;  %v538_v32 = vadd.f32 %v537_v55, %v3878_v8  ;;  %v2402_v40 = vld [vmem:[%s5989_s3 + $0x1c0] sm:$0xff] }
 0x234   :  { %v3397_v16 = vpop.eup %3396  ;;  %v2465_v4 = vmul.f32 %v3395_v54, %v2401_v21  ;;  %v2179_v28 = vmul.f32 0.5, %v2115_v13  ;;  %2691 = vst [vmem:[%s5988_s6 + $0xc8] sm:$0xff] %v2115_v13  ;;  %v730_v62 = vadd.f32 %v729_v61, %v3878_v8  ;;  %v540_v38 = vadd.f32 %v539_v57, %v3880_v9 }
 0x235   :  { %v5635_v58 = vpop.eup %3398  ;;  %v2029_v25 = vmul.f32 0.6931472, %v3397_v16  ;;  %v1318_v11 = vand.u32 2147483647, %v5642_v43  ;;  %v1753_v35 = vmul.f32 %v5588_v51, %v1752_v22  ;;  %v2837_v46 = vmul.f32 -1.442695, %v538_v32 }
 0x236   :  { %v3401_v18 = vpop.eup %3400  ;;  %v2529_v27 = vadd.f32 %v5417_v39, %v2465_v4  ;;  %v2268_v36 = vmul.f32 1.442695, %v2179_v28  ;;  %v2036_v19 = vadd.f32 1.0, %v5635_v58  ;;  %v1350_v39 = vsub.f32 0.0, %v1286_v56  ;;  %v543_v28 = vpop.f32.mrf.mxu0  ;;  %v2371_v22 = vld [vmem:[%s5989_s3 + $0xc8] sm:$0xff] }
 0x237   :  { %v3403_v5 = vpop.eup %3402  ;;  %v2035_v45 = vsel %vm2034_vm5, %v2032_v59, %v2029_v25  ;;  %v965_v33 = vadd.f32 1.0, %v3401_v18  ;;  %v2039_v34 = vmul.f32 -0.5, %v5635_v58  ;;  %v732_v13 = vadd.f32 %v731_v3, %v3880_v9 }
 0x238   :  { %v3405_v52 = vpop.eup %3404  ;;  %2593 = vst [vmem:[%s5990_s4 + $0x1b8] sm:$0xff] %v2529_v27  ;;  %3418 = vpow2.f32 %v2268_v36  ;;  %v2147_v12 = vsub.f32 %v1251_v6, %v2035_v45  ;;  %v997_v44 = vadd.f32 1.0, %v3403_v5  ;;  %v1442_v63 = vmul.f32 1.442695, %v1350_v39 }
 0x239   :  { %v3407_v50 = vpop.eup %3406  ;;  %3420 = vlog2.f32 %v2036_v19  ;;  %v966_v42 = vadd.f32 1.0, %v3405_v52  ;;  %v2042_v51 = vand.u32 2147483647, %v5635_v58  ;;  %v1382_v6 = vsub.f32 0.0, %v1318_v11  ;;  %v735_v52 = vpop.f32.mrf.mxu1 }
 0x23a   :  { %v2211_v60 = vmul.f32 0.5, %v2147_v12  ;;  %2723 = vst [vmem:[%s5988_s6 + $0x1c8] sm:$0xff] %v2147_v12  ;;  %3422 = vrcp.f32 %v965_v33  ;;  %v998_v26 = vadd.f32 1.0, %v3407_v50  ;;  %v5659_v17 = vpop.eup %3408  ;;  %v2040_v2 = vadd.f32 1.0, %v2039_v34 }
 0x23b   :  { %3424 = vrcp.f32 %v997_v44  ;;  %v1757_v24 = vadd.f32 1.0, %v5659_v17  ;;  %v2869_v16 = vmul.f32 -1.442695, %v730_v62  ;;  %v5671_v4 = vadd.f32 1e-08, %v540_v38 }
 0x23c   :  { %v2332_v29 = vmul.f32 1.442695, %v2211_v60  ;;  %3426 = vrcp.f32 %v966_v42  ;;  %v1506_v59 = vmul.f32 1.442695, %v1382_v6  ;;  %v5679_v36 = vadd.f32 1e-08, %v732_v13 }
 0x23d   :  { %v3411_v21 = vpop.eup %3410  ;;  %3428 = vrcp.f32 %v998_v26  ;;  %v544_v5 = vadd.f32 %v543_v28, %v3878_v8  ;;  %v1252_v23 = vmin.f32 %v5495_v7, 0.0  ;;  %vm5696_vm7 = vcmp.lt.f32.partialorder %v2042_v51, 0.0004427343 }
 0x23e   :  { %3430 = vpow2.f32 %v2332_v29  ;;  %v1750_v54 = vmul.f32 0.6931472, %v3411_v21  ;;  %v3413_v41 = vpop.eup %3412  ;;  %v1760_v44 = vmul.f32 -0.5, %v5659_v17  ;;  %v1319_v39 = vand.u32 2147483647, %v5679_v36  ;;  %v2403_v21 = vld [vmem:[%s5989_s3 + $0x1c8] sm:$0xff] }
 0x23f   :  { %3432 = vlog2.f32 %v1757_v24  ;;  %v3415_v56 = vpop.eup %3414  ;;  %v2434_v55 = vmul.f32 %v3413_v41, %v2370_v10  ;;  %v1763_v1 = vand.u32 2147483647, %v5659_v17  ;;  %v2838_v32 = vmul.f32 -1.442695, %v544_v5 }
 0x240   :  { %v1756_v25 = vsel %vm5647_vm6, %v1753_v35, %v1750_v54  ;;  %3434 = vpow2.f32 %v1442_v63  ;;  %v5675_v37 = vpop.eup %3416  ;;  %v2466_v18 = vmul.f32 %v3415_v56, %v2402_v40  ;;  %v1383_v62 = vsub.f32 0.0, %v1319_v39  ;;  %v737_v35 = vpop.f32.mrf.mxu1 }
 0x241   :  { %v2116_v27 = vsub.f32 %v1220_v53, %v1756_v25  ;;  %3436 = vpow2.f32 %v2837_v46  ;;  %v2498_v19 = vadd.f32 %v5461_v49, %v2434_v55  ;;  %v2045_v61 = vadd.f32 1.0, %v5675_v37 }
 0x242   :  { %v2530_v45 = vadd.f32 %v5511_v15, %v2466_v18  ;;  %3438 = vpow2.f32 %v1506_v59  ;;  %v2041_v49 = vmul.f32 %v5635_v58, %v2040_v2  ;;  %v1287_v53 = vand.u32 2147483647, %v5671_v4  ;;  %v545_v58 = vpop.f32.mrf.mxu0 }
 0x243   :  { %v2180_v33 = vmul.f32 0.5, %v2116_v27  ;;  %2692 = vst [vmem:[%s5988_s6 + $0xd0] sm:$0xff] %v2116_v27  ;;  %2562 = vst [vmem:[%s5990_s4 + $0xc0] sm:$0xff] %v2498_v19  ;;  %3440 = vlog2.f32 %v2045_v61  ;;  %v736_v3 = vadd.f32 %v735_v52, %v3878_v8  ;;  %v546_v29 = vadd.f32 %v545_v58, %v3880_v9  ;;  %v2372_v58 = vld [vmem:[%s5989_s3 + $0xd0] sm:$0xff] }
 0x244   :  { %2594 = vst [vmem:[%s5990_s4 + $0x1c0] sm:$0xff] %v2530_v45  ;;  %3442 = vpow2.f32 %v2869_v16  ;;  %v1351_v42 = vsub.f32 0.0, %v1287_v53  ;;  %v1508_v24 = vmul.f32 1.442695, %v1383_v62  ;;  %v2048_v54 = vmul.f32 -0.5, %v5675_v37 }
 0x245   :  { %v3419_v12 = vpop.eup %3418  ;;  %v2270_v7 = vmul.f32 1.442695, %v2180_v33  ;;  %v2870_v46 = vmul.f32 -1.442695, %v736_v3  ;;  %v5739_v51 = vadd.f32 1e-08, %v546_v29  ;;  %v738_v2 = vadd.f32 %v737_v35, %v3880_v9 }
 0x246   :  { %v3421_v57 = vpop.eup %3420  ;;  %v2435_v50 = vmul.f32 %v3419_v12, %v2371_v22  ;;  %v1444_v38 = vmul.f32 1.442695, %v1351_v42  ;;  %v1221_v41 = vmin.f32 %v5559_v0, 0.0  ;;  %vm5750_vm8 = vcmp.lt.f32.partialorder %v1763_v1, 0.0004427343 }
 0x247   :  { %v5707_v60 = vpop.eup %3422  ;;  %3444 = vpow2.f32 %v2270_v7  ;;  %v2038_v26 = vmul.f32 0.6931472, %v3421_v57  ;;  %v2051_v18 = vand.u32 2147483647, %v5675_v37  ;;  %v1288_v27 = vand.u32 2147483647, %v5739_v51  ;;  %v549_v7 = vpop.f32.mrf.mxu0 }
 0x248   :  { %v5710_v34 = vpop.eup %3424  ;;  %v2499_v11 = vadd.f32 %v5568_v31, %v2435_v50  ;;  %2629 = vst [vmem:[%s5987_s5 + $0xd8] sm:$0xff] %v5707_v60  ;;  %3446 = vpow2.f32 %v2838_v32  ;;  %v1761_v31 = vadd.f32 1.0, %v1760_v44  ;;  %v2049_v45 = vadd.f32 1.0, %v2048_v54  ;;  %v741_v44 = vpop.f32.mrf.mxu1 }
 0x249   :  { %v5718_v63 = vpop.eup %3426  ;;  %v2044_v10 = vsel %vm5696_vm7, %v2041_v49, %v2038_v26  ;;  %2661 = vst [vmem:[%s5987_s5 + $0x1d8] sm:$0xff] %v5710_v34  ;;  %3448 = vpow2.f32 %v1444_v38  ;;  %v5763_v49 = vadd.f32 1e-08, %v738_v2  ;;  %v1253_v52 = vmin.f32 %v5561_v14, 0.0 }
 0x24a   :  { %v5729_v13 = vpop.eup %3428  ;;  %2563 = vst [vmem:[%s5990_s4 + $0xc8] sm:$0xff] %v2499_v11  ;;  %v2148_v40 = vsub.f32 %v1252_v23, %v2044_v10  ;;  %2630 = vst [vmem:[%s5987_s5 + $0xe0] sm:$0xff] %v5718_v63  ;;  %3450 = vpow2.f32 %v1508_v24  ;;  %v1762_v59 = vmul.f32 %v5659_v17, %v1761_v31  ;;  %v1352_v23 = vsub.f32 0.0, %v1288_v27  ;;  %v743_v10 = vpop.f32.mrf.mxu1 }
 0x24b   :  { %v3431_v6 = vpop.eup %3430  ;;  %2662 = vst [vmem:[%s5987_s5 + $0x1e0] sm:$0xff] %v5729_v13  ;;  %3452 = vpow2.f32 %v2870_v46  ;;  %v2050_v1 = vmul.f32 %v5675_v37, %v2049_v45  ;;  %vm2052_vm9 = vcmp.lt.f32.partialorder %v2051_v18, 0.0004427343  ;;  %v1320_v32 = vand.u32 2147483647, %v5763_v49 }
 0x24c   :  { %v3433_v16 = vpop.eup %3432  ;;  %v2467_v28 = vmul.f32 %v3431_v6, %v2403_v21  ;;  %v2212_v56 = vmul.f32 0.5, %v2148_v40  ;;  %2724 = vst [vmem:[%s5988_s6 + $0x1d0] sm:$0xff] %v2148_v40  ;;  %v1446_v42 = vmul.f32 1.442695, %v1352_v23  ;;  %v551_v21 = vpop.f32.mrf.mxu0  ;;  %v550_v31 = vadd.f32 %v549_v7, %v3878_v8 }
 0x24d   :  { %v5754_v0 = vpop.eup %3434  ;;  %v1759_v25 = vmul.f32 0.6931472, %v3433_v16  ;;  %v742_v24 = vadd.f32 %v741_v44, %v3878_v8  ;;  %v1384_v6 = vsub.f32 0.0, %v1320_v32  ;;  %v552_v16 = vadd.f32 %v551_v21, %v3880_v9 }
 0x24e   :  { %v3437_v19 = vpop.eup %3436  ;;  %v2531_v61 = vadd.f32 %v5579_v48, %v2467_v28  ;;  %v2334_v5 = vmul.f32 1.442695, %v2212_v56  ;;  %v1766_v22 = vadd.f32 1.0, %v5754_v0  ;;  %v1769_v35 = vmul.f32 -0.5, %v5754_v0 }
 0x24f   :  { %v1765_v33 = vsel %vm5750_vm8, %v1762_v59, %v1759_v25  ;;  %v5765_v15 = vpop.eup %3438  ;;  %v967_v53 = vadd.f32 1.0, %v3437_v19  ;;  %v744_v8 = vadd.f32 %v743_v10, %v3880_v9  ;;  %v2404_v59 = vld [vmem:[%s5989_s3 + $0x1d0] sm:$0xff]  ;;  %v1222_v18 = vmin.f32 %v5619_v47, 0.0 }
 0x250   :  { %2595 = vst [vmem:[%s5990_s4 + $0x1c8] sm:$0xff] %v2531_v61  ;;  %3454 = vpow2.f32 %v2334_v5  ;;  %v2117_v17 = vsub.f32 %v1221_v41, %v1765_v33  ;;  %v3441_v48 = vpop.eup %3440  ;;  %v2054_v12 = vadd.f32 1.0, %v5765_v15  ;;  %v1770_v56 = vadd.f32 1.0, %v1769_v35 }
 0x251   :  { %3456 = vlog2.f32 %v1766_v22  ;;  %v3443_v39 = vpop.eup %3442  ;;  %v2047_v50 = vmul.f32 0.6931472, %v3441_v48  ;;  %v2057_v55 = vmul.f32 -0.5, %v5765_v15  ;;  %v1772_v9 = vand.u32 2147483647, %v5754_v0 }
 0x252   :  { %v2181_v57 = vmul.f32 0.5, %v2117_v17  ;;  %2693 = vst [vmem:[%s5988_s6 + $0xd8] sm:$0xff] %v2117_v17  ;;  %3458 = vlog2.f32 %v2054_v12  ;;  %v999_v14 = vadd.f32 1.0, %v3443_v39  ;;  %v1510_v19 = vmul.f32 1.442695, %v1384_v6  ;;  %v2405_v6 = vld [vmem:[%s5989_s3 + $0x1d8] sm:$0xff] }
 0x253   :  { %v2053_v3 = vsel %vm2052_vm9, %v2050_v1, %v2047_v50  ;;  %3460 = vrcp.f32 %v967_v53  ;;  %v2839_v61 = vmul.f32 -1.442695, %v550_v31  ;;  %v2871_v5 = vmul.f32 -1.442695, %v742_v24  ;;  %v2373_v50 = vld [vmem:[%s5989_s3 + $0xd8] sm:$0xff] }
 0x254   :  { %v3445_v26 = vpop.eup %3444  ;;  %v2272_v62 = vmul.f32 1.442695, %v2181_v57  ;;  %v2149_v29 = vsub.f32 %v1253_v52, %v2053_v3  ;;  %3462 = vrcp.f32 %v999_v14  ;;  %v5804_v45 = vadd.f32 1e-08, %v552_v16 }
 0x255   :  { %v3447_v11 = vpop.eup %3446  ;;  %v2436_v38 = vmul.f32 %v3445_v26, %v2372_v58  ;;  %v5806_v22 = vadd.f32 1e-08, %v744_v8  ;;  %v1771_v23 = vmul.f32 %v5754_v0, %v1770_v56  ;;  %v1254_v17 = vmin.f32 %v5642_v43, 0.0 }
 0x256   :  { %3464 = vpow2.f32 %v2272_v62  ;;  %v968_v37 = vadd.f32 1.0, %v3447_v11  ;;  %v5783_v46 = vpop.eup %3448  ;;  %v2213_v54 = vmul.f32 0.5, %v2149_v29  ;;  %2725 = vst [vmem:[%s5988_s6 + $0x1d8] sm:$0xff] %v2149_v29  ;;  %v2058_v53 = vadd.f32 1.0, %v2057_v55 }
 0x257   :  { %v2500_v40 = vadd.f32 %v5607_v30, %v2436_v38  ;;  %3466 = vpow2.f32 %v1446_v42  ;;  %v5789_v41 = vpop.eup %3450  ;;  %v1775_v2 = vadd.f32 1.0, %v5783_v46  ;;  %v2060_v52 = vand.u32 2147483647, %v5765_v15 }
 0x258   :  { %3468 = vrcp.f32 %v968_v37  ;;  %v3453_v28 = vpop.eup %3452  ;;  %v2336_v30 = vmul.f32 1.442695, %v2213_v54  ;;  %v2063_v25 = vadd.f32 1.0, %v5789_v41  ;;  %v1289_v12 = vand.u32 2147483647, %v5804_v45 }
 0x259   :  { %2564 = vst [vmem:[%s5990_s4 + $0xd0] sm:$0xff] %v2500_v40  ;;  %3470 = vlog2.f32 %v1775_v2  ;;  %v1000_v27 = vadd.f32 1.0, %v3453_v28  ;;  %v1778_v44 = vmul.f32 -0.5, %v5783_v46  ;;  %v1321_v39 = vand.u32 2147483647, %v5806_v22 }
 0x25a   :  { %3472 = vpow2.f32 %v2336_v30  ;;  %vm1773_vm10 = vcmp.lt.f32.partialorder %v1772_v9, 0.0004427343  ;;  %v1353_v43 = vsub.f32 0.0, %v1289_v12  ;;  %v2059_v42 = vmul.f32 %v5765_v15, %v2058_v53 }
 0x25b   :  { %3474 = vlog2.f32 %v2063_v25  ;;  %v1385_v32 = vsub.f32 0.0, %v1321_v39  ;;  %vm2061_vm11 = vcmp.lt.f32.partialorder %v2060_v52, 0.0004427343  ;;  %v2066_v62 = vmul.f32 -0.5, %v5789_v41 }
 0x25c   :  { %3476 = vrcp.f32 %v1000_v27  ;;  %v1448_v3 = vmul.f32 1.442695, %v1353_v43  ;;  %v1779_v15 = vadd.f32 1.0, %v1778_v44  ;;  %v1781_v24 = vand.u32 2147483647, %v5783_v46 }
 0x25d   :  { %v3455_v33 = vpop.eup %3454  ;;  %3478 = vpow2.f32 %v1510_v19  ;;  %v1512_v29 = vmul.f32 1.442695, %v1385_v32  ;;  %v2067_v8 = vadd.f32 1.0, %v2066_v62  ;;  %v2069_v30 = vand.u32 2147483647, %v5789_v41 }
 0x25e   :  { %v3457_v47 = vpop.eup %3456  ;;  %v2468_v48 = vmul.f32 %v3455_v33, %v2404_v59  ;;  %3480 = vpow2.f32 %v2839_v61  ;;  %v1780_v25 = vmul.f32 %v5783_v46, %v1779_v15  ;;  %v1223_v27 = vmin.f32 %v5671_v4, 0.0 }
 0x25f   :  { %v1768_v7 = vmul.f32 0.6931472, %v3457_v47  ;;  %v3459_v58 = vpop.eup %3458  ;;  %3482 = vpow2.f32 %v2871_v5  ;;  %vm1782_vm12 = vcmp.lt.f32.partialorder %v1781_v24, 0.0004427343  ;;  %v2068_v5 = vmul.f32 %v5789_v41, %v2067_v8 }
 0x260   :  { %v2532_v0 = vadd.f32 %v5621_v20, %v2468_v48  ;;  %v5815_v57 = vpop.eup %3460  ;;  %v2056_v14 = vmul.f32 0.6931472, %v3459_v58  ;;  %3484 = vpow2.f32 %v1448_v3  ;;  %v1255_v53 = vmin.f32 %v5679_v36, 0.0  ;;  %v2406_v3 = vld [vmem:[%s5989_s3 + $0x1e0] sm:$0xff] }
 0x261   :  { %v1774_v1 = vsel %vm1773_vm10, %v1771_v23, %v1768_v7  ;;  %v5821_v26 = vpop.eup %3462  ;;  %2631 = vst [vmem:[%s5987_s5 + $0xe8] sm:$0xff] %v5815_v57  ;;  %3486 = vpow2.f32 %v1512_v29  ;;  %vm2070_vm13 = vcmp.lt.f32.partialorder %v2069_v30, 0.0004427343  ;;  %v1224_v29 = vmin.f32 %v5739_v51, 0.0 }
 0x262   :  { %2596 = vst [vmem:[%s5990_s4 + $0x1d0] sm:$0xff] %v2532_v0  ;;  %v2118_v20 = vsub.f32 %v1222_v18, %v1774_v1  ;;  %v2062_v38 = vsel %vm2061_vm11, %v2059_v42, %v2056_v14  ;;  %2663 = vst [vmem:[%s5987_s5 + $0x1e8] sm:$0xff] %v5821_v26  ;;  %v2374_v14 = vld [vmem:[%s5989_s3 + $0xe0] sm:$0xff] }
 0x263   :  { %v3465_v11 = vpop.eup %3464  ;;  %v2150_v37 = vsub.f32 %v1254_v17, %v2062_v38 }
 0x264   :  { %v5835_v35 = vpop.eup %3466  ;;  %v2437_v21 = vmul.f32 %v3465_v11, %v2373_v50  ;;  %v2182_v10 = vmul.f32 0.5, %v2118_v20  ;;  %2694 = vst [vmem:[%s5988_s6 + $0xe0] sm:$0xff] %v2118_v20 }
 0x265   :  { %v5840_v31 = vpop.eup %3468  ;;  %v1784_v40 = vadd.f32 1.0, %v5835_v35  ;;  %v2214_v16 = vmul.f32 0.5, %v2150_v37  ;;  %2726 = vst [vmem:[%s5988_s6 + $0x1e0] sm:$0xff] %v2150_v37  ;;  %v1790_v50 = vand.u32 2147483647, %v5835_v35 }
 0x266   :  { %v2501_v54 = vadd.f32 %v5707_v60, %v2437_v21  ;;  %v2274_v2 = vmul.f32 1.442695, %v2182_v10  ;;  %2632 = vst [vmem:[%s5987_s5 + $0xf0] sm:$0xff] %v5840_v31  ;;  %v3471_v28 = vpop.eup %3470 }
 0x267   :  { %3488 = vlog2.f32 %v1784_v40  ;;  %v3473_v60 = vpop.eup %3472  ;;  %v2338_v56 = vmul.f32 1.442695, %v2214_v16  ;;  %v1777_v55 = vmul.f32 0.6931472, %v3471_v28  ;;  %vm1791_vm14 = vcmp.lt.f32.partialorder %v1790_v50, 0.0004427343 }
 0x268   :  { %2565 = vst [vmem:[%s5990_s4 + $0xd8] sm:$0xff] %v2501_v54  ;;  %3490 = vpow2.f32 %v2274_v2  ;;  %v3475_v59 = vpop.eup %3474  ;;  %v2469_v18 = vmul.f32 %v3473_v60, %v2405_v6 }
 0x269   :  { %v5861_v9 = vpop.eup %3476  ;;  %3492 = vpow2.f32 %v2338_v56  ;;  %v1783_v19 = vsel %vm1782_vm12, %v1780_v25, %v1777_v55  ;;  %v2065_v61 = vmul.f32 0.6931472, %v3475_v59  ;;  %v1256_v55 = vmin.f32 %v5763_v49, 0.0  ;;  %v2407_v59 = vld [vmem:[%s5989_s3 + $0x1e8] sm:$0xff] }
 0x26a   :  { %v5864_v33 = vpop.eup %3478  ;;  %v2533_v23 = vadd.f32 %v5710_v34, %v2469_v18  ;;  %v2119_v17 = vsub.f32 %v1223_v27, %v1783_v19  ;;  %2664 = vst [vmem:[%s5987_s5 + $0x1f0] sm:$0xff] %v5861_v9  ;;  %v1787_v34 = vmul.f32 -0.5, %v5835_v35 }
 0x26b   :  { %v3481_v4 = vpop.eup %3480  ;;  %v2071_v46 = vsel %vm2070_vm13, %v2068_v5, %v2065_v61  ;;  %v2072_v47 = vadd.f32 1.0, %v5864_v33  ;;  %v2075_v20 = vmul.f32 -0.5, %v5864_v33  ;;  %v2078_v6 = vand.u32 2147483647, %v5864_v33 }
 0x26c   :  { %v3483_v48 = vpop.eup %3482  ;;  %2597 = vst [vmem:[%s5990_s4 + $0x1d8] sm:$0xff] %v2533_v23  ;;  %v2183_v41 = vmul.f32 0.5, %v2119_v17  ;;  %2695 = vst [vmem:[%s5988_s6 + $0xe8] sm:$0xff] %v2119_v17  ;;  %v2151_v36 = vsub.f32 %v1255_v53, %v2071_v46  ;;  %v969_v52 = vadd.f32 1.0, %v3481_v4  ;;  %v1788_v0 = vadd.f32 1.0, %v1787_v34 }
 0x26d   :  { %3494 = vlog2.f32 %v2072_v47  ;;  %v1001_v12 = vadd.f32 1.0, %v3483_v48  ;;  %v5883_v39 = vpop.eup %3484  ;;  %v2076_v54 = vadd.f32 1.0, %v2075_v20  ;;  %vm2079_vm15 = vcmp.lt.f32.partialorder %v2078_v6, 0.0004427343 }
 0x26e   :  { %v2276_v7 = vmul.f32 1.442695, %v2183_v41  ;;  %v2215_v44 = vmul.f32 0.5, %v2151_v36  ;;  %2727 = vst [vmem:[%s5988_s6 + $0x1e8] sm:$0xff] %v2151_v36  ;;  %3496 = vrcp.f32 %v969_v52  ;;  %v5885_v43 = vpop.eup %3486  ;;  %v1793_v1 = vadd.f32 1.0, %v5883_v39 }
 0x26f   :  { %3498 = vrcp.f32 %v1001_v12  ;;  %v2081_v42 = vadd.f32 1.0, %v5885_v43  ;;  %v1789_v38 = vmul.f32 %v5835_v35, %v1788_v0  ;;  %v1796_v51 = vmul.f32 -0.5, %v5883_v39 }
 0x270   :  { %3500 = vpow2.f32 %v2276_v7  ;;  %v2340_v58 = vmul.f32 1.442695, %v2215_v44  ;;  %v2077_v60 = vmul.f32 %v5864_v33, %v2076_v54  ;;  %v1799_v49 = vand.u32 2147483647, %v5883_v39 }
 0x271   :  { %v1797_v27 = vadd.f32 1.0, %v1796_v51  ;;  %v2087_v23 = vand.u32 2147483647, %v5885_v43  ;;  %v1225_v48 = vmin.f32 %v5804_v45, 0.0  ;;  %v1257_v44 = vmin.f32 %v5806_v22, 0.0  ;;  %v2376_v22 = vld [vmem:[%s5989_s3 + $0xf0] sm:$0xff] }
 0x272   :  { %3502 = vpow2.f32 %v2340_v58  ;;  %vm1800_vm0 = vcmp.lt.f32.partialorder %v1799_v49, 0.0004427343 }
 0x273   :  { %3504 = vlog2.f32 %v1793_v1  ;;  %v1798_v36 = vmul.f32 %v5883_v39, %v1797_v27  ;;  %vm2088_vm1 = vcmp.lt.f32.partialorder %v2087_v23, 0.0004427343 }
 0x274   :  { %v3489_v32 = vpop.eup %3488  ;;  %3506 = vlog2.f32 %v2081_v42 }
 0x275   :  { %v3491_v62 = vpop.eup %3490  ;;  %v1786_v11 = vmul.f32 0.6931472, %v3489_v32  ;;  %v2408_v32 = vld [vmem:[%s5989_s3 + $0x1f0] sm:$0xff] }
 0x276   :  { %v2438_v15 = vmul.f32 %v3491_v62, %v2374_v14  ;;  %v3493_v21 = vpop.eup %3492 }
 0x277   :  { %v1792_v10 = vsel %vm1791_vm14, %v1789_v38, %v1786_v11  ;;  %v2470_v24 = vmul.f32 %v3493_v21, %v2406_v3  ;;  %v2377_v11 = vld [vmem:[%s5989_s3 + $0xf8] sm:$0xff] }
 0x278   :  { %v2502_v37 = vadd.f32 %v5718_v63, %v2438_v15  ;;  %v2120_v40 = vsub.f32 %v1224_v29, %v1792_v10  ;;  %v2084_v63 = vmul.f32 -0.5, %v5885_v43 }
 0x279   :  { %v2534_v35 = vadd.f32 %v5729_v13, %v2470_v24  ;;  %v2375_v13 = vld [vmem:[%s5989_s3 + $0xe8] sm:$0xff] }
 0x27a   :  { %2566 = vst [vmem:[%s5990_s4 + $0xe0] sm:$0xff] %v2502_v37  ;;  %v2184_v2 = vmul.f32 0.5, %v2120_v40  ;;  %2696 = vst [vmem:[%s5988_s6 + $0xf0] sm:$0xff] %v2120_v40  ;;  %v3495_v16 = vpop.eup %3494  ;;  %v2085_v5 = vadd.f32 1.0, %v2084_v63 }
 0x27b   :  { %v5910_v8 = vpop.eup %3496  ;;  %2598 = vst [vmem:[%s5990_s4 + $0x1e0] sm:$0xff] %v2534_v35  ;;  %v2074_v30 = vmul.f32 0.6931472, %v3495_v16 }
 0x27c   :  { %v2278_v28 = vmul.f32 1.442695, %v2184_v2  ;;  %v5919_v56 = vpop.eup %3498  ;;  %2633 = vst [vmem:[%s5987_s5 + $0xf8] sm:$0xff] %v5910_v8  ;;  %v2086_v12 = vmul.f32 %v5885_v43, %v2085_v5 }
 0x27d   :  { %v3501_v25 = vpop.eup %3500  ;;  %v2080_v18 = vsel %vm2079_vm15, %v2077_v60, %v2074_v30  ;;  %2665 = vst [vmem:[%s5987_s5 + $0x1f8] sm:$0xff] %v5919_v56 }
 0x27e   :  { %3508 = vpow2.f32 %v2278_v28  ;;  %v2439_v19 = vmul.f32 %v3501_v25, %v2375_v13  ;;  %v2152_v61 = vsub.f32 %v1256_v55, %v2080_v18 }
 0x27f   :  { %v3503_v33 = vpop.eup %3502 }
 0x280   :  { %v3505_v17 = vpop.eup %3504  ;;  %v2503_v53 = vadd.f32 %v5815_v57, %v2439_v19  ;;  %v2471_v4 = vmul.f32 %v3503_v33, %v2407_v59  ;;  %v2216_v46 = vmul.f32 0.5, %v2152_v61  ;;  %2728 = vst [vmem:[%s5988_s6 + $0x1f0] sm:$0xff] %v2152_v61 }
 0x281   :  { %v3507_v47 = vpop.eup %3506  ;;  %v1795_v41 = vmul.f32 0.6931472, %v3505_v17 }
 0x282   :  { %2567 = vst [vmem:[%s5990_s4 + $0xe8] sm:$0xff] %v2503_v53  ;;  %v2535_v34 = vadd.f32 %v5821_v26, %v2471_v4  ;;  %v2342_v57 = vmul.f32 1.442695, %v2216_v46  ;;  %v2083_v52 = vmul.f32 0.6931472, %v3507_v47 }
 0x283   :  { %v1801_v7 = vsel %vm1800_vm0, %v1798_v36, %v1795_v41 }
 0x284   :  { %2599 = vst [vmem:[%s5990_s4 + $0x1e8] sm:$0xff] %v2535_v34  ;;  %3510 = vpow2.f32 %v2342_v57  ;;  %v2121_v45 = vsub.f32 %v1225_v48, %v1801_v7  ;;  %v2089_v39 = vsel %vm2088_vm1, %v2086_v12, %v2083_v52 }
 0x285   :  { %v2153_v58 = vsub.f32 %v1257_v44, %v2089_v39 }
 0x286   :  { %v2185_v0 = vmul.f32 0.5, %v2121_v45  ;;  %2697 = vst [vmem:[%s5988_s6 + $0xf8] sm:$0xff] %v2121_v45 }
 0x287   :  { %v2217_v26 = vmul.f32 0.5, %v2153_v58  ;;  %2729 = vst [vmem:[%s5988_s6 + $0x1f8] sm:$0xff] %v2153_v58 }
 0x288   :  { %v2280_v43 = vmul.f32 1.442695, %v2185_v0 }
 0x289   :  { %v2344_v50 = vmul.f32 1.442695, %v2217_v26 }
 0x28a   :  { %3512 = vpow2.f32 %v2280_v43 }
 0x28b   :  { %v3509_v1 = vpop.eup %3508  ;;  %3514 = vpow2.f32 %v2344_v50 }
 0x28c   :  { %v2440_v14 = vmul.f32 %v3509_v1, %v2376_v22 }
 0x28e   :  { %v2504_v42 = vadd.f32 %v5840_v31, %v2440_v14  ;;  %v2409_v31 = vld [vmem:[%s5989_s3 + $0x1f8] sm:$0xff] }
 0x290   :  { %2568 = vst [vmem:[%s5990_s4 + $0xf0] sm:$0xff] %v2504_v42 }
 0x291   :  { %v3511_v20 = vpop.eup %3510 }
 0x292   :  { %v2472_v62 = vmul.f32 %v3511_v20, %v2408_v32 }
 0x294   :  { %v2536_v3 = vadd.f32 %v5861_v9, %v2472_v62 }
 0x296   :  { %2600 = vst [vmem:[%s5990_s4 + $0x1f0] sm:$0xff] %v2536_v3 }
 0x297   :  { %v3513_v38 = vpop.eup %3512 }
 0x298   :  { %v3515_v15 = vpop.eup %3514  ;;  %v2441_v29 = vmul.f32 %v3513_v38, %v2377_v11 }
 0x299   :  { %v2473_v21 = vmul.f32 %v3515_v15, %v2409_v31 }
 0x29a   :  { %v2505_v10 = vadd.f32 %v5910_v8, %v2441_v29 }
 0x29b   :  { %v2537_v9 = vadd.f32 %v5919_v56, %v2473_v21 }
 0x29c   :  { %2569 = vst [vmem:[%s5990_s4 + $0xf8] sm:$0xff] %v2505_v10 }
 0x29d   :  { %2601 = vst [vmem:[%s5990_s4 + $0x1f8] sm:$0xff] %v2537_v9 }

// kernel: shape_prior_vae_forward.18
= control target key start
LH: loop header
LB: loop body
LE: loop exit
PB: predicated region body
PF: predicated region fallthrough
CT: control target
= control target key end

     0   :  { %vm287_vm0 = vcmask 1043456   ;;  %vm94_vm1 = vcmask 818176   ;;  %s3733_s1 = inlined_call_operand.vmem [shape: f32[100,128], index: 1, kind: input, shape index: {}]   ;;  %s3734_s0 = inlined_call_operand.vmem [shape: f32[512,100], index: 0, kind: input, shape index: {}]   ;;  %s3735_s2 = inlined_call_operand.vmem [shape: f32[1,128], index: 2, kind: input, shape index: {}]   ;;  %s3736_s3 = inlined_call_operand.vmem [shape: f32[1,128], index: 3, kind: input, shape index: {}]   ;;  %s3737_s4 = inlined_call_operand.vmem [shape: f32[512,128], index: 4, kind: output, shape index: {}]  }
   0x1   :  { %v93_v0 = vld [vmem:[%s3733_s1 + $0x60] sm:$0xf]  ;;  %v92_v1 = vld [vmem:[%s3733_s1 + $0x58] sm:$0xff]  ;;  %v91_v2 = vld [vmem:[%s3733_s1 + $0x50] sm:$0xff] }
   0x2   :  { %1493 = vmatprep.subr.msk.mxu0 %vm287_vm0, %v93_v0  ;;  %1615 = vmatprep.subr.msk.mxu1 %vm287_vm0, %v93_v0  ;;  %v90_v3 = vld [vmem:[%s3733_s1 + $0x48] sm:$0xff]  ;;  %v17_v4 = vld [vmem:[%s3734_s0] sm:$0xff]  ;;  %v88_v6 = vld [vmem:[%s3733_s1 + $0x38] sm:$0xff] }
   0x3   :  { %1494 = vmatpush3.msk.msra.mxu0 %vm287_vm0, %v93_v0  ;;  %1628 = vmatpush3.msk.msra.mxu1 %vm287_vm0, %v93_v0  ;;  %v89_v5 = vld [vmem:[%s3733_s1 + $0x40] sm:$0xff]  ;;  %v87_v7 = vld [vmem:[%s3733_s1 + $0x30] sm:$0xff]  ;;  %v86_v8 = vld [vmem:[%s3733_s1 + $0x28] sm:$0xff] }
   0x4   :  { %1495 = vmatprep.subr.mxu0 %v92_v1  ;;  %1616 = vmatprep.subr.mxu1 %v92_v1  ;;  %v85_v9 = vld [vmem:[%s3733_s1 + $0x20] sm:$0xff]  ;;  %v84_v10 = vld [vmem:[%s3733_s1 + $0x18] sm:$0xff]  ;;  %v83_v11 = vld [vmem:[%s3733_s1 + $0x10] sm:$0xff] }
   0x5   :  { %1496 = vmatpush3.msra.mxu0 %v92_v1  ;;  %1629 = vmatpush3.msra.mxu1 %v92_v1  ;;  %v82_v12 = vld [vmem:[%s3733_s1 + $0x8] sm:$0xff]  ;;  %v81_v13 = vld [vmem:[%s3733_s1] sm:$0xff]  ;;  %v19_v15 = vld [vmem:[%s3734_s0 + $0x10] sm:$0xff] }
   0x6   :  { %1497 = vmatprep.subr.mxu0 %v91_v2  ;;  %1519 = vmatprep.mubr.msk.f32.mxu0 %vm94_vm1, %v17_v4  ;;  %v18_v14 = vld [vmem:[%s3734_s0 + $0x8] sm:$0xff]  ;;  %v49_v16 = vld [vmem:[%s3734_s0 + $0x100] sm:$0xff]  ;;  %v51_v18 = vld [vmem:[%s3734_s0 + $0x110] sm:$0xff] }
   0x7   :  { %1498 = vmatpush3.msra.mxu0 %v91_v2  ;;  %1617 = vmatprep.subr.mxu1 %v91_v2  ;;  %v50_v17 = vld [vmem:[%s3734_s0 + $0x108] sm:$0xff]  ;;  %v20_v19 = vld [vmem:[%s3734_s0 + $0x18] sm:$0xff]  ;;  %v21_v20 = vld [vmem:[%s3734_s0 + $0x20] sm:$0xff] }
   0x8   :  { %1499 = vmatprep.subr.mxu0 %v90_v3  ;;  %1630 = vmatpush3.msra.mxu1 %v91_v2  ;;  %v52_v21 = vld [vmem:[%s3734_s0 + $0x118] sm:$0xff]  ;;  %v53_v22 = vld [vmem:[%s3734_s0 + $0x120] sm:$0xff]  ;;  %v22_v23 = vld [vmem:[%s3734_s0 + $0x28] sm:$0xff] }
   0x9   :  { %1500 = vmatpush3.msra.mxu0 %v90_v3  ;;  %1618 = vmatprep.subr.mxu1 %v90_v3  ;;  %v23_v24 = vld [vmem:[%s3734_s0 + $0x30] sm:$0xff]  ;;  %v54_v25 = vld [vmem:[%s3734_s0 + $0x128] sm:$0xff]  ;;  %v24_v27 = vld [vmem:[%s3734_s0 + $0x38] sm:$0xff] }
   0xa   :  { %1501 = vmatprep.subr.mxu0 %v89_v5  ;;  %1631 = vmatpush3.msra.mxu1 %v90_v3  ;;  %v55_v26 = vld [vmem:[%s3734_s0 + $0x130] sm:$0xff]  ;;  %v25_v28 = vld [vmem:[%s3734_s0 + $0x40] sm:$0xff]  ;;  %v56_v29 = vld [vmem:[%s3734_s0 + $0x138] sm:$0xff] }
   0xb   :  { %1502 = vmatpush3.msra.mxu0 %v89_v5  ;;  %1619 = vmatprep.subr.mxu1 %v89_v5  ;;  %v57_v30 = vld [vmem:[%s3734_s0 + $0x140] sm:$0xff]  ;;  %v26_v31 = vld [vmem:[%s3734_s0 + $0x48] sm:$0xff]  ;;  %v27_v32 = vld [vmem:[%s3734_s0 + $0x50] sm:$0xff] }
   0xc   :  { %1503 = vmatprep.subr.mxu0 %v88_v6  ;;  %1632 = vmatpush3.msra.mxu1 %v89_v5  ;;  %v58_v33 = vld [vmem:[%s3734_s0 + $0x148] sm:$0xff]  ;;  %v59_v34 = vld [vmem:[%s3734_s0 + $0x150] sm:$0xff]  ;;  %v28_v35 = vld [vmem:[%s3734_s0 + $0x58] sm:$0xff] }
   0xd   :  { %1504 = vmatpush3.msra.mxu0 %v88_v6  ;;  %1620 = vmatprep.subr.mxu1 %v88_v6  ;;  %v29_v36 = vld [vmem:[%s3734_s0 + $0x60] sm:$0xff]  ;;  %v60_v37 = vld [vmem:[%s3734_s0 + $0x158] sm:$0xff]  ;;  %v30_v39 = vld [vmem:[%s3734_s0 + $0x68] sm:$0xff] }
   0xe   :  { %1505 = vmatprep.subr.mxu0 %v87_v7  ;;  %1633 = vmatpush3.msra.mxu1 %v88_v6  ;;  %v61_v38 = vld [vmem:[%s3734_s0 + $0x160] sm:$0xff]  ;;  %v31_v40 = vld [vmem:[%s3734_s0 + $0x70] sm:$0xff]  ;;  %v62_v41 = vld [vmem:[%s3734_s0 + $0x168] sm:$0xff] }
   0xf   :  { %1506 = vmatpush3.msra.mxu0 %v87_v7  ;;  %1621 = vmatprep.subr.mxu1 %v87_v7  ;;  %v63_v42 = vld [vmem:[%s3734_s0 + $0x170] sm:$0xff]  ;;  %v32_v43 = vld [vmem:[%s3734_s0 + $0x78] sm:$0xff]  ;;  %v33_v44 = vld [vmem:[%s3734_s0 + $0x80] sm:$0xff] }
  0x10   :  { %1507 = vmatprep.subr.mxu0 %v86_v8  ;;  %1634 = vmatpush3.msra.mxu1 %v87_v7  ;;  %v64_v45 = vld [vmem:[%s3734_s0 + $0x178] sm:$0xff]  ;;  %v65_v46 = vld [vmem:[%s3734_s0 + $0x180] sm:$0xff]  ;;  %v34_v47 = vld [vmem:[%s3734_s0 + $0x88] sm:$0xff] }
  0x11   :  { %1508 = vmatpush3.msra.mxu0 %v86_v8  ;;  %1622 = vmatprep.subr.mxu1 %v86_v8  ;;  %v35_v48 = vld [vmem:[%s3734_s0 + $0x90] sm:$0xff]  ;;  %v66_v49 = vld [vmem:[%s3734_s0 + $0x188] sm:$0xff]  ;;  %v36_v51 = vld [vmem:[%s3734_s0 + $0x98] sm:$0xff] }
  0x12   :  { %1509 = vmatprep.subr.mxu0 %v85_v9  ;;  %1635 = vmatpush3.msra.mxu1 %v86_v8  ;;  %v67_v50 = vld [vmem:[%s3734_s0 + $0x190] sm:$0xff]  ;;  %v37_v52 = vld [vmem:[%s3734_s0 + $0xa0] sm:$0xff]  ;;  %v68_v53 = vld [vmem:[%s3734_s0 + $0x198] sm:$0xff] }
  0x13   :  { %1510 = vmatpush3.msra.mxu0 %v85_v9  ;;  %1623 = vmatprep.subr.mxu1 %v85_v9  ;;  %v69_v54 = vld [vmem:[%s3734_s0 + $0x1a0] sm:$0xff]  ;;  %v38_v55 = vld [vmem:[%s3734_s0 + $0xa8] sm:$0xff]  ;;  %v39_v56 = vld [vmem:[%s3734_s0 + $0xb0] sm:$0xff] }
  0x14   :  { %1511 = vmatprep.subr.mxu0 %v84_v10  ;;  %1636 = vmatpush3.msra.mxu1 %v85_v9  ;;  %v70_v57 = vld [vmem:[%s3734_s0 + $0x1a8] sm:$0xff]  ;;  %v71_v58 = vld [vmem:[%s3734_s0 + $0x1b0] sm:$0xff]  ;;  %v40_v59 = vld [vmem:[%s3734_s0 + $0xb8] sm:$0xff] }
  0x15   :  { %1512 = vmatpush3.msra.mxu0 %v84_v10  ;;  %1624 = vmatprep.subr.mxu1 %v84_v10  ;;  %v41_v60 = vld [vmem:[%s3734_s0 + $0xc0] sm:$0xff]  ;;  %v72_v61 = vld [vmem:[%s3734_s0 + $0x1b8] sm:$0xff]  ;;  %v42_v63 = vld [vmem:[%s3734_s0 + $0xc8] sm:$0xff] }
  0x16   :  { %1513 = vmatprep.subr.mxu0 %v83_v11  ;;  %1637 = vmatpush3.msra.mxu1 %v84_v10  ;;  %v73_v62 = vld [vmem:[%s3734_s0 + $0x1c0] sm:$0xff]  ;;  %v43_v0 = vld [vmem:[%s3734_s0 + $0xd0] sm:$0xff]  ;;  %v74_v1 = vld [vmem:[%s3734_s0 + $0x1c8] sm:$0xff] }
  0x17   :  { %1514 = vmatpush3.msra.mxu0 %v83_v11  ;;  %1625 = vmatprep.subr.mxu1 %v83_v11  ;;  %v75_v2 = vld [vmem:[%s3734_s0 + $0x1d0] sm:$0xff]  ;;  %v44_v3 = vld [vmem:[%s3734_s0 + $0xd8] sm:$0xff]  ;;  %v45_v4 = vld [vmem:[%s3734_s0 + $0xe0] sm:$0xff] }
  0x18   :  { %1515 = vmatprep.subr.mxu0 %v82_v12  ;;  %1638 = vmatpush3.msra.mxu1 %v83_v11  ;;  %v76_v5 = vld [vmem:[%s3734_s0 + $0x1d8] sm:$0xff]  ;;  %v77_v6 = vld [vmem:[%s3734_s0 + $0x1e0] sm:$0xff]  ;;  %v46_v7 = vld [vmem:[%s3734_s0 + $0xe8] sm:$0xff] }
  0x19   :  { %1516 = vmatpush3.msra.mxu0 %v82_v12  ;;  %1626 = vmatprep.subr.mxu1 %v82_v12  ;;  %v47_v8 = vld [vmem:[%s3734_s0 + $0xf0] sm:$0xff]  ;;  %v78_v9 = vld [vmem:[%s3734_s0 + $0x1e8] sm:$0xff]  ;;  %v48_v11 = vld [vmem:[%s3734_s0 + $0xf8] sm:$0xff] }
  0x1a   :  { %1517 = vmatprep.subr.mxu0 %v81_v13  ;;  %1639 = vmatpush3.msra.mxu1 %v82_v12  ;;  %v79_v10 = vld [vmem:[%s3734_s0 + $0x1f0] sm:$0xff]  ;;  %v80_v12 = vld [vmem:[%s3734_s0 + $0x1f8] sm:$0xff] }
  0x1b   :  { %1518 = vmatpush3.msra.mxu0 %v81_v13  ;;  %1627 = vmatprep.subr.mxu1 %v81_v13 }
  0x1c   :  { %1520 = vmatmul.mubr.msk.f32.vlgmr.msra.gmra.mxu0 %vm94_vm1, %v18_v14  ;;  %1640 = vmatpush3.msra.mxu1 %v81_v13 }
  0x1d   :  { %1522 = vmatprep.mubr.msk.f32.mxu0 %vm94_vm1, %v19_v15  ;;  %1567 = vmatprep.mubr.msk.f32.mxu1 %vm94_vm1, %v49_v16 }
  0x1e   :  { %1568 = vmatmul.mubr.msk.f32.vlgmr.msra.gmra.mxu1 %vm94_vm1, %v50_v17 }
  0x1f   :  { %1570 = vmatprep.mubr.msk.f32.mxu1 %vm94_vm1, %v51_v18 }
  0x20   :  { %1523 = vmatmul.mubr.msk.f32.gmra.mxu0 %vm94_vm1, %v20_v19 }
  0x21   :  { %1525 = vmatprep.mubr.msk.f32.mxu0 %vm94_vm1, %v21_v20 }
  0x22   :  { %1571 = vmatmul.mubr.msk.f32.gmra.mxu1 %vm94_vm1, %v52_v21 }
  0x23   :  { %1573 = vmatprep.mubr.msk.f32.mxu1 %vm94_vm1, %v53_v22 }
  0x24   :  { %1526 = vmatmul.mubr.msk.f32.gmra.mxu0 %vm94_vm1, %v22_v23 }
  0x25   :  { %1528 = vmatprep.mubr.msk.f32.mxu0 %vm94_vm1, %v23_v24 }
  0x26   :  { %1574 = vmatmul.mubr.msk.f32.gmra.mxu1 %vm94_vm1, %v54_v25 }
  0x27   :  { %1576 = vmatprep.mubr.msk.f32.mxu1 %vm94_vm1, %v55_v26 }
  0x28   :  { %1529 = vmatmul.mubr.msk.f32.gmra.mxu0 %vm94_vm1, %v24_v27 }
  0x29   :  { %1531 = vmatprep.mubr.msk.f32.mxu0 %vm94_vm1, %v25_v28 }
  0x2a   :  { %1577 = vmatmul.mubr.msk.f32.gmra.mxu1 %vm94_vm1, %v56_v29 }
  0x2b   :  { %1579 = vmatprep.mubr.msk.f32.mxu1 %vm94_vm1, %v57_v30 }
  0x2c   :  { %1532 = vmatmul.mubr.msk.f32.gmra.mxu0 %vm94_vm1, %v26_v31 }
  0x2d   :  { %1534 = vmatprep.mubr.msk.f32.mxu0 %vm94_vm1, %v27_v32 }
  0x2e   :  { %1580 = vmatmul.mubr.msk.f32.gmra.mxu1 %vm94_vm1, %v58_v33 }
  0x2f   :  { %1582 = vmatprep.mubr.msk.f32.mxu1 %vm94_vm1, %v59_v34 }
  0x30   :  { %1535 = vmatmul.mubr.msk.f32.gmra.mxu0 %vm94_vm1, %v28_v35 }
  0x31   :  { %1537 = vmatprep.mubr.msk.f32.mxu0 %vm94_vm1, %v29_v36 }
  0x32   :  { %1583 = vmatmul.mubr.msk.f32.gmra.mxu1 %vm94_vm1, %v60_v37 }
  0x33   :  { %1585 = vmatprep.mubr.msk.f32.mxu1 %vm94_vm1, %v61_v38 }
  0x34   :  { %1538 = vmatmul.mubr.msk.f32.gmra.mxu0 %vm94_vm1, %v30_v39 }
  0x35   :  { %1540 = vmatprep.mubr.msk.f32.mxu0 %vm94_vm1, %v31_v40 }
  0x36   :  { %1586 = vmatmul.mubr.msk.f32.gmra.mxu1 %vm94_vm1, %v62_v41 }
  0x37   :  { %1588 = vmatprep.mubr.msk.f32.mxu1 %vm94_vm1, %v63_v42 }
  0x38   :  { %1541 = vmatmul.mubr.msk.f32.gmra.mxu0 %vm94_vm1, %v32_v43 }
  0x39   :  { %1543 = vmatprep.mubr.msk.f32.mxu0 %vm94_vm1, %v33_v44 }
  0x3a   :  { %1589 = vmatmul.mubr.msk.f32.gmra.mxu1 %vm94_vm1, %v64_v45 }
  0x3b   :  { %1591 = vmatprep.mubr.msk.f32.mxu1 %vm94_vm1, %v65_v46 }
  0x3c   :  { %1544 = vmatmul.mubr.msk.f32.gmra.mxu0 %vm94_vm1, %v34_v47 }
  0x3d   :  { %1546 = vmatprep.mubr.msk.f32.mxu0 %vm94_vm1, %v35_v48 }
  0x3e   :  { %1592 = vmatmul.mubr.msk.f32.gmra.mxu1 %vm94_vm1, %v66_v49 }
  0x3f   :  { %1594 = vmatprep.mubr.msk.f32.mxu1 %vm94_vm1, %v67_v50 }
  0x40   :  { %1547 = vmatmul.mubr.msk.f32.gmra.mxu0 %vm94_vm1, %v36_v51 }
  0x41   :  { %1549 = vmatprep.mubr.msk.f32.mxu0 %vm94_vm1, %v37_v52 }
  0x42   :  { %1595 = vmatmul.mubr.msk.f32.gmra.mxu1 %vm94_vm1, %v68_v53 }
  0x43   :  { %1597 = vmatprep.mubr.msk.f32.mxu1 %vm94_vm1, %v69_v54 }
  0x44   :  { %1550 = vmatmul.mubr.msk.f32.gmra.mxu0 %vm94_vm1, %v38_v55 }
  0x45   :  { %1552 = vmatprep.mubr.msk.f32.mxu0 %vm94_vm1, %v39_v56 }
  0x46   :  { %1598 = vmatmul.mubr.msk.f32.gmra.mxu1 %vm94_vm1, %v70_v57 }
  0x47   :  { %1600 = vmatprep.mubr.msk.f32.mxu1 %vm94_vm1, %v71_v58 }
  0x48   :  { %1553 = vmatmul.mubr.msk.f32.gmra.mxu0 %vm94_vm1, %v40_v59 }
  0x49   :  { %1555 = vmatprep.mubr.msk.f32.mxu0 %vm94_vm1, %v41_v60 }
  0x4a   :  { %1601 = vmatmul.mubr.msk.f32.gmra.mxu1 %vm94_vm1, %v72_v61 }
  0x4b   :  { %1603 = vmatprep.mubr.msk.f32.mxu1 %vm94_vm1, %v73_v62 }
  0x4c   :  { %1556 = vmatmul.mubr.msk.f32.gmra.mxu0 %vm94_vm1, %v42_v63 }
  0x4d   :  { %1558 = vmatprep.mubr.msk.f32.mxu0 %vm94_vm1, %v43_v0 }
  0x4e   :  { %1604 = vmatmul.mubr.msk.f32.gmra.mxu1 %vm94_vm1, %v74_v1 }
  0x4f   :  { %1606 = vmatprep.mubr.msk.f32.mxu1 %vm94_vm1, %v75_v2 }
  0x50   :  { %1559 = vmatmul.mubr.msk.f32.gmra.mxu0 %vm94_vm1, %v44_v3 }
  0x51   :  { %1561 = vmatprep.mubr.msk.f32.mxu0 %vm94_vm1, %v45_v4 }
  0x52   :  { %1607 = vmatmul.mubr.msk.f32.gmra.mxu1 %vm94_vm1, %v76_v5 }
  0x53   :  { %1609 = vmatprep.mubr.msk.f32.mxu1 %vm94_vm1, %v77_v6 }
  0x54   :  { %1562 = vmatmul.mubr.msk.f32.gmra.mxu0 %vm94_vm1, %v46_v7 }
  0x55   :  { %1564 = vmatprep.mubr.msk.f32.mxu0 %vm94_vm1, %v47_v8 }
  0x56   :  { %1610 = vmatmul.mubr.msk.f32.gmra.mxu1 %vm94_vm1, %v78_v9 }
  0x57   :  { %1612 = vmatprep.mubr.msk.f32.mxu1 %vm94_vm1, %v79_v10 }
  0x58   :  { %1565 = vmatmul.mubr.msk.f32.gmra.mxu0 %vm94_vm1, %v48_v11 }
  0x5a   :  { %1613 = vmatmul.mubr.msk.f32.gmra.mxu1 %vm94_vm1, %v80_v12 }
  0xdc   :  { %v1963_v13 = vpop.f32.mrf.mxu0 }
  0xde   :  { %v1965_v14 = vpop.f32.mrf.mxu0  ;;  %v1967_v15 = vpop.f32.mrf.mxu1 }
  0xdf   :  { %v676_v17 = vadd.f32 %v1963_v13, %v1965_v14 }
  0xe0   :  { %v1969_v16 = vpop.f32.mrf.mxu0  ;;  %v1975_v19 = vpop.f32.mrf.mxu1 }
  0xe2   :  { %v1973_v18 = vpop.f32.mrf.mxu0  ;;  %v1983_v24 = vpop.f32.mrf.mxu1 }
  0xe3   :  { %v677_v20 = vadd.f32 %v676_v17, %v1973_v18 }
  0xe4   :  { %v1978_v21 = vpop.f32.mrf.mxu0  ;;  %v1991_v29 = vpop.f32.mrf.mxu1 }
  0xe5   :  { %v678_v22 = vadd.f32 %v1969_v16, %v677_v20 }
  0xe6   :  { %v1981_v23 = vpop.f32.mrf.mxu0  ;;  %v1999_v34 = vpop.f32.mrf.mxu1 }
  0xe7   :  { %v679_v25 = vadd.f32 %v678_v22, %v1981_v23 }
  0xe8   :  { %v1986_v26 = vpop.f32.mrf.mxu0  ;;  %v2007_v39 = vpop.f32.mrf.mxu1 }
  0xe9   :  { %v680_v27 = vadd.f32 %v1978_v21, %v679_v25 }
  0xea   :  { %v1989_v28 = vpop.f32.mrf.mxu0  ;;  %v2015_v44 = vpop.f32.mrf.mxu1 }
  0xeb   :  { %v681_v30 = vadd.f32 %v680_v27, %v1989_v28 }
  0xec   :  { %v1994_v31 = vpop.f32.mrf.mxu0  ;;  %v2023_v49 = vpop.f32.mrf.mxu1 }
  0xed   :  { %v682_v32 = vadd.f32 %v1986_v26, %v681_v30 }
  0xee   :  { %v1997_v33 = vpop.f32.mrf.mxu0  ;;  %v2031_v54 = vpop.f32.mrf.mxu1 }
  0xef   :  { %v683_v35 = vadd.f32 %v682_v32, %v1997_v33 }
  0xf0   :  { %v2002_v36 = vpop.f32.mrf.mxu0  ;;  %v2039_v59 = vpop.f32.mrf.mxu1 }
  0xf1   :  { %v684_v37 = vadd.f32 %v1994_v31, %v683_v35  ;;  %3794 = vst [vmem:[#allocation2_spill] sm:$0xff] %v2039_v59 }
  0xf2   :  { %v2005_v38 = vpop.f32.mrf.mxu0  ;;  %v2047_v0 = vpop.f32.mrf.mxu1 }
  0xf3   :  { %v685_v40 = vadd.f32 %v684_v37, %v2005_v38 }
  0xf4   :  { %v2010_v41 = vpop.f32.mrf.mxu0  ;;  %v2055_v5 = vpop.f32.mrf.mxu1 }
  0xf5   :  { %v686_v42 = vadd.f32 %v2002_v36, %v685_v40  ;;  %3795 = vst [vmem:[#allocation3_spill] sm:$0xff] %v2055_v5 }
  0xf6   :  { %v2013_v43 = vpop.f32.mrf.mxu0  ;;  %v2063_v10 = vpop.f32.mrf.mxu1 }
  0xf7   :  { %v687_v45 = vadd.f32 %v686_v42, %v2013_v43 }
  0xf8   :  { %v2018_v46 = vpop.f32.mrf.mxu0  ;;  %v2071_v22 = vpop.f32.mrf.mxu1 }
  0xf9   :  { %v688_v47 = vadd.f32 %v2010_v41, %v687_v45  ;;  %3796 = vst [vmem:[#allocation4_spill] sm:$0xff] %v2071_v22 }
  0xfa   :  { %v2021_v48 = vpop.f32.mrf.mxu0  ;;  %v2079_v35 = vpop.f32.mrf.mxu1 }
  0xfb   :  { %v689_v50 = vadd.f32 %v688_v47, %v2021_v48 }
  0xfc   :  { %v2026_v51 = vpop.f32.mrf.mxu0  ;;  %v2087_v47 = vpop.f32.mrf.mxu1 }
  0xfd   :  { %v690_v52 = vadd.f32 %v2018_v46, %v689_v50  ;;  %3797 = vst [vmem:[#allocation5_spill] sm:$0xff] %v2087_v47 }
  0xfe   :  { %v2029_v53 = vpop.f32.mrf.mxu0 }
  0xff   :  { %v691_v55 = vadd.f32 %v690_v52, %v2029_v53 }
 0x100   :  { %v2034_v56 = vpop.f32.mrf.mxu0 }
 0x101   :  { %v692_v57 = vadd.f32 %v2026_v51, %v691_v55  ;;  %v2091_v55 = vpop.f32.mrf.mxu1 }
 0x102   :  { %v2037_v58 = vpop.f32.mrf.mxu0  ;;  %3798 = vst [vmem:[#allocation6_spill] sm:$0xff] %v2091_v55 }
 0x103   :  { %v693_v60 = vadd.f32 %v692_v57, %v2037_v58 }
 0x104   :  { %v2042_v61 = vpop.f32.mrf.mxu0 }
 0x105   :  { %v694_v62 = vadd.f32 %v2034_v56, %v693_v60 }
 0x106   :  { %v2045_v63 = vpop.f32.mrf.mxu0 }
 0x107   :  { %v695_v1 = vadd.f32 %v694_v62, %v2045_v63  ;;  %v2095_v62 = vpop.f32.mrf.mxu1 }
 0x108   :  { %v2050_v2 = vpop.f32.mrf.mxu0  ;;  %3799 = vst [vmem:[#allocation7_spill] sm:$0xff] %v2095_v62 }
 0x109   :  { %v696_v3 = vadd.f32 %v2042_v61, %v695_v1 }
 0x10a   :  { %v2053_v4 = vpop.f32.mrf.mxu0 }
 0x10b   :  { %v697_v6 = vadd.f32 %v696_v3, %v2053_v4 }
 0x10c   :  { %v2058_v7 = vpop.f32.mrf.mxu0 }
 0x10d   :  { %v698_v8 = vadd.f32 %v2050_v2, %v697_v6  ;;  %v2099_v6 = vpop.f32.mrf.mxu1 }
 0x10e   :  { %v2061_v9 = vpop.f32.mrf.mxu0  ;;  %3800 = vst [vmem:[#allocation8_spill] sm:$0xff] %v2099_v6 }
 0x10f   :  { %v699_v11 = vadd.f32 %v698_v8, %v2061_v9 }
 0x110   :  { %v2066_v12 = vpop.f32.mrf.mxu0 }
 0x111   :  { %v700_v17 = vadd.f32 %v2058_v7, %v699_v11 }
 0x112   :  { %v2069_v20 = vpop.f32.mrf.mxu0 }
 0x113   :  { %v701_v25 = vadd.f32 %v700_v17, %v2069_v20  ;;  %v2103_v17 = vpop.f32.mrf.mxu1 }
 0x114   :  { %v2074_v27 = vpop.f32.mrf.mxu0  ;;  %3801 = vst [vmem:[#allocation9_spill] sm:$0xff] %v2103_v17 }
 0x115   :  { %v702_v30 = vadd.f32 %v2066_v12, %v701_v25 }
 0x116   :  { %v2077_v32 = vpop.f32.mrf.mxu0 }
 0x117   :  { %v703_v37 = vadd.f32 %v702_v30, %v2077_v32 }
 0x118   :  { %v2082_v40 = vpop.f32.mrf.mxu0 }
 0x119   :  { %v704_v42 = vadd.f32 %v2074_v27, %v703_v37  ;;  %v2107_v37 = vpop.f32.mrf.mxu1 }
 0x11a   :  { %v2085_v45 = vpop.f32.mrf.mxu0  ;;  %3802 = vst [vmem:[#allocation10_spill] sm:$0xff] %v2107_v37 }
 0x11b   :  { %v705_v50 = vadd.f32 %v704_v42, %v2085_v45 }
 0x11d   :  { %v706_v52 = vadd.f32 %v2082_v40, %v705_v50 }
 0x11f   :  { %v707_v57 = vadd.f32 %v706_v52, %v1975_v19  ;;  %v2111_v52 = vpop.f32.mrf.mxu1 }
 0x120   :  { %3803 = vst [vmem:[#allocation11_spill] sm:$0xff] %v2111_v52 }
 0x121   :  { %v708_v60 = vadd.f32 %v1967_v15, %v707_v57 }
 0x123   :  { %v709_v1 = vadd.f32 %v708_v60, %v1991_v29 }
 0x125   :  { %v710_v3 = vadd.f32 %v1983_v24, %v709_v1  ;;  %v2115_v1 = vpop.f32.mrf.mxu1 }
 0x126   :  { %3804 = vst [vmem:[#allocation12_spill] sm:$0xff] %v2115_v1 }
 0x127   :  { %v711_v8 = vadd.f32 %v710_v3, %v2007_v39 }
 0x129   :  { %v712_v11 = vadd.f32 %v1999_v34, %v711_v8 }
 0x12b   :  { %v713_v25 = vadd.f32 %v712_v11, %v2023_v49  ;;  %v2119_v11 = vpop.f32.mrf.mxu1 }
 0x12c   :  { %3805 = vst [vmem:[#allocation13_spill] sm:$0xff] %v2119_v11 }
 0x12d   :  { %v714_v30 = vadd.f32 %v2015_v44, %v713_v25 }
 0x12f   :  { %v715_v42 = vadd.f32 %v714_v30, %v2039_v59  ;;  %v2123_v59 = vpop.f32.mrf.mxu1 }
 0x130   :  { %3806 = vst [vmem:[#allocation14_spill] sm:$0xff] %v2123_v59 }
 0x131   :  { %v716_v50 = vadd.f32 %v2031_v54, %v715_v42 }
 0x133   :  { %v717_v57 = vadd.f32 %v716_v50, %v2055_v5  ;;  %v2127_v5 = vpop.f32.mrf.mxu1 }
 0x134   :  { %3807 = vst [vmem:[#allocation15_spill] sm:$0xff] %v2127_v5 }
 0x135   :  { %v718_v60 = vadd.f32 %v2047_v0, %v717_v57 }
 0x137   :  { %v719_v3 = vadd.f32 %v718_v60, %v2071_v22  ;;  %v2131_v22 = vpop.f32.mrf.mxu1 }
 0x139   :  { %v720_v8 = vadd.f32 %v2063_v10, %v719_v3 }
 0x13b   :  { %v721_v25 = vadd.f32 %v720_v8, %v2087_v47  ;;  %v2135_v47 = vpop.f32.mrf.mxu1 }
 0x13d   :  { %v722_v30 = vadd.f32 %v2079_v35, %v721_v25 }
 0x13f   :  { %v723_v42 = vadd.f32 %v722_v30, %v2095_v62  ;;  %v2139_v62 = vpop.f32.mrf.mxu1 }
 0x141   :  { %v724_v50 = vadd.f32 %v2091_v55, %v723_v42 }
 0x143   :  { %v725_v57 = vadd.f32 %v724_v50, %v2103_v17  ;;  %v2143_v17 = vpop.f32.mrf.mxu1 }
 0x145   :  { %v726_v60 = vadd.f32 %v2099_v6, %v725_v57 }
 0x147   :  { %v727_v3 = vadd.f32 %v726_v60, %v2111_v52  ;;  %v2147_v52 = vpop.f32.mrf.mxu1 }
 0x149   :  { %v728_v8 = vadd.f32 %v2107_v37, %v727_v3 }
 0x14b   :  { %v729_v25 = vadd.f32 %v728_v8, %v2119_v11  ;;  %v667_v11 = vpop.f32.mrf.mxu1 }
 0x14d   :  { %v730_v30 = vadd.f32 %v2115_v1, %v729_v25 }
 0x14f   :  { %v731_v42 = vadd.f32 %v730_v30, %v2127_v5 }
 0x151   :  { %v732_v50 = vadd.f32 %v2123_v59, %v731_v42 }
 0x153   :  { %v733_v57 = vadd.f32 %v732_v50, %v2135_v47 }
 0x155   :  { %v734_v60 = vadd.f32 %v2131_v22, %v733_v57 }
 0x157   :  { %v735_v3 = vadd.f32 %v734_v60, %v2143_v17 }
 0x159   :  { %v736_v8 = vadd.f32 %v2139_v62, %v735_v3 }
 0x15b   :  { %v737_v25 = vadd.f32 %v736_v8, %v667_v11 }
 0x15d   :  { %v738_v1 = vadd.f32 %v2147_v52, %v737_v25 }
 0x15f   :  { %v739_v37 = vrot.slane %v738_v1, 4 }
 0x161   :  { %v740_v30 = vadd.f32 %v739_v37, %v738_v1 }
 0x163   :  { %v741_v5 = vrot.slane %v740_v30, 2 }
 0x165   :  { %v742_v42 = vadd.f32 %v741_v5, %v740_v30 }
 0x167   :  { %v743_v59 = vrot.slane %v742_v42, 1 }
 0x169   :  { %v744_v6 = vadd.f32 %v743_v59, %v742_v42 }
 0x16b   :  { %v2152_v55 = vmul.f32 0.001953125, %v744_v6 }
 0x16d   :  { %v2155_v50 = vsub.f32 %v667_v11, %v2152_v55  ;;  %v2159_v57 = vsub.f32 %v1965_v14, %v2152_v55  ;;  %v2163_v60 = vsub.f32 %v1963_v13, %v2152_v55  ;;  %v2167_v37 = vsub.f32 %v1973_v18, %v2152_v55 }
 0x16e   :  { %v2175_v6 = vsub.f32 %v1969_v16, %v2152_v55  ;;  %v2179_v14 = vsub.f32 %v1981_v23, %v2152_v55  ;;  %v2185_v18 = vsub.f32 %v1978_v21, %v2152_v55  ;;  %v2191_v16 = vsub.f32 %v1989_v28, %v2152_v55 }
 0x16f   :  { %v811_v59 = vmul.f32 %v2159_v57, %v2159_v57  ;;  %v812_v5 = vmul.f32 %v2163_v60, %v2163_v60  ;;  %v813_v13 = vmul.f32 %v2167_v37, %v2167_v37  ;;  %v2197_v25 = vsub.f32 %v1986_v26, %v2152_v55 }
 0x170   :  { %v814_v11 = vmul.f32 %v2175_v6, %v2175_v6  ;;  %v815_v23 = vmul.f32 %v2179_v14, %v2179_v14  ;;  %v816_v21 = vmul.f32 %v2185_v18, %v2185_v18  ;;  %v2203_v42 = vsub.f32 %v1997_v33, %v2152_v55 }
 0x171   :  { %v875_v1 = vadd.f32 %v812_v5, %v811_v59  ;;  %v817_v28 = vmul.f32 %v2191_v16, %v2191_v16  ;;  %v2209_v5 = vsub.f32 %v1994_v31, %v2152_v55  ;;  %v818_v26 = vmul.f32 %v2197_v25, %v2197_v25 }
 0x172   :  { %v819_v33 = vmul.f32 %v2203_v42, %v2203_v42 }
 0x173   :  { %v876_v3 = vadd.f32 %v875_v1, %v813_v13  ;;  %v2215_v1 = vsub.f32 %v2005_v38, %v2152_v55  ;;  %v820_v31 = vmul.f32 %v2209_v5, %v2209_v5 }
 0x175   :  { %v877_v8 = vadd.f32 %v876_v3, %v814_v11  ;;  %v2221_v3 = vsub.f32 %v2002_v36, %v2152_v55  ;;  %v821_v38 = vmul.f32 %v2215_v1, %v2215_v1 }
 0x177   :  { %v878_v30 = vadd.f32 %v877_v8, %v815_v23  ;;  %v2227_v8 = vsub.f32 %v2013_v43, %v2152_v55  ;;  %v822_v36 = vmul.f32 %v2221_v3, %v2221_v3 }
 0x179   :  { %v879_v59 = vadd.f32 %v878_v30, %v816_v21  ;;  %v2233_v30 = vsub.f32 %v2010_v41, %v2152_v55  ;;  %v823_v43 = vmul.f32 %v2227_v8, %v2227_v8 }
 0x17b   :  { %v880_v13 = vadd.f32 %v879_v59, %v817_v28  ;;  %v2239_v59 = vsub.f32 %v2021_v48, %v2152_v55  ;;  %v824_v41 = vmul.f32 %v2233_v30, %v2233_v30 }
 0x17d   :  { %v881_v11 = vadd.f32 %v880_v13, %v818_v26  ;;  %v2245_v13 = vsub.f32 %v2018_v46, %v2152_v55  ;;  %v825_v48 = vmul.f32 %v2239_v59, %v2239_v59 }
 0x17f   :  { %v882_v23 = vadd.f32 %v881_v11, %v819_v33  ;;  %v2251_v11 = vsub.f32 %v2029_v53, %v2152_v55  ;;  %v826_v46 = vmul.f32 %v2245_v13, %v2245_v13 }
 0x181   :  { %v883_v21 = vadd.f32 %v882_v23, %v820_v31  ;;  %v2257_v23 = vsub.f32 %v2026_v51, %v2152_v55  ;;  %v827_v53 = vmul.f32 %v2251_v11, %v2251_v11 }
 0x183   :  { %v884_v28 = vadd.f32 %v883_v21, %v821_v38  ;;  %v2263_v21 = vsub.f32 %v2037_v58, %v2152_v55  ;;  %v828_v51 = vmul.f32 %v2257_v23, %v2257_v23 }
 0x185   :  { %v885_v26 = vadd.f32 %v884_v28, %v822_v36  ;;  %v2269_v28 = vsub.f32 %v2034_v56, %v2152_v55  ;;  %v829_v58 = vmul.f32 %v2263_v21, %v2263_v21 }
 0x187   :  { %v886_v33 = vadd.f32 %v885_v26, %v823_v43  ;;  %v2275_v26 = vsub.f32 %v2045_v63, %v2152_v55  ;;  %v830_v56 = vmul.f32 %v2269_v28, %v2269_v28 }
 0x189   :  { %v887_v31 = vadd.f32 %v886_v33, %v824_v41  ;;  %v2281_v33 = vsub.f32 %v2042_v61, %v2152_v55  ;;  %v831_v63 = vmul.f32 %v2275_v26, %v2275_v26 }
 0x18b   :  { %v888_v38 = vadd.f32 %v887_v31, %v825_v48  ;;  %v2287_v31 = vsub.f32 %v2053_v4, %v2152_v55  ;;  %v832_v61 = vmul.f32 %v2281_v33, %v2281_v33 }
 0x18d   :  { %v889_v36 = vadd.f32 %v888_v38, %v826_v46  ;;  %v2293_v38 = vsub.f32 %v2050_v2, %v2152_v55  ;;  %v833_v4 = vmul.f32 %v2287_v31, %v2287_v31 }
 0x18f   :  { %v890_v43 = vadd.f32 %v889_v36, %v827_v53  ;;  %v2299_v36 = vsub.f32 %v2061_v9, %v2152_v55  ;;  %v834_v2 = vmul.f32 %v2293_v38, %v2293_v38 }
 0x191   :  { %v891_v41 = vadd.f32 %v890_v43, %v828_v51  ;;  %v2305_v43 = vsub.f32 %v2058_v7, %v2152_v55  ;;  %v835_v9 = vmul.f32 %v2299_v36, %v2299_v36 }
 0x193   :  { %v892_v48 = vadd.f32 %v891_v41, %v829_v58  ;;  %v2311_v41 = vsub.f32 %v2069_v20, %v2152_v55  ;;  %v836_v7 = vmul.f32 %v2305_v43, %v2305_v43 }
 0x195   :  { %v893_v46 = vadd.f32 %v892_v48, %v830_v56  ;;  %v2317_v48 = vsub.f32 %v2066_v12, %v2152_v55  ;;  %v837_v20 = vmul.f32 %v2311_v41, %v2311_v41 }
 0x197   :  { %v894_v53 = vadd.f32 %v893_v46, %v831_v63  ;;  %v2323_v46 = vsub.f32 %v2077_v32, %v2152_v55  ;;  %v838_v12 = vmul.f32 %v2317_v48, %v2317_v48 }
 0x199   :  { %v895_v51 = vadd.f32 %v894_v53, %v832_v61  ;;  %v2329_v53 = vsub.f32 %v2074_v27, %v2152_v55  ;;  %v839_v32 = vmul.f32 %v2323_v46, %v2323_v46 }
 0x19b   :  { %v896_v58 = vadd.f32 %v895_v51, %v833_v4  ;;  %v2335_v51 = vsub.f32 %v2085_v45, %v2152_v55  ;;  %v840_v27 = vmul.f32 %v2329_v53, %v2329_v53 }
 0x19d   :  { %v897_v56 = vadd.f32 %v896_v58, %v834_v2  ;;  %v2341_v58 = vsub.f32 %v2082_v40, %v2152_v55  ;;  %v841_v45 = vmul.f32 %v2335_v51, %v2335_v51 }
 0x19f   :  { %v898_v63 = vadd.f32 %v897_v56, %v835_v9  ;;  %v2347_v56 = vsub.f32 %v1975_v19, %v2152_v55  ;;  %v842_v40 = vmul.f32 %v2341_v58, %v2341_v58 }
 0x1a1   :  { %v899_v61 = vadd.f32 %v898_v63, %v836_v7  ;;  %v2353_v63 = vsub.f32 %v1967_v15, %v2152_v55  ;;  %v843_v19 = vmul.f32 %v2347_v56, %v2347_v56 }
 0x1a3   :  { %v900_v4 = vadd.f32 %v899_v61, %v837_v20  ;;  %v2359_v61 = vsub.f32 %v1991_v29, %v2152_v55  ;;  %v844_v15 = vmul.f32 %v2353_v63, %v2353_v63 }
 0x1a5   :  { %v901_v2 = vadd.f32 %v900_v4, %v838_v12  ;;  %v2365_v4 = vsub.f32 %v1983_v24, %v2152_v55  ;;  %v845_v29 = vmul.f32 %v2359_v61, %v2359_v61 }
 0x1a7   :  { %v902_v9 = vadd.f32 %v901_v2, %v839_v32  ;;  %v2371_v2 = vsub.f32 %v2007_v39, %v2152_v55  ;;  %v846_v24 = vmul.f32 %v2365_v4, %v2365_v4 }
 0x1a9   :  { %v903_v7 = vadd.f32 %v902_v9, %v840_v27  ;;  %v2377_v9 = vsub.f32 %v1999_v34, %v2152_v55  ;;  %v847_v39 = vmul.f32 %v2371_v2, %v2371_v2 }
 0x1ab   :  { %v904_v20 = vadd.f32 %v903_v7, %v841_v45  ;;  %v2383_v7 = vsub.f32 %v2023_v49, %v2152_v55  ;;  %v848_v34 = vmul.f32 %v2377_v9, %v2377_v9 }
 0x1ad   :  { %v905_v12 = vadd.f32 %v904_v20, %v842_v40  ;;  %v2389_v20 = vsub.f32 %v2015_v44, %v2152_v55  ;;  %v849_v49 = vmul.f32 %v2383_v7, %v2383_v7 }
 0x1af   :  { %v906_v32 = vadd.f32 %v905_v12, %v843_v19  ;;  %3808 = vst [vmem:[#allocation16_spill] sm:$0xff] %v2389_v20  ;;  %v3809_v12 = vld [vmem:[#allocation2_spill] sm:$0xff]  ;;  %v850_v44 = vmul.f32 %v2389_v20, %v2389_v20 }
 0x1b1   :  { %v907_v27 = vadd.f32 %v906_v32, %v844_v15  ;;  %v2395_v15 = vsub.f32 %v3809_v12, %v2152_v55  ;;  %v2413_v12 = vsub.f32 %v2047_v0, %v2152_v55 }
 0x1b3   :  { %v908_v45 = vadd.f32 %v907_v27, %v845_v29  ;;  %v2401_v29 = vsub.f32 %v2031_v54, %v2152_v55  ;;  %v854_v0 = vmul.f32 %v2413_v12, %v2413_v12 }
 0x1b5   :  { %v909_v40 = vadd.f32 %v908_v45, %v846_v24  ;;  %3810 = vst [vmem:[#allocation2_spill] sm:$0xff] %v2401_v29  ;;  %v3811_v24 = vld [vmem:[#allocation3_spill] sm:$0xff]  ;;  %v852_v54 = vmul.f32 %v2401_v29, %v2401_v29 }
 0x1b6   :  { %v2407_v45 = vsub.f32 %v3811_v24, %v2152_v55  ;;  %3812 = vst [vmem:[#allocation3_spill] sm:$0xff] %v2413_v12  ;;  %v2425_v24 = vsub.f32 %v2063_v10, %v2152_v55 }
 0x1b7   :  { %v910_v19 = vadd.f32 %v909_v40, %v847_v39  ;;  %v851_v39 = vmul.f32 %v2395_v15, %v2395_v15 }
 0x1b8   :  { %3815 = vst [vmem:[#allocation17_spill] sm:$0xff] %v2425_v24  ;;  %v856_v10 = vmul.f32 %v2425_v24, %v2425_v24 }
 0x1b9   :  { %v911_v32 = vadd.f32 %v910_v19, %v848_v34  ;;  %v3813_v19 = vld [vmem:[#allocation4_spill] sm:$0xff] }
 0x1ba   :  { %v2419_v20 = vsub.f32 %v3813_v19, %v2152_v55  ;;  %v2437_v19 = vsub.f32 %v2079_v35, %v2152_v55 }
 0x1bb   :  { %v912_v27 = vadd.f32 %v911_v32, %v849_v49  ;;  %v853_v49 = vmul.f32 %v2407_v45, %v2407_v45 }
 0x1bc   :  { %3814 = vst [vmem:[#allocation4_spill] sm:$0xff] %v2419_v20  ;;  %3818 = vst [vmem:[#allocation18_spill] sm:$0xff] %v2437_v19  ;;  %v858_v35 = vmul.f32 %v2437_v19, %v2437_v19 }
 0x1bd   :  { %v913_v40 = vadd.f32 %v912_v27, %v850_v44  ;;  %v3816_v27 = vld [vmem:[#allocation5_spill] sm:$0xff] }
 0x1be   :  { %v2431_v29 = vsub.f32 %v3816_v27, %v2152_v55  ;;  %v3821_v27 = vld [vmem:[#allocation6_spill] sm:$0xff] }
 0x1bf   :  { %v914_v34 = vadd.f32 %v913_v40, %v851_v39  ;;  %v855_v39 = vmul.f32 %v2419_v20, %v2419_v20  ;;  %v2449_v20 = vsub.f32 %v3821_v27, %v2152_v55  ;;  %v3827_v27 = vld [vmem:[#allocation11_spill] sm:$0xff] }
 0x1c0   :  { %3817 = vst [vmem:[#allocation5_spill] sm:$0xff] %v2431_v29  ;;  %v2467_v19 = vsub.f32 %v3827_v27, %v2152_v55  ;;  %v3831_v27 = vld [vmem:[#allocation12_spill] sm:$0xff] }
 0x1c1   :  { %v915_v32 = vadd.f32 %v914_v34, %v852_v54  ;;  %v3819_v34 = vld [vmem:[#allocation7_spill] sm:$0xff]  ;;  %3822 = vst [vmem:[#allocation6_spill] sm:$0xff] %v2449_v20 }
 0x1c2   :  { %v2443_v12 = vsub.f32 %v3819_v34, %v2152_v55  ;;  %v3825_v34 = vld [vmem:[#allocation8_spill] sm:$0xff]  ;;  %3828 = vst [vmem:[#allocation11_spill] sm:$0xff] %v2467_v19 }
 0x1c3   :  { %v916_v44 = vadd.f32 %v915_v32, %v853_v49  ;;  %v857_v49 = vmul.f32 %v2431_v29, %v2431_v29  ;;  %v2461_v29 = vsub.f32 %v3825_v34, %v2152_v55  ;;  %v3830_v34 = vld [vmem:[#allocation13_spill] sm:$0xff] }
 0x1c4   :  { %3820 = vst [vmem:[#allocation7_spill] sm:$0xff] %v2443_v12 }
 0x1c5   :  { %v917_v40 = vadd.f32 %v916_v44, %v854_v0  ;;  %v3823_v44 = vld [vmem:[#allocation9_spill] sm:$0xff]  ;;  %3826 = vst [vmem:[#allocation8_spill] sm:$0xff] %v2461_v29 }
 0x1c6   :  { %v2455_v24 = vsub.f32 %v3823_v44, %v2152_v55  ;;  %v3829_v44 = vld [vmem:[#allocation10_spill] sm:$0xff] }
 0x1c7   :  { %v918_v54 = vadd.f32 %v917_v40, %v855_v39  ;;  %v859_v39 = vmul.f32 %v2443_v12, %v2443_v12  ;;  %v2473_v12 = vsub.f32 %v3829_v44, %v2152_v55  ;;  %v3832_v44 = vld [vmem:[#allocation15_spill] sm:$0xff] }
 0x1c8   :  { %3824 = vst [vmem:[#allocation9_spill] sm:$0xff] %v2455_v24 }
 0x1c9   :  { %v919_v32 = vadd.f32 %v918_v54, %v856_v10  ;;  %v860_v10 = vmul.f32 %v2449_v20, %v2449_v20  ;;  %v2479_v20 = vsub.f32 %v3830_v34, %v2152_v55  ;;  %v3834_v34 = vld [vmem:[#allocation14_spill] sm:$0xff] }
 0x1cb   :  { %v920_v0 = vadd.f32 %v919_v32, %v857_v49  ;;  %v861_v49 = vmul.f32 %v2455_v24, %v2455_v24  ;;  %v2485_v24 = vsub.f32 %v3831_v27, %v2152_v55  ;;  %v2503_v27 = vsub.f32 %v2135_v47, %v2152_v55 }
 0x1cd   :  { %v921_v40 = vadd.f32 %v920_v0, %v858_v35  ;;  %v862_v35 = vmul.f32 %v2461_v29, %v2461_v29  ;;  %v2491_v29 = vsub.f32 %v3832_v44, %v2152_v55  ;;  %3836 = vst [vmem:[#allocation12_spill] sm:$0xff] %v2503_v27  ;;  %v2509_v44 = vsub.f32 %v2131_v22, %v2152_v55 }
 0x1ce   :  { %v869_v47 = vmul.f32 %v2503_v27, %v2503_v27 }
 0x1cf   :  { %v922_v54 = vadd.f32 %v921_v40, %v859_v39  ;;  %v863_v39 = vmul.f32 %v2467_v19, %v2467_v19  ;;  %3833 = vst [vmem:[#allocation10_spill] sm:$0xff] %v2491_v29  ;;  %v2497_v19 = vsub.f32 %v3834_v34, %v2152_v55  ;;  %3837 = vst [vmem:[#allocation15_spill] sm:$0xff] %v2509_v44 }
 0x1d0   :  { %v2515_v34 = vsub.f32 %v2143_v17, %v2152_v55  ;;  %v870_v22 = vmul.f32 %v2509_v44, %v2509_v44  ;;  %v2529_v17 = vsub.f32 %v2147_v52, %v2152_v55 }
 0x1d1   :  { %v923_v32 = vadd.f32 %v922_v54, %v860_v10  ;;  %v864_v10 = vmul.f32 %v2473_v12, %v2473_v12  ;;  %3835 = vst [vmem:[#allocation13_spill] sm:$0xff] %v2497_v19 }
 0x1d2   :  { %3838 = vst [vmem:[#allocation14_spill] sm:$0xff] %v2515_v34  ;;  %3840 = vst [vmem:[#allocation20_spill] sm:$0xff] %v2529_v17  ;;  %v874_v44 = vmul.f32 %v2529_v17, %v2529_v17 }
 0x1d3   :  { %v924_v0 = vadd.f32 %v923_v32, %v861_v49  ;;  %v865_v49 = vmul.f32 %v2479_v20, %v2479_v20 }
 0x1d5   :  { %v925_v40 = vadd.f32 %v924_v0, %v862_v35  ;;  %v866_v35 = vmul.f32 %v2485_v24, %v2485_v24 }
 0x1d7   :  { %v926_v54 = vadd.f32 %v925_v40, %v863_v39  ;;  %v867_v39 = vmul.f32 %v2491_v29, %v2491_v29 }
 0x1d9   :  { %v927_v32 = vadd.f32 %v926_v54, %v864_v10  ;;  %v868_v10 = vmul.f32 %v2497_v19, %v2497_v19 }
 0x1db   :  { %v928_v0 = vadd.f32 %v927_v32, %v865_v49  ;;  %v2521_v32 = vsub.f32 %v2139_v62, %v2152_v55  ;;  %v873_v62 = vmul.f32 %v2155_v50, %v2155_v50 }
 0x1dd   :  { %v929_v40 = vadd.f32 %v928_v0, %v866_v35  ;;  %3839 = vst [vmem:[#allocation19_spill] sm:$0xff] %v2521_v32  ;;  %v871_v0 = vmul.f32 %v2515_v34, %v2515_v34 }
 0x1df   :  { %v930_v54 = vadd.f32 %v929_v40, %v867_v39  ;;  %v872_v40 = vmul.f32 %v2521_v32, %v2521_v32  ;;  %v950_v32 = vlaneseq }
 0x1e1   :  { %v931_v49 = vadd.f32 %v930_v54, %v868_v10 }
 0x1e3   :  { %v932_v35 = vadd.f32 %v931_v49, %v869_v47 }
 0x1e5   :  { %v933_v39 = vadd.f32 %v932_v35, %v870_v22 }
 0x1e7   :  { %v934_v10 = vadd.f32 %v933_v39, %v871_v0  ;;  %v951_v0 = vshrl.u32 %v950_v32, 7  ;;  %v3841_v32 = vld [vmem:[#allocation16_spill] sm:$0xff] }
 0x1e9   :  { %v935_v54 = vadd.f32 %v934_v10, %v872_v40  ;;  %v945_v40 = vld [vmem:[%s3735_s2] sm:$0x1]  ;;  %v952_v17 = vsub.s32 0, %v951_v0  ;;  %v3848_v0 = vld [vmem:[#allocation7_spill] sm:$0xff] }
 0x1eb   :  { %v936_v47 = vadd.f32 %v935_v54, %v873_v62  ;;  %v3843_v54 = vld [vmem:[#allocation3_spill] sm:$0xff] }
 0x1ed   :  { %v937_v49 = vadd.f32 %v936_v47, %v874_v44  ;;  %v3844_v47 = vld [vmem:[#allocation4_spill] sm:$0xff] }
 0x1ef   :  { %v938_v27 = vrot.slane %v937_v49, 4 }
 0x1f1   :  { %v939_v34 = vadd.f32 %v938_v27, %v937_v49 }
 0x1f3   :  { %v940_v22 = vrot.slane %v939_v34, 2 }
 0x1f5   :  { %v941_v35 = vadd.f32 %v940_v22, %v939_v34  ;;  %v3845_v22 = vld [vmem:[#allocation17_spill] sm:$0xff] }
 0x1f7   :  { %v942_v19 = vrot.slane %v941_v35, 1 }
 0x1f9   :  { %v943_v55 = vadd.f32 %v942_v19, %v941_v35  ;;  %v3846_v35 = vld [vmem:[#allocation5_spill] sm:$0xff] }
 0x1fb   :  { %v944_v52 = vmul.f32 0.001953125, %v943_v55 }
 0x1fd   :  { %v946_v29 = vadd.f32 1e-05, %v944_v52  ;;  %v3847_v52 = vld [vmem:[#allocation18_spill] sm:$0xff] }
 0x1ff   :  { %1641 = vrsqrt.f32 %v946_v29 }
 0x20c   :  { %v1642_v39 = vpop.eup %1641 }
 0x20d   :  { %v948_v10 = vmul.f32 %v1642_v39, %v945_v40  ;;  %v3849_v40 = vld [vmem:[#allocation6_spill] sm:$0xff] }
 0x20f   :  { %v2540_v62 = vrot.slane %v948_v10, %v952_v17  ;;  %v3842_v17 = vld [vmem:[#allocation2_spill] sm:$0xff] }
 0x211   :  { %v2544_v27 = vmul.f32 %v2540_v62, %v2159_v57  ;;  %v2548_v19 = vmul.f32 %v2540_v62, %v2163_v60  ;;  %v2552_v29 = vmul.f32 %v2540_v62, %v2167_v37  ;;  %v2556_v44 = vmul.f32 %v2540_v62, %v2175_v6 }
 0x212   :  { %v2560_v34 = vmul.f32 %v2540_v62, %v2179_v14  ;;  %v2564_v57 = vmul.f32 %v2540_v62, %v2185_v18  ;;  %v2568_v60 = vmul.f32 %v2540_v62, %v2191_v16  ;;  %v2572_v37 = vmul.f32 %v2540_v62, %v2197_v25 }
 0x213   :  { %v2576_v6 = vmul.f32 %v2540_v62, %v2203_v42  ;;  %v2580_v14 = vmul.f32 %v2540_v62, %v2209_v5  ;;  %v2584_v18 = vmul.f32 %v2540_v62, %v2215_v1  ;;  %v2588_v16 = vmul.f32 %v2540_v62, %v2221_v3 }
 0x214   :  { %v2592_v25 = vmul.f32 %v2540_v62, %v2227_v8  ;;  %v2596_v42 = vmul.f32 %v2540_v62, %v2233_v30  ;;  %v2600_v5 = vmul.f32 %v2540_v62, %v2239_v59  ;;  %v2604_v1 = vmul.f32 %v2540_v62, %v2245_v13 }
 0x215   :  { %v2608_v3 = vmul.f32 %v2540_v62, %v2251_v11  ;;  %v2612_v8 = vmul.f32 %v2540_v62, %v2257_v23  ;;  %v2616_v30 = vmul.f32 %v2540_v62, %v2263_v21  ;;  %v2620_v59 = vmul.f32 %v2540_v62, %v2269_v28 }
 0x216   :  { %v2624_v13 = vmul.f32 %v2540_v62, %v2275_v26  ;;  %v2628_v11 = vmul.f32 %v2540_v62, %v2281_v33  ;;  %v2632_v23 = vmul.f32 %v2540_v62, %v2287_v31  ;;  %v2636_v21 = vmul.f32 %v2540_v62, %v2293_v38 }
 0x217   :  { %v2640_v28 = vmul.f32 %v2540_v62, %v2299_v36  ;;  %v2644_v26 = vmul.f32 %v2540_v62, %v2305_v43  ;;  %v2648_v33 = vmul.f32 %v2540_v62, %v2311_v41  ;;  %v2652_v31 = vmul.f32 %v2540_v62, %v2317_v48 }
 0x218   :  { %v2656_v38 = vmul.f32 %v2540_v62, %v2323_v46  ;;  %v2660_v36 = vmul.f32 %v2540_v62, %v2329_v53  ;;  %v2664_v43 = vmul.f32 %v2540_v62, %v2335_v51  ;;  %v2668_v41 = vmul.f32 %v2540_v62, %v2341_v58 }
 0x219   :  { %v2672_v48 = vmul.f32 %v2540_v62, %v2347_v56  ;;  %v2676_v46 = vmul.f32 %v2540_v62, %v2353_v63  ;;  %v2680_v53 = vmul.f32 %v2540_v62, %v2359_v61  ;;  %v2684_v51 = vmul.f32 %v2540_v62, %v2365_v4 }
 0x21a   :  { %v2688_v58 = vmul.f32 %v2540_v62, %v2371_v2  ;;  %v2692_v56 = vmul.f32 %v2540_v62, %v2377_v9  ;;  %v2696_v63 = vmul.f32 %v2540_v62, %v2383_v7  ;;  %v2700_v61 = vmul.f32 %v2540_v62, %v3841_v32  ;;  %v3850_v32 = vld [vmem:[#allocation9_spill] sm:$0xff] }
 0x21b   :  { %v2704_v4 = vmul.f32 %v2540_v62, %v2395_v15  ;;  %v2708_v2 = vmul.f32 %v2540_v62, %v3842_v17  ;;  %v2712_v9 = vmul.f32 %v2540_v62, %v2407_v45  ;;  %v2716_v7 = vmul.f32 %v2540_v62, %v3843_v54  ;;  %v3852_v54 = vld [vmem:[#allocation8_spill] sm:$0xff] }
 0x21c   :  { %v2720_v49 = vmul.f32 %v2540_v62, %v3844_v47  ;;  %v2724_v15 = vmul.f32 %v2540_v62, %v3845_v22  ;;  %v2728_v55 = vmul.f32 %v2540_v62, %v3846_v35  ;;  %v2732_v45 = vmul.f32 %v2540_v62, %v3847_v52  ;;  %v3854_v22 = vld [vmem:[#allocation11_spill] sm:$0xff] }
 0x21d   :  { %v2736_v39 = vmul.f32 %v2540_v62, %v3848_v0  ;;  %v2740_v10 = vmul.f32 %v2540_v62, %v3849_v40  ;;  %v2744_v17 = vmul.f32 %v2540_v62, %v3850_v32  ;;  %v2748_v47 = vmul.f32 %v2540_v62, %v3852_v54  ;;  %v2765_v40 = vld [vmem:[%s3736_s3] ss:$0 sm:$0xff] }
 0x21e   :  { %v2752_v35 = vmul.f32 %v2540_v62, %v3854_v22  ;;  %v2756_v52 = vmul.f32 %v2540_v62, %v2473_v12  ;;  %v2760_v0 = vmul.f32 %v2540_v62, %v2479_v20  ;;  %v2769_v32 = vmul.f32 %v2540_v62, %v2485_v24  ;;  %v3859_v54 = vld [vmem:[#allocation10_spill] sm:$0xff] }
 0x21f   :  { %3851 = vst [vmem:[#allocation16_spill] sm:$0xff] %v2744_v17  ;;  %3853 = vst [vmem:[#allocation2_spill] sm:$0xff] %v2748_v47  ;;  %v2773_v22 = vmul.f32 %v2540_v62, %v3859_v54  ;;  %v3864_v17 = vld [vmem:[#allocation14_spill] sm:$0xff] }
 0x220   :  { %3855 = vst [vmem:[#allocation3_spill] sm:$0xff] %v2752_v35  ;;  %3856 = vst [vmem:[#allocation4_spill] sm:$0xff] %v2756_v52  ;;  %v3860_v35 = vld [vmem:[#allocation13_spill] sm:$0xff]  ;;  %v3862_v52 = vld [vmem:[#allocation12_spill] sm:$0xff]  ;;  %v2789_v24 = vmul.f32 %v2540_v62, %v3864_v17  ;;  %v2809_v17 = vadd.f32 %v2765_v40, %v2548_v19  ;;  %v2829_v19 = vadd.f32 %v2765_v40, %v2568_v60 }
 0x221   :  { %3857 = vst [vmem:[#allocation17_spill] sm:$0xff] %v2760_v0  ;;  %3858 = vst [vmem:[#allocation5_spill] sm:$0xff] %v2769_v32  ;;  %v2777_v12 = vmul.f32 %v2540_v62, %v3860_v35  ;;  %v2781_v20 = vmul.f32 %v2540_v62, %v3862_v52  ;;  %v3863_v0 = vld [vmem:[#allocation15_spill] sm:$0xff]  ;;  %v2797_v35 = vmul.f32 %v2540_v62, %v2155_v50 }
 0x222   :  { %v2785_v47 = vmul.f32 %v2540_v62, %v3863_v0  ;;  %v3865_v32 = vld [vmem:[#allocation19_spill] sm:$0xff]  ;;  %v2805_v0 = vadd.f32 %v2765_v40, %v2544_v27  ;;  %v2817_v50 = vadd.f32 %v2765_v40, %v2556_v44  ;;  %v2825_v27 = vadd.f32 %v2765_v40, %v2564_v57 }
 0x223   :  { %3861 = vst [vmem:[#allocation18_spill] sm:$0xff] %v2777_v12  ;;  %v2793_v54 = vmul.f32 %v2540_v62, %v3865_v32  ;;  %v3866_v12 = vld [vmem:[#allocation20_spill] sm:$0xff]  ;;  %v2813_v32 = vadd.f32 %v2765_v40, %v2552_v29  ;;  %v2833_v29 = vadd.f32 %v2765_v40, %v2572_v37  ;;  %v2837_v44 = vadd.f32 %v2765_v40, %v2576_v6 }
 0x224   :  { %v2801_v52 = vmul.f32 %v2540_v62, %v3866_v12  ;;  %v2821_v62 = vadd.f32 %v2765_v40, %v2560_v34  ;;  %v2841_v34 = vadd.f32 %v2765_v40, %v2580_v14  ;;  %v2845_v57 = vadd.f32 %v2765_v40, %v2584_v18 }
 0x225   :  { %v2849_v60 = vadd.f32 %v2765_v40, %v2588_v16  ;;  %v2853_v37 = vadd.f32 %v2765_v40, %v2592_v25  ;;  %v2857_v6 = vadd.f32 %v2765_v40, %v2596_v42  ;;  %v2861_v14 = vadd.f32 %v2765_v40, %v2600_v5 }
 0x226   :  { %v2865_v18 = vadd.f32 %v2765_v40, %v2604_v1  ;;  %v2869_v16 = vadd.f32 %v2765_v40, %v2608_v3  ;;  %v2873_v25 = vadd.f32 %v2765_v40, %v2612_v8  ;;  %v2877_v42 = vadd.f32 %v2765_v40, %v2616_v30  ;;  %v3872_v12 = vld [vmem:[#allocation16_spill] sm:$0xff] }
 0x227   :  { %v2881_v5 = vadd.f32 %v2765_v40, %v2620_v59  ;;  %v2885_v1 = vadd.f32 %v2765_v40, %v2624_v13  ;;  %v2889_v3 = vadd.f32 %v2765_v40, %v2628_v11  ;;  %v2893_v8 = vadd.f32 %v2765_v40, %v2632_v23 }
 0x228   :  { %v2897_v30 = vadd.f32 %v2765_v40, %v2636_v21  ;;  %v2901_v59 = vadd.f32 %v2765_v40, %v2640_v28  ;;  %v2905_v13 = vadd.f32 %v2765_v40, %v2644_v26  ;;  %v2909_v11 = vadd.f32 %v2765_v40, %v2648_v33 }
 0x229   :  { %v2913_v23 = vadd.f32 %v2765_v40, %v2652_v31  ;;  %v2917_v21 = vadd.f32 %v2765_v40, %v2656_v38  ;;  %v2921_v28 = vadd.f32 %v2765_v40, %v2660_v36  ;;  %v2925_v26 = vadd.f32 %v2765_v40, %v2664_v43 }
 0x22a   :  { %v2929_v33 = vadd.f32 %v2765_v40, %v2668_v41  ;;  %v2933_v31 = vadd.f32 %v2765_v40, %v2672_v48  ;;  %v2937_v38 = vadd.f32 %v2765_v40, %v2676_v46  ;;  %v2941_v36 = vadd.f32 %v2765_v40, %v2680_v53 }
 0x22b   :  { %v2945_v43 = vadd.f32 %v2765_v40, %v2684_v51  ;;  %v2949_v41 = vadd.f32 %v2765_v40, %v2688_v58  ;;  %v2953_v48 = vadd.f32 %v2765_v40, %v2692_v56  ;;  %v2957_v46 = vadd.f32 %v2765_v40, %v2696_v63 }
 0x22c   :  { %v2961_v53 = vadd.f32 %v2765_v40, %v2700_v61  ;;  %v2965_v51 = vadd.f32 %v2765_v40, %v2704_v4  ;;  %v2969_v58 = vadd.f32 %v2765_v40, %v2708_v2  ;;  %v2973_v56 = vadd.f32 %v2765_v40, %v2712_v9 }
 0x22d   :  { %v2977_v63 = vadd.f32 %v2765_v40, %v2716_v7  ;;  %v2981_v61 = vadd.f32 %v2765_v40, %v2720_v49  ;;  %v2985_v4 = vadd.f32 %v2765_v40, %v2724_v15  ;;  %v2989_v2 = vadd.f32 %v2765_v40, %v2728_v55 }
 0x22e   :  { %v2993_v9 = vadd.f32 %v2765_v40, %v2732_v45  ;;  %v2997_v7 = vadd.f32 %v2765_v40, %v2736_v39  ;;  %v3001_v49 = vadd.f32 %v2765_v40, %v2740_v10  ;;  %v3005_v15 = vadd.f32 %v2765_v40, %v3872_v12 }
 0x22f   :  { %3867 = vst [vmem:[#allocation7_spill] sm:$0xff] %v2985_v4  ;;  %3868 = vst [vmem:[#allocation6_spill] sm:$0xff] %v2989_v2  ;;  %v3873_v4 = vld [vmem:[#allocation2_spill] sm:$0xff]  ;;  %v3875_v2 = vld [vmem:[#allocation3_spill] sm:$0xff]  ;;  %vm1090_vm2 = vcmp.ge.f32.partialorder %v2805_v0, 0.0  ;;  %vm1091_vm3 = vcmp.ge.f32.partialorder %v2809_v17, 0.0 }
 0x230   :  { %3869 = vst [vmem:[#allocation9_spill] sm:$0xff] %v2993_v9  ;;  %3870 = vst [vmem:[#allocation8_spill] sm:$0xff] %v2997_v7  ;;  %v3009_v55 = vadd.f32 %v2765_v40, %v3873_v4  ;;  %v3013_v45 = vadd.f32 %v2765_v40, %v3875_v2  ;;  %v3876_v9 = vld [vmem:[#allocation4_spill] sm:$0xff]  ;;  %v3878_v7 = vld [vmem:[#allocation17_spill] sm:$0xff]  ;;  %v3029_v4 = vadd.f32 %v2765_v40, %v2773_v22  ;;  %vm1092_vm4 = vcmp.ge.f32.partialorder %v2813_v32, 0.0 }
 0x231   :  { %3871 = vst [vmem:[#allocation11_spill] sm:$0xff] %v3001_v49  ;;  %v3017_v39 = vadd.f32 %v2765_v40, %v3876_v9  ;;  %v3021_v10 = vadd.f32 %v2765_v40, %v3878_v7  ;;  %v3880_v49 = vld [vmem:[#allocation5_spill] sm:$0xff]  ;;  %v3037_v9 = vadd.f32 %v2765_v40, %v2781_v20  ;;  %v3041_v7 = vadd.f32 %v2765_v40, %v2785_v47 }
 0x232   :  { %3874 = vst [vmem:[#allocation10_spill] sm:$0xff] %v3009_v55  ;;  %v3025_v12 = vadd.f32 %v2765_v40, %v3880_v49  ;;  %3882 = vst [vmem:[#allocation14_spill] sm:$0xff] %v3029_v4  ;;  %v3883_v55 = vld [vmem:[#allocation18_spill] sm:$0xff]  ;;  %v3045_v49 = vadd.f32 %v2765_v40, %v2789_v24  ;;  %v3049_v22 = vadd.f32 %v2765_v40, %v2793_v54  ;;  %vm1093_vm5 = vcmp.ge.f32.partialorder %v2817_v50, 0.0 }
 0x233   :  { %3877 = vst [vmem:[#allocation13_spill] sm:$0xff] %v3017_v39  ;;  %3879 = vst [vmem:[#allocation12_spill] sm:$0xff] %v3021_v10  ;;  %v3033_v2 = vadd.f32 %v2765_v40, %v3883_v55  ;;  %vm1094_vm6 = vcmp.ge.f32.partialorder %v2821_v62, 0.0  ;;  %vm1095_vm7 = vcmp.ge.f32.partialorder %v2825_v27, 0.0  ;;  %vm1096_vm8 = vcmp.ge.f32.partialorder %v2829_v19, 0.0 }
 0x234   :  { %3881 = vst [vmem:[#allocation15_spill] sm:$0xff] %v3025_v12  ;;  %3885 = vst [vmem:[#allocation20_spill] sm:$0xff] %v3037_v9  ;;  %vm1097_vm9 = vcmp.ge.f32.partialorder %v2833_v29, 0.0  ;;  %vm1098_vm10 = vcmp.ge.f32.partialorder %v2837_v44, 0.0  ;;  %v3062_v47 = vadd.f32 %v2765_v40, %v2797_v35  ;;  %vm1099_vm11 = vcmp.ge.f32.partialorder %v2841_v34, 0.0 }
 0x235   :  { %3884 = vst [vmem:[#allocation19_spill] sm:$0xff] %v3033_v2  ;;  %3886 = vst [vmem:[#allocation16_spill] sm:$0xff] %v3041_v7  ;;  %v1154_v20 = vmul.f32 0.01, %v2805_v0  ;;  %v1155_v24 = vmul.f32 0.01, %v2809_v17  ;;  %v3070_v55 = vadd.f32 %v2765_v40, %v2801_v52 }
 0x236   :  { %3887 = vst [vmem:[#allocation2_spill] sm:$0xff] %v3045_v49  ;;  %3888 = vst [vmem:[#allocation3_spill] sm:$0xff] %v3049_v22  ;;  %v1156_v54 = vmul.f32 0.01, %v2813_v32  ;;  %vm1100_vm12 = vcmp.ge.f32.partialorder %v2845_v57, 0.0  ;;  %vm1101_vm13 = vcmp.ge.f32.partialorder %v2849_v60, 0.0 }
 0x237   :  { %3889 = vst [vmem:[#allocation4_spill] sm:$0xff] %v3062_v47  ;;  %3890 = vst [vmem:[#allocation17_spill] sm:$0xff] %v3070_v55  ;;  %v1157_v22 = vmul.f32 0.01, %v2817_v50  ;;  %v1158_v49 = vmul.f32 0.01, %v2821_v62  ;;  %v1218_v40 = vsel %vm1090_vm2, %v2805_v0, %v1154_v20  ;;  %v1219_v4 = vsel %vm1091_vm3, %v2809_v17, %v1155_v24 }
 0x238   :  { %v1159_v35 = vmul.f32 0.01, %v2825_v27  ;;  %v1160_v47 = vmul.f32 0.01, %v2829_v19  ;;  %v1161_v7 = vmul.f32 0.01, %v2833_v29  ;;  %1282 = vst [vmem:[%s3737_s4] sm:$0xff] %v1218_v40  ;;  %v1220_v10 = vsel %vm1092_vm4, %v2813_v32, %v1156_v54 }
 0x239   :  { %v1162_v9 = vmul.f32 0.01, %v2837_v44  ;;  %vm1102_vm14 = vcmp.ge.f32.partialorder %v2853_v37, 0.0  ;;  %v1163_v52 = vmul.f32 0.01, %v2841_v34  ;;  %vm1103_vm15 = vcmp.ge.f32.partialorder %v2857_v6, 0.0 }
 0x23a   :  { %v3086_v55 = vmul.f32 0.01, %v2845_v57  ;;  %v3089_v2 = vmul.f32 0.01, %v2849_v60  ;;  %v3099_v0 = vmul.f32 0.01, %v2853_v37  ;;  %v1221_v39 = vsel %vm1093_vm5, %v2817_v50, %v1157_v22 }
 0x23b   :  { %v3102_v20 = vmul.f32 0.01, %v2857_v6  ;;  %v3105_v12 = vmul.f32 0.01, %v2861_v14  ;;  %1283 = vst [vmem:[%s3737_s4 + $0x8] sm:$0xff] %v1219_v4  ;;  %vm1104_vm0 = vcmp.ge.f32.partialorder %v2861_v14, 0.0 }
 0x23c   :  { %v3115_v17 = vmul.f32 0.01, %v2865_v18  ;;  %v3118_v24 = vmul.f32 0.01, %v2869_v16  ;;  %v3121_v40 = vmul.f32 0.01, %v2873_v25 }
 0x23d   :  { %1284 = vst [vmem:[%s3737_s4 + $0x10] sm:$0xff] %v1220_v10  ;;  %vm1105_vm1 = vcmp.ge.f32.partialorder %v2865_v18, 0.0  ;;  %v3131_v32 = vmul.f32 0.01, %v2877_v42  ;;  %v3134_v4 = vmul.f32 0.01, %v2881_v5 }
 0x23e   :  { %3891 = vst [vmem:[#allocation5_spill] sm:$0xff] %v3121_v40  ;;  %v3137_v54 = vmul.f32 0.01, %v2885_v1  ;;  %v1222_v40 = vsel %vm1094_vm6, %v2821_v62, %v1158_v49  ;;  %1285 = vst [vmem:[%s3737_s4 + $0x18] sm:$0xff] %v1221_v39  ;;  %vm1106_vm2 = vcmp.ge.f32.partialorder %v2869_v16, 0.0  ;;  %vm1107_vm3 = vcmp.ge.f32.partialorder %v2873_v25, 0.0 }
 0x23f   :  { %v3147_v50 = vmul.f32 0.01, %v2889_v3  ;;  %v3150_v10 = vmul.f32 0.01, %v2893_v8  ;;  %v3153_v22 = vmul.f32 0.01, %v2897_v30 }
 0x240   :  { %3892 = vst [vmem:[#allocation18_spill] sm:$0xff] %v3137_v54  ;;  %v1223_v54 = vsel %vm1095_vm7, %v2825_v27, %v1159_v35  ;;  %1286 = vst [vmem:[%s3737_s4 + $0x20] sm:$0xff] %v1222_v40  ;;  %v3163_v62 = vmul.f32 0.01, %v2901_v59  ;;  %v3166_v39 = vmul.f32 0.01, %v2905_v13 }
 0x241   :  { %3893 = vst [vmem:[#allocation21_spill] sm:$0xff] %v3153_v22  ;;  %v3169_v49 = vmul.f32 0.01, %v2909_v11  ;;  %v1224_v22 = vsel %vm1096_vm8, %v2829_v19, %v1160_v47  ;;  %1287 = vst [vmem:[%s3737_s4 + $0x28] sm:$0xff] %v1223_v54  ;;  %vm1108_vm4 = vcmp.ge.f32.partialorder %v2877_v42, 0.0  ;;  %vm1109_vm5 = vcmp.ge.f32.partialorder %v2881_v5, 0.0 }
 0x242   :  { %v3179_v27 = vmul.f32 0.01, %v2913_v23  ;;  %v3182_v35 = vmul.f32 0.01, %v2917_v21  ;;  %v3185_v40 = vmul.f32 0.01, %v2921_v28 }
 0x243   :  { %3894 = vst [vmem:[#allocation22_spill] sm:$0xff] %v3169_v49  ;;  %v1225_v49 = vsel %vm1097_vm9, %v2833_v29, %v1161_v7  ;;  %1288 = vst [vmem:[%s3737_s4 + $0x30] sm:$0xff] %v1224_v22  ;;  %v3197_v19 = vmul.f32 0.01, %v2925_v26  ;;  %v3200_v47 = vmul.f32 0.01, %v2929_v33  ;;  %v1226_v29 = vsel %vm1098_vm10, %v2837_v44, %v1162_v9 }
 0x244   :  { %v3203_v54 = vmul.f32 0.01, %v2933_v31  ;;  %1289 = vst [vmem:[%s3737_s4 + $0x38] sm:$0xff] %v1225_v49  ;;  %vm1112_vm8 = vcmp.ge.f32.partialorder %v2893_v8, 0.0  ;;  %v3216_v7 = vmul.f32 0.01, %v2937_v38  ;;  %v1227_v9 = vsel %vm1099_vm11, %v2841_v34, %v1163_v52 }
 0x245   :  { %v3219_v22 = vmul.f32 0.01, %v2941_v36  ;;  %v3222_v44 = vmul.f32 0.01, %v2945_v43  ;;  %1290 = vst [vmem:[%s3737_s4 + $0x40] sm:$0xff] %v1226_v29  ;;  %vm1116_vm10 = vcmp.ge.f32.partialorder %v2909_v11, 0.0  ;;  %v1228_v52 = vsel %vm1100_vm12, %v2845_v57, %v3086_v55 }
 0x246   :  { %v3235_v49 = vmul.f32 0.01, %v2949_v41  ;;  %v3241_v34 = vmul.f32 0.01, %v2957_v46  ;;  %1291 = vst [vmem:[%s3737_s4 + $0x48] sm:$0xff] %v1227_v9  ;;  %vm1120_vm11 = vcmp.ge.f32.partialorder %v2925_v26, 0.0  ;;  %v1229_v55 = vsel %vm1101_vm13, %v2849_v60, %v3089_v2 }
 0x247   :  { %3895 = vst [vmem:[#allocation23_spill] sm:$0xff] %v3222_v44  ;;  %v3238_v44 = vmul.f32 0.01, %v2953_v48  ;;  %v3255_v29 = vmul.f32 0.01, %v2961_v53  ;;  %1292 = vst [vmem:[%s3737_s4 + $0x50] sm:$0xff] %v1228_v52  ;;  %v1230_v2 = vsel %vm1102_vm14, %v2853_v37, %v3099_v0  ;;  %v1231_v0 = vsel %vm1103_vm15, %v2857_v6, %v3102_v20 }
 0x248   :  { %3896 = vst [vmem:[#allocation24_spill] sm:$0xff] %v3241_v34  ;;  %v3258_v34 = vmul.f32 0.01, %v2965_v51  ;;  %v3261_v57 = vmul.f32 0.01, %v2969_v58  ;;  %vm1124_vm12 = vcmp.ge.f32.partialorder %v2941_v36, 0.0  ;;  %v1232_v20 = vsel %vm1104_vm0, %v2861_v14, %v3105_v12 }
 0x249   :  { %v3275_v9 = vmul.f32 0.01, %v2973_v56  ;;  %v3281_v60 = vmul.f32 0.01, %v2981_v61  ;;  %1293 = vst [vmem:[%s3737_s4 + $0x58] sm:$0xff] %v1229_v55  ;;  %vm1128_vm13 = vcmp.ge.f32.partialorder %v2957_v46, 0.0  ;;  %v1233_v12 = vsel %vm1105_vm1, %v2865_v18, %v3115_v17 }
 0x24a   :  { %3897 = vst [vmem:[#allocation25_spill] sm:$0xff] %v3258_v34  ;;  %3898 = vst [vmem:[#allocation26_spill] sm:$0xff] %v3261_v57  ;;  %v3278_v57 = vmul.f32 0.01, %v2977_v63  ;;  %v3902_v52 = vld [vmem:[#allocation7_spill] sm:$0xff]  ;;  %v3906_v34 = vld [vmem:[#allocation9_spill] sm:$0xff]  ;;  %v1234_v17 = vsel %vm1106_vm2, %v2869_v16, %v3118_v24 }
 0x24b   :  { %3899 = vst [vmem:[#allocation27_spill] sm:$0xff] %v3275_v9  ;;  %3901 = vst [vmem:[#allocation29_spill] sm:$0xff] %v3281_v60  ;;  %v3904_v60 = vld [vmem:[#allocation6_spill] sm:$0xff]  ;;  %v3301_v37 = vmul.f32 0.01, %v3906_v34  ;;  %vm1132_vm14 = vcmp.ge.f32.partialorder %v2973_v56, 0.0 }
 0x24c   :  { %3900 = vst [vmem:[#allocation28_spill] sm:$0xff] %v3278_v57  ;;  %v3295_v57 = vmul.f32 0.01, %v3902_v52  ;;  %v3298_v9 = vmul.f32 0.01, %v3904_v60  ;;  %1294 = vst [vmem:[%s3737_s4 + $0x60] sm:$0xff] %v1230_v2 }
 0x24d   :  { %3907 = vst [vmem:[#allocation9_spill] sm:$0xff] %v3301_v37  ;;  %v3908_v55 = vld [vmem:[#allocation8_spill] sm:$0xff]  ;;  %v3910_v37 = vld [vmem:[#allocation11_spill] sm:$0xff]  ;;  %v3321_v6 = vmul.f32 0.01, %v3005_v15  ;;  %1295 = vst [vmem:[%s3737_s4 + $0x68] sm:$0xff] %v1231_v0 }
 0x24e   :  { %3903 = vst [vmem:[#allocation7_spill] sm:$0xff] %v3295_v57  ;;  %3905 = vst [vmem:[#allocation6_spill] sm:$0xff] %v3298_v9  ;;  %v3315_v9 = vmul.f32 0.01, %v3908_v55  ;;  %v3318_v57 = vmul.f32 0.01, %v3910_v37 }
 0x24f   :  { %3912 = vst [vmem:[#allocation31_spill] sm:$0xff] %v3321_v6  ;;  %vm1136_vm15 = vcmp.ge.f32.partialorder %v3904_v60, 0.0  ;;  %v3913_v2 = vld [vmem:[#allocation10_spill] sm:$0xff]  ;;  %v3338_v6 = vmul.f32 0.01, %v3013_v45  ;;  %1296 = vst [vmem:[%s3737_s4 + $0x70] sm:$0xff] %v1232_v20 }
 0x250   :  { %3909 = vst [vmem:[#allocation8_spill] sm:$0xff] %v3315_v9  ;;  %3911 = vst [vmem:[#allocation30_spill] sm:$0xff] %v3318_v57  ;;  %v3335_v57 = vmul.f32 0.01, %v3913_v2  ;;  %v3916_v9 = vld [vmem:[#allocation13_spill] sm:$0xff]  ;;  %vm1140_vm0 = vcmp.ge.f32.partialorder %v3005_v15, 0.0 }
 0x251   :  { %3915 = vst [vmem:[#allocation32_spill] sm:$0xff] %v3338_v6  ;;  %v3341_v14 = vmul.f32 0.01, %v3916_v9  ;;  %v3918_v0 = vld [vmem:[#allocation12_spill] sm:$0xff]  ;;  %v3922_v37 = vld [vmem:[#allocation14_spill] sm:$0xff]  ;;  %1297 = vst [vmem:[%s3737_s4 + $0x78] sm:$0xff] %v1233_v12 }
 0x252   :  { %3914 = vst [vmem:[#allocation10_spill] sm:$0xff] %v3335_v57  ;;  %v3355_v6 = vmul.f32 0.01, %v3918_v0  ;;  %v3361_v18 = vmul.f32 0.01, %v3922_v37  ;;  %vm1144_vm1 = vcmp.ge.f32.partialorder %v3918_v0, 0.0 }
 0x253   :  { %3917 = vst [vmem:[#allocation33_spill] sm:$0xff] %v3341_v14  ;;  %v3920_v14 = vld [vmem:[#allocation15_spill] sm:$0xff]  ;;  %v3928_v9 = vld [vmem:[#allocation16_spill] sm:$0xff]  ;;  %v3930_v24 = vld [vmem:[#allocation5_spill] sm:$0xff]  ;;  %vm3938_vm7 = vcmp.ge.f32.partialorder %v2889_v3, 0.0 }
 0x254   :  { %3919 = vst [vmem:[#allocation12_spill] sm:$0xff] %v3355_v6  ;;  %v3358_v57 = vmul.f32 0.01, %v3920_v14  ;;  %3923 = vst [vmem:[#allocation34_spill] sm:$0xff] %v3361_v18  ;;  %v3924_v20 = vld [vmem:[#allocation19_spill] sm:$0xff]  ;;  %v3926_v18 = vld [vmem:[#allocation20_spill] sm:$0xff]  ;;  %v1235_v12 = vsel %vm1107_vm3, %v2873_v25, %v3930_v24 }
 0x255   :  { %v3378_v6 = vmul.f32 0.01, %v3926_v18  ;;  %v3381_v16 = vmul.f32 0.01, %v3928_v9  ;;  %1298 = vst [vmem:[%s3737_s4 + $0x80] sm:$0xff] %v1234_v17  ;;  %vm1148_vm2 = vcmp.ge.f32.partialorder %v3926_v18, 0.0  ;;  %v1236_v17 = vsel %vm1108_vm4, %v2877_v42, %v3131_v32 }
 0x256   :  { %3921 = vst [vmem:[#allocation15_spill] sm:$0xff] %v3358_v57  ;;  %v3375_v57 = vmul.f32 0.01, %v3924_v20  ;;  %vm1149_vm6 = vcmp.ge.f32.partialorder %v3928_v9, 0.0  ;;  %v3931_v20 = vld [vmem:[#allocation2_spill] sm:$0xff]  ;;  %v3933_v37 = vld [vmem:[#allocation4_spill] sm:$0xff]  ;;  %v1239_v32 = vsel %vm3938_vm7, %v2889_v3, %v3147_v50 }
 0x257   :  { %3927 = vst [vmem:[#allocation20_spill] sm:$0xff] %v3378_v6  ;;  %3929 = vst [vmem:[#allocation16_spill] sm:$0xff] %v3381_v16  ;;  %v3395_v6 = vmul.f32 0.01, %v3931_v20  ;;  %v3401_v25 = vmul.f32 0.01, %v3933_v37 }
 0x258   :  { %3925 = vst [vmem:[#allocation35_spill] sm:$0xff] %v3375_v57  ;;  %v3932_v57 = vld [vmem:[#allocation3_spill] sm:$0xff]  ;;  %1299 = vst [vmem:[%s3737_s4 + $0x88] sm:$0xff] %v1235_v12  ;;  %vm1152_vm3 = vcmp.ge.f32.partialorder %v3933_v37, 0.0  ;;  %v3935_v24 = vld [vmem:[#allocation17_spill] sm:$0xff]  ;;  %vm3937_vm4 = vcmp.ge.f32.partialorder %v2885_v1, 0.0  ;;  %v1240_v12 = vsel %vm1112_vm8, %v2893_v8, %v3150_v10 }
 0x259   :  { %v3398_v16 = vmul.f32 0.01, %v3932_v57  ;;  %3934 = vst [vmem:[#allocation5_spill] sm:$0xff] %v3401_v25  ;;  %vm1153_vm9 = vcmp.ge.f32.partialorder %v3935_v24, 0.0  ;;  %v3413_v20 = vmul.f32 0.01, %v3935_v24  ;;  %v1237_v25 = vsel %vm1109_vm5, %v2881_v5, %v3134_v4 }
 0x25a   :  { %v3936_v57 = vld [vmem:[#allocation18_spill] sm:$0xff]  ;;  %1300 = vst [vmem:[%s3737_s4 + $0x90] sm:$0xff] %v1236_v17  ;;  %v3939_v5 = vld [vmem:[#allocation21_spill] sm:$0xff]  ;;  %vm3940_vm5 = vcmp.ge.f32.partialorder %v2897_v30, 0.0  ;;  %vm3942_vm7 = vcmp.ge.f32.partialorder %v2905_v13, 0.0  ;;  %1301 = vst [vmem:[%s3737_s4 + $0x98] sm:$0xff] %v1237_v25 }
 0x25b   :  { %v1238_v42 = vsel %vm3937_vm4, %v2885_v1, %v3936_v57  ;;  %v1241_v4 = vsel %vm3940_vm5, %v2897_v30, %v3939_v5  ;;  %vm3941_vm4 = vcmp.ge.f32.partialorder %v2901_v59, 0.0  ;;  %v1243_v3 = vsel %vm3942_vm7, %v2905_v13, %v3166_v39  ;;  %1303 = vst [vmem:[%s3737_s4 + $0xa8] sm:$0xff] %v1239_v32  ;;  %v3943_v8 = vld [vmem:[#allocation22_spill] sm:$0xff]  ;;  %1304 = vst [vmem:[%s3737_s4 + $0xb0] sm:$0xff] %v1240_v12  ;;  %v3980_v17 = vld [vmem:[#allocation33_spill] sm:$0xff] }
 0x25c   :  { %v1242_v1 = vsel %vm3941_vm4, %v2901_v59, %v3163_v62  ;;  %1302 = vst [vmem:[%s3737_s4 + $0xa0] sm:$0xff] %v1238_v42  ;;  %v1244_v30 = vsel %vm1116_vm10, %v2909_v11, %v3943_v8  ;;  %vm3944_vm8 = vcmp.ge.f32.partialorder %v2913_v23, 0.0  ;;  %vm3945_vm5 = vcmp.ge.f32.partialorder %v2917_v21, 0.0  ;;  %1305 = vst [vmem:[%s3737_s4 + $0xb8] sm:$0xff] %v1241_v4  ;;  %v3958_v39 = vld [vmem:[#allocation26_spill] sm:$0xff]  ;;  %v3981_v42 = vld [vmem:[#allocation13_spill] sm:$0xff] }
 0x25d   :  { %v1245_v59 = vsel %vm3944_vm8, %v2913_v23, %v3179_v27  ;;  %v1246_v13 = vsel %vm3945_vm5, %v2917_v21, %v3182_v35  ;;  %vm3946_vm4 = vcmp.ge.f32.partialorder %v2921_v28, 0.0  ;;  %1306 = vst [vmem:[%s3737_s4 + $0xc0] sm:$0xff] %v1242_v1  ;;  %1307 = vst [vmem:[%s3737_s4 + $0xc8] sm:$0xff] %v1243_v3  ;;  %v1248_v11 = vsel %vm1120_vm11, %v2925_v26, %v3197_v19  ;;  %v3963_v35 = vld [vmem:[#allocation29_spill] sm:$0xff]  ;;  %v3965_v19 = vld [vmem:[#allocation7_spill] sm:$0xff] }
 0x25e   :  { %v1247_v50 = vsel %vm3946_vm4, %v2921_v28, %v3185_v40  ;;  %vm3947_vm10 = vcmp.ge.f32.partialorder %v2929_v33, 0.0  ;;  %vm3948_vm7 = vcmp.ge.f32.partialorder %v2933_v31, 0.0  ;;  %vm3949_vm8 = vcmp.ge.f32.partialorder %v2937_v38, 0.0  ;;  %1308 = vst [vmem:[%s3737_s4 + $0xd0] sm:$0xff] %v1244_v30  ;;  %1309 = vst [vmem:[%s3737_s4 + $0xd8] sm:$0xff] %v1245_v59  ;;  %v3986_v5 = vld [vmem:[#allocation34_spill] sm:$0xff] }
 0x25f   :  { %v1249_v23 = vsel %vm3947_vm10, %v2929_v33, %v3200_v47  ;;  %v1250_v21 = vsel %vm3948_vm7, %v2933_v31, %v3203_v54  ;;  %v1251_v28 = vsel %vm3949_vm8, %v2937_v38, %v3216_v7  ;;  %1310 = vst [vmem:[%s3737_s4 + $0xe0] sm:$0xff] %v1246_v13  ;;  %1311 = vst [vmem:[%s3737_s4 + $0xe8] sm:$0xff] %v1247_v50  ;;  %v3950_v33 = vld [vmem:[#allocation23_spill] sm:$0xff]  ;;  %vm3951_vm11 = vcmp.ge.f32.partialorder %v2945_v43, 0.0  ;;  %v3970_v7 = vld [vmem:[#allocation8_spill] sm:$0xff] }
 0x260   :  { %v1252_v26 = vsel %vm1124_vm12, %v2941_v36, %v3219_v22  ;;  %v1253_v31 = vsel %vm3951_vm11, %v2945_v43, %v3950_v33  ;;  %vm3952_vm5 = vcmp.ge.f32.partialorder %v2949_v41, 0.0  ;;  %vm3953_vm4 = vcmp.ge.f32.partialorder %v2953_v48, 0.0  ;;  %1312 = vst [vmem:[%s3737_s4 + $0xf0] sm:$0xff] %v1248_v11  ;;  %1313 = vst [vmem:[%s3737_s4 + $0xf8] sm:$0xff] %v1249_v23  ;;  %v3954_v36 = vld [vmem:[#allocation24_spill] sm:$0xff]  ;;  %v3987_v4 = vld [vmem:[#allocation14_spill] sm:$0xff] }
 0x261   :  { %v1254_v38 = vsel %vm3952_vm5, %v2949_v41, %v3235_v49  ;;  %v1255_v10 = vsel %vm3953_vm4, %v2953_v48, %v3238_v44  ;;  %1314 = vst [vmem:[%s3737_s4 + $0x100] sm:$0xff] %v1250_v21  ;;  %1315 = vst [vmem:[%s3737_s4 + $0x108] sm:$0xff] %v1251_v28  ;;  %v1256_v43 = vsel %vm1128_vm13, %v2957_v46, %v3954_v36  ;;  %vm3955_vm12 = vcmp.ge.f32.partialorder %v2961_v53, 0.0  ;;  %v3956_v48 = vld [vmem:[#allocation25_spill] sm:$0xff]  ;;  %v3960_v46 = vld [vmem:[#allocation27_spill] sm:$0xff] }
 0x262   :  { %v1257_v41 = vsel %vm3955_vm12, %v2961_v53, %v3255_v29  ;;  %vm3957_vm10 = vcmp.ge.f32.partialorder %v2965_v51, 0.0  ;;  %vm3959_vm7 = vcmp.ge.f32.partialorder %v2969_v58, 0.0  ;;  %1316 = vst [vmem:[%s3737_s4 + $0x110] sm:$0xff] %v1252_v26  ;;  %1317 = vst [vmem:[%s3737_s4 + $0x118] sm:$0xff] %v1253_v31  ;;  %v1260_v53 = vsel %vm1132_vm14, %v2973_v56, %v3960_v46  ;;  %v3967_v56 = vld [vmem:[#allocation6_spill] sm:$0xff]  ;;  %v3973_v49 = vld [vmem:[#allocation11_spill] sm:$0xff] }
 0x263   :  { %v1258_v62 = vsel %vm3957_vm10, %v2965_v51, %v3956_v48  ;;  %v1259_v27 = vsel %vm3959_vm7, %v2969_v58, %v3958_v39  ;;  %1318 = vst [vmem:[%s3737_s4 + $0x120] sm:$0xff] %v1254_v38  ;;  %1319 = vst [vmem:[%s3737_s4 + $0x128] sm:$0xff] %v1255_v10  ;;  %v3961_v51 = vld [vmem:[#allocation28_spill] sm:$0xff]  ;;  %vm3962_vm13 = vcmp.ge.f32.partialorder %v2977_v63, 0.0  ;;  %vm3964_vm8 = vcmp.ge.f32.partialorder %v2981_v61, 0.0  ;;  %v3972_v44 = vld [vmem:[#allocation30_spill] sm:$0xff] }
 0x264   :  { %v1261_v58 = vsel %vm3962_vm13, %v2977_v63, %v3961_v51  ;;  %v1262_v40 = vsel %vm3964_vm8, %v2981_v61, %v3963_v35  ;;  %vm3966_vm11 = vcmp.ge.f32.partialorder %v3902_v52, 0.0  ;;  %1320 = vst [vmem:[%s3737_s4 + $0x130] sm:$0xff] %v1256_v43  ;;  %1321 = vst [vmem:[%s3737_s4 + $0x138] sm:$0xff] %v1257_v41  ;;  %v1264_v63 = vsel %vm1136_vm15, %v3904_v60, %v3967_v56  ;;  %v3968_v61 = vld [vmem:[#allocation9_spill] sm:$0xff]  ;;  %v3976_v60 = vld [vmem:[#allocation10_spill] sm:$0xff] }
 0x265   :  { %v1263_v47 = vsel %vm3966_vm11, %v3902_v52, %v3965_v19  ;;  %1322 = vst [vmem:[%s3737_s4 + $0x140] sm:$0xff] %v1258_v62  ;;  %1323 = vst [vmem:[%s3737_s4 + $0x148] sm:$0xff] %v1259_v27  ;;  %vm3969_vm14 = vcmp.ge.f32.partialorder %v3906_v34, 0.0  ;;  %vm3971_vm5 = vcmp.ge.f32.partialorder %v3908_v55, 0.0  ;;  %vm3974_vm4 = vcmp.ge.f32.partialorder %v3973_v49, 0.0  ;;  %v3989_v3 = vld [vmem:[#allocation35_spill] sm:$0xff] }
 0x266   :  { %v1265_v54 = vsel %vm3969_vm14, %v3906_v34, %v3968_v61  ;;  %v1266_v22 = vsel %vm3971_vm5, %v3908_v55, %v3970_v7  ;;  %v1267_v29 = vsel %vm3974_vm4, %v3973_v49, %v3972_v44  ;;  %1324 = vst [vmem:[%s3737_s4 + $0x150] sm:$0xff] %v1260_v53  ;;  %1325 = vst [vmem:[%s3737_s4 + $0x158] sm:$0xff] %v1261_v58  ;;  %v3975_v34 = vld [vmem:[#allocation31_spill] sm:$0xff]  ;;  %vm3977_vm15 = vcmp.ge.f32.partialorder %v3913_v2, 0.0  ;;  %v3978_v55 = vld [vmem:[#allocation32_spill] sm:$0xff] }
 0x267   :  { %1326 = vst [vmem:[%s3737_s4 + $0x160] sm:$0xff] %v1262_v40  ;;  %1327 = vst [vmem:[%s3737_s4 + $0x168] sm:$0xff] %v1263_v47  ;;  %v1268_v57 = vsel %vm1140_vm0, %v3005_v15, %v3975_v34  ;;  %v1269_v52 = vsel %vm3977_vm15, %v3913_v2, %v3976_v60  ;;  %vm3979_vm12 = vcmp.ge.f32.partialorder %v3013_v45, 0.0  ;;  %vm3982_vm10 = vcmp.ge.f32.partialorder %v3981_v42, 0.0  ;;  %v3983_v15 = vld [vmem:[#allocation12_spill] sm:$0xff]  ;;  %v3984_v2 = vld [vmem:[#allocation15_spill] sm:$0xff] }
 0x268   :  { %v1270_v25 = vsel %vm3979_vm12, %v3013_v45, %v3978_v55  ;;  %v1271_v32 = vsel %vm3982_vm10, %v3981_v42, %v3980_v17  ;;  %1328 = vst [vmem:[%s3737_s4 + $0x170] sm:$0xff] %v1264_v63  ;;  %1329 = vst [vmem:[%s3737_s4 + $0x178] sm:$0xff] %v1265_v54  ;;  %v1272_v45 = vsel %vm1144_vm1, %v3918_v0, %v3983_v15  ;;  %vm3985_vm0 = vcmp.ge.f32.partialorder %v3920_v14, 0.0  ;;  %v3990_v8 = vld [vmem:[#allocation19_spill] sm:$0xff]  ;;  %v3993_v59 = vld [vmem:[#allocation16_spill] sm:$0xff] }
 0x269   :  { %1330 = vst [vmem:[%s3737_s4 + $0x180] sm:$0xff] %v1266_v22  ;;  %1331 = vst [vmem:[%s3737_s4 + $0x188] sm:$0xff] %v1267_v29  ;;  %v1273_v12 = vsel %vm3985_vm0, %v3920_v14, %v3984_v2  ;;  %vm3988_vm7 = vcmp.ge.f32.partialorder %v3987_v4, 0.0  ;;  %vm3991_vm13 = vcmp.ge.f32.partialorder %v3990_v8, 0.0  ;;  %v3992_v14 = vld [vmem:[#allocation20_spill] sm:$0xff]  ;;  %v1277_v13 = vsel %vm1149_vm6, %v3928_v9, %v3993_v59  ;;  %v3994_v50 = vld [vmem:[#allocation2_spill] sm:$0xff] }
 0x26a   :  { %v1274_v1 = vsel %vm3988_vm7, %v3987_v4, %v3986_v5  ;;  %v1275_v30 = vsel %vm3991_vm13, %v3990_v8, %v3989_v3  ;;  %1332 = vst [vmem:[%s3737_s4 + $0x190] sm:$0xff] %v1268_v57  ;;  %1333 = vst [vmem:[%s3737_s4 + $0x198] sm:$0xff] %v1269_v52  ;;  %v1276_v0 = vsel %vm1148_vm2, %v3926_v18, %v3992_v14  ;;  %vm3995_vm1 = vcmp.ge.f32.partialorder %v3994_v50, 0.0  ;;  %v3996_v23 = vld [vmem:[#allocation3_spill] sm:$0xff]  ;;  %v3998_v9 = vld [vmem:[#allocation5_spill] sm:$0xff] }
 0x26b   :  { %1334 = vst [vmem:[%s3737_s4 + $0x1a0] sm:$0xff] %v1270_v25  ;;  %1335 = vst [vmem:[%s3737_s4 + $0x1a8] sm:$0xff] %v1271_v32  ;;  %v1278_v11 = vsel %vm3995_vm1, %v3994_v50, %v3395_v6  ;;  %vm3997_vm8 = vcmp.ge.f32.partialorder %v3996_v23, 0.0  ;;  %v1280_v6 = vsel %vm1152_vm3, %v3933_v37, %v3998_v9  ;;  %v1281_v18 = vsel %vm1153_vm9, %v3935_v24, %v3413_v20 }
 0x26c   :  { %v1279_v21 = vsel %vm3997_vm8, %v3996_v23, %v3398_v16  ;;  %1336 = vst [vmem:[%s3737_s4 + $0x1b0] sm:$0xff] %v1272_v45  ;;  %1337 = vst [vmem:[%s3737_s4 + $0x1b8] sm:$0xff] %v1273_v12 }
 0x26d   :  { %1338 = vst [vmem:[%s3737_s4 + $0x1c0] sm:$0xff] %v1274_v1  ;;  %1339 = vst [vmem:[%s3737_s4 + $0x1c8] sm:$0xff] %v1275_v30 }
 0x26e   :  { %1340 = vst [vmem:[%s3737_s4 + $0x1d0] sm:$0xff] %v1276_v0  ;;  %1341 = vst [vmem:[%s3737_s4 + $0x1d8] sm:$0xff] %v1277_v13 }
 0x26f   :  { %1342 = vst [vmem:[%s3737_s4 + $0x1e0] sm:$0xff] %v1278_v11  ;;  %1343 = vst [vmem:[%s3737_s4 + $0x1e8] sm:$0xff] %v1279_v21 }
 0x270   :  { %1344 = vst [vmem:[%s3737_s4 + $0x1f0] sm:$0xff] %v1280_v6  ;;  %1345 = vst [vmem:[%s3737_s4 + $0x1f8] sm:$0xff] %v1281_v18 }

// kernel: shape_prior_vae_forward.19
= control target key start
LH: loop header
LB: loop body
LE: loop exit
PB: predicated region body
PF: predicated region fallthrough
CT: control target
= control target key end

     0   :  { %vm291_vm0 = vcmask 1043456   ;;  %vm98_vm1 = vcmask 818176   ;;  %s2331_s1 = inlined_call_operand.vmem [shape: f32[100,128], index: 1, kind: input, shape index: {}]   ;;  %s2332_s0 = inlined_call_operand.vmem [shape: f32[512,100], index: 0, kind: input, shape index: {}]   ;;  %s2333_s2 = inlined_call_operand.vmem [shape: f32[1,128], index: 2, kind: input, shape index: {}]   ;;  %s2334_s3 = inlined_call_operand.vmem [shape: f32[512,128], index: 3, kind: output, shape index: {}]  }
   0x1   :  { %v90_v0 = vld [vmem:[%s2331_s1 + $0x60] sm:$0xf]  ;;  %v89_v1 = vld [vmem:[%s2331_s1 + $0x58] sm:$0xff]  ;;  %v88_v2 = vld [vmem:[%s2331_s1 + $0x50] sm:$0xff] }
   0x2   :  { %1339 = vmatprep.subr.msk.mxu0 %vm291_vm0, %v90_v0  ;;  %1461 = vmatprep.subr.msk.mxu1 %vm291_vm0, %v90_v0  ;;  %v87_v3 = vld [vmem:[%s2331_s1 + $0x48] sm:$0xff]  ;;  %v86_v4 = vld [vmem:[%s2331_s1 + $0x40] sm:$0xff]  ;;  %v85_v5 = vld [vmem:[%s2331_s1 + $0x38] sm:$0xff] }
   0x3   :  { %1340 = vmatpush3.msk.msra.mxu0 %vm291_vm0, %v90_v0  ;;  %1474 = vmatpush3.msk.msra.mxu1 %vm291_vm0, %v90_v0  ;;  %v84_v6 = vld [vmem:[%s2331_s1 + $0x30] sm:$0xff]  ;;  %v83_v7 = vld [vmem:[%s2331_s1 + $0x28] sm:$0xff]  ;;  %v82_v8 = vld [vmem:[%s2331_s1 + $0x20] sm:$0xff] }
   0x4   :  { %1341 = vmatprep.subr.mxu0 %v89_v1  ;;  %1462 = vmatprep.subr.mxu1 %v89_v1  ;;  %v81_v9 = vld [vmem:[%s2331_s1 + $0x18] sm:$0xff]  ;;  %v80_v10 = vld [vmem:[%s2331_s1 + $0x10] sm:$0xff]  ;;  %v79_v11 = vld [vmem:[%s2331_s1 + $0x8] sm:$0xff] }
   0x5   :  { %1342 = vmatpush3.msra.mxu0 %v89_v1  ;;  %1475 = vmatpush3.msra.mxu1 %v89_v1  ;;  %v78_v12 = vld [vmem:[%s2331_s1] sm:$0xff]  ;;  %v15_v15 = vld [vmem:[%s2332_s0 + $0x8] sm:$0xff]  ;;  %v16_v17 = vld [vmem:[%s2332_s0 + $0x10] sm:$0xff] }
   0x6   :  { %1343 = vmatprep.subr.mxu0 %v88_v2  ;;  %1463 = vmatprep.subr.mxu1 %v88_v2  ;;  %v14_v13 = vld [vmem:[%s2332_s0] sm:$0xff]  ;;  %v47_v16 = vld [vmem:[%s2332_s0 + $0x108] sm:$0xff]  ;;  %v48_v18 = vld [vmem:[%s2332_s0 + $0x110] sm:$0xff] }
   0x7   :  { %1344 = vmatpush3.msra.mxu0 %v88_v2  ;;  %1476 = vmatpush3.msra.mxu1 %v88_v2  ;;  %v46_v14 = vld [vmem:[%s2332_s0 + $0x100] sm:$0xff]  ;;  %v17_v19 = vld [vmem:[%s2332_s0 + $0x18] sm:$0xff]  ;;  %v19_v23 = vld [vmem:[%s2332_s0 + $0x28] sm:$0xff] }
   0x8   :  { %1345 = vmatprep.subr.mxu0 %v87_v3  ;;  %1464 = vmatprep.subr.mxu1 %v87_v3  ;;  %v49_v20 = vld [vmem:[%s2332_s0 + $0x118] sm:$0xff]  ;;  %v18_v21 = vld [vmem:[%s2332_s0 + $0x20] sm:$0xff]  ;;  %v51_v24 = vld [vmem:[%s2332_s0 + $0x128] sm:$0xff] }
   0x9   :  { %1346 = vmatpush3.msra.mxu0 %v87_v3  ;;  %1477 = vmatpush3.msra.mxu1 %v87_v3  ;;  %v50_v22 = vld [vmem:[%s2332_s0 + $0x120] sm:$0xff]  ;;  %v20_v25 = vld [vmem:[%s2332_s0 + $0x30] sm:$0xff]  ;;  %v21_v27 = vld [vmem:[%s2332_s0 + $0x38] sm:$0xff] }
   0xa   :  { %1347 = vmatprep.subr.mxu0 %v86_v4  ;;  %1465 = vmatprep.subr.mxu1 %v86_v4  ;;  %v52_v26 = vld [vmem:[%s2332_s0 + $0x130] sm:$0xff]  ;;  %v53_v28 = vld [vmem:[%s2332_s0 + $0x138] sm:$0xff]  ;;  %v22_v29 = vld [vmem:[%s2332_s0 + $0x40] sm:$0xff] }
   0xb   :  { %1348 = vmatpush3.msra.mxu0 %v86_v4  ;;  %1478 = vmatpush3.msra.mxu1 %v86_v4  ;;  %v54_v30 = vld [vmem:[%s2332_s0 + $0x140] sm:$0xff]  ;;  %v23_v31 = vld [vmem:[%s2332_s0 + $0x48] sm:$0xff]  ;;  %v24_v33 = vld [vmem:[%s2332_s0 + $0x50] sm:$0xff] }
   0xc   :  { %1349 = vmatprep.subr.mxu0 %v85_v5  ;;  %1466 = vmatprep.subr.mxu1 %v85_v5  ;;  %v55_v32 = vld [vmem:[%s2332_s0 + $0x148] sm:$0xff]  ;;  %v56_v34 = vld [vmem:[%s2332_s0 + $0x150] sm:$0xff]  ;;  %v25_v35 = vld [vmem:[%s2332_s0 + $0x58] sm:$0xff] }
   0xd   :  { %1350 = vmatpush3.msra.mxu0 %v85_v5  ;;  %1479 = vmatpush3.msra.mxu1 %v85_v5  ;;  %v57_v36 = vld [vmem:[%s2332_s0 + $0x158] sm:$0xff]  ;;  %v26_v37 = vld [vmem:[%s2332_s0 + $0x60] sm:$0xff]  ;;  %v27_v39 = vld [vmem:[%s2332_s0 + $0x68] sm:$0xff] }
   0xe   :  { %1351 = vmatprep.subr.mxu0 %v84_v6  ;;  %1467 = vmatprep.subr.mxu1 %v84_v6  ;;  %v58_v38 = vld [vmem:[%s2332_s0 + $0x160] sm:$0xff]  ;;  %v59_v40 = vld [vmem:[%s2332_s0 + $0x168] sm:$0xff]  ;;  %v28_v41 = vld [vmem:[%s2332_s0 + $0x70] sm:$0xff] }
   0xf   :  { %1352 = vmatpush3.msra.mxu0 %v84_v6  ;;  %1480 = vmatpush3.msra.mxu1 %v84_v6  ;;  %v60_v42 = vld [vmem:[%s2332_s0 + $0x170] sm:$0xff]  ;;  %v29_v43 = vld [vmem:[%s2332_s0 + $0x78] sm:$0xff]  ;;  %v30_v45 = vld [vmem:[%s2332_s0 + $0x80] sm:$0xff] }
  0x10   :  { %1353 = vmatprep.subr.mxu0 %v83_v7  ;;  %1468 = vmatprep.subr.mxu1 %v83_v7  ;;  %v61_v44 = vld [vmem:[%s2332_s0 + $0x178] sm:$0xff]  ;;  %v62_v46 = vld [vmem:[%s2332_s0 + $0x180] sm:$0xff]  ;;  %v31_v47 = vld [vmem:[%s2332_s0 + $0x88] sm:$0xff] }
  0x11   :  { %1354 = vmatpush3.msra.mxu0 %v83_v7  ;;  %1481 = vmatpush3.msra.mxu1 %v83_v7  ;;  %v63_v48 = vld [vmem:[%s2332_s0 + $0x188] sm:$0xff]  ;;  %v32_v49 = vld [vmem:[%s2332_s0 + $0x90] sm:$0xff]  ;;  %v33_v51 = vld [vmem:[%s2332_s0 + $0x98] sm:$0xff] }
  0x12   :  { %1355 = vmatprep.subr.mxu0 %v82_v8  ;;  %1469 = vmatprep.subr.mxu1 %v82_v8  ;;  %v64_v50 = vld [vmem:[%s2332_s0 + $0x190] sm:$0xff]  ;;  %v65_v52 = vld [vmem:[%s2332_s0 + $0x198] sm:$0xff]  ;;  %v34_v53 = vld [vmem:[%s2332_s0 + $0xa0] sm:$0xff] }
  0x13   :  { %1356 = vmatpush3.msra.mxu0 %v82_v8  ;;  %1482 = vmatpush3.msra.mxu1 %v82_v8  ;;  %v66_v54 = vld [vmem:[%s2332_s0 + $0x1a0] sm:$0xff]  ;;  %v35_v55 = vld [vmem:[%s2332_s0 + $0xa8] sm:$0xff]  ;;  %v36_v57 = vld [vmem:[%s2332_s0 + $0xb0] sm:$0xff] }
  0x14   :  { %1357 = vmatprep.subr.mxu0 %v81_v9  ;;  %1470 = vmatprep.subr.mxu1 %v81_v9  ;;  %v67_v56 = vld [vmem:[%s2332_s0 + $0x1a8] sm:$0xff]  ;;  %v68_v58 = vld [vmem:[%s2332_s0 + $0x1b0] sm:$0xff]  ;;  %v37_v59 = vld [vmem:[%s2332_s0 + $0xb8] sm:$0xff] }
  0x15   :  { %1358 = vmatpush3.msra.mxu0 %v81_v9  ;;  %1483 = vmatpush3.msra.mxu1 %v81_v9  ;;  %v69_v60 = vld [vmem:[%s2332_s0 + $0x1b8] sm:$0xff]  ;;  %v38_v61 = vld [vmem:[%s2332_s0 + $0xc0] sm:$0xff]  ;;  %v39_v63 = vld [vmem:[%s2332_s0 + $0xc8] sm:$0xff] }
  0x16   :  { %1359 = vmatprep.subr.mxu0 %v80_v10  ;;  %1471 = vmatprep.subr.mxu1 %v80_v10  ;;  %v70_v62 = vld [vmem:[%s2332_s0 + $0x1c0] sm:$0xff]  ;;  %v71_v0 = vld [vmem:[%s2332_s0 + $0x1c8] sm:$0xff]  ;;  %v40_v1 = vld [vmem:[%s2332_s0 + $0xd0] sm:$0xff] }
  0x17   :  { %1360 = vmatpush3.msra.mxu0 %v80_v10  ;;  %1484 = vmatpush3.msra.mxu1 %v80_v10  ;;  %v72_v2 = vld [vmem:[%s2332_s0 + $0x1d0] sm:$0xff]  ;;  %v41_v3 = vld [vmem:[%s2332_s0 + $0xd8] sm:$0xff]  ;;  %v42_v5 = vld [vmem:[%s2332_s0 + $0xe0] sm:$0xff] }
  0x18   :  { %1361 = vmatprep.subr.mxu0 %v79_v11  ;;  %1472 = vmatprep.subr.mxu1 %v79_v11  ;;  %v73_v4 = vld [vmem:[%s2332_s0 + $0x1d8] sm:$0xff]  ;;  %v74_v6 = vld [vmem:[%s2332_s0 + $0x1e0] sm:$0xff]  ;;  %v43_v7 = vld [vmem:[%s2332_s0 + $0xe8] sm:$0xff] }
  0x19   :  { %1362 = vmatpush3.msra.mxu0 %v79_v11  ;;  %1485 = vmatpush3.msra.mxu1 %v79_v11  ;;  %v75_v8 = vld [vmem:[%s2332_s0 + $0x1e8] sm:$0xff]  ;;  %v44_v9 = vld [vmem:[%s2332_s0 + $0xf0] sm:$0xff]  ;;  %v45_v11 = vld [vmem:[%s2332_s0 + $0xf8] sm:$0xff] }
  0x1a   :  { %1363 = vmatprep.subr.mxu0 %v78_v12  ;;  %1473 = vmatprep.subr.mxu1 %v78_v12  ;;  %v76_v10 = vld [vmem:[%s2332_s0 + $0x1f0] sm:$0xff] }
  0x1b   :  { %1364 = vmatpush3.msra.mxu0 %v78_v12  ;;  %1486 = vmatpush3.msra.mxu1 %v78_v12  ;;  %v77_v12 = vld [vmem:[%s2332_s0 + $0x1f8] sm:$0xff] }
  0x1c   :  { %1365 = vmatprep.mubr.msk.f32.mxu0 %vm98_vm1, %v14_v13  ;;  %1413 = vmatprep.mubr.msk.f32.mxu1 %vm98_vm1, %v46_v14  ;;  %v2061_v13 = vld [vmem:[%s2333_s2] ss:$0 sm:$0xff] }
  0x1d   :  { %1366 = vmatmul.mubr.msk.f32.vlgmr.msra.gmra.mxu0 %vm98_vm1, %v15_v15  ;;  %1414 = vmatmul.mubr.msk.f32.vlgmr.msra.gmra.mxu1 %vm98_vm1, %v47_v16 }
  0x1e   :  { %1368 = vmatprep.mubr.msk.f32.mxu0 %vm98_vm1, %v16_v17  ;;  %1416 = vmatprep.mubr.msk.f32.mxu1 %vm98_vm1, %v48_v18 }
  0x21   :  { %1369 = vmatmul.mubr.msk.f32.gmra.mxu0 %vm98_vm1, %v17_v19  ;;  %1417 = vmatmul.mubr.msk.f32.gmra.mxu1 %vm98_vm1, %v49_v20 }
  0x22   :  { %1371 = vmatprep.mubr.msk.f32.mxu0 %vm98_vm1, %v18_v21  ;;  %1419 = vmatprep.mubr.msk.f32.mxu1 %vm98_vm1, %v50_v22 }
  0x25   :  { %1372 = vmatmul.mubr.msk.f32.gmra.mxu0 %vm98_vm1, %v19_v23  ;;  %1420 = vmatmul.mubr.msk.f32.gmra.mxu1 %vm98_vm1, %v51_v24 }
  0x26   :  { %1374 = vmatprep.mubr.msk.f32.mxu0 %vm98_vm1, %v20_v25  ;;  %1422 = vmatprep.mubr.msk.f32.mxu1 %vm98_vm1, %v52_v26 }
  0x29   :  { %1375 = vmatmul.mubr.msk.f32.gmra.mxu0 %vm98_vm1, %v21_v27  ;;  %1423 = vmatmul.mubr.msk.f32.gmra.mxu1 %vm98_vm1, %v53_v28 }
  0x2a   :  { %1377 = vmatprep.mubr.msk.f32.mxu0 %vm98_vm1, %v22_v29  ;;  %1425 = vmatprep.mubr.msk.f32.mxu1 %vm98_vm1, %v54_v30 }
  0x2d   :  { %1378 = vmatmul.mubr.msk.f32.gmra.mxu0 %vm98_vm1, %v23_v31  ;;  %1426 = vmatmul.mubr.msk.f32.gmra.mxu1 %vm98_vm1, %v55_v32 }
  0x2e   :  { %1380 = vmatprep.mubr.msk.f32.mxu0 %vm98_vm1, %v24_v33  ;;  %1428 = vmatprep.mubr.msk.f32.mxu1 %vm98_vm1, %v56_v34 }
  0x31   :  { %1381 = vmatmul.mubr.msk.f32.gmra.mxu0 %vm98_vm1, %v25_v35  ;;  %1429 = vmatmul.mubr.msk.f32.gmra.mxu1 %vm98_vm1, %v57_v36 }
  0x32   :  { %1383 = vmatprep.mubr.msk.f32.mxu0 %vm98_vm1, %v26_v37  ;;  %1431 = vmatprep.mubr.msk.f32.mxu1 %vm98_vm1, %v58_v38 }
  0x35   :  { %1384 = vmatmul.mubr.msk.f32.gmra.mxu0 %vm98_vm1, %v27_v39  ;;  %1432 = vmatmul.mubr.msk.f32.gmra.mxu1 %vm98_vm1, %v59_v40 }
  0x36   :  { %1386 = vmatprep.mubr.msk.f32.mxu0 %vm98_vm1, %v28_v41  ;;  %1434 = vmatprep.mubr.msk.f32.mxu1 %vm98_vm1, %v60_v42 }
  0x39   :  { %1387 = vmatmul.mubr.msk.f32.gmra.mxu0 %vm98_vm1, %v29_v43  ;;  %1435 = vmatmul.mubr.msk.f32.gmra.mxu1 %vm98_vm1, %v61_v44 }
  0x3a   :  { %1389 = vmatprep.mubr.msk.f32.mxu0 %vm98_vm1, %v30_v45  ;;  %1437 = vmatprep.mubr.msk.f32.mxu1 %vm98_vm1, %v62_v46 }
  0x3d   :  { %1390 = vmatmul.mubr.msk.f32.gmra.mxu0 %vm98_vm1, %v31_v47  ;;  %1438 = vmatmul.mubr.msk.f32.gmra.mxu1 %vm98_vm1, %v63_v48 }
  0x3e   :  { %1392 = vmatprep.mubr.msk.f32.mxu0 %vm98_vm1, %v32_v49  ;;  %1440 = vmatprep.mubr.msk.f32.mxu1 %vm98_vm1, %v64_v50 }
  0x41   :  { %1393 = vmatmul.mubr.msk.f32.gmra.mxu0 %vm98_vm1, %v33_v51  ;;  %1441 = vmatmul.mubr.msk.f32.gmra.mxu1 %vm98_vm1, %v65_v52 }
  0x42   :  { %1395 = vmatprep.mubr.msk.f32.mxu0 %vm98_vm1, %v34_v53  ;;  %1443 = vmatprep.mubr.msk.f32.mxu1 %vm98_vm1, %v66_v54 }
  0x45   :  { %1396 = vmatmul.mubr.msk.f32.gmra.mxu0 %vm98_vm1, %v35_v55  ;;  %1444 = vmatmul.mubr.msk.f32.gmra.mxu1 %vm98_vm1, %v67_v56 }
  0x46   :  { %1398 = vmatprep.mubr.msk.f32.mxu0 %vm98_vm1, %v36_v57  ;;  %1446 = vmatprep.mubr.msk.f32.mxu1 %vm98_vm1, %v68_v58 }
  0x49   :  { %1399 = vmatmul.mubr.msk.f32.gmra.mxu0 %vm98_vm1, %v37_v59  ;;  %1447 = vmatmul.mubr.msk.f32.gmra.mxu1 %vm98_vm1, %v69_v60 }
  0x4a   :  { %1401 = vmatprep.mubr.msk.f32.mxu0 %vm98_vm1, %v38_v61  ;;  %1449 = vmatprep.mubr.msk.f32.mxu1 %vm98_vm1, %v70_v62 }
  0x4d   :  { %1402 = vmatmul.mubr.msk.f32.gmra.mxu0 %vm98_vm1, %v39_v63  ;;  %1450 = vmatmul.mubr.msk.f32.gmra.mxu1 %vm98_vm1, %v71_v0 }
  0x4e   :  { %1404 = vmatprep.mubr.msk.f32.mxu0 %vm98_vm1, %v40_v1  ;;  %1452 = vmatprep.mubr.msk.f32.mxu1 %vm98_vm1, %v72_v2 }
  0x51   :  { %1405 = vmatmul.mubr.msk.f32.gmra.mxu0 %vm98_vm1, %v41_v3  ;;  %1453 = vmatmul.mubr.msk.f32.gmra.mxu1 %vm98_vm1, %v73_v4 }
  0x52   :  { %1407 = vmatprep.mubr.msk.f32.mxu0 %vm98_vm1, %v42_v5  ;;  %1455 = vmatprep.mubr.msk.f32.mxu1 %vm98_vm1, %v74_v6 }
  0x55   :  { %1408 = vmatmul.mubr.msk.f32.gmra.mxu0 %vm98_vm1, %v43_v7  ;;  %1456 = vmatmul.mubr.msk.f32.gmra.mxu1 %vm98_vm1, %v75_v8 }
  0x56   :  { %1410 = vmatprep.mubr.msk.f32.mxu0 %vm98_vm1, %v44_v9  ;;  %1458 = vmatprep.mubr.msk.f32.mxu1 %vm98_vm1, %v76_v10 }
  0x59   :  { %1411 = vmatmul.mubr.msk.f32.gmra.mxu0 %vm98_vm1, %v45_v11  ;;  %1459 = vmatmul.mubr.msk.f32.gmra.mxu1 %vm98_vm1, %v77_v12 }
  0xdd   :  { %v1367_v14 = vpop.f32.mrf.mxu0  ;;  %v1415_v15 = vpop.f32.mrf.mxu1 }
  0xde   :  { %v367_v16 = vadd.f32 %v1367_v14, %v2061_v13  ;;  %v527_v17 = vadd.f32 %v1415_v15, %v2061_v13 }
  0xdf   :  { %v361_v18 = vpop.f32.mrf.mxu0  ;;  %v521_v19 = vpop.f32.mrf.mxu1 }
  0xe0   :  { %v1199_v20 = vmul.f32 -1.442695, %v367_v16  ;;  %v1231_v21 = vmul.f32 -1.442695, %v527_v17  ;;  %v362_v22 = vadd.f32 %v2061_v13, %v361_v18  ;;  %v522_v23 = vadd.f32 %v2061_v13, %v521_v19 }
  0xe1   :  { %v1370_v24 = vpop.f32.mrf.mxu0  ;;  %v1418_v25 = vpop.f32.mrf.mxu1 }
  0xe2   :  { %1487 = vpow2.f32 %v1199_v20  ;;  %v1198_v26 = vmul.f32 -1.442695, %v362_v22  ;;  %v1230_v27 = vmul.f32 -1.442695, %v522_v23  ;;  %v377_v28 = vadd.f32 %v1370_v24, %v2061_v13 }
  0xe3   :  { %1489 = vpow2.f32 %v1231_v21  ;;  %v537_v29 = vadd.f32 %v1418_v25, %v2061_v13  ;;  %v371_v30 = vpop.f32.mrf.mxu0  ;;  %v531_v31 = vpop.f32.mrf.mxu1 }
  0xe4   :  { %1491 = vpow2.f32 %v1198_v26  ;;  %v1201_v32 = vmul.f32 -1.442695, %v377_v28  ;;  %v372_v33 = vadd.f32 %v2061_v13, %v371_v30  ;;  %v532_v34 = vadd.f32 %v2061_v13, %v531_v31 }
  0xe5   :  { %1493 = vpow2.f32 %v1230_v27  ;;  %v1233_v35 = vmul.f32 -1.442695, %v537_v29  ;;  %v1373_v36 = vpop.f32.mrf.mxu0  ;;  %v1421_v37 = vpop.f32.mrf.mxu1 }
  0xe6   :  { %1495 = vpow2.f32 %v1201_v32  ;;  %v1200_v38 = vmul.f32 -1.442695, %v372_v33  ;;  %v1232_v39 = vmul.f32 -1.442695, %v532_v34  ;;  %v387_v40 = vadd.f32 %v1373_v36, %v2061_v13 }
  0xe7   :  { %1497 = vpow2.f32 %v1233_v35  ;;  %v547_v41 = vadd.f32 %v1421_v37, %v2061_v13  ;;  %v381_v42 = vpop.f32.mrf.mxu0  ;;  %v541_v43 = vpop.f32.mrf.mxu1 }
  0xe8   :  { %1499 = vpow2.f32 %v1200_v38  ;;  %v1203_v44 = vmul.f32 -1.442695, %v387_v40  ;;  %v382_v45 = vadd.f32 %v2061_v13, %v381_v42  ;;  %v542_v46 = vadd.f32 %v2061_v13, %v541_v43 }
  0xe9   :  { %1501 = vpow2.f32 %v1232_v39  ;;  %v1235_v47 = vmul.f32 -1.442695, %v547_v41  ;;  %v1376_v48 = vpop.f32.mrf.mxu0  ;;  %v1424_v49 = vpop.f32.mrf.mxu1 }
  0xea   :  { %1503 = vpow2.f32 %v1203_v44  ;;  %v1202_v50 = vmul.f32 -1.442695, %v382_v45  ;;  %v1234_v51 = vmul.f32 -1.442695, %v542_v46  ;;  %v397_v52 = vadd.f32 %v1376_v48, %v2061_v13 }
  0xeb   :  { %1505 = vpow2.f32 %v1235_v47  ;;  %v557_v53 = vadd.f32 %v1424_v49, %v2061_v13  ;;  %v391_v54 = vpop.f32.mrf.mxu0  ;;  %v551_v55 = vpop.f32.mrf.mxu1 }
  0xec   :  { %1507 = vpow2.f32 %v1202_v50  ;;  %v1205_v56 = vmul.f32 -1.442695, %v397_v52  ;;  %v392_v57 = vadd.f32 %v2061_v13, %v391_v54  ;;  %v552_v58 = vadd.f32 %v2061_v13, %v551_v55 }
  0xed   :  { %1509 = vpow2.f32 %v1234_v51  ;;  %v1237_v59 = vmul.f32 -1.442695, %v557_v53  ;;  %v1379_v60 = vpop.f32.mrf.mxu0  ;;  %v1427_v61 = vpop.f32.mrf.mxu1 }
  0xee   :  { %1511 = vpow2.f32 %v1205_v56  ;;  %v1204_v62 = vmul.f32 -1.442695, %v392_v57  ;;  %v1236_v63 = vmul.f32 -1.442695, %v552_v58  ;;  %v407_v31 = vadd.f32 %v1379_v60, %v2061_v13 }
  0xef   :  { %v1488_v0 = vpop.eup %1487  ;;  %1513 = vpow2.f32 %v1237_v59  ;;  %v401_v1 = vpop.f32.mrf.mxu0  ;;  %v567_v35 = vadd.f32 %v1427_v61, %v2061_v13 }
  0xf0   :  { %v561_v2 = vpop.f32.mrf.mxu1  ;;  %v1490_v3 = vpop.eup %1489  ;;  %v873_v4 = vadd.f32 1.0, %v1488_v0  ;;  %1515 = vpow2.f32 %v1204_v62  ;;  %v402_v38 = vadd.f32 %v2061_v13, %v401_v1  ;;  %v1207_v45 = vmul.f32 -1.442695, %v407_v31 }
  0xf1   :  { %v1492_v5 = vpop.eup %1491  ;;  %v905_v6 = vadd.f32 1.0, %v1490_v3  ;;  %1517 = vpow2.f32 %v1236_v63  ;;  %v1382_v7 = vpop.f32.mrf.mxu0  ;;  %v562_v41 = vadd.f32 %v2061_v13, %v561_v2  ;;  %v1239_v50 = vmul.f32 -1.442695, %v567_v35 }
  0xf2   :  { %v1494_v8 = vpop.eup %1493  ;;  %1519 = vrcp.f32 %v873_v4  ;;  %v872_v9 = vadd.f32 1.0, %v1492_v5  ;;  %v1430_v10 = vpop.f32.mrf.mxu1  ;;  %v417_v46 = vadd.f32 %v1382_v7, %v2061_v13  ;;  %v1206_v53 = vmul.f32 -1.442695, %v402_v38 }
  0xf3   :  { %v1496_v11 = vpop.eup %1495  ;;  %1521 = vrcp.f32 %v905_v6  ;;  %v904_v12 = vadd.f32 1.0, %v1494_v8  ;;  %v411_v18 = vpop.f32.mrf.mxu0  ;;  %v577_v51 = vadd.f32 %v1430_v10, %v2061_v13  ;;  %v1238_v56 = vmul.f32 -1.442695, %v562_v41 }
  0xf4   :  { %v1498_v14 = vpop.eup %1497  ;;  %1523 = vrcp.f32 %v872_v9  ;;  %v875_v15 = vadd.f32 1.0, %v1496_v11  ;;  %v571_v21 = vpop.f32.mrf.mxu1  ;;  %v412_v54 = vadd.f32 %v2061_v13, %v411_v18  ;;  %v1209_v60 = vmul.f32 -1.442695, %v417_v46 }
  0xf5   :  { %v1500_v16 = vpop.eup %1499  ;;  %1525 = vrcp.f32 %v904_v12  ;;  %v907_v17 = vadd.f32 1.0, %v1498_v14  ;;  %v1385_v28 = vpop.f32.mrf.mxu0  ;;  %v572_v57 = vadd.f32 %v2061_v13, %v571_v21  ;;  %v1241_v0 = vmul.f32 -1.442695, %v577_v51 }
  0xf6   :  { %v1502_v19 = vpop.eup %1501  ;;  %1527 = vrcp.f32 %v875_v15  ;;  %v874_v20 = vadd.f32 1.0, %v1500_v16  ;;  %v1433_v32 = vpop.f32.mrf.mxu1  ;;  %v427_v61 = vadd.f32 %v1385_v28, %v2061_v13  ;;  %v1208_v3 = vmul.f32 -1.442695, %v412_v54 }
  0xf7   :  { %v1504_v22 = vpop.eup %1503  ;;  %1529 = vrcp.f32 %v907_v17  ;;  %v906_v23 = vadd.f32 1.0, %v1502_v19  ;;  %v421_v42 = vpop.f32.mrf.mxu0  ;;  %v587_v1 = vadd.f32 %v1433_v32, %v2061_v13  ;;  %v1240_v6 = vmul.f32 -1.442695, %v572_v57 }
  0xf8   :  { %v1506_v24 = vpop.eup %1505  ;;  %1531 = vrcp.f32 %v874_v20  ;;  %v877_v25 = vadd.f32 1.0, %v1504_v22  ;;  %v581_v47 = vpop.f32.mrf.mxu1  ;;  %v422_v4 = vadd.f32 %v2061_v13, %v421_v42  ;;  %v1211_v10 = vmul.f32 -1.442695, %v427_v61 }
  0xf9   :  { %v1508_v26 = vpop.eup %1507  ;;  %1533 = vrcp.f32 %v906_v23  ;;  %v909_v27 = vadd.f32 1.0, %v1506_v24  ;;  %v1388_v58 = vpop.f32.mrf.mxu0  ;;  %v582_v7 = vadd.f32 %v2061_v13, %v581_v47  ;;  %v1243_v15 = vmul.f32 -1.442695, %v587_v1 }
  0xfa   :  { %v1510_v29 = vpop.eup %1509  ;;  %1535 = vrcp.f32 %v877_v25  ;;  %v876_v30 = vadd.f32 1.0, %v1508_v26  ;;  %v1436_v62 = vpop.f32.mrf.mxu1  ;;  %v437_v11 = vadd.f32 %v1388_v58, %v2061_v13  ;;  %v1210_v18 = vmul.f32 -1.442695, %v422_v4 }
  0xfb   :  { %v1512_v33 = vpop.eup %1511  ;;  %1537 = vrcp.f32 %v909_v27  ;;  %v908_v34 = vadd.f32 1.0, %v1510_v29  ;;  %v431_v8 = vpop.f32.mrf.mxu0  ;;  %v597_v16 = vadd.f32 %v1436_v62, %v2061_v13  ;;  %v1242_v21 = vmul.f32 -1.442695, %v582_v7 }
  0xfc   :  { %v1514_v36 = vpop.eup %1513  ;;  %1539 = vrcp.f32 %v876_v30  ;;  %v879_v37 = vadd.f32 1.0, %v1512_v33  ;;  %v591_v12 = vpop.f32.mrf.mxu1  ;;  %v432_v19 = vadd.f32 %v2061_v13, %v431_v8  ;;  %v1213_v25 = vmul.f32 -1.442695, %v437_v11 }
  0xfd   :  { %v1516_v39 = vpop.eup %1515  ;;  %1541 = vrcp.f32 %v908_v34  ;;  %v911_v40 = vadd.f32 1.0, %v1514_v36  ;;  %v592_v22 = vadd.f32 %v2061_v13, %v591_v12  ;;  %v2125_v23 = vpop.f32.mrf.mxu0  ;;  %v1245_v28 = vmul.f32 -1.442695, %v597_v16 }
  0xfe   :  { %v1518_v43 = vpop.eup %1517  ;;  %1543 = vrcp.f32 %v879_v37  ;;  %v878_v44 = vadd.f32 1.0, %v1516_v39  ;;  %v2130_v26 = vpop.f32.mrf.mxu1  ;;  %v1212_v30 = vmul.f32 -1.442695, %v432_v19 }
  0xff   :  { %v1520_v48 = vpop.eup %1519  ;;  %1545 = vrcp.f32 %v911_v40  ;;  %v910_v49 = vadd.f32 1.0, %v1518_v43  ;;  %v1244_v32 = vmul.f32 -1.442695, %v592_v22  ;;  %v441_v33 = vpop.f32.mrf.mxu0  ;;  %v607_v4 = vadd.f32 %v2130_v26, %v2061_v13 }
 0x100   :  { %v1522_v52 = vpop.eup %1521  ;;  %1065 = vst [vmem:[%s2334_s3 + $0x8] sm:$0xff] %v1520_v48  ;;  %1547 = vrcp.f32 %v878_v44  ;;  %v601_v35 = vpop.f32.mrf.mxu1  ;;  %v442_v7 = vadd.f32 %v2061_v13, %v441_v33 }
 0x101   :  { %v1524_v55 = vpop.eup %1523  ;;  %1097 = vst [vmem:[%s2334_s3 + $0x108] sm:$0xff] %v1522_v52  ;;  %1549 = vrcp.f32 %v910_v49  ;;  %v1394_v41 = vpop.f32.mrf.mxu0 }
 0x102   :  { %v1526_v59 = vpop.eup %1525  ;;  %1064 = vst [vmem:[%s2334_s3] sm:$0xff] %v1524_v55  ;;  %1551 = vpow2.f32 %v1207_v45  ;;  %v1442_v44 = vpop.f32.mrf.mxu1  ;;  %v457_v16 = vadd.f32 %v1394_v41, %v2061_v13 }
 0x103   :  { %v1528_v63 = vpop.eup %1527  ;;  %1096 = vst [vmem:[%s2334_s3 + $0x100] sm:$0xff] %v1526_v59  ;;  %1553 = vpow2.f32 %v1239_v50  ;;  %v451_v51 = vpop.f32.mrf.mxu0 }
 0x104   :  { %v1530_v2 = vpop.eup %1529  ;;  %1067 = vst [vmem:[%s2334_s3 + $0x18] sm:$0xff] %v1528_v63  ;;  %1555 = vpow2.f32 %v1206_v53  ;;  %v611_v54 = vpop.f32.mrf.mxu1 }
 0x105   :  { %v1532_v5 = vpop.eup %1531  ;;  %1099 = vst [vmem:[%s2334_s3 + $0x118] sm:$0xff] %v1530_v2  ;;  %1557 = vpow2.f32 %v1238_v56  ;;  %v1397_v61 = vpop.f32.mrf.mxu0 }
 0x106   :  { %v1534_v9 = vpop.eup %1533  ;;  %1066 = vst [vmem:[%s2334_s3 + $0x10] sm:$0xff] %v1532_v5  ;;  %1559 = vpow2.f32 %v1209_v60  ;;  %v1445_v1 = vpop.f32.mrf.mxu1 }
 0x107   :  { %v1536_v14 = vpop.eup %1535  ;;  %1098 = vst [vmem:[%s2334_s3 + $0x110] sm:$0xff] %v1534_v9  ;;  %1561 = vpow2.f32 %v1241_v0  ;;  %v447_v0 = vadd.f32 %v2125_v23, %v2061_v13  ;;  %v461_v11 = vpop.f32.mrf.mxu0  ;;  %v1214_v23 = vmul.f32 -1.442695, %v442_v7 }
 0x108   :  { %v1538_v17 = vpop.eup %1537  ;;  %1069 = vst [vmem:[%s2334_s3 + $0x28] sm:$0xff] %v1536_v14  ;;  %1563 = vpow2.f32 %v1208_v3 }
 0x109   :  { %v1540_v20 = vpop.eup %1539  ;;  %1101 = vst [vmem:[%s2334_s3 + $0x128] sm:$0xff] %v1538_v17  ;;  %1565 = vpow2.f32 %v1240_v6  ;;  %v621_v17 = vpop.f32.mrf.mxu1 }
 0x10a   :  { %v1542_v24 = vpop.eup %1541  ;;  %1068 = vst [vmem:[%s2334_s3 + $0x20] sm:$0xff] %v1540_v20  ;;  %1567 = vpow2.f32 %v1211_v10  ;;  %v602_v10 = vadd.f32 %v2061_v13, %v601_v35  ;;  %v1247_v20 = vmul.f32 -1.442695, %v607_v4  ;;  %v627_v35 = vadd.f32 %v1445_v1, %v2061_v13 }
 0x10b   :  { %v1544_v27 = vpop.eup %1543  ;;  %1100 = vst [vmem:[%s2334_s3 + $0x120] sm:$0xff] %v1542_v24  ;;  %1569 = vpow2.f32 %v1243_v15  ;;  %v1215_v15 = vmul.f32 -1.442695, %v447_v0  ;;  %v452_v24 = vadd.f32 %v2061_v13, %v451_v51  ;;  %v622_v41 = vadd.f32 %v2061_v13, %v621_v17 }
 0x10c   :  { %v1546_v29 = vpop.eup %1545  ;;  %1071 = vst [vmem:[%s2334_s3 + $0x38] sm:$0xff] %v1544_v27  ;;  %1571 = vpow2.f32 %v1210_v18  ;;  %v1246_v26 = vmul.f32 -1.442695, %v602_v10  ;;  %v612_v27 = vadd.f32 %v2061_v13, %v611_v54 }
 0x10d   :  { %v1548_v31 = vpop.eup %1547  ;;  %1103 = vst [vmem:[%s2334_s3 + $0x138] sm:$0xff] %v1546_v29  ;;  %1573 = vpow2.f32 %v1242_v21  ;;  %v617_v21 = vadd.f32 %v1442_v44, %v2061_v13  ;;  %v1250_v54 = vmul.f32 -1.442695, %v622_v41 }
 0x10e   :  { %v1550_v34 = vpop.eup %1549  ;;  %1070 = vst [vmem:[%s2334_s3 + $0x30] sm:$0xff] %v1548_v31  ;;  %1575 = vpow2.f32 %v1213_v25  ;;  %v467_v31 = vadd.f32 %v1397_v61, %v2061_v13 }
 0x10f   :  { %v1552_v36 = vpop.eup %1551  ;;  %1102 = vst [vmem:[%s2334_s3 + $0x130] sm:$0xff] %v1550_v34  ;;  %1577 = vpow2.f32 %v1245_v28  ;;  %v1400_v28 = vpop.f32.mrf.mxu0  ;;  %v1249_v34 = vmul.f32 -1.442695, %v617_v21 }
 0x110   :  { %v1554_v37 = vpop.eup %1553  ;;  %v881_v38 = vadd.f32 1.0, %v1552_v36  ;;  %1579 = vpow2.f32 %v1212_v30  ;;  %v1217_v30 = vmul.f32 -1.442695, %v457_v16  ;;  %v1219_v44 = vmul.f32 -1.442695, %v467_v31 }
 0x111   :  { %v1556_v39 = vpop.eup %1555  ;;  %v913_v40 = vadd.f32 1.0, %v1554_v37  ;;  %1581 = vpow2.f32 %v1244_v32  ;;  %v1448_v32 = vpop.f32.mrf.mxu1  ;;  %v1216_v37 = vmul.f32 -1.442695, %v452_v24 }
 0x112   :  { %v1558_v42 = vpop.eup %1557  ;;  %1583 = vrcp.f32 %v881_v38  ;;  %v880_v43 = vadd.f32 1.0, %v1556_v39  ;;  %v462_v38 = vadd.f32 %v2061_v13, %v461_v11 }
 0x113   :  { %v1560_v45 = vpop.eup %1559  ;;  %1585 = vrcp.f32 %v913_v40  ;;  %v912_v46 = vadd.f32 1.0, %v1558_v42  ;;  %v1248_v40 = vmul.f32 -1.442695, %v612_v27  ;;  %v471_v42 = vpop.f32.mrf.mxu0 }
 0x114   :  { %v1562_v47 = vpop.eup %1561  ;;  %1587 = vrcp.f32 %v880_v43  ;;  %v883_v48 = vadd.f32 1.0, %v1560_v45  ;;  %v477_v45 = vadd.f32 %v1400_v28, %v2061_v13  ;;  %v1218_v51 = vmul.f32 -1.442695, %v462_v38 }
 0x115   :  { %v1564_v49 = vpop.eup %1563  ;;  %1589 = vrcp.f32 %v912_v46  ;;  %v915_v50 = vadd.f32 1.0, %v1562_v47  ;;  %v631_v46 = vpop.f32.mrf.mxu1 }
 0x116   :  { %v1566_v52 = vpop.eup %1565  ;;  %1591 = vrcp.f32 %v883_v48  ;;  %v882_v53 = vadd.f32 1.0, %v1564_v49  ;;  %v1251_v48 = vmul.f32 -1.442695, %v627_v35  ;;  %v637_v49 = vadd.f32 %v1448_v32, %v2061_v13 }
 0x117   :  { %v1568_v55 = vpop.eup %1567  ;;  %1593 = vrcp.f32 %v915_v50  ;;  %v914_v56 = vadd.f32 1.0, %v1566_v52  ;;  %v472_v52 = vadd.f32 %v2061_v13, %v471_v42 }
 0x118   :  { %v1570_v57 = vpop.eup %1569  ;;  %1595 = vrcp.f32 %v882_v53  ;;  %v885_v58 = vadd.f32 1.0, %v1568_v55  ;;  %v632_v55 = vadd.f32 %v2061_v13, %v631_v46  ;;  %v1253_v61 = vmul.f32 -1.442695, %v637_v49 }
 0x119   :  { %v1572_v59 = vpop.eup %1571  ;;  %1597 = vrcp.f32 %v914_v56  ;;  %v917_v60 = vadd.f32 1.0, %v1570_v57  ;;  %v2195_v56 = vpop.f32.mrf.mxu0 }
 0x11a   :  { %v1574_v62 = vpop.eup %1573  ;;  %1599 = vrcp.f32 %v885_v58  ;;  %v884_v63 = vadd.f32 1.0, %v1572_v59  ;;  %v1221_v58 = vmul.f32 -1.442695, %v477_v45  ;;  %v2200_v59 = vpop.f32.mrf.mxu1  ;;  %v1252_v1 = vmul.f32 -1.442695, %v632_v55 }
 0x11b   :  { %v1576_v2 = vpop.eup %1575  ;;  %1601 = vrcp.f32 %v917_v60  ;;  %v916_v3 = vadd.f32 1.0, %v1574_v62  ;;  %v647_v38 = vadd.f32 %v2200_v59, %v2061_v13 }
 0x11c   :  { %v1578_v5 = vpop.eup %1577  ;;  %1603 = vrcp.f32 %v884_v63  ;;  %v887_v6 = vadd.f32 1.0, %v1576_v2  ;;  %v1220_v63 = vmul.f32 -1.442695, %v472_v52  ;;  %v481_v2 = vpop.f32.mrf.mxu0 }
 0x11d   :  { %v1580_v8 = vpop.eup %1579  ;;  %1605 = vrcp.f32 %v916_v3  ;;  %v919_v9 = vadd.f32 1.0, %v1578_v5  ;;  %v641_v4 = vpop.f32.mrf.mxu1  ;;  %v482_v41 = vadd.f32 %v2061_v13, %v481_v2 }
 0x11e   :  { %v1582_v12 = vpop.eup %1581  ;;  %1607 = vrcp.f32 %v887_v6  ;;  %v886_v14 = vadd.f32 1.0, %v1580_v8  ;;  %v1406_v10 = vpop.f32.mrf.mxu0 }
 0x11f   :  { %v1584_v18 = vpop.eup %1583  ;;  %1609 = vrcp.f32 %v919_v9  ;;  %v918_v19 = vadd.f32 1.0, %v1582_v12  ;;  %v497_v49 = vadd.f32 %v1406_v10, %v2061_v13 }
 0x120   :  { %v1586_v22 = vpop.eup %1585  ;;  %1073 = vst [vmem:[%s2334_s3 + $0x48] sm:$0xff] %v1584_v18  ;;  %1611 = vrcp.f32 %v886_v14  ;;  %v1454_v14 = vpop.f32.mrf.mxu1 }
 0x121   :  { %v1588_v25 = vpop.eup %1587  ;;  %1105 = vst [vmem:[%s2334_s3 + $0x148] sm:$0xff] %v1586_v22  ;;  %1613 = vrcp.f32 %v918_v19  ;;  %v491_v21 = vpop.f32.mrf.mxu0 }
 0x122   :  { %v1590_v29 = vpop.eup %1589  ;;  %1072 = vst [vmem:[%s2334_s3 + $0x40] sm:$0xff] %v1588_v25  ;;  %1615 = vpow2.f32 %v1215_v15  ;;  %v651_v24 = vpop.f32.mrf.mxu1 }
 0x123   :  { %v1592_v33 = vpop.eup %1591  ;;  %1104 = vst [vmem:[%s2334_s3 + $0x140] sm:$0xff] %v1590_v29  ;;  %1617 = vpow2.f32 %v1247_v20  ;;  %v1409_v31 = vpop.f32.mrf.mxu0 }
 0x124   :  { %v1594_v36 = vpop.eup %1593  ;;  %1075 = vst [vmem:[%s2334_s3 + $0x58] sm:$0xff] %v1592_v33  ;;  %1619 = vpow2.f32 %v1214_v23  ;;  %v1457_v35 = vpop.f32.mrf.mxu1 }
 0x125   :  { %v1596_v39 = vpop.eup %1595  ;;  %1107 = vst [vmem:[%s2334_s3 + $0x158] sm:$0xff] %v1594_v36  ;;  %1621 = vpow2.f32 %v1246_v26  ;;  %v501_v45 = vpop.f32.mrf.mxu0 }
 0x126   :  { %v1598_v43 = vpop.eup %1597  ;;  %1074 = vst [vmem:[%s2334_s3 + $0x50] sm:$0xff] %v1596_v39  ;;  %1623 = vpow2.f32 %v1217_v30 }
 0x127   :  { %v1600_v47 = vpop.eup %1599  ;;  %1106 = vst [vmem:[%s2334_s3 + $0x150] sm:$0xff] %v1598_v43  ;;  %1625 = vpow2.f32 %v1249_v34  ;;  %v487_v34 = vadd.f32 %v2195_v56, %v2061_v13  ;;  %v1222_v56 = vmul.f32 -1.442695, %v482_v41 }
 0x128   :  { %v1602_v50 = vpop.eup %1601  ;;  %1077 = vst [vmem:[%s2334_s3 + $0x68] sm:$0xff] %v1600_v47  ;;  %1627 = vpow2.f32 %v1216_v37 }
 0x129   :  { %v1604_v53 = vpop.eup %1603  ;;  %1109 = vst [vmem:[%s2334_s3 + $0x168] sm:$0xff] %v1602_v50  ;;  %1629 = vpow2.f32 %v1248_v40  ;;  %v661_v50 = vpop.f32.mrf.mxu1 }
 0x12a   :  { %v1606_v57 = vpop.eup %1605  ;;  %1076 = vst [vmem:[%s2334_s3 + $0x60] sm:$0xff] %v1604_v53  ;;  %1631 = vpow2.f32 %v1219_v44  ;;  %v642_v44 = vadd.f32 %v2061_v13, %v641_v4  ;;  %v1255_v53 = vmul.f32 -1.442695, %v647_v38  ;;  %v667_v4 = vadd.f32 %v1457_v35, %v2061_v13 }
 0x12b   :  { %v1608_v60 = vpop.eup %1607  ;;  %1108 = vst [vmem:[%s2334_s3 + $0x160] sm:$0xff] %v1606_v57  ;;  %1633 = vpow2.f32 %v1251_v48  ;;  %v1223_v48 = vmul.f32 -1.442695, %v487_v34  ;;  %v492_v57 = vadd.f32 %v2061_v13, %v491_v21  ;;  %v662_v10 = vadd.f32 %v2061_v13, %v661_v50 }
 0x12c   :  { %v1610_v62 = vpop.eup %1609  ;;  %1079 = vst [vmem:[%s2334_s3 + $0x78] sm:$0xff] %v1608_v60  ;;  %1635 = vpow2.f32 %v1218_v51  ;;  %v1254_v59 = vmul.f32 -1.442695, %v642_v44  ;;  %v652_v60 = vadd.f32 %v2061_v13, %v651_v24 }
 0x12d   :  { %v1612_v0 = vpop.eup %1611  ;;  %1111 = vst [vmem:[%s2334_s3 + $0x178] sm:$0xff] %v1610_v62  ;;  %1637 = vpow2.f32 %v1250_v54  ;;  %v657_v54 = vadd.f32 %v1454_v14, %v2061_v13  ;;  %v1258_v24 = vmul.f32 -1.442695, %v662_v10 }
 0x12e   :  { %v1614_v3 = vpop.eup %1613  ;;  %1078 = vst [vmem:[%s2334_s3 + $0x70] sm:$0xff] %v1612_v0  ;;  %1639 = vpow2.f32 %v1221_v58  ;;  %v507_v0 = vadd.f32 %v1409_v31, %v2061_v13 }
 0x12f   :  { %v1616_v5 = vpop.eup %1615  ;;  %1110 = vst [vmem:[%s2334_s3 + $0x170] sm:$0xff] %v1614_v3  ;;  %1641 = vpow2.f32 %v1253_v61  ;;  %v1412_v61 = vpop.f32.mrf.mxu0  ;;  %v1257_v3 = vmul.f32 -1.442695, %v657_v54 }
 0x130   :  { %v1618_v6 = vpop.eup %1617  ;;  %v889_v7 = vadd.f32 1.0, %v1616_v5  ;;  %1643 = vpow2.f32 %v1220_v63  ;;  %v1225_v63 = vmul.f32 -1.442695, %v497_v49  ;;  %v1227_v14 = vmul.f32 -1.442695, %v507_v0 }
 0x131   :  { %v1620_v8 = vpop.eup %1619  ;;  %v921_v9 = vadd.f32 1.0, %v1618_v6  ;;  %1645 = vpow2.f32 %v1252_v1  ;;  %v1460_v1 = vpop.f32.mrf.mxu1  ;;  %v1224_v6 = vmul.f32 -1.442695, %v492_v57 }
 0x132   :  { %v1622_v11 = vpop.eup %1621  ;;  %1647 = vrcp.f32 %v889_v7  ;;  %v888_v12 = vadd.f32 1.0, %v1620_v8  ;;  %v502_v7 = vadd.f32 %v2061_v13, %v501_v45 }
 0x133   :  { %v1624_v15 = vpop.eup %1623  ;;  %1649 = vrcp.f32 %v921_v9  ;;  %v920_v16 = vadd.f32 1.0, %v1622_v11  ;;  %v1256_v9 = vmul.f32 -1.442695, %v652_v60  ;;  %v511_v11 = vpop.f32.mrf.mxu0 }
 0x134   :  { %v1626_v17 = vpop.eup %1625  ;;  %1651 = vrcp.f32 %v888_v12  ;;  %v891_v18 = vadd.f32 1.0, %v1624_v15  ;;  %v517_v15 = vadd.f32 %v1412_v61, %v2061_v13  ;;  %v1226_v21 = vmul.f32 -1.442695, %v502_v7 }
 0x135   :  { %v1628_v19 = vpop.eup %1627  ;;  %1653 = vrcp.f32 %v920_v16  ;;  %v923_v20 = vadd.f32 1.0, %v1626_v17  ;;  %v671_v16 = vpop.f32.mrf.mxu1 }
 0x136   :  { %v1630_v22 = vpop.eup %1629  ;;  %1655 = vrcp.f32 %v891_v18  ;;  %v890_v23 = vadd.f32 1.0, %v1628_v19  ;;  %v1259_v18 = vmul.f32 -1.442695, %v667_v4  ;;  %v677_v19 = vadd.f32 %v1460_v1, %v2061_v13 }
 0x137   :  { %v1632_v25 = vpop.eup %1631  ;;  %1657 = vrcp.f32 %v923_v20  ;;  %v922_v26 = vadd.f32 1.0, %v1630_v22  ;;  %v512_v22 = vadd.f32 %v2061_v13, %v511_v11 }
 0x138   :  { %v1634_v27 = vpop.eup %1633  ;;  %1659 = vrcp.f32 %v890_v23  ;;  %v893_v28 = vadd.f32 1.0, %v1632_v25  ;;  %v672_v25 = vadd.f32 %v2061_v13, %v671_v16 }
 0x139   :  { %v1636_v29 = vpop.eup %1635  ;;  %1661 = vrcp.f32 %v922_v26  ;;  %v925_v30 = vadd.f32 1.0, %v1634_v27  ;;  %v1229_v27 = vmul.f32 -1.442695, %v517_v15  ;;  %v1228_v13 = vmul.f32 -1.442695, %v512_v22 }
 0x13a   :  { %v1638_v32 = vpop.eup %1637  ;;  %1663 = vrcp.f32 %v893_v28  ;;  %v892_v33 = vadd.f32 1.0, %v1636_v29  ;;  %v1261_v29 = vmul.f32 -1.442695, %v677_v19 }
 0x13b   :  { %v1640_v36 = vpop.eup %1639  ;;  %1665 = vrcp.f32 %v925_v30  ;;  %v924_v37 = vadd.f32 1.0, %v1638_v32  ;;  %v1260_v32 = vmul.f32 -1.442695, %v672_v25 }
 0x13c   :  { %v1642_v39 = vpop.eup %1641  ;;  %1667 = vrcp.f32 %v892_v33  ;;  %v895_v40 = vadd.f32 1.0, %v1640_v36 }
 0x13d   :  { %v1644_v42 = vpop.eup %1643  ;;  %1669 = vrcp.f32 %v924_v37  ;;  %v927_v43 = vadd.f32 1.0, %v1642_v39 }
 0x13e   :  { %v1646_v46 = vpop.eup %1645  ;;  %1671 = vrcp.f32 %v895_v40  ;;  %v894_v47 = vadd.f32 1.0, %v1644_v42 }
 0x13f   :  { %v1648_v51 = vpop.eup %1647  ;;  %1673 = vrcp.f32 %v927_v43  ;;  %v926_v52 = vadd.f32 1.0, %v1646_v46 }
 0x140   :  { %v1650_v55 = vpop.eup %1649  ;;  %1081 = vst [vmem:[%s2334_s3 + $0x88] sm:$0xff] %v1648_v51  ;;  %1675 = vrcp.f32 %v894_v47 }
 0x141   :  { %v1652_v58 = vpop.eup %1651  ;;  %1113 = vst [vmem:[%s2334_s3 + $0x188] sm:$0xff] %v1650_v55  ;;  %1677 = vrcp.f32 %v926_v52 }
 0x142   :  { %v1654_v62 = vpop.eup %1653  ;;  %1080 = vst [vmem:[%s2334_s3 + $0x80] sm:$0xff] %v1652_v58  ;;  %1679 = vpow2.f32 %v1223_v48 }
 0x143   :  { %v1656_v2 = vpop.eup %1655  ;;  %1112 = vst [vmem:[%s2334_s3 + $0x180] sm:$0xff] %v1654_v62  ;;  %1681 = vpow2.f32 %v1255_v53 }
 0x144   :  { %v1658_v5 = vpop.eup %1657  ;;  %1083 = vst [vmem:[%s2334_s3 + $0x98] sm:$0xff] %v1656_v2  ;;  %1683 = vpow2.f32 %v1222_v56 }
 0x145   :  { %v1660_v8 = vpop.eup %1659  ;;  %1115 = vst [vmem:[%s2334_s3 + $0x198] sm:$0xff] %v1658_v5  ;;  %1685 = vpow2.f32 %v1254_v59 }
 0x146   :  { %v1662_v12 = vpop.eup %1661  ;;  %1082 = vst [vmem:[%s2334_s3 + $0x90] sm:$0xff] %v1660_v8  ;;  %1687 = vpow2.f32 %v1225_v63 }
 0x147   :  { %v1664_v17 = vpop.eup %1663  ;;  %1114 = vst [vmem:[%s2334_s3 + $0x190] sm:$0xff] %v1662_v12  ;;  %1689 = vpow2.f32 %v1257_v3 }
 0x148   :  { %v1666_v20 = vpop.eup %1665  ;;  %1085 = vst [vmem:[%s2334_s3 + $0xa8] sm:$0xff] %v1664_v17  ;;  %1691 = vpow2.f32 %v1224_v6 }
 0x149   :  { %v1668_v23 = vpop.eup %1667  ;;  %1117 = vst [vmem:[%s2334_s3 + $0x1a8] sm:$0xff] %v1666_v20  ;;  %1693 = vpow2.f32 %v1256_v9 }
 0x14a   :  { %v1670_v26 = vpop.eup %1669  ;;  %1084 = vst [vmem:[%s2334_s3 + $0xa0] sm:$0xff] %v1668_v23  ;;  %1695 = vpow2.f32 %v1227_v14 }
 0x14b   :  { %v1672_v28 = vpop.eup %1671  ;;  %1116 = vst [vmem:[%s2334_s3 + $0x1a0] sm:$0xff] %v1670_v26  ;;  %1697 = vpow2.f32 %v1259_v18 }
 0x14c   :  { %v1674_v30 = vpop.eup %1673  ;;  %1087 = vst [vmem:[%s2334_s3 + $0xb8] sm:$0xff] %v1672_v28  ;;  %1699 = vpow2.f32 %v1226_v21 }
 0x14d   :  { %v1676_v31 = vpop.eup %1675  ;;  %1119 = vst [vmem:[%s2334_s3 + $0x1b8] sm:$0xff] %v1674_v30  ;;  %1701 = vpow2.f32 %v1258_v24 }
 0x14e   :  { %v1678_v33 = vpop.eup %1677  ;;  %1086 = vst [vmem:[%s2334_s3 + $0xb0] sm:$0xff] %v1676_v31  ;;  %1703 = vpow2.f32 %v1229_v27 }
 0x14f   :  { %v1680_v34 = vpop.eup %1679  ;;  %1118 = vst [vmem:[%s2334_s3 + $0x1b0] sm:$0xff] %v1678_v33  ;;  %1705 = vpow2.f32 %v1261_v29 }
 0x150   :  { %v1682_v35 = vpop.eup %1681  ;;  %v897_v36 = vadd.f32 1.0, %v1680_v34  ;;  %1707 = vpow2.f32 %v1228_v13 }
 0x151   :  { %v1684_v37 = vpop.eup %1683  ;;  %v929_v38 = vadd.f32 1.0, %v1682_v35  ;;  %1709 = vpow2.f32 %v1260_v32 }
 0x152   :  { %v1686_v39 = vpop.eup %1685  ;;  %1711 = vrcp.f32 %v897_v36  ;;  %v896_v40 = vadd.f32 1.0, %v1684_v37 }
 0x153   :  { %v1688_v41 = vpop.eup %1687  ;;  %1713 = vrcp.f32 %v929_v38  ;;  %v928_v42 = vadd.f32 1.0, %v1686_v39 }
 0x154   :  { %v1690_v43 = vpop.eup %1689  ;;  %1715 = vrcp.f32 %v896_v40  ;;  %v899_v44 = vadd.f32 1.0, %v1688_v41 }
 0x155   :  { %v1692_v45 = vpop.eup %1691  ;;  %1717 = vrcp.f32 %v928_v42  ;;  %v931_v46 = vadd.f32 1.0, %v1690_v43 }
 0x156   :  { %v1694_v47 = vpop.eup %1693  ;;  %1719 = vrcp.f32 %v899_v44  ;;  %v898_v48 = vadd.f32 1.0, %v1692_v45 }
 0x157   :  { %v1696_v49 = vpop.eup %1695  ;;  %1721 = vrcp.f32 %v931_v46  ;;  %v930_v50 = vadd.f32 1.0, %v1694_v47 }
 0x158   :  { %v1698_v51 = vpop.eup %1697  ;;  %1723 = vrcp.f32 %v898_v48  ;;  %v901_v52 = vadd.f32 1.0, %v1696_v49 }
 0x159   :  { %v1700_v53 = vpop.eup %1699  ;;  %1725 = vrcp.f32 %v930_v50  ;;  %v933_v54 = vadd.f32 1.0, %v1698_v51 }
 0x15a   :  { %v1702_v55 = vpop.eup %1701  ;;  %1727 = vrcp.f32 %v901_v52  ;;  %v900_v56 = vadd.f32 1.0, %v1700_v53 }
 0x15b   :  { %v1704_v57 = vpop.eup %1703  ;;  %1729 = vrcp.f32 %v933_v54  ;;  %v932_v58 = vadd.f32 1.0, %v1702_v55 }
 0x15c   :  { %v1706_v59 = vpop.eup %1705  ;;  %1731 = vrcp.f32 %v900_v56  ;;  %v903_v60 = vadd.f32 1.0, %v1704_v57 }
 0x15d   :  { %v1708_v61 = vpop.eup %1707  ;;  %1733 = vrcp.f32 %v932_v58  ;;  %v935_v62 = vadd.f32 1.0, %v1706_v59 }
 0x15e   :  { %v1710_v63 = vpop.eup %1709  ;;  %1735 = vrcp.f32 %v903_v60  ;;  %v902_v0 = vadd.f32 1.0, %v1708_v61 }
 0x15f   :  { %v1712_v1 = vpop.eup %1711  ;;  %1737 = vrcp.f32 %v935_v62  ;;  %v934_v2 = vadd.f32 1.0, %v1710_v63 }
 0x160   :  { %v1714_v3 = vpop.eup %1713  ;;  %1089 = vst [vmem:[%s2334_s3 + $0xc8] sm:$0xff] %v1712_v1  ;;  %1739 = vrcp.f32 %v902_v0 }
 0x161   :  { %v1716_v4 = vpop.eup %1715  ;;  %1121 = vst [vmem:[%s2334_s3 + $0x1c8] sm:$0xff] %v1714_v3  ;;  %1741 = vrcp.f32 %v934_v2 }
 0x162   :  { %v1718_v5 = vpop.eup %1717  ;;  %1088 = vst [vmem:[%s2334_s3 + $0xc0] sm:$0xff] %v1716_v4 }
 0x163   :  { %v1720_v6 = vpop.eup %1719  ;;  %1120 = vst [vmem:[%s2334_s3 + $0x1c0] sm:$0xff] %v1718_v5 }
 0x164   :  { %v1722_v7 = vpop.eup %1721  ;;  %1091 = vst [vmem:[%s2334_s3 + $0xd8] sm:$0xff] %v1720_v6 }
 0x165   :  { %v1724_v8 = vpop.eup %1723  ;;  %1123 = vst [vmem:[%s2334_s3 + $0x1d8] sm:$0xff] %v1722_v7 }
 0x166   :  { %v1726_v9 = vpop.eup %1725  ;;  %1090 = vst [vmem:[%s2334_s3 + $0xd0] sm:$0xff] %v1724_v8 }
 0x167   :  { %v1728_v10 = vpop.eup %1727  ;;  %1122 = vst [vmem:[%s2334_s3 + $0x1d0] sm:$0xff] %v1726_v9 }
 0x168   :  { %v1730_v11 = vpop.eup %1729  ;;  %1093 = vst [vmem:[%s2334_s3 + $0xe8] sm:$0xff] %v1728_v10 }
 0x169   :  { %v1732_v12 = vpop.eup %1731  ;;  %1125 = vst [vmem:[%s2334_s3 + $0x1e8] sm:$0xff] %v1730_v11 }
 0x16a   :  { %v1734_v14 = vpop.eup %1733  ;;  %1092 = vst [vmem:[%s2334_s3 + $0xe0] sm:$0xff] %v1732_v12 }
 0x16b   :  { %v1736_v15 = vpop.eup %1735  ;;  %1124 = vst [vmem:[%s2334_s3 + $0x1e0] sm:$0xff] %v1734_v14 }
 0x16c   :  { %v1738_v16 = vpop.eup %1737  ;;  %1095 = vst [vmem:[%s2334_s3 + $0xf8] sm:$0xff] %v1736_v15 }
 0x16d   :  { %v1740_v17 = vpop.eup %1739  ;;  %1127 = vst [vmem:[%s2334_s3 + $0x1f8] sm:$0xff] %v1738_v16 }
 0x16e   :  { %v1742_v18 = vpop.eup %1741  ;;  %1094 = vst [vmem:[%s2334_s3 + $0xf0] sm:$0xff] %v1740_v17 }
 0x16f   :  { %1126 = vst [vmem:[%s2334_s3 + $0x1f0] sm:$0xff] %v1742_v18 }

</bundles_post_ra>
